<compile_context>
chip_gen: v5e
topology: v5e:2x2
jax: 0.10.0
libtpu: 0.0.40
codegen_flags: <defaults>
</compile_context>

<pallas_src>
import functools

import jax
import jax.numpy as jnp
import numpy as np
from jax.experimental import pallas as pl
from jax.experimental.pallas import tpu as pltpu

_LANES = 128


def _round_up(x, m):
    return ((x + m - 1) // m) * m


def _lane_fold(v, tn):
    """(tm, tn) -> (tm, 128): add the lane tiles together (VPU vreg adds)."""
    acc = v[:, 0:_LANES]
    for c in range(_LANES, tn, _LANES):
        acc = acc + v[:, c:c + _LANES]
    return acc


def _ahard_pair_kernel(xi_ref, xjt_ref, sqi_ref, sqj_ref, ti_ref, tj_ref,
                       out_ref,
                       pos_a, neg_a, pos_ie, neg_e, pos_ds, neg_ds,
                       *, alpha, beta, n_real, tm, tn):
    i = pl.program_id(0)          # anchor-row block    (parallel)
    j = pl.program_id(1)          # candidate-col block (arbitrary / reduction)

    @pl.when(j == 0)
    def _init():
        for acc in (pos_a, neg_a, pos_ie, neg_e, pos_ds, neg_ds):
            acc[...] = jnp.zeros(acc.shape, acc.dtype)

    xi = xi_ref[...]                                   # (tm, d_pad)  f32
    xjt = xjt_ref[...]                                 # (d_pad, tn)  f32
    # Gram block on the MXU (no in-kernel transpose: x^T comes from wrapper).
    g = jnp.dot(xi, xjt, preferred_element_type=jnp.float32)   # (tm, tn)

    dist2 = sqi_ref[...] + sqj_ref[...] - 2.0 * g      # (tm,1)+(1,tn)-(tm,tn)
    dist = jnp.sqrt(jnp.maximum(dist2, 1e-12))

    same = ti_ref[...] == tj_ref[...]                  # (tm, tn) bool

    rid = i * tm + jax.lax.broadcasted_iota(jnp.int32, (tm, 1), 0)
    cid = j * tn + jax.lax.broadcasted_iota(jnp.int32, (1, tn), 1)
    rvalid = rid < n_real                              # (tm, 1) bool
    valid = rvalid & (cid < n_real)                    # (tm, tn) bool
    pos_mask = same & (rid != cid) & valid             # positives (no diag)
    neg_mask = (~same) & valid                         # negatives

    # One exp + one sqrt + one approx reciprocal per element (EUP slots):
    #   exp(alpha*(1-d))  == exp(alpha)     * e*e     (alpha == 2*beta default)
    #   exp(beta*(d-0.8)) == exp(-0.8*beta) * (1/e)
    #   exp(beta*(1.1-d)) == exp(1.1*beta)  * e
    # Uniform constants are applied once per row at finalize (exp(alpha)
    # cancels inside a_lr entirely).
    e = jnp.exp(-beta * dist)
    if alpha == 2.0 * beta:
        ea = e * e
    else:
        ea = jnp.exp(alpha * (1.0 - dist))
    inv_e = pl.reciprocal(e, approx=True)

    def macc(acc_ref, mask, val):
        acc_ref[...] += _lane_fold(jnp.where(mask, val, 0.0), tn)

    macc(pos_a, pos_mask, ea)        # ~ sum exp(alpha*(1-d)) over positives
    macc(neg_a, neg_mask, ea)        # ~ sum exp(alpha*(1-d)) over negatives
    macc(pos_ie, pos_mask, inv_e)    # ~ sum exp(beta*d)      over positives
    macc(neg_e, neg_mask, e)         # ~ sum exp(-beta*d)     over negatives
    macc(pos_ds, pos_mask, dist)     # sum of positive distances
    macc(neg_ds, neg_mask, dist)     # sum of negative distances

    @pl.when(j == pl.num_programs(1) - 1)
    def _finalize():
        def rowsum(acc):             # single 128-lane XLU reduce, once.
            return jnp.sum(acc[...], axis=1, keepdims=True)   # (tm, 1)

        p = rowsum(pos_a)
        q = rowsum(neg_a)
        s_pos = rowsum(pos_ie)
        s_neg = rowsum(neg_e)
        pd = rowsum(pos_ds)
        nd = rowsum(neg_ds)

        a_lr = 1.0 - p / (p + q)     # exp(alpha) scale cancels here
        # pos_loss + neg_loss = log(exp(-0.8b)*s_pos) + log(exp(1.1b)*s_neg)
        #                     = log(s_pos) + log(s_neg) + 0.3*beta
        loss_rows = a_lr * (jnp.log(s_pos) + jnp.log(s_neg) + 0.3 * beta)
        loss_rows = jnp.where(rvalid, loss_rows, 0.0)   # padded anchors -> 0
        # Lane-dense (tm, 128) slab: lane 0 loss, 1 pos-dist sum, 2 neg-dist sum.
        lane = jax.lax.broadcasted_iota(jnp.int32, (tm, _LANES), 1)
        out_ref[...] = (jnp.where(lane == 0, loss_rows, 0.0)
                        + jnp.where(lane == 1, pd, 0.0)
                        + jnp.where(lane == 2, nd, 0.0))


def ahard_pair(inputs, targets, alpha=40.0, beta=20.0):
    """Returns (loss, accuracy, pos_d, neg_d) like AHardPair.forward."""
    inputs = inputs.astype(jnp.float32)
    n, d = inputs.shape

    # Always round n to 512 so tn=512 (or 1024) is selected, and tm=256 gives
    # grid dim 0 >= 2 (both v7x TensorCores busy under the "parallel" axis).
    n_pad = _round_up(n, 512)
    d_pad = _round_up(d, 128)
    tm = 256
    tn = 1024 if (n_pad % 1024 == 0 and d_pad <= 512) else 512

    x = jnp.zeros((n_pad, d_pad), jnp.float32).at[:n, :d].set(inputs)
    xt = x.T                                   # one-time transpose in XLA
    t = jnp.full((n_pad,), -1, jnp.int32).at[:n].set(targets.astype(jnp.int32))
    sq = jnp.sum(x * x, axis=1)                # squared norms, O(n*d) once
    sq_col = sq.reshape(n_pad, 1)
    sq_row = sq.reshape(1, n_pad)
    t_col = t.reshape(n_pad, 1)
    t_row = t.reshape(1, n_pad)

    kernel = functools.partial(_ahard_pair_kernel,
                               alpha=float(alpha), beta=float(beta),
                               n_real=n, tm=tm, tn=tn)

    grid0, grid1 = n_pad // tm, n_pad // tn
    grid = (grid0, grid1)

    # VMEM budget from the actual tile sizes (double-buffered inputs + output
    # + the six (tm,128) accumulators), clamped to a safe cross-generation cap.
    blk_bytes = 4 * (tm * d_pad + d_pad * tn + 2 * (tm + tn))
    vmem_est = 2 * blk_bytes + 2 * 4 * tm * _LANES + 6 * 4 * tm * _LANES
    vmem_limit = int(min(64 * 1024 * 1024,
                         max(32 * 1024 * 1024, 2 * vmem_est)))

    cost = pl.CostEstimate(
        flops=2 * n_pad * n_pad * d_pad + 32 * n_pad * n_pad,
        transcendentals=3 * n_pad * n_pad,
        bytes_accessed=4 * ((grid0 + grid1) * n_pad * d_pad
                            + n_pad * _LANES
                            + 4 * n_pad * max(grid0, grid1)))

    stats = pl.pallas_call(
        kernel,
        grid=grid,
        in_specs=[
            pl.BlockSpec((tm, d_pad), lambda i, j: (i, 0)),   # anchor rows of x
            pl.BlockSpec((d_pad, tn), lambda i, j: (0, j)),   # cols of x^T
            pl.BlockSpec((tm, 1), lambda i, j: (i, 0)),       # ||x_i||^2
            pl.BlockSpec((1, tn), lambda i, j: (0, j)),       # ||x_j||^2
            pl.BlockSpec((tm, 1), lambda i, j: (i, 0)),       # labels (column)
            pl.BlockSpec((1, tn), lambda i, j: (0, j)),       # labels (row)
        ],
        out_specs=pl.BlockSpec((tm, _LANES), lambda i, j: (i, 0)),
        out_shape=jax.ShapeDtypeStruct((n_pad, _LANES), jnp.float32),
        scratch_shapes=[pltpu.VMEM((tm, _LANES), jnp.float32)] * 6,
        compiler_params=pltpu.CompilerParams(
            dimension_semantics=("parallel", "arbitrary"),
            vmem_limit_bytes=vmem_limit),
        cost_estimate=cost,
    )(x, xt, sq_col, sq_row, t_col, t_row)

    # Pair counts computed analytically from the labels (kernel no longer
    # accumulates them), plus the tiny O(n) final reductions.
    tr = targets.astype(jnp.int32)
    same_cnt = jnp.sum(tr[:, None] == tr[None, :], axis=1)   # includes self
    total_pos = jnp.sum(same_cnt - 1)
    total_neg = n * n - jnp.sum(same_cnt)

    loss = jnp.sum(stats[:, 0]) / n
    pos_d = jnp.sum(stats[:, 1]) / total_pos
    neg_d = jnp.sum(stats[:, 2]) / total_neg
    # TODO(synk): reference's acc_num is never incremented and its per-row
    # debug print (i % 37 == 0) is a side effect -- both intentionally omitted.
    accuracy = 0.0
    return loss, accuracy, pos_d, neg_d


def _numpy_reference(x, t, alpha=40.0, beta=20.0):
    x = np.asarray(x, np.float64)
    t = np.asarray(t)
    n = x.shape[0]
    sq = (x ** 2).sum(1, keepdims=True)
    d2 = sq + sq.T - 2.0 * (x @ x.T)
    dist = np.sqrt(np.clip(d2, 1e-12, None))
    same = t[:, None] == t[None, :]
    eye = np.eye(n, dtype=bool)
    pos = same & ~eye
    neg = ~same
    loss_rows = []
    for i in range(n):
        pp = dist[i][pos[i]]
        nn_ = dist[i][neg[i]]
        p_logit = np.sum(np.exp(alpha * (1.0 - pp)))
        n_logit = np.sum(np.exp(alpha * (1.0 - nn_)))
        a_lr = 1.0 - p_logit / (p_logit + n_logit)
        pos_loss = np.log(np.sum(np.exp(beta * (pp - 0.8))))
        neg_loss = np.log(np.sum(np.exp(beta * (1.1 - nn_))))
        loss_rows.append(a_lr * (pos_loss + neg_loss))
    return (np.mean(loss_rows), 0.0, dist[pos].mean(), dist[neg].mean())


if __name__ == "__main__":
    key = jax.random.PRNGKey(0)
    n, d = 8, 32
    x = jax.random.normal(key, (n, d), dtype=jnp.float32)
    # This loss assumes roughly unit-norm embeddings (distances in [0, 2]);
    # unnormalized inputs overflow exp() in the reference PyTorch code too.
    x = x / jnp.linalg.norm(x, axis=1, keepdims=True)
    targets = jnp.array([0, 0, 1, 1, 2, 2, 3, 3], dtype=jnp.int32)  # 4 classes x 2

    loss, acc, pos_d, neg_d = ahard_pair(x, targets)
    jax.block_until_ready(loss)

    r_loss, r_acc, r_pos, r_neg = _numpy_reference(np.asarray(x),
                                                   np.asarray(targets))
    assert np.allclose(float(loss), r_loss, rtol=1e-2, atol=1e-3), \
        (float(loss), r_loss)
    assert np.allclose(float(pos_d), r_pos, rtol=1e-2, atol=1e-3), \
        (float(pos_d), r_pos)
    assert np.allclose(float(neg_d), r_neg, rtol=1e-2, atol=1e-3), \
        (float(neg_d), r_neg)
    assert acc == r_acc

    print("KERNEL_OK")
</pallas_src>

<mosaic_0001>
module attributes {stable_mosaic.version = 11 : i64} {
  func.func @_ahard_pair_kernel(%arg0: i32, %arg1: i32, %arg2: memref<256x128xf32, #tpu.memory_space<vmem>>, %arg3: memref<128x512xf32, #tpu.memory_space<vmem>>, %arg4: memref<256x1xf32, #tpu.memory_space<vmem>>, %arg5: memref<1x512xf32, #tpu.memory_space<vmem>>, %arg6: memref<256x1xi32, #tpu.memory_space<vmem>>, %arg7: memref<1x512xi32, #tpu.memory_space<vmem>>, %arg8: memref<256x128xf32, #tpu.memory_space<vmem>>, %arg9: memref<256x128xf32, #tpu.memory_space<vmem>>, %arg10: memref<256x128xf32, #tpu.memory_space<vmem>>, %arg11: memref<256x128xf32, #tpu.memory_space<vmem>>, %arg12: memref<256x128xf32, #tpu.memory_space<vmem>>, %arg13: memref<256x128xf32, #tpu.memory_space<vmem>>, %arg14: memref<256x128xf32, #tpu.memory_space<vmem>>) attributes {dimension_semantics = [#tpu.dimension_semantics<parallel>, #tpu.dimension_semantics<arbitrary>], iteration_bounds = array<i64: 2, 1>, scalar_prefetch = 0 : i64, scratch_operands = 6 : i64, tpu.core_type = #tpu.core_type<tc>, window_params = [{transform_indices = @transform_0, window_bounds = array<i64: 256, 128>}, {transform_indices = @transform_1, window_bounds = array<i64: 128, 512>}, {transform_indices = @transform_2, window_bounds = array<i64: 256, 1>}, {transform_indices = @transform_3, window_bounds = array<i64: 1, 512>}, {transform_indices = @transform_4, window_bounds = array<i64: 256, 1>}, {transform_indices = @transform_5, window_bounds = array<i64: 1, 512>}, {transform_indices = @transform_6, window_bounds = array<i64: 256, 128>}]} {
    %c0_i32 = arith.constant 0 : i32
    %0 = arith.cmpi eq, %arg1, %c0_i32 : i32
    %1 = arith.extui %0 : i1 to i32
    %c0_i32_0 = arith.constant 0 : i32
    %2 = arith.cmpi ne, %1, %c0_i32_0 : i32
    scf.if %2 {
      %cst_49 = arith.constant 0.000000e+00 : f32
      %124 = vector.broadcast %cst_49 : f32 to vector<256x128xf32>
      %c0_50 = arith.constant 0 : index
      %c0_51 = arith.constant 0 : index
      %125 = vector.load %arg9[%c0_50, %c0_51] : memref<256x128xf32, #tpu.memory_space<vmem>>, vector<256x128xf32>
      tpu.vector_store %arg9[%c0_50, %c0_51], %124 {strides = array<i32>} : memref<256x128xf32, #tpu.memory_space<vmem>>, vector<256x128xf32>,
      %cst_52 = arith.constant 0.000000e+00 : f32
      %126 = vector.broadcast %cst_52 : f32 to vector<256x128xf32>
      %c0_53 = arith.constant 0 : index
      %c0_54 = arith.constant 0 : index
      %127 = vector.load %arg10[%c0_53, %c0_54] : memref<256x128xf32, #tpu.memory_space<vmem>>, vector<256x128xf32>
      tpu.vector_store %arg10[%c0_53, %c0_54], %126 {strides = array<i32>} : memref<256x128xf32, #tpu.memory_space<vmem>>, vector<256x128xf32>,
      %cst_55 = arith.constant 0.000000e+00 : f32
      %128 = vector.broadcast %cst_55 : f32 to vector<256x128xf32>
      %c0_56 = arith.constant 0 : index
      %c0_57 = arith.constant 0 : index
      %129 = vector.load %arg11[%c0_56, %c0_57] : memref<256x128xf32, #tpu.memory_space<vmem>>, vector<256x128xf32>
      tpu.vector_store %arg11[%c0_56, %c0_57], %128 {strides = array<i32>} : memref<256x128xf32, #tpu.memory_space<vmem>>, vector<256x128xf32>,
      %cst_58 = arith.constant 0.000000e+00 : f32
      %130 = vector.broadcast %cst_58 : f32 to vector<256x128xf32>
      %c0_59 = arith.constant 0 : index
      %c0_60 = arith.constant 0 : index
      %131 = vector.load %arg12[%c0_59, %c0_60] : memref<256x128xf32, #tpu.memory_space<vmem>>, vector<256x128xf32>
      tpu.vector_store %arg12[%c0_59, %c0_60], %130 {strides = array<i32>} : memref<256x128xf32, #tpu.memory_space<vmem>>, vector<256x128xf32>,
      %cst_61 = arith.constant 0.000000e+00 : f32
      %132 = vector.broadcast %cst_61 : f32 to vector<256x128xf32>
      %c0_62 = arith.constant 0 : index
      %c0_63 = arith.constant 0 : index
      %133 = vector.load %arg13[%c0_62, %c0_63] : memref<256x128xf32, #tpu.memory_space<vmem>>, vector<256x128xf32>
      tpu.vector_store %arg13[%c0_62, %c0_63], %132 {strides = array<i32>} : memref<256x128xf32, #tpu.memory_space<vmem>>, vector<256x128xf32>,
      %cst_64 = arith.constant 0.000000e+00 : f32
      %134 = vector.broadcast %cst_64 : f32 to vector<256x128xf32>
      %c0_65 = arith.constant 0 : index
      %c0_66 = arith.constant 0 : index
      %135 = vector.load %arg14[%c0_65, %c0_66] : memref<256x128xf32, #tpu.memory_space<vmem>>, vector<256x128xf32>
      tpu.vector_store %arg14[%c0_65, %c0_66], %134 {strides = array<i32>} : memref<256x128xf32, #tpu.memory_space<vmem>>, vector<256x128xf32>,
    } else {
    }
    %c0 = arith.constant 0 : index
    %c0_1 = arith.constant 0 : index
    %3 = vector.load %arg2[%c0, %c0_1] : memref<256x128xf32, #tpu.memory_space<vmem>>, vector<256x128xf32>
    %c0_2 = arith.constant 0 : index
    %c0_3 = arith.constant 0 : index
    %4 = vector.load %arg3[%c0_2, %c0_3] : memref<128x512xf32, #tpu.memory_space<vmem>>, vector<128x512xf32>
    %cst = arith.constant dense<0.000000e+00> : vector<256x512xf32>
    %5 = tpu.matmul %3, %4, %cst {dimension_numbers = #tpu.dot_dimension_numbers<[1], [0], [0], [1], [0, 0, 1, 1], [], []>} : vector<256x128xf32>, vector<128x512xf32>, vector<256x512xf32> -> vector<256x512xf32>
    %c0_4 = arith.constant 0 : index
    %c0_5 = arith.constant 0 : index
    %6 = vector.load %arg4[%c0_4, %c0_5] : memref<256x1xf32, #tpu.memory_space<vmem>>, vector<256x1xf32>
    %c0_6 = arith.constant 0 : index
    %c0_7 = arith.constant 0 : index
    %7 = vector.load %arg5[%c0_6, %c0_7] : memref<1x512xf32, #tpu.memory_space<vmem>>, vector<1x512xf32>
    %8 = vector.broadcast %6 : vector<256x1xf32> to vector<256x512xf32>
    %9 = vector.broadcast %7 : vector<1x512xf32> to vector<256x512xf32>
    %10 = arith.addf %8, %9 : vector<256x512xf32>
    %cst_8 = arith.constant 2.000000e+00 : f32
    %11 = vector.broadcast %cst_8 : f32 to vector<256x512xf32>
    %12 = arith.mulf %11, %5 : vector<256x512xf32>
    %13 = arith.subf %10, %12 : vector<256x512xf32>
    %cst_9 = arith.constant 9.99999996E-13 : f32
    %14 = vector.broadcast %cst_9 : f32 to vector<256x512xf32>
    %15 = arith.maximumf %13, %14 : vector<256x512xf32>
    %16 = math.sqrt %15 : vector<256x512xf32>
    %c0_10 = arith.constant 0 : index
    %c0_11 = arith.constant 0 : index
    %17 = vector.load %arg6[%c0_10, %c0_11] : memref<256x1xi32, #tpu.memory_space<vmem>>, vector<256x1xi32>
    %c0_12 = arith.constant 0 : index
    %c0_13 = arith.constant 0 : index
    %18 = vector.load %arg7[%c0_12, %c0_13] : memref<1x512xi32, #tpu.memory_space<vmem>>, vector<1x512xi32>
    %19 = vector.broadcast %17 : vector<256x1xi32> to vector<256x512xi32>
    %20 = vector.broadcast %18 : vector<1x512xi32> to vector<256x512xi32>
    %21 = arith.cmpi eq, %19, %20 : vector<256x512xi32>
    %c256_i32 = arith.constant 256 : i32
    %22 = arith.muli %arg0, %c256_i32 : i32
    %23 = tpu.iota {dimensions = array<i32: 0>} : vector<256x1xi32>
    %24 = vector.broadcast %22 : i32 to vector<256x1xi32>
    %25 = arith.addi %24, %23 : vector<256x1xi32>
    %c512_i32 = arith.constant 512 : i32
    %26 = arith.muli %arg1, %c512_i32 : i32
    %27 = tpu.iota {dimensions = array<i32: 1>} : vector<1x512xi32>
    %28 = vector.broadcast %26 : i32 to vector<1x512xi32>
    %29 = arith.addi %28, %27 : vector<1x512xi32>
    %c8_i32 = arith.constant 8 : i32
    %30 = vector.broadcast %c8_i32 : i32 to vector<256x1xi32>
    %31 = arith.cmpi slt, %25, %30 : vector<256x1xi32>
    %c8_i32_14 = arith.constant 8 : i32
    %32 = vector.broadcast %c8_i32_14 : i32 to vector<1x512xi32>
    %33 = arith.cmpi slt, %29, %32 : vector<1x512xi32>
    %34 = vector.broadcast %31 : vector<256x1xi1> to vector<256x512xi1>
    %35 = vector.broadcast %33 : vector<1x512xi1> to vector<256x512xi1>
    %36 = arith.andi %34, %35 : vector<256x512xi1>
    %37 = vector.broadcast %25 : vector<256x1xi32> to vector<256x512xi32>
    %38 = vector.broadcast %29 : vector<1x512xi32> to vector<256x512xi32>
    %39 = arith.cmpi ne, %37, %38 : vector<256x512xi32>
    %40 = arith.andi %21, %39 : vector<256x512xi1>
    %41 = arith.andi %40, %36 : vector<256x512xi1>
    %cst_15 = arith.constant dense<true> : vector<256x512xi1>
    %42 = arith.xori %21, %cst_15 : vector<256x512xi1>
    %43 = arith.andi %42, %36 : vector<256x512xi1>
    %cst_16 = arith.constant -2.000000e+01 : f32
    %44 = vector.broadcast %cst_16 : f32 to vector<256x512xf32>
    %45 = arith.mulf %44, %16 : vector<256x512xf32>
    %46 = math.exp %45 : vector<256x512xf32>
    %47 = arith.mulf %46, %46 : vector<256x512xf32>
    %48 = tpu.reciprocal %46 {approx = true} : vector<256x512xf32> -> vector<256x512xf32>
    %c0_17 = arith.constant 0 : index
    %c0_18 = arith.constant 0 : index
    %49 = vector.load %arg9[%c0_17, %c0_18] : memref<256x128xf32, #tpu.memory_space<vmem>>, vector<256x128xf32>
    %cst_19 = arith.constant 0.000000e+00 : f32
    %50 = vector.broadcast %cst_19 : f32 to vector<256x512xf32>
    %51 = arith.select %41, %47, %50 : vector<256x512xi1>, vector<256x512xf32>
    %52 = vector.extract_strided_slice %51 {offsets = [0, 0], sizes = [256, 128], strides = [1, 1]} : vector<256x512xf32> to vector<256x128xf32>
    %53 = vector.extract_strided_slice %51 {offsets = [0, 128], sizes = [256, 128], strides = [1, 1]} : vector<256x512xf32> to vector<256x128xf32>
    %54 = arith.addf %52, %53 : vector<256x128xf32>
    %55 = vector.extract_strided_slice %51 {offsets = [0, 256], sizes = [256, 128], strides = [1, 1]} : vector<256x512xf32> to vector<256x128xf32>
    %56 = arith.addf %54, %55 : vector<256x128xf32>
    %57 = vector.extract_strided_slice %51 {offsets = [0, 384], sizes = [256, 128], strides = [1, 1]} : vector<256x512xf32> to vector<256x128xf32>
    %58 = arith.addf %56, %57 : vector<256x128xf32>
    %59 = arith.addf %49, %58 : vector<256x128xf32>
    %c0_20 = arith.constant 0 : index
    %c0_21 = arith.constant 0 : index
    %60 = vector.load %arg9[%c0_20, %c0_21] : memref<256x128xf32, #tpu.memory_space<vmem>>, vector<256x128xf32>
    tpu.vector_store %arg9[%c0_20, %c0_21], %59 {strides = array<i32>} : memref<256x128xf32, #tpu.memory_space<vmem>>, vector<256x128xf32>,
    %c0_22 = arith.constant 0 : index
    %c0_23 = arith.constant 0 : index
    %61 = vector.load %arg10[%c0_22, %c0_23] : memref<256x128xf32, #tpu.memory_space<vmem>>, vector<256x128xf32>
    %cst_24 = arith.constant 0.000000e+00 : f32
    %62 = vector.broadcast %cst_24 : f32 to vector<256x512xf32>
    %63 = arith.select %43, %47, %62 : vector<256x512xi1>, vector<256x512xf32>
    %64 = vector.extract_strided_slice %63 {offsets = [0, 0], sizes = [256, 128], strides = [1, 1]} : vector<256x512xf32> to vector<256x128xf32>
    %65 = vector.extract_strided_slice %63 {offsets = [0, 128], sizes = [256, 128], strides = [1, 1]} : vector<256x512xf32> to vector<256x128xf32>
    %66 = arith.addf %64, %65 : vector<256x128xf32>
    %67 = vector.extract_strided_slice %63 {offsets = [0, 256], sizes = [256, 128], strides = [1, 1]} : vector<256x512xf32> to vector<256x128xf32>
    %68 = arith.addf %66, %67 : vector<256x128xf32>
    %69 = vector.extract_strided_slice %63 {offsets = [0, 384], sizes = [256, 128], strides = [1, 1]} : vector<256x512xf32> to vector<256x128xf32>
    %70 = arith.addf %68, %69 : vector<256x128xf32>
    %71 = arith.addf %61, %70 : vector<256x128xf32>
    %c0_25 = arith.constant 0 : index
    %c0_26 = arith.constant 0 : index
    %72 = vector.load %arg10[%c0_25, %c0_26] : memref<256x128xf32, #tpu.memory_space<vmem>>, vector<256x128xf32>
    tpu.vector_store %arg10[%c0_25, %c0_26], %71 {strides = array<i32>} : memref<256x128xf32, #tpu.memory_space<vmem>>, vector<256x128xf32>,
    %c0_27 = arith.constant 0 : index
    %c0_28 = arith.constant 0 : index
    %73 = vector.load %arg11[%c0_27, %c0_28] : memref<256x128xf32, #tpu.memory_space<vmem>>, vector<256x128xf32>
    %cst_29 = arith.constant 0.000000e+00 : f32
    %74 = vector.broadcast %cst_29 : f32 to vector<256x512xf32>
    %75 = arith.select %41, %48, %74 : vector<256x512xi1>, vector<256x512xf32>
    %76 = vector.extract_strided_slice %75 {offsets = [0, 0], sizes = [256, 128], strides = [1, 1]} : vector<256x512xf32> to vector<256x128xf32>
    %77 = vector.extract_strided_slice %75 {offsets = [0, 128], sizes = [256, 128], strides = [1, 1]} : vector<256x512xf32> to vector<256x128xf32>
    %78 = arith.addf %76, %77 : vector<256x128xf32>
    %79 = vector.extract_strided_slice %75 {offsets = [0, 256], sizes = [256, 128], strides = [1, 1]} : vector<256x512xf32> to vector<256x128xf32>
    %80 = arith.addf %78, %79 : vector<256x128xf32>
    %81 = vector.extract_strided_slice %75 {offsets = [0, 384], sizes = [256, 128], strides = [1, 1]} : vector<256x512xf32> to vector<256x128xf32>
    %82 = arith.addf %80, %81 : vector<256x128xf32>
    %83 = arith.addf %73, %82 : vector<256x128xf32>
    %c0_30 = arith.constant 0 : index
    %c0_31 = arith.constant 0 : index
    %84 = vector.load %arg11[%c0_30, %c0_31] : memref<256x128xf32, #tpu.memory_space<vmem>>, vector<256x128xf32>
    tpu.vector_store %arg11[%c0_30, %c0_31], %83 {strides = array<i32>} : memref<256x128xf32, #tpu.memory_space<vmem>>, vector<256x128xf32>,
    %c0_32 = arith.constant 0 : index
    %c0_33 = arith.constant 0 : index
    %85 = vector.load %arg12[%c0_32, %c0_33] : memref<256x128xf32, #tpu.memory_space<vmem>>, vector<256x128xf32>
    %cst_34 = arith.constant 0.000000e+00 : f32
    %86 = vector.broadcast %cst_34 : f32 to vector<256x512xf32>
    %87 = arith.select %43, %46, %86 : vector<256x512xi1>, vector<256x512xf32>
    %88 = vector.extract_strided_slice %87 {offsets = [0, 0], sizes = [256, 128], strides = [1, 1]} : vector<256x512xf32> to vector<256x128xf32>
    %89 = vector.extract_strided_slice %87 {offsets = [0, 128], sizes = [256, 128], strides = [1, 1]} : vector<256x512xf32> to vector<256x128xf32>
    %90 = arith.addf %88, %89 : vector<256x128xf32>
    %91 = vector.extract_strided_slice %87 {offsets = [0, 256], sizes = [256, 128], strides = [1, 1]} : vector<256x512xf32> to vector<256x128xf32>
    %92 = arith.addf %90, %91 : vector<256x128xf32>
    %93 = vector.extract_strided_slice %87 {offsets = [0, 384], sizes = [256, 128], strides = [1, 1]} : vector<256x512xf32> to vector<256x128xf32>
    %94 = arith.addf %92, %93 : vector<256x128xf32>
    %95 = arith.addf %85, %94 : vector<256x128xf32>
    %c0_35 = arith.constant 0 : index
    %c0_36 = arith.constant 0 : index
    %96 = vector.load %arg12[%c0_35, %c0_36] : memref<256x128xf32, #tpu.memory_space<vmem>>, vector<256x128xf32>
    tpu.vector_store %arg12[%c0_35, %c0_36], %95 {strides = array<i32>} : memref<256x128xf32, #tpu.memory_space<vmem>>, vector<256x128xf32>,
    %c0_37 = arith.constant 0 : index
    %c0_38 = arith.constant 0 : index
    %97 = vector.load %arg13[%c0_37, %c0_38] : memref<256x128xf32, #tpu.memory_space<vmem>>, vector<256x128xf32>
    %cst_39 = arith.constant 0.000000e+00 : f32
    %98 = vector.broadcast %cst_39 : f32 to vector<256x512xf32>
    %99 = arith.select %41, %16, %98 : vector<256x512xi1>, vector<256x512xf32>
    %100 = vector.extract_strided_slice %99 {offsets = [0, 0], sizes = [256, 128], strides = [1, 1]} : vector<256x512xf32> to vector<256x128xf32>
    %101 = vector.extract_strided_slice %99 {offsets = [0, 128], sizes = [256, 128], strides = [1, 1]} : vector<256x512xf32> to vector<256x128xf32>
    %102 = arith.addf %100, %101 : vector<256x128xf32>
    %103 = vector.extract_strided_slice %99 {offsets = [0, 256], sizes = [256, 128], strides = [1, 1]} : vector<256x512xf32> to vector<256x128xf32>
    %104 = arith.addf %102, %103 : vector<256x128xf32>
    %105 = vector.extract_strided_slice %99 {offsets = [0, 384], sizes = [256, 128], strides = [1, 1]} : vector<256x512xf32> to vector<256x128xf32>
    %106 = arith.addf %104, %105 : vector<256x128xf32>
    %107 = arith.addf %97, %106 : vector<256x128xf32>
    %c0_40 = arith.constant 0 : index
    %c0_41 = arith.constant 0 : index
    %108 = vector.load %arg13[%c0_40, %c0_41] : memref<256x128xf32, #tpu.memory_space<vmem>>, vector<256x128xf32>
    tpu.vector_store %arg13[%c0_40, %c0_41], %107 {strides = array<i32>} : memref<256x128xf32, #tpu.memory_space<vmem>>, vector<256x128xf32>,
    %c0_42 = arith.constant 0 : index
    %c0_43 = arith.constant 0 : index
    %109 = vector.load %arg14[%c0_42, %c0_43] : memref<256x128xf32, #tpu.memory_space<vmem>>, vector<256x128xf32>
    %cst_44 = arith.constant 0.000000e+00 : f32
    %110 = vector.broadcast %cst_44 : f32 to vector<256x512xf32>
    %111 = arith.select %43, %16, %110 : vector<256x512xi1>, vector<256x512xf32>
    %112 = vector.extract_strided_slice %111 {offsets = [0, 0], sizes = [256, 128], strides = [1, 1]} : vector<256x512xf32> to vector<256x128xf32>
    %113 = vector.extract_strided_slice %111 {offsets = [0, 128], sizes = [256, 128], strides = [1, 1]} : vector<256x512xf32> to vector<256x128xf32>
    %114 = arith.addf %112, %113 : vector<256x128xf32>
    %115 = vector.extract_strided_slice %111 {offsets = [0, 256], sizes = [256, 128], strides = [1, 1]} : vector<256x512xf32> to vector<256x128xf32>
    %116 = arith.addf %114, %115 : vector<256x128xf32>
    %117 = vector.extract_strided_slice %111 {offsets = [0, 384], sizes = [256, 128], strides = [1, 1]} : vector<256x512xf32> to vector<256x128xf32>
    %118 = arith.addf %116, %117 : vector<256x128xf32>
    %119 = arith.addf %109, %118 : vector<256x128xf32>
    %c0_45 = arith.constant 0 : index
    %c0_46 = arith.constant 0 : index
    %120 = vector.load %arg14[%c0_45, %c0_46] : memref<256x128xf32, #tpu.memory_space<vmem>>, vector<256x128xf32>
    tpu.vector_store %arg14[%c0_45, %c0_46], %119 {strides = array<i32>} : memref<256x128xf32, #tpu.memory_space<vmem>>, vector<256x128xf32>,
    %c0_i32_47 = arith.constant 0 : i32
    %121 = arith.cmpi eq, %arg1, %c0_i32_47 : i32
    %122 = arith.extui %121 : i1 to i32
    %c0_i32_48 = arith.constant 0 : i32
    %123 = arith.cmpi ne, %122, %c0_i32_48 : i32
    scf.if %123 {
      %c0_49 = arith.constant 0 : index
      %c0_50 = arith.constant 0 : index
      %124 = vector.load %arg9[%c0_49, %c0_50] : memref<256x128xf32, #tpu.memory_space<vmem>>, vector<256x128xf32>
      %cst_51 = arith.constant dense<0.000000e+00> : vector<256xf32>
      %125 = vector.multi_reduction <add>, %124, %cst_51 [1] : vector<256x128xf32> to vector<256xf32>
      %126 = vector.shape_cast %125 : vector<256xf32> to vector<256x1xf32>
      %c0_52 = arith.constant 0 : index
      %c0_53 = arith.constant 0 : index
      %127 = vector.load %arg10[%c0_52, %c0_53] : memref<256x128xf32, #tpu.memory_space<vmem>>, vector<256x128xf32>
      %cst_54 = arith.constant dense<0.000000e+00> : vector<256xf32>
      %128 = vector.multi_reduction <add>, %127, %cst_54 [1] : vector<256x128xf32> to vector<256xf32>
      %129 = vector.shape_cast %128 : vector<256xf32> to vector<256x1xf32>
      %c0_55 = arith.constant 0 : index
      %c0_56 = arith.constant 0 : index
      %130 = vector.load %arg11[%c0_55, %c0_56] : memref<256x128xf32, #tpu.memory_space<vmem>>, vector<256x128xf32>
      %cst_57 = arith.constant dense<0.000000e+00> : vector<256xf32>
      %131 = vector.multi_reduction <add>, %130, %cst_57 [1] : vector<256x128xf32> to vector<256xf32>
      %132 = vector.shape_cast %131 : vector<256xf32> to vector<256x1xf32>
      %c0_58 = arith.constant 0 : index
      %c0_59 = arith.constant 0 : index
      %133 = vector.load %arg12[%c0_58, %c0_59] : memref<256x128xf32, #tpu.memory_space<vmem>>, vector<256x128xf32>
      %cst_60 = arith.constant dense<0.000000e+00> : vector<256xf32>
      %134 = vector.multi_reduction <add>, %133, %cst_60 [1] : vector<256x128xf32> to vector<256xf32>
      %135 = vector.shape_cast %134 : vector<256xf32> to vector<256x1xf32>
      %c0_61 = arith.constant 0 : index
      %c0_62 = arith.constant 0 : index
      %136 = vector.load %arg13[%c0_61, %c0_62] : memref<256x128xf32, #tpu.memory_space<vmem>>, vector<256x128xf32>
      %cst_63 = arith.constant dense<0.000000e+00> : vector<256xf32>
      %137 = vector.multi_reduction <add>, %136, %cst_63 [1] : vector<256x128xf32> to vector<256xf32>
      %138 = vector.shape_cast %137 : vector<256xf32> to vector<256x1xf32>
      %c0_64 = arith.constant 0 : index
      %c0_65 = arith.constant 0 : index
      %139 = vector.load %arg14[%c0_64, %c0_65] : memref<256x128xf32, #tpu.memory_space<vmem>>, vector<256x128xf32>
      %cst_66 = arith.constant dense<0.000000e+00> : vector<256xf32>
      %140 = vector.multi_reduction <add>, %139, %cst_66 [1] : vector<256x128xf32> to vector<256xf32>
      %141 = vector.shape_cast %140 : vector<256xf32> to vector<256x1xf32>
      %142 = arith.addf %126, %129 : vector<256x1xf32>
      %143 = arith.divf %126, %142 : vector<256x1xf32>
      %cst_67 = arith.constant 1.000000e+00 : f32
      %144 = vector.broadcast %cst_67 : f32 to vector<256x1xf32>
      %145 = arith.subf %144, %143 : vector<256x1xf32>
      %146 = math.log %132 : vector<256x1xf32>
      %147 = math.log %135 : vector<256x1xf32>
      %148 = arith.addf %146, %147 : vector<256x1xf32>
      %cst_68 = arith.constant 6.000000e+00 : f32
      %149 = vector.broadcast %cst_68 : f32 to vector<256x1xf32>
      %150 = arith.addf %148, %149 : vector<256x1xf32>
      %151 = arith.mulf %145, %150 : vector<256x1xf32>
      %cst_69 = arith.constant 0.000000e+00 : f32
      %152 = vector.broadcast %cst_69 : f32 to vector<256x1xf32>
      %153 = arith.select %31, %151, %152 : vector<256x1xi1>, vector<256x1xf32>
      %154 = tpu.iota {dimensions = array<i32: 1>} : vector<256x128xi32>
      %c0_i32_70 = arith.constant 0 : i32
      %155 = vector.broadcast %c0_i32_70 : i32 to vector<256x128xi32>
      %156 = arith.cmpi eq, %154, %155 : vector<256x128xi32>
      %cst_71 = arith.constant 0.000000e+00 : f32
      %157 = vector.shape_cast %153 : vector<256x1xf32> to vector<256x1xf32>
      %158 = vector.broadcast %157 : vector<256x1xf32> to vector<256x128xf32>
      %159 = vector.broadcast %cst_71 : f32 to vector<256x128xf32>
      %160 = arith.select %156, %158, %159 : vector<256x128xi1>, vector<256x128xf32>
      %c1_i32 = arith.constant 1 : i32
      %161 = vector.broadcast %c1_i32 : i32 to vector<256x128xi32>
      %162 = arith.cmpi eq, %154, %161 : vector<256x128xi32>
      %cst_72 = arith.constant 0.000000e+00 : f32
      %163 = vector.shape_cast %138 : vector<256x1xf32> to vector<256x1xf32>
      %164 = vector.broadcast %163 : vector<256x1xf32> to vector<256x128xf32>
      %165 = vector.broadcast %cst_72 : f32 to vector<256x128xf32>
      %166 = arith.select %162, %164, %165 : vector<256x128xi1>, vector<256x128xf32>
      %167 = arith.addf %160, %166 : vector<256x128xf32>
      %c2_i32 = arith.constant 2 : i32
      %168 = vector.broadcast %c2_i32 : i32 to vector<256x128xi32>
      %169 = arith.cmpi eq, %154, %168 : vector<256x128xi32>
      %cst_73 = arith.constant 0.000000e+00 : f32
      %170 = vector.shape_cast %141 : vector<256x1xf32> to vector<256x1xf32>
      %171 = vector.broadcast %170 : vector<256x1xf32> to vector<256x128xf32>
      %172 = vector.broadcast %cst_73 : f32 to vector<256x128xf32>
      %173 = arith.select %169, %171, %172 : vector<256x128xi1>, vector<256x128xf32>
      %174 = arith.addf %167, %173 : vector<256x128xf32>
      %c0_74 = arith.constant 0 : index
      %c0_75 = arith.constant 0 : index
      %175 = vector.load %arg8[%c0_74, %c0_75] : memref<256x128xf32, #tpu.memory_space<vmem>>, vector<256x128xf32>
      tpu.vector_store %arg8[%c0_74, %c0_75], %174 {strides = array<i32>} : memref<256x128xf32, #tpu.memory_space<vmem>>, vector<256x128xf32>,
    } else {
    }
    return
  }
  func.func @transform_0(%arg0: i32, %arg1: i32) -> (i32, i32) {
    %c0_i32 = arith.constant 0 : i32
    %c0_i32_0 = arith.constant 0 : i32
    return %arg0, %c0_i32 : i32, i32
  }
  func.func @transform_1(%arg0: i32, %arg1: i32) -> (i32, i32) {
    %c0_i32 = arith.constant 0 : i32
    %c0_i32_0 = arith.constant 0 : i32
    return %c0_i32, %arg1 : i32, i32
  }
  func.func @transform_2(%arg0: i32, %arg1: i32) -> (i32, i32) {
    %c0_i32 = arith.constant 0 : i32
    %c0_i32_0 = arith.constant 0 : i32
    return %arg0, %c0_i32 : i32, i32
  }
  func.func @transform_3(%arg0: i32, %arg1: i32) -> (i32, i32) {
    %c0_i32 = arith.constant 0 : i32
    %c0_i32_0 = arith.constant 0 : i32
    return %c0_i32, %arg1 : i32, i32
  }
  func.func @transform_4(%arg0: i32, %arg1: i32) -> (i32, i32) {
    %c0_i32 = arith.constant 0 : i32
    %c0_i32_0 = arith.constant 0 : i32
    return %arg0, %c0_i32 : i32, i32
  }
  func.func @transform_5(%arg0: i32, %arg1: i32) -> (i32, i32) {
    %c0_i32 = arith.constant 0 : i32
    %c0_i32_0 = arith.constant 0 : i32
    return %c0_i32, %arg1 : i32, i32
  }
  func.func @transform_6(%arg0: i32, %arg1: i32) -> (i32, i32) {
    %c0_i32 = arith.constant 0 : i32
    %c0_i32_0 = arith.constant 0 : i32
    return %arg0, %c0_i32 : i32, i32
  }
}

</mosaic_0001>

<bundles_post_ra>
// kernel: tpu_custom_call.1
= control target key start
LH: loop header
LB: loop body
LE: loop exit
PB: predicated region body
PF: predicated region fallthrough
CT: control target
= control target key end

     0   :  { %11 = vsyncpa [#allocation9], 0  ;;  %s14863_s0 = inlined_call_operand.vmem [shape: f32[512,128], index: 0, kind: input, shape index: {}]   ;;  %s14864_s1 = inlined_call_operand.vmem [shape: f32[128,512], index: 1, kind: input, shape index: {}]   ;;  %s14865_s2 = inlined_call_operand.vmem [shape: f32[512,1], index: 2, kind: input, shape index: {}]   ;;  %s14866_s3 = inlined_call_operand.vmem [shape: f32[1,512], index: 3, kind: input, shape index: {}]   ;;  %s14867_s4 = inlined_call_operand.vmem [shape: s32[512,1], index: 4, kind: input, shape index: {}]   ;;  %s14868_s5 = inlined_call_operand.vmem [shape: s32[1,512], index: 5, kind: input, shape index: {}]   ;;  %s14869_s6 = inlined_call_operand.hbm [shape: f32[512,128], index: 6, kind: output, shape index: {}]  }
   0x1   :  { %13 = vsyncpa [#allocation9 + $0x1], 0  ;;  %s9480_s21 = smov 0   ;;  %s9482_s22 = smov 0  }
   0x2   :  { %s9484_s23 = smov 0   ;;  %s9486_s24 = smov 0  }
   0x3   :  { %s9488_s25 = smov 0   ;;  %s9490_s26 = smov 0  }
   0x4 LB: > { %s8861_s27 = sadd.s32 4294967295, %s9439_s26   ;;  %s8862_s28 = sadd.s32 4294967294, %s9439_s26   ;;  %s9439_s26 = sphi %s9490_s26, %s19_s26   ;;  %s9435_s25 = sphi %s9488_s25, %s16747_s25   ;;  %s9431_s24 = sphi %s9486_s24, %s16746_s24   ;;  %s9427_s23 = sphi %s9484_s23, %s16745_s23   ;;  %s9423_s22 = sphi %s9482_s22, %s16744_s22   ;;  %s9419_s21 = sphi %s9480_s21, %s16743_s21  }
   0x5   : > { %s31_s29 = sadd.s32 1, %s9435_s25  ;;  %s194_s30 = sadd.s32 1, %s9427_s23 }
   0x6   : > { %p33_p0 = scmp.ge.s32.totalorder %s31_s29, 2  ;;  %p204_p1 = scmp.ne.s32.totalorder %s9427_s23, %s9423_s22 }
   0x7   : > { %p205_p2 = scmp.eq.s32.totalorder %s8861_s27, 1  ;;  %p210_p3 = scmp.ne.s32.totalorder %s9423_s22, %s9419_s21 }
   0x8   : > { %s16749_s29 = smov (%p33_p0, %s31_s29), 0  ;;  %p211_p5 = scmp.eq.s32.totalorder %s8862_s28, 1 }
   0x9   : > { %p9520_p4 = por %p205_p2, %p204_p1  ;;  %s191_s8 = ssub.s32 %s9435_s25, %s16749_s29 }
   0xa   : > { %p8868_p6 = scmp.ge.s32.totalorder %s9439_s26, 1  ;;  %p192_p7 = scmp.eq.s32.totalorder %s191_s8, 0 }
   0xb   : > { %p9527_p8 = por %p211_p5, %p210_p3  ;;  %p281_p9 = scmp.lt.s32.totalorder %s9439_s26, 3 }
   0xc   : > { %s9533_s10 = scalar_select %p192_p7, %s9427_s23, %s194_s30  }
   0xd   : > { %p282_p10 = pnand %p8868_p6, %p281_p9 }
   0xf   : > { %285 = sbr.rel (%p282_p10) target bundleno = 930 (0x3a2), region = 44 }
  0x14   : > { %v657_v0 = vld [vmem:[%s14864_s1 + $0x1e0] sm:$0xff]  ;;  %s8870_s15 = sshll.u32 %s9431_s24, 5  ;;  %v9441_v2 = vmov 0   ;;  %s8876_s16 = sshll.u32 %s9431_s24, 8 }
  0x15   : > { %v653_v1 = vld [vmem:[%s14864_s1 + $0x1c0] sm:$0xff]  ;;  %661 = vmatpush.msra.mxu0 %v657_v0  ;;  %8944 = vset.pattern.permute.xlu2 %v9441_v2  ;;  %p335_p11 = scmp.lt.s32.totalorder %s8870_s15, 63  ;;  %s8724_s12 = scalar_lea.hbm %s14869_s6, %s8876_s16 }
  0x16   : > { %v649_v3 = vld [vmem:[%s14864_s1 + $0x1a0] sm:$0xff]  ;;  %8943 = vset.pattern.permute.xlu1 %v9441_v2  ;;  %8942 = vset.pattern.permute.xlu0 %v9441_v2  ;;  %s8727_s13 = sshll.u32 %s8724_s12, 4  ;;  %s9381_s17 = scalar_lea.hbm %s14869_s6, 512  ;;  %s8728_s13 = int_to_ptr.hbm [resolvable:$true] %s8727_s13 }
  0x17   : > { %662 = vmatpush.msra.mxu0 %v653_v1  ;;  %s16751_s15 = smov (!%p335_p11, %s8870_s15), 63  ;;  %v645_v4 = vld [vmem:[%s14864_s1 + $0x180] sm:$0xff]  ;;  %s9375_s14 = sshra.s32 %s8728_s13, 4  ;;  %s9376_s14 = int_to_ptr.hbm [resolvable:$true] %s9375_s14 }
  0x18   : > { %s9548_s20 = sshll.u32 %s16751_s15, 3  ;;  %v641_v5 = vld [vmem:[%s14864_s1 + $0x160] sm:$0xff]  ;;  %p9382_p1 = scmp.lt.s32.totalorder %s9376_s14, %s14869_s6 }
  0x19   : > { %663 = vmatpush.msra.mxu0 %v649_v3  ;;  %s9554_s30 = scalar_lea.vmem %s14865_s2, %s9548_s20  ;;  %v637_v9 = vld [vmem:[%s14864_s1 + $0x140] sm:$0xff]  ;;  %s9602_s8 = scalar_lea.vmem %s14863_s0, %s9548_s20 }
  0x1a   : > { %v1117_v6 = vld [vmem:[%s9554_s30 + $0x20] sm:$0xff]  ;;  %v1115_v7 = vld [vmem:[%s9554_s30 + $0x10] sm:$0xff]  ;;  %v1118_v12 = vld [vmem:[%s9554_s30 + $0x28] sm:$0xff]  ;;  %s9639_s15 = scalar_lea.vmem %s14867_s4, %s9548_s20 }
  0x1b   : > { %664 = vmatpush.msra.mxu0 %v645_v4  ;;  %v1113_v8 = vld [vmem:[%s9554_s30] sm:$0xff]  ;;  %1168 = vperm.xlu2 %8944, %v1117_v6   ;;  %v1116_v13 = vld [vmem:[%s9554_s30 + $0x18] sm:$0xff]  ;;  %v1114_v14 = vld [vmem:[%s9554_s30 + $0x8] sm:$0xff] }
  0x1c   : > { %1158 = vperm.xlu1 %8943, %v1115_v7   ;;  %1148 = vperm.xlu0 %8942, %v1113_v8   ;;  %v633_v10 = vld [vmem:[%s14864_s1 + $0x120] sm:$0xff]  ;;  %v1120_v20 = vld [vmem:[%s9554_s30 + $0x38] sm:$0xff]  ;;  %v1119_v21 = vld [vmem:[%s9554_s30 + $0x30] sm:$0xff] }
  0x1d   : > { %665 = vmatpush.msra.mxu0 %v641_v5  ;;  %v629_v11 = vld [vmem:[%s14864_s1 + $0x100] sm:$0xff]  ;;  %v1124_v26 = vld [vmem:[%s9554_s30 + $0x58] sm:$0xff]  ;;  %v1123_v27 = vld [vmem:[%s9554_s30 + $0x50] sm:$0xff] }
  0x1e   : > { %v625_v15 = vld [vmem:[%s14864_s1 + $0xe0] sm:$0xff]  ;;  %v1122_v28 = vld [vmem:[%s9554_s30 + $0x48] sm:$0xff]  ;;  %v1127_v30 = vld [vmem:[%s9554_s30 + $0x70] sm:$0xff] }
  0x1f   : > { %666 = vmatpush.msra.mxu0 %v637_v9  ;;  %v621_v16 = vld [vmem:[%s14864_s1 + $0xc0] sm:$0xff]  ;;  %v1126_v31 = vld [vmem:[%s9554_s30 + $0x68] sm:$0xff]  ;;  %v1128_v36 = vld [vmem:[%s9554_s30 + $0x78] sm:$0xff] }
  0x20   : > { %v617_v17 = vld [vmem:[%s14864_s1 + $0xa0] sm:$0xff]  ;;  %v566_v33 = vld [vmem:[%s9602_s8 + $0x8] sm:$0xff]  ;;  %v567_v37 = vld [vmem:[%s9602_s8 + $0x10] sm:$0xff] }
  0x21   : > { %667 = vmatpush.msra.mxu0 %v633_v10  ;;  %v613_v18 = vld [vmem:[%s14864_s1 + $0x80] sm:$0xff]  ;;  %v1130_v34 = vld [vmem:[%s9554_s30 + $0x88] sm:$0xff]  ;;  %v1132_v39 = vld [vmem:[%s9554_s30 + $0x98] sm:$0xff] }
  0x22   : > { %v1121_v19 = vld [vmem:[%s9554_s30 + $0x40] sm:$0xff]  ;;  %v1131_v40 = vld [vmem:[%s9554_s30 + $0x90] sm:$0xff]  ;;  %v568_v41 = vld [vmem:[%s9602_s8 + $0x18] sm:$0xff] }
  0x23   : > { %668 = vmatpush.msra.mxu0 %v629_v11  ;;  %1173 = vperm.xlu2 %8944, %v1118_v12   ;;  %v609_v22 = vld [vmem:[%s14864_s1 + $0x60] sm:$0xff]  ;;  %v1136_v42 = vld [vmem:[%s9554_s30 + $0xb8] sm:$0xff]  ;;  %v1135_v43 = vld [vmem:[%s9554_s30 + $0xb0] sm:$0xff] }
  0x24   : > { %1163 = vperm.xlu1 %8943, %v1116_v13   ;;  %1153 = vperm.xlu0 %8942, %v1114_v14   ;;  %v605_v23 = vld [vmem:[%s14864_s1 + $0x40] sm:$0xff]  ;;  %v1134_v44 = vld [vmem:[%s9554_s30 + $0xa8] sm:$0xff]  ;;  %v1139_v46 = vld [vmem:[%s9554_s30 + $0xd0] sm:$0xff] }
  0x25   : > { %669 = vmatpush.msra.mxu0 %v625_v15  ;;  %v601_v24 = vld [vmem:[%s14864_s1 + $0x20] sm:$0xff]  ;;  %v1138_v47 = vld [vmem:[%s9554_s30 + $0xc8] sm:$0xff]  ;;  %v1140_v52 = vld [vmem:[%s9554_s30 + $0xd8] sm:$0xff] }
  0x26   : > { %v597_v25 = vld [vmem:[%s14864_s1] sm:$0xff]  ;;  %v570_v49 = vld [vmem:[%s9602_s8 + $0x28] sm:$0xff]  ;;  %v571_v53 = vld [vmem:[%s9602_s8 + $0x30] sm:$0xff] }
  0x27   : > { %670 = vmatpush.msra.mxu0 %v621_v16  ;;  %v565_v29 = vld [vmem:[%s9602_s8] sm:$0xff]  ;;  %v1142_v50 = vld [vmem:[%s9554_s30 + $0xe8] sm:$0xff]  ;;  %v1144_v55 = vld [vmem:[%s9554_s30 + $0xf8] sm:$0xff] }
  0x28   : > { %v1125_v32 = vld [vmem:[%s9554_s30 + $0x60] sm:$0xff]  ;;  %v1143_v56 = vld [vmem:[%s9554_s30 + $0xf0] sm:$0xff]  ;;  %v572_v57 = vld [vmem:[%s9602_s8 + $0x38] sm:$0xff] }
  0x29   : > { %671 = vmatpush.msra.mxu0 %v617_v17  ;;  %v1129_v35 = vld [vmem:[%s9554_s30 + $0x80] sm:$0xff]  ;;  %v3366_v58 = vld [vmem:[%s9639_s15 + $0x18] sm:$0xff]  ;;  %v3365_v59 = vld [vmem:[%s9639_s15 + $0x10] sm:$0xff] }
  0x2a   : > { %v1133_v38 = vld [vmem:[%s9554_s30 + $0xa0] sm:$0xff]  ;;  %v3364_v60 = vld [vmem:[%s9639_s15 + $0x8] sm:$0xff]  ;;  %v3369_v63 = vld [vmem:[%s9639_s15 + $0x30] sm:$0xff] }
  0x2b   : > { %672 = vmatpush.msra.mxu0 %v613_v18  ;;  %1188 = vperm.xlu2 %8944, %v1121_v19   ;;  %v569_v45 = vld [vmem:[%s9602_s8 + $0x20] sm:$0xff]  ;;  %v3368_v0 = vld [vmem:[%s9639_s15 + $0x28] sm:$0xff]  ;;  %v3370_v6 = vld [vmem:[%s9639_s15 + $0x38] sm:$0xff] }
  0x2c   : > { %1183 = vperm.xlu1 %8943, %v1120_v20   ;;  %1178 = vperm.xlu0 %8942, %v1119_v21   ;;  %v1137_v48 = vld [vmem:[%s9554_s30 + $0xc0] sm:$0xff]  ;;  %v574_v2 = vld [vmem:[%s9602_s8 + $0x48] sm:$0xff]  ;;  %v575_v7 = vld [vmem:[%s9602_s8 + $0x50] sm:$0xff] }
  0x2d   : > { %673 = vmatpush.msra.mxu0 %v609_v22  ;;  %v1141_v51 = vld [vmem:[%s9554_s30 + $0xe0] sm:$0xff]  ;;  %v3372_v4 = vld [vmem:[%s9639_s15 + $0x48] sm:$0xff]  ;;  %v3374_v9 = vld [vmem:[%s9639_s15 + $0x58] sm:$0xff] }
  0x2e   : > { %v3363_v54 = vld [vmem:[%s9639_s15] sm:$0xff]  ;;  %v3373_v10 = vld [vmem:[%s9639_s15 + $0x50] sm:$0xff]  ;;  %v576_v11 = vld [vmem:[%s9602_s8 + $0x58] sm:$0xff] }
  0x2f   : > { %674 = vmatpush.msra.mxu0 %v605_v23  ;;  %v573_v61 = vld [vmem:[%s9602_s8 + $0x40] sm:$0xff]  ;;  %v3378_v15 = vld [vmem:[%s9639_s15 + $0x78] sm:$0xff]  ;;  %v3377_v16 = vld [vmem:[%s9639_s15 + $0x70] sm:$0xff] }
  0x30   : > { %v3367_v1 = vld [vmem:[%s9639_s15 + $0x20] sm:$0xff]  ;;  %v3376_v17 = vld [vmem:[%s9639_s15 + $0x68] sm:$0xff]  ;;  %v3381_v22 = vld [vmem:[%s9639_s15 + $0x90] sm:$0xff] }
  0x31   : > { %675 = vmatpush.msra.mxu0 %v601_v24  ;;  %v3371_v5 = vld [vmem:[%s9639_s15 + $0x40] sm:$0xff]  ;;  %v3380_v23 = vld [vmem:[%s9639_s15 + $0x88] sm:$0xff] }
  0x32   : > { %v3375_v8 = vld [vmem:[%s9639_s15 + $0x60] sm:$0xff] }
  0x33   : > { %676 = vmatpush.msra.mxu0 %v597_v25  ;;  %1203 = vperm.xlu2 %8944, %v1124_v26   ;;  %v577_v18 = vld [vmem:[%s9602_s8 + $0x60] sm:$0xff]  ;;  %v578_v25 = vld [vmem:[%s9602_s8 + $0x68] sm:$0xff] }
  0x34   : > { %1198 = vperm.xlu1 %8943, %v1123_v27   ;;  %1193 = vperm.xlu0 %8942, %v1122_v28   ;;  %v3379_v24 = vld [vmem:[%s9639_s15 + $0x80] sm:$0xff] }
  0x35   : > { %677 = vmatmul.f32.vlgmr.msra.gmra.mxu0 %v565_v29  ;;  %v3384_v29 = vld [vmem:[%s9639_s15 + $0xa8] sm:$0xff] }
  0x3b   : > { %1218 = vperm.xlu2 %8944, %v1127_v30   ;;  %v3383_v30 = vld [vmem:[%s9639_s15 + $0xa0] sm:$0xff] }
  0x3c   : > { %1213 = vperm.xlu1 %8943, %v1126_v31   ;;  %1208 = vperm.xlu0 %8942, %v1125_v32   ;;  %v3382_v31 = vld [vmem:[%s9639_s15 + $0x98] sm:$0xff]  ;;  %v579_v32 = vld [vmem:[%s9602_s8 + $0x70] sm:$0xff] }
  0x3d   : > { %680 = vmatmul.f32.gmra.mxu0 %v566_v33 }
  0x43   : > { %1233 = vperm.xlu2 %8944, %v1130_v34  }
  0x44   : > { %1228 = vperm.xlu1 %8943, %v1129_v35   ;;  %1223 = vperm.xlu0 %8942, %v1128_v36   ;;  %v3387_v36 = vld [vmem:[%s9639_s15 + $0xc0] sm:$0xff] }
  0x45   : > { %683 = vmatmul.f32.gmra.mxu0 %v567_v37  ;;  %v3386_v37 = vld [vmem:[%s9639_s15 + $0xb8] sm:$0xff] }
  0x4b   : > { %1248 = vperm.xlu2 %8944, %v1133_v38   ;;  %v3385_v38 = vld [vmem:[%s9639_s15 + $0xb0] sm:$0xff] }
  0x4c   : > { %1243 = vperm.xlu1 %8943, %v1132_v39   ;;  %1238 = vperm.xlu0 %8942, %v1131_v40   ;;  %v580_v39 = vld [vmem:[%s9602_s8 + $0x78] sm:$0xff]  ;;  %v1145_v40 = vld [vmem:[%s14866_s3] sm:$0xf] }
  0x4d   : > { %686 = vmatmul.f32.gmra.mxu0 %v568_v41 }
  0x53   : > { %1263 = vperm.xlu2 %8944, %v1136_v42  }
  0x54   : > { %1258 = vperm.xlu1 %8943, %v1135_v43   ;;  %1253 = vperm.xlu0 %8942, %v1134_v44   ;;  %v9708_v43 = vperm.slane %v1145_v40, 0  ;;  %v3390_v44 = vld [vmem:[%s9639_s15 + $0xd8] sm:$0xff] }
  0x55   : > { %689 = vmatmul.f32.gmra.mxu0 %v569_v45  ;;  %v3389_v45 = vld [vmem:[%s9639_s15 + $0xd0] sm:$0xff] }
  0x5b   : > { %1278 = vperm.xlu2 %8944, %v1139_v46  }
  0x5c   : > { %1273 = vperm.xlu1 %8943, %v1138_v47   ;;  %1268 = vperm.xlu0 %8942, %v1137_v48   ;;  %v3388_v47 = vld [vmem:[%s9639_s15 + $0xc8] sm:$0xff]  ;;  %v581_v48 = vld [vmem:[%s9602_s8 + $0x80] sm:$0xff] }
  0x5d   : > { %692 = vmatmul.f32.gmra.mxu0 %v570_v49 }
  0x63   : > { %1293 = vperm.xlu2 %8944, %v1142_v50  }
  0x64   : > { %1288 = vperm.xlu1 %8943, %v1141_v51   ;;  %1283 = vperm.xlu0 %8942, %v1140_v52  }
  0x65   : > { %695 = vmatmul.f32.gmra.mxu0 %v571_v53 }
  0x6b   : > { %3397 = vperm.xlu2 %8944, %v3363_v54  }
  0x6c   : > { %1303 = vperm.xlu1 %8943, %v1144_v55   ;;  %1298 = vperm.xlu0 %8942, %v1143_v56   ;;  %v3393_v56 = vld [vmem:[%s9639_s15 + $0xf0] sm:$0xff] }
  0x6d   : > { %698 = vmatmul.f32.gmra.mxu0 %v572_v57  ;;  %v3392_v57 = vld [vmem:[%s9639_s15 + $0xe8] sm:$0xff] }
  0x73   : > { %3406 = vperm.xlu2 %8944, %v3366_v58  }
  0x74   : > { %3403 = vperm.xlu1 %8943, %v3365_v59   ;;  %3400 = vperm.xlu0 %8942, %v3364_v60   ;;  %v3391_v59 = vld [vmem:[%s9639_s15 + $0xe0] sm:$0xff]  ;;  %v582_v60 = vld [vmem:[%s9602_s8 + $0x88] sm:$0xff] }
  0x75   : > { %701 = vmatmul.f32.gmra.mxu0 %v573_v61  ;;  %v9649_v62 = vpop.permute.xlu2 %1168 }
  0x7b   : > { %3415 = vperm.xlu2 %8944, %v3369_v63  }
  0x7c   : > { %3412 = vperm.xlu1 %8943, %v3368_v0   ;;  %3409 = vperm.xlu0 %8942, %v3367_v1  }
  0x7d   : > { %704 = vmatmul.f32.gmra.mxu0 %v574_v2  ;;  %v9655_v3 = vpop.permute.xlu2 %1173 }
  0x83   : > { %3424 = vperm.xlu2 %8944, %v3372_v4  }
  0x84   : > { %3421 = vperm.xlu1 %8943, %v3371_v5   ;;  %3418 = vperm.xlu0 %8942, %v3370_v6  }
  0x85   : > { %707 = vmatmul.f32.gmra.mxu0 %v575_v7  ;;  %v9665_v12 = vpop.permute.xlu2 %1188 }
  0x8b   : > { %3433 = vperm.xlu2 %8944, %v3375_v8  }
  0x8c   : > { %3430 = vperm.xlu1 %8943, %v3374_v9   ;;  %3427 = vperm.xlu0 %8942, %v3373_v10   ;;  %v3394_v10 = vld [vmem:[%s9639_s15 + $0xf8] sm:$0xff]  ;;  %s9377_s15 = scalar_lea.hbm %s9376_s14, 256 }
  0x8d   : > { %710 = vmatmul.f32.gmra.mxu0 %v576_v11  ;;  %v9673_v19 = vpop.permute.xlu2 %1203  ;;  %v583_v11 = vld [vmem:[%s9602_s8 + $0x90] sm:$0xff]  ;;  %p9378_p12 = scmp.ne.s32.totalorder %s9376_s14, %s9377_s15  ;;  %p9383_p2 = scmp.lt.s32.totalorder %s9381_s17, %s9377_s15 }
  0x8e   : > { %v9667_v13 = vpop.permute.xlu1 %1158  ;;  %v1149_v14 = vpop.permute.xlu0 %1148 }
  0x8f   : > { %v1315_v49 = vadd.f32 %v9708_v43, %v1149_v14  ;;  %v1323_v14 = vadd.f32 %v9708_v43, %v9667_v13  ;;  %p9379_p13 = pnand %p9378_p12, %p9520_p4  ;;  %p9384_p3 = por %p9383_p2, %p9382_p1 }
  0x91   : > { %p9380_p0 = pneg %p9379_p13 }
  0x93   : > { %3442 = vperm.xlu2 %8944, %v3378_v15   ;;  %p9385_p5 = pnand %p9384_p3, %p9380_p0 }
  0x94   : > { %3439 = vperm.xlu1 %8943, %v3377_v16   ;;  %3436 = vperm.xlu0 %8942, %v3376_v17  }
  0x95   : > { %713 = vmatmul.f32.gmra.mxu0 %v577_v18  ;;  %v9683_v27 = vpop.permute.xlu2 %1218 }
  0x96   : > { %v9675_v20 = vpop.permute.xlu1 %1163  ;;  %v1154_v21 = vpop.permute.xlu0 %1153 }
  0x97   : > { %v1319_v61 = vadd.f32 %v9708_v43, %v1154_v21 }
  0x9b   : > { %3451 = vperm.xlu2 %8944, %v3381_v22  }
  0x9c   : > { %3448 = vperm.xlu1 %8943, %v3380_v23   ;;  %3445 = vperm.xlu0 %8942, %v3379_v24  }
  0x9d   : > { %716 = vmatmul.f32.gmra.mxu0 %v578_v25  ;;  %v9695_v35 = vpop.permute.xlu2 %1233 }
  0x9e   : > { %v9681_v26 = vpop.permute.xlu1 %1183  ;;  %v9685_v28 = vpop.permute.xlu0 %1178 }
  0xa3   : > { %3460 = vperm.xlu2 %8944, %v3384_v29  }
  0xa4   : > { %3457 = vperm.xlu1 %8943, %v3383_v30   ;;  %3454 = vperm.xlu0 %8942, %v3382_v31  }
  0xa5   : > { %719 = vmatmul.f32.gmra.mxu0 %v579_v32  ;;  %v9715_v50 = vpop.permute.xlu2 %1248  ;;  %v584_v32 = vld [vmem:[%s9602_s8 + $0x98] sm:$0xff] }
  0xa6   : > { %v9691_v33 = vpop.permute.xlu1 %1198  ;;  %v9693_v34 = vpop.permute.xlu0 %1193 }
  0xab   : > { %3469 = vperm.xlu2 %8944, %v3387_v36   ;;  %v1327_v36 = vadd.f32 %v9708_v43, %v9675_v20 }
  0xac   : > { %3466 = vperm.xlu1 %8943, %v3386_v37   ;;  %3463 = vperm.xlu0 %8942, %v3385_v38  }
  0xad   : > { %722 = vmatmul.f32.gmra.mxu0 %v580_v39  ;;  %v9726_v0 = vpop.permute.xlu2 %1263 }
  0xae   : > { %v9704_v41 = vpop.permute.xlu1 %1213  ;;  %v9706_v42 = vpop.permute.xlu0 %1208 }
  0xb2   : > { %v678_v46 = vpop.f32.mrf.mxu0 }
  0xb3   : > { %v1443_v51 = vmul.f32 2.0, %v678_v46  ;;  %3478 = vperm.xlu2 %8944, %v3390_v44  }
  0xb4   : > { %3475 = vperm.xlu1 %8943, %v3389_v45   ;;  %3472 = vperm.xlu0 %8942, %v3388_v47  }
  0xb5   : > { %v1571_v52 = vsub.f32 %v1315_v49, %v1443_v51  ;;  %725 = vmatmul.f32.gmra.mxu0 %v581_v48  ;;  %v9741_v23 = vpop.permute.xlu2 %1278 }
  0xb6   : > { %v9717_v53 = vpop.permute.xlu1 %1228  ;;  %v9719_v55 = vpop.permute.xlu0 %1223 }
  0xb7   : > { %v1699_v54 = vmax.f32 %v1571_v52, 1e-12 }
  0xb9   : > { %8945 = vrsqrt.f32 %v1699_v54  ;;  %vm1834_vm0 = vcmp.eq.f32.partialorder %v1699_v54, inf  ;;  %v1837_v40 = vand.u32 2147483648, %v1699_v54  ;;  %vm1836_vm1 = vcmp.eq.f32.partialorder %v1699_v54, 0.0 }
  0xba   : > { %v681_v58 = vpop.f32.mrf.mxu0 }
  0xbb   : > { %v1447_v63 = vmul.f32 2.0, %v681_v58  ;;  %3487 = vperm.xlu2 %8944, %v3393_v56  }
  0xbc   : > { %3484 = vperm.xlu1 %8943, %v3392_v57   ;;  %3481 = vperm.xlu0 %8942, %v3391_v59   ;;  %v3625_v59 = vlaneseq }
  0xbd   : > { %v1575_v1 = vsub.f32 %v1319_v61, %v1447_v63  ;;  %728 = vmatmul.f32.gmra.mxu0 %v582_v60  ;;  %v9762_v58 = vpop.permute.xlu2 %1293  ;;  %v585_v61 = vld [vmem:[%s9602_s8 + $0xa0] sm:$0xff] }
  0xbe   : > { %v9728_v2 = vpop.permute.xlu1 %1243  ;;  %v9732_v6 = vpop.permute.xlu0 %1238 }
  0xbf   : > { %v8946_v4 = vpop.eup %8945  ;;  %v9730_v5 = vmax.f32 %v1575_v1, 1e-12  ;;  %v1331_v1 = vadd.f32 %v9708_v43, %v9649_v62  ;;  %v3395_v62 = vld [vmem:[%s14868_s5] sm:$0xf] }
  0xc0   : > { %v1828_v7 = vmul.f32 %v8946_v4, %v1699_v54 }
  0xc1   : > { %8947 = vrsqrt.f32 %v9730_v5  ;;  %vm1882_vm2 = vcmp.eq.f32.partialorder %v9730_v5, inf  ;;  %vm1884_vm3 = vcmp.eq.f32.partialorder %v9730_v5, 0.0 }
  0xc2   : > { %v1829_v8 = vmul.f32 %v8946_v4, %v1828_v7  ;;  %v684_v9 = vpop.f32.mrf.mxu0 }
  0xc3   : > { %v1451_v15 = vmul.f32 2.0, %v684_v9  ;;  %v9770_v9 = vshrl.u32 %v3625_v59, 7 }
  0xc4   : > { %v1830_v16 = vmul.f32 0.5, %v1829_v8  ;;  %3490 = vperm.xlu0 %8942, %v3394_v10  }
  0xc5   : > { %v1579_v17 = vsub.f32 %v1323_v14, %v1451_v15  ;;  %731 = vmatmul.f32.gmra.mxu0 %v583_v11  ;;  %v9775_v14 = vstv %s8876_s16 }
  0xc6   : > { %v1831_v18 = vsub.f32 1.5, %v1830_v16  ;;  %v9739_v21 = vpop.permute.xlu1 %1258  ;;  %v9745_v25 = vpop.permute.xlu0 %1253 }
  0xc7   : > { %v8948_v22 = vpop.eup %8947  ;;  %v9743_v24 = vmax.f32 %v1579_v17, 1e-12 }
  0xc8   : > { %v1876_v29 = vmul.f32 %v8948_v22, %v9730_v5  ;;  %v1832_v13 = vmul.f32 %v8946_v4, %v1831_v18 }
  0xc9   : > { %8949 = vrsqrt.f32 %v9743_v24  ;;  %vm1930_vm4 = vcmp.eq.f32.partialorder %v9743_v24, inf  ;;  %vm1932_vm5 = vcmp.eq.f32.partialorder %v9743_v24, 0.0 }
  0xca   : > { %v1877_v30 = vmul.f32 %v8948_v22, %v1876_v29  ;;  %v687_v31 = vpop.f32.mrf.mxu0  ;;  %v1833_v38 = vmul.f32 %v1832_v13, %v1699_v54  ;;  %v1885_v29 = vand.u32 2147483648, %v9730_v5 }
  0xcb   : > { %v1455_v37 = vmul.f32 2.0, %v687_v31  ;;  %v9792_v31 = vadd.s32 %v9775_v14, %v9770_v9 }
  0xcc   : > { %v1878_v39 = vmul.f32 0.5, %v1877_v30  ;;  %v1835_v45 = vsel %vm1834_vm0, %v1699_v54, %v1833_v38 }
  0xcd   : > { %v1583_v44 = vsub.f32 %v1327_v36, %v1455_v37  ;;  %734 = vmatmul.f32.gmra.mxu0 %v584_v32  ;;  %v9754_v48 = vsel %vm1836_vm1, %v1837_v40, %v1835_v45  ;;  %15354 = vst [vmem:[#allocation12_spill] sm:$0xff] %v9792_v31  ;;  %v9794_v32 = vand.u32 127, %v3625_v59  ;;  %v9799_v37 = vperm.slane %v3395_v62, 0  ;;  %v586_v40 = vld [vmem:[%s9602_s8 + $0xa8] sm:$0xff]  ;;  %v9805_v45 = vpop.permute.xlu2 %3397 }
  0xce   : > { %v1879_v46 = vsub.f32 1.5, %v1878_v39  ;;  %v9752_v47 = vpop.permute.xlu1 %1273  ;;  %15353 = vst [vmem:[#allocation11_spill] sm:$0xff] %v9754_v48  ;;  %v9758_v20 = vpop.permute.xlu0 %1268  ;;  %v4578_v56 = vmul.f32 -20.0, %v9754_v48  ;;  %vm14885_vm6 = vcmp.lt.s32.totalorder %v9792_v31, 8 }
  0xcf   : > { %v8950_v49 = vpop.eup %8949  ;;  %v9756_v51 = vmax.f32 %v1583_v44, 1e-12  ;;  %15355 = vst [vmem:[#allocation13_spill] sm:$0xff] %v9794_v32  ;;  %vm14904_vm7 = vcmp.lt.s32.totalorder %v9794_v32, 8  ;;  %vm3938_vm8 = vcmp.ne.s32.totalorder %v9792_v31, %v9794_v32  ;;  %vm3496_vm9 = vcmp.eq.s32.totalorder %v9805_v45, %v9799_v37 }
  0xd0   : > { %v1924_v52 = vmul.f32 %v8950_v49, %v9743_v24  ;;  %v1880_v57 = vmul.f32 %v8948_v22, %v1879_v46  ;;  %v4706_v8 = vmul.f32 1.442695, %v4578_v56  ;;  %vm9836_vm10 = vmand %vm14885_vm6, %vm14904_vm7 }
  0xd1   : > { %8951 = vrsqrt.f32 %v9756_v51  ;;  %vm4066_vm11 = vmand %vm3496_vm9, %vm3938_vm8  ;;  %vm1978_vm14 = vcmp.eq.f32.partialorder %v9756_v51, inf  ;;  %vm1980_vm0 = vcmp.eq.f32.partialorder %v9756_v51, 0.0  ;;  %vm14908_vm8 = vmmov 1  }
  0xd2   : > { %v1925_v54 = vmul.f32 %v8950_v49, %v1924_v52  ;;  %v690_v60 = vpop.f32.mrf.mxu0  ;;  %v1881_v63 = vmul.f32 %v1880_v57, %v9730_v5  ;;  %8953 = vpow2.f32 %v4706_v8  ;;  %v3628_v8 = vadd.s32 16, %v9770_v9  ;;  %vm9859_vm12 = vmand %vm4066_vm11, %vm9836_vm10 }
  0xd3   : > { %v1459_v4 = vmul.f32 2.0, %v690_v60 }
  0xd4   : > { %v1926_v7 = vmul.f32 0.5, %v1925_v54  ;;  %v1883_v16 = vsel %vm1882_vm2, %v9730_v5, %v1881_v63  ;;  %v1335_v5 = vadd.f32 %v9708_v43, %v9655_v3 }
  0xd5   : > { %v1587_v10 = vsub.f32 %v1331_v1, %v1459_v4  ;;  %737 = vmatmul.f32.gmra.mxu0 %v585_v61  ;;  %v9797_v36 = vsel %vm1884_vm3, %v1885_v29, %v1883_v16 }
  0xd6   : > { %v1927_v11 = vsub.f32 1.5, %v1926_v7  ;;  %v9777_v15 = vpop.permute.xlu1 %1288  ;;  %v9785_v22 = vpop.permute.xlu0 %1283  ;;  %15356 = vst [vmem:[#allocation14_spill] sm:$0xff] %v9797_v36  ;;  %v4582_v56 = vmul.f32 -20.0, %v9797_v36  ;;  %v15377_v36 = vmov 0 }
  0xd7   : > { %v8952_v17 = vpop.eup %8951  ;;  %v9783_v18 = vmax.f32 %v1587_v10, 1e-12 }
  0xd8   : > { %v1972_v13 = vmul.f32 %v8952_v17, %v9756_v51  ;;  %v1928_v30 = vmul.f32 %v8950_v49, %v1927_v11  ;;  %v1933_v49 = vand.u32 2147483648, %v9743_v24  ;;  %v9816_v54 = vpop.eup %8953  ;;  %v4714_v16 = vmul.f32 1.442695, %v4582_v56 }
  0xd9   : > { %8955 = vrsqrt.f32 %v9783_v18  ;;  %15358 = vst [vmem:[#allocation16_spill] sm:$0xff] %v9816_v54  ;;  %v9846_v29 = vmul.f32 %v9816_v54, %v9816_v54 }
  0xda   : > { %v1973_v38 = vmul.f32 %v8952_v17, %v1972_v13  ;;  %v693_v39 = vpop.f32.mrf.mxu0  ;;  %v1929_v44 = vmul.f32 %v1928_v30, %v9743_v24  ;;  %v1339_v13 = vadd.f32 %v9708_v43, %v9685_v28 }
  0xdb   : > { %v1463_v46 = vmul.f32 2.0, %v693_v39  ;;  %v587_v39 = vld [vmem:[%s9602_s8 + $0xb0] sm:$0xff]  ;;  %v5250_v56 = vsel %vm9859_vm12, %v9846_v29, 0.0 }
  0xdc   : > { %v1974_v52 = vmul.f32 0.5, %v1973_v38  ;;  %v1931_v57 = vsel %vm1930_vm4, %v9743_v24, %v1929_v44  ;;  %v3627_v24 = vadd.s32 8, %v9770_v9 }
  0xdd   : > { %v1591_v59 = vsub.f32 %v1335_v5, %v1463_v46  ;;  %740 = vmatmul.f32.gmra.mxu0 %v586_v40  ;;  %v9814_v3 = vsel %vm1932_vm5, %v1933_v49, %v1931_v57  ;;  %v9855_v5 = vadd.s32 %v9775_v14, %v3628_v8 }
  0xde   : > { %15357 = vst [vmem:[#allocation15_spill] sm:$0xff] %v9814_v3  ;;  %v9822_v60 = vpop.permute.xlu1 %1303  ;;  %v4586_v61 = vmul.f32 -20.0, %v9814_v3  ;;  %v1975_v1 = vsub.f32 1.5, %v1974_v52  ;;  %v9828_v7 = vpop.permute.xlu0 %1298  ;;  %v9852_v40 = vadd.s32 %v9775_v14, %v3627_v24  ;;  %v15364_v52 = vmov 0  ;;  %v589_v3 = vld [vmem:[%s9602_s8 + $0xc0] sm:$0xff] }
  0xdf   : > { %15359 = vst [vmem:[#allocation17_spill] sm:$0xff] %v9822_v60  ;;  %v8956_v63 = vpop.eup %8955  ;;  %v9826_v4 = vmax.f32 %v1591_v59, 1e-12  ;;  %v15365_v52 = vsel %vm9859_vm12, 4294967295, %v15364_v52  ;;  %vm14886_vm15 = vcmp.lt.s32.totalorder %v9855_v5, 8 }
  0xe0   : > { %v2020_v10 = vmul.f32 %v8956_v63, %v9783_v18  ;;  %v4722_v62 = vmul.f32 1.442695, %v4586_v61  ;;  %15362 = vst [vmem:[#allocation18_spill] sm:$0xff] %v9852_v40  ;;  %v1976_v46 = vmul.f32 %v8952_v17, %v1975_v1  ;;  %vm14870_vm13 = vcmp.lt.s32.totalorder %v9852_v40, 8  ;;  %vm9912_vm5 = vmand %vm14886_vm15, %vm14904_vm7 }
  0xe1   : > { %8957 = vrsqrt.f32 %v9826_v4  ;;  %15363 = vst [vmem:[#allocation19_spill] sm:$0xff] %v9855_v5  ;;  %v1981_v17 = vand.u32 2147483648, %v9756_v51  ;;  %vm3942_vm2 = vcmp.ne.s32.totalorder %v9852_v40, %v9794_v32  ;;  %vm9900_vm4 = vmand %vm14870_vm13, %vm14904_vm7  ;;  %vm2028_vm13 = vcmp.eq.f32.partialorder %v9783_v18, 0.0 }
  0xe2   : > { %v2021_v30 = vmul.f32 %v8956_v63, %v2020_v10  ;;  %v696_v38 = vpop.f32.mrf.mxu0  ;;  %8959 = vpow2.f32 %v4722_v62  ;;  %15366 = vst [vmem:[#allocation20_spill] sm:$0xff] %v15365_v52  ;;  %v1977_v57 = vmul.f32 %v1976_v46, %v9756_v51 }
  0xe3   : > { %v1467_v44 = vmul.f32 2.0, %v696_v38  ;;  %8961 = vpow2.f32 %v4714_v16  ;;  %v1343_v38 = vadd.f32 %v9708_v43, %v9681_v26 }
  0xe4   : > { %v2022_v49 = vmul.f32 0.5, %v2021_v30  ;;  %v1979_v10 = vsel %vm1978_vm14, %v9756_v51, %v1977_v57  ;;  %vm2026_vm14 = vcmp.eq.f32.partialorder %v9783_v18, inf }
  0xe5   : > { %v1595_v28 = vsub.f32 %v1339_v13, %v1467_v44  ;;  %743 = vmatmul.f32.gmra.mxu0 %v587_v39  ;;  %v9885_v62 = vsel %vm1980_vm0, %v1981_v17, %v1979_v10  ;;  %v588_v44 = vld [vmem:[%s9602_s8 + $0xb8] sm:$0xff]  ;;  %v2029_v17 = vand.u32 2147483648, %v9783_v18 }
  0xe6   : > { %v2023_v59 = vsub.f32 1.5, %v2022_v49  ;;  %v9867_v24 = vpop.permute.xlu1 %3403  ;;  %7173 = vadd.xlane.f32.xlu1 %v5250_v56  ;;  %v9876_v8 = vpop.permute.xlu0 %3400  ;;  %15367 = vst [vmem:[#allocation21_spill] sm:$0xff] %v9885_v62  ;;  %v4590_v49 = vmul.f32 -20.0, %v9885_v62  ;;  %v3629_v56 = vadd.s32 24, %v9770_v9 }
  0xe7   : > { %v9872_v61 = vpop.eup %8957  ;;  %v9874_v1 = vmax.f32 %v1595_v28, 1e-12  ;;  %vm3504_vm1 = vcmp.eq.s32.totalorder %v9867_v24, %v9799_v37  ;;  %vm14887_vm3 = vcmp.eq.s32.totalorder %v9876_v8, %v9799_v37 }
  0xe8   : > { %v2068_v16 = vmul.f32 %v9872_v61, %v9826_v4  ;;  %v2024_v13 = vmul.f32 %v8956_v63, %v2023_v59  ;;  %v9887_v30 = vpop.eup %8959  ;;  %vm9923_vm11 = vmxor %vm3504_vm1, %vm14908_vm8 }
  0xe9   : > { %15368 = vst [vmem:[#allocation22_spill] sm:$0xff] %v9887_v30  ;;  %8963 = vrsqrt.f32 %v9874_v1  ;;  %v9904_v63 = vpop.eup %8961  ;;  %vm4070_vm0 = vmand %vm14887_vm3, %vm3942_vm2 }
  0xea   : > { %15371 = vst [vmem:[#allocation23_spill] sm:$0xff] %v9904_v63  ;;  %v2069_v26 = vmul.f32 %v9872_v61, %v2068_v16  ;;  %v699_v39 = vpop.f32.mrf.mxu0  ;;  %v2025_v28 = vmul.f32 %v2024_v13, %v9783_v18  ;;  %v9937_v16 = vmul.f32 %v9887_v30, %v9887_v30  ;;  %v9943_v31 = vmul.f32 %v9904_v63, %v9904_v63  ;;  %vm9950_vm2 = vmand %vm4070_vm0, %vm9900_vm4 }
  0xeb   : > { %v1471_v59 = vmul.f32 2.0, %v699_v39  ;;  %v15378_v36 = vsel %vm9950_vm2, 4294967295, %v15377_v36  ;;  %8965 = vrcp.f32 %v9816_v54 }
  0xec   : > { %v2070_v10 = vmul.f32 0.5, %v2069_v26  ;;  %v2027_v13 = vsel %vm2026_vm14, %v9783_v18, %v2025_v28  ;;  %v3630_v26 = vadd.s32 32, %v9770_v9  ;;  %15379 = vst [vmem:[#allocation25_spill] sm:$0xff] %v15378_v36  ;;  %v4730_v28 = vmul.f32 1.442695, %v4590_v49 }
  0xed   : > { %v1599_v39 = vsub.f32 %v1343_v38, %v1471_v59  ;;  %746 = vmatmul.f32.gmra.mxu0 %v588_v44  ;;  %v9946_v40 = vsel %vm2028_vm13, %v2029_v17, %v2027_v13  ;;  %v9956_v59 = vadd.s32 %v9775_v14, %v3629_v56  ;;  %v5254_v44 = vsel %vm9950_vm2, %v9943_v31, 0.0  ;;  %vm9967_vm13 = vmand %vm9923_vm11, %vm9912_vm5  ;;  %v9978_v13 = vpop.permute.xlu2 %3406 }
  0xee   : > { %15376 = vst [vmem:[#allocation24_spill] sm:$0xff] %v9946_v40  ;;  %v2071_v62 = vsub.f32 1.5, %v2070_v10  ;;  %v4594_v18 = vmul.f32 -20.0, %v9946_v40  ;;  %v15381_v17 = vmov 0  ;;  %vm3946_vm14 = vcmp.ne.s32.totalorder %v9855_v5, %v9794_v32  ;;  %7175 = vadd.xlane.f32.xlu2 %v5254_v44  ;;  %vm9988_vm11 = vmxor %vm3496_vm9, %vm14908_vm8  ;;  %v10015_v24 = vpop.permute.xlu0 %3409  ;;  %v10133_v51 = vpop.permute.xlu1 %3412 }
  0xef   : > { %v8964_v38 = vpop.eup %8963  ;;  %15380 = vst [vmem:[#allocation26_spill] sm:$0xff] %v9956_v59  ;;  %v9958_v48 = vmax.f32 %v1599_v39, 1e-12  ;;  %v15382_v17 = vsel %vm9967_vm13, 4294967295, %v15381_v17  ;;  %v5578_v56 = vsel %vm9967_vm13, %v9937_v16, 0.0  ;;  %v9982_v57 = vadd.s32 %v9775_v14, %v3630_v26  ;;  %vm10004_vm9 = vmand %vm3504_vm1, %vm3946_vm14 }
  0xf0   : > { %15383 = vst [vmem:[#allocation27_spill] sm:$0xff] %v15382_v17  ;;  %v2116_v49 = vmul.f32 %v8964_v38, %v9874_v1  ;;  %v4738_v10 = vmul.f32 1.442695, %v4594_v18  ;;  %7273 = vadd.xlane.f32.xlu1 %v5578_v56  ;;  %v2072_v18 = vmul.f32 %v9872_v61, %v2071_v62  ;;  %v1347_v17 = vadd.f32 %v9708_v43, %v9665_v12  ;;  %vm10021_vm1 = vmand %vm9988_vm11, %vm9836_vm10 }
  0xf1   : > { %8967 = vrsqrt.f32 %v9958_v48  ;;  %15384 = vst [vmem:[#allocation28_spill] sm:$0xff] %v9982_v57  ;;  %vm3950_vm0 = vcmp.ne.s32.totalorder %v9956_v59, %v9794_v32  ;;  %vm14890_vm6 = vcmp.eq.s32.totalorder %v9978_v13, %v9799_v37  ;;  %vm14888_vm15 = vcmp.lt.s32.totalorder %v9956_v59, 8  ;;  %v8966_v62 = vpop.eup %8965  ;;  %vm10030_vm3 = vmand %vm10004_vm9, %vm9912_vm5  ;;  %v590_v59 = vld [vmem:[%s9602_s8 + $0xc8] sm:$0xff] }
  0xf2   : > { %v2117_v44 = vmul.f32 %v8964_v38, %v2116_v49  ;;  %v702_v40 = vpop.f32.mrf.mxu0  ;;  %8969 = vpow2.f32 %v4730_v28  ;;  %v2073_v12 = vmul.f32 %v2072_v18, %v9826_v4  ;;  %v3631_v28 = vadd.s32 40, %v9770_v9  ;;  %vm10050_vm10 = vmand %vm14888_vm15, %vm14904_vm7 }
  0xf3   : > { %v1475_v26 = vmul.f32 2.0, %v702_v40  ;;  %8971 = vpow2.f32 %v4738_v10  ;;  %v15389_v40 = vmov 0  ;;  %vm2074_vm14 = vcmp.eq.f32.partialorder %v9826_v4, inf  ;;  %vm10064_vm9 = vmand %vm14890_vm6, %vm3950_vm0 }
  0xf4   : > { %v2118_v61 = vmul.f32 0.5, %v2117_v44  ;;  %v15390_v40 = vsel %vm10021_vm1, 4294967295, %v15389_v40  ;;  %v15392_v10 = vmov 0  ;;  %v5570_v11 = vsel %vm10021_vm1, %v9846_v29, 0.0 }
  0xf5   : > { %v1603_v49 = vsub.f32 %v1347_v17, %v1475_v26  ;;  %15391 = vst [vmem:[#allocation29_spill] sm:$0xff] %v15390_v40  ;;  %749 = vmatmul.f32.gmra.mxu0 %v589_v3  ;;  %v15393_v10 = vsel %vm10030_vm3, 4294967295, %v15392_v10  ;;  %v2075_v17 = vsel %vm2074_vm14, %v9826_v4, %v2073_v12  ;;  %v2077_v39 = vand.u32 2147483648, %v9826_v4 }
  0xf6   : > { %v2119_v56 = vsub.f32 1.5, %v2118_v61  ;;  %15394 = vst [vmem:[#allocation30_spill] sm:$0xff] %v15393_v10  ;;  %v5258_v46 = vsel %vm10030_vm3, %v9937_v16, 0.0  ;;  %vm14892_vm5 = vcmp.lt.s32.totalorder %v9982_v57, 8  ;;  %vm2076_vm11 = vcmp.eq.f32.partialorder %v9826_v4, 0.0  ;;  %7269 = vadd.xlane.f32.xlu2 %v5570_v11 }
  0xf7   : > { %v10039_v3 = vpop.eup %8967  ;;  %v10044_v44 = vmax.f32 %v1603_v49, 1e-12  ;;  %vm14898_vm14 = vcmp.eq.s32.totalorder %v10015_v24, %v9799_v37  ;;  %7177 = vadd.xlane.f32.xlu0 %v5258_v46  ;;  %v5890_v4 = vsel %vm9859_vm12, %v8966_v62, 0.0  ;;  %v10074_v26 = vsel %vm2076_vm11, %v2077_v39, %v2075_v17  ;;  %vm10100_vm11 = vmand %vm14892_vm5, %vm14904_vm7 }
  0xf8   : > { %v10056_v29 = vpop.eup %8969  ;;  %v2164_v45 = vmul.f32 %v10039_v3, %v9958_v48  ;;  %15400 = vst [vmem:[#allocation32_spill] sm:$0xff] %v10074_v26  ;;  %vm15401_vm0 = vcmp.eq.s32.totalorder %v9876_v8, %v9799_v37  ;;  %7365 = vadd.xlane.f32.xlu1 %v5890_v4  ;;  %v4598_v49 = vmul.f32 -20.0, %v10074_v26  ;;  %v2120_v11 = vmul.f32 %v8964_v38, %v2119_v56 }
  0xf9   : > { %15397 = vst [vmem:[#allocation31_spill] sm:$0xff] %v10056_v29  ;;  %v10076_v61 = vpop.eup %8971  ;;  %vm10082_vm15 = vmxor %vm15401_vm0, %vm14908_vm8  ;;  %8973 = vrsqrt.f32 %v10044_v44  ;;  %v1351_v62 = vadd.f32 %v9708_v43, %v9693_v34  ;;  %v3632_v17 = vadd.s32 48, %v9770_v9  ;;  %v10093_v46 = vadd.s32 %v9775_v14, %v3631_v28 }
  0xfa   : > { %v2165_v39 = vmul.f32 %v10039_v3, %v2164_v45  ;;  %v705_v8 = vpop.f32.mrf.mxu0  ;;  %vm15407_vm0 = vcmp.ne.s32.totalorder %v9982_v57, %v9794_v32  ;;  %v10116_v28 = vmul.f32 %v10056_v29, %v10056_v29  ;;  %v4746_v56 = vmul.f32 1.442695, %v4598_v49  ;;  %vm10123_vm5 = vmand %vm10082_vm15, %vm9900_vm4 }
  0xfb   : > { %15404 = vst [vmem:[#allocation33_spill] sm:$0xff] %v10093_v46  ;;  %vm10110_vm6 = vmand %vm14898_vm14, %vm15407_vm0  ;;  %v1479_v38 = vmul.f32 2.0, %v705_v8  ;;  %v2121_v45 = vmul.f32 %v2120_v11, %v9874_v1  ;;  %v15410_v57 = vmov 0  ;;  %v4978_v26 = vmul.f32 %v10076_v61, %v10076_v61 }
  0xfc   : > { %v2166_v5 = vmul.f32 0.5, %v2165_v39  ;;  %v15411_v57 = vsel %vm10123_vm5, 4294967295, %v15410_v57  ;;  %vm2122_vm0 = vcmp.eq.f32.partialorder %v9874_v1, inf  ;;  %v2125_v8 = vand.u32 2147483648, %v9874_v1  ;;  %vm10139_vm15 = vmand %vm10064_vm9, %vm10050_vm10 }
  0xfd   : > { %15412 = vst [vmem:[#allocation34_spill] sm:$0xff] %v15411_v57  ;;  %v1607_v52 = vsub.f32 %v1351_v62, %v1479_v38  ;;  %752 = vmatmul.f32.gmra.mxu0 %v590_v59  ;;  %8975 = vpow2.f32 %v4746_v56  ;;  %v2123_v49 = vsel %vm2122_vm0, %v9874_v1, %v2121_v45  ;;  %vm2124_vm14 = vcmp.eq.f32.partialorder %v9874_v1, 0.0  ;;  %vm10157_vm4 = vmand %vm10110_vm6, %vm10100_vm11 }
  0xfe   : > { %v15413_v12 = vmov 0  ;;  %v10143_v11 = vsel %vm2124_vm14, %v2125_v8, %v2123_v49  ;;  %v5574_v59 = vsel %vm10123_vm5, %v9943_v31, 0.0  ;;  %v5262_v1 = vsel %vm10139_vm15, %v10116_v28, 0.0  ;;  %v591_v49 = vld [vmem:[%s9602_s8 + $0xd0] sm:$0xff] }
  0xff   : > { %v15414_v12 = vsel %vm10139_vm15, 4294967295, %v15413_v12  ;;  %15416 = vst [vmem:[#allocation36_spill] sm:$0xff] %v10143_v11  ;;  %v8974_v39 = vpop.eup %8973  ;;  %v10148_v62 = vmax.f32 %v1607_v52, 1e-12  ;;  %v15417_v16 = vmov 0  ;;  %vm14903_vm9 = vcmp.lt.s32.totalorder %v10093_v46, 8  ;;  %7271 = vadd.xlane.f32.xlu0 %v5574_v59  ;;  %7179 = vadd.xlane.f32.xlu2 %v5262_v1 }
 0x100   : > { %15415 = vst [vmem:[#allocation35_spill] sm:$0xff] %v15414_v12  ;;  %v15418_v16 = vsel %vm10157_vm4, 4294967295, %v15417_v16  ;;  %v2167_v38 = vsub.f32 1.5, %v2166_v5  ;;  %v2212_v31 = vmul.f32 %v8974_v39, %v10044_v44  ;;  %v5266_v52 = vsel %vm10157_vm4, %v4978_v26, 0.0 }
 0x101   : > { %15419 = vst [vmem:[#allocation37_spill] sm:$0xff] %v15418_v16  ;;  %v4602_v56 = vmul.f32 -20.0, %v10143_v11  ;;  %vm15420_vm14 = vcmp.eq.s32.totalorder %v9978_v13, %v9799_v37  ;;  %v10175_v45 = vadd.s32 %v9775_v14, %v3632_v17  ;;  %8977 = vrsqrt.f32 %v10148_v62  ;;  %7181 = vadd.xlane.f32.xlu1 %v5266_v52  ;;  %v10193_v11 = vpop.permute.xlu2 %3415 }
 0x102   : > { %vm10170_vm6 = vmxor %vm15420_vm14, %vm14908_vm8  ;;  %v2213_v5 = vmul.f32 %v8974_v39, %v2212_v31  ;;  %v708_v8 = vpop.f32.mrf.mxu0  ;;  %v1355_v1 = vadd.f32 %v9708_v43, %v9691_v33  ;;  %vm15427_vm0 = vcmp.eq.s32.totalorder %v10015_v24, %v9799_v37  ;;  %v2168_v40 = vmul.f32 %v10039_v3, %v2167_v38 }
 0x103   : > { %15423 = vst [vmem:[#allocation38_spill] sm:$0xff] %v10175_v45  ;;  %vm10185_vm14 = vmand %vm14903_vm9, %vm14904_vm7  ;;  %v4754_v59 = vmul.f32 1.442695, %v4602_v56  ;;  %v10189_v17 = vpop.eup %8975  ;;  %v1483_v31 = vmul.f32 2.0, %v708_v8  ;;  %vm15428_vm9 = vcmp.eq.s32.totalorder %v10133_v51, %v9799_v37  ;;  %v15431_v24 = vmov 0 }
 0x104   : > { %15426 = vst [vmem:[#allocation39_spill] sm:$0xff] %v10189_v17  ;;  %vm4338_vm12 = vmxor %vm15427_vm0, %vm14908_vm8  ;;  %v2214_v56 = vmul.f32 0.5, %v2213_v5  ;;  %v4982_v33 = vmul.f32 %v10189_v17, %v10189_v17  ;;  %vm3520_vm13 = vcmp.eq.s32.totalorder %v10193_v11, %v9799_v37  ;;  %v15434_v3 = vmov 0 }
 0x105   : > { %vm10203_vm7 = vmxor %vm15428_vm9, %vm14908_vm8  ;;  %8979 = vpow2.f32 %v4754_v59  ;;  %v1611_v54 = vsub.f32 %v1355_v1, %v1483_v31  ;;  %755 = vmatmul.f32.gmra.mxu0 %v591_v49  ;;  %vm14914_vm9 = vcmp.lt.s32.totalorder %v10175_v45, 8  ;;  %vm3962_vm8 = vcmp.ne.s32.totalorder %v10175_v45, %v9794_v32 }
 0x106   : > { %vm10214_vm0 = vmand %vm10170_vm6, %vm10050_vm10  ;;  %v2215_v5 = vsub.f32 1.5, %v2214_v56  ;;  %v2169_v18 = vmul.f32 %v2168_v40, %v9958_v48  ;;  %v15437_v4 = vmov 0  ;;  %8981 = vrcp.f32 %v10056_v29  ;;  %v592_v56 = vld [vmem:[%s9602_s8 + $0xd8] sm:$0xff] }
 0x107   : > { %v15432_v24 = vsel %vm10214_vm0, 4294967295, %v15431_v24  ;;  %vm10225_vm1 = vmand %vm4338_vm12, %vm10100_vm11  ;;  %v8978_v38 = vpop.eup %8977  ;;  %v10232_v8 = vmax.f32 %v1611_v54, 1e-12  ;;  %v5582_v49 = vsel %vm10214_vm0, %v10116_v28, 0.0  ;;  %vm15440_vm11 = vcmp.lt.s32.totalorder %v9794_v32, 8 }
 0x108   : > { %15433 = vst [vmem:[#allocation40_spill] sm:$0xff] %v15432_v24  ;;  %v15435_v3 = vsel %vm10225_vm1, 4294967295, %v15434_v3  ;;  %v5586_v34 = vsel %vm10225_vm1, %v4978_v26, 0.0  ;;  %vm10241_vm12 = vmand %vm10203_vm7, %vm10185_vm14  ;;  %v2216_v54 = vmul.f32 %v8974_v39, %v2215_v5  ;;  %v2260_v40 = vmul.f32 %v8978_v38, %v10148_v62  ;;  %7275 = vadd.xlane.f32.xlu2 %v5582_v49 }
 0x109   : > { %15436 = vst [vmem:[#allocation41_spill] sm:$0xff] %v15435_v3  ;;  %v15438_v4 = vsel %vm10241_vm12, 4294967295, %v15437_v4  ;;  %7277 = vadd.xlane.f32.xlu0 %v5586_v34  ;;  %v5590_v26 = vsel %vm10241_vm12, %v4982_v33, 0.0  ;;  %vm10255_vm7 = vmand %vm14914_vm9, %vm15440_vm11  ;;  %8983 = vrsqrt.f32 %v10232_v8  ;;  %vm2170_vm10 = vcmp.eq.f32.partialorder %v9958_v48, inf }
 0x10a   : > { %15439 = vst [vmem:[#allocation42_spill] sm:$0xff] %v15438_v4  ;;  %vm10265_vm6 = vmand %vm3520_vm13, %vm3962_vm8  ;;  %7279 = vadd.xlane.f32.xlu1 %v5590_v26  ;;  %v2217_v1 = vmul.f32 %v2216_v54, %v10044_v44  ;;  %v2261_v31 = vmul.f32 %v8978_v38, %v2260_v40  ;;  %v711_v52 = vpop.f32.mrf.mxu0  ;;  %v2171_v5 = vsel %vm2170_vm10, %v9958_v48, %v2169_v18  ;;  %v2173_v34 = vand.u32 2147483648, %v9958_v48  ;;  %v10294_v18 = vpop.permute.xlu1 %3421 }
 0x10b   : > { %v10271_v59 = vpop.eup %8979  ;;  %v1359_v49 = vadd.f32 %v9708_v43, %v9673_v19  ;;  %vm15446_vm8 = vcmp.ne.s32.totalorder %v10093_v46, %v9794_v32  ;;  %vm15447_vm11 = vcmp.eq.s32.totalorder %v10133_v51, %v9799_v37  ;;  %v1487_v54 = vmul.f32 2.0, %v711_v52 }
 0x10c   : > { %15445 = vst [vmem:[#allocation43_spill] sm:$0xff] %v10271_v59  ;;  %vm10285_vm9 = vmand %vm15447_vm11, %vm15446_vm8  ;;  %v10291_v40 = vmul.f32 %v10271_v59, %v10271_v59  ;;  %vm2172_vm10 = vcmp.eq.f32.partialorder %v9958_v48, 0.0  ;;  %v3633_v19 = vadd.s32 56, %v9770_v9  ;;  %v2262_v45 = vmul.f32 0.5, %v2261_v31  ;;  %v8982_v46 = vpop.eup %8981 }
 0x10d   : > { %vm10301_vm8 = vmand %vm10265_vm6, %vm10255_vm7  ;;  %v15450_v51 = vmov 0  ;;  %v10305_v52 = vsel %vm2172_vm10, %v2173_v34, %v2171_v5  ;;  %v1615_v4 = vsub.f32 %v1359_v49, %v1487_v54  ;;  %758 = vmatmul.f32.gmra.mxu0 %v592_v56  ;;  %vm2218_vm11 = vcmp.eq.f32.partialorder %v10044_v44, inf }
 0x10e   : > { %v15451_v51 = vsel %vm10301_vm8, 4294967295, %v15450_v51  ;;  %15453 = vst [vmem:[#allocation45_spill] sm:$0xff] %v10305_v52  ;;  %v5274_v48 = vsel %vm10301_vm8, %v10291_v40, 0.0  ;;  %v2263_v31 = vsub.f32 1.5, %v2262_v45  ;;  %vm10315_vm6 = vmand %vm10285_vm9, %vm10185_vm14  ;;  %v15454_v39 = vmov 0 }
 0x10f   : > { %15452 = vst [vmem:[#allocation44_spill] sm:$0xff] %v15451_v51  ;;  %v15455_v39 = vsel %vm10315_vm6, 4294967295, %v15454_v39  ;;  %8985 = vrcp.f32 %v9887_v30  ;;  %v2219_v5 = vsel %vm2218_vm11, %v10044_v44, %v2217_v1  ;;  %v10321_v34 = vpop.eup %8983  ;;  %v10323_v49 = vmax.f32 %v1615_v4, 1e-12  ;;  %v3419_v1 = vpop.permute.xlu0 %3418  ;;  %v593_v30 = vld [vmem:[%s9602_s8 + $0xe0] sm:$0xff] }
 0x110   : > { %15456 = vst [vmem:[#allocation46_spill] sm:$0xff] %v15455_v39  ;;  %v5270_v56 = vsel %vm10315_vm6, %v4982_v33, 0.0  ;;  %v4606_v45 = vmul.f32 -20.0, %v10305_v52  ;;  %v2221_v13 = vand.u32 2147483648, %v10044_v44  ;;  %v10330_v26 = vadd.s32 %v9775_v14, %v3633_v19 }
 0x111   : > { %v2308_v54 = vmul.f32 %v10321_v34, %v10232_v8  ;;  %7183 = vadd.xlane.f32.xlu2 %v5270_v56  ;;  %7185 = vadd.xlane.f32.xlu0 %v5274_v48  ;;  %v5902_v4 = vsel %vm10139_vm15, %v8982_v46, 0.0  ;;  %vm2220_vm14 = vcmp.eq.f32.partialorder %v10044_v44, 0.0  ;;  %8987 = vrsqrt.f32 %v10323_v49 }
 0x112   : > { %15457 = vst [vmem:[#allocation47_spill] sm:$0xff] %v10330_v26  ;;  %7371 = vadd.xlane.f32.xlu1 %v5902_v4  ;;  %v4762_v33 = vmul.f32 1.442695, %v4606_v45  ;;  %v10338_v52 = vsel %vm2220_vm14, %v2221_v13, %v2219_v5  ;;  %v2264_v24 = vmul.f32 %v8978_v38, %v2263_v31  ;;  %v714_v29 = vpop.f32.mrf.mxu0  ;;  %v1363_v48 = vadd.f32 %v9708_v43, %v9706_v42  ;;  %v10357_v42 = vpop.permute.xlu2 %3424 }
 0x113   : > { %15458 = vst [vmem:[#allocation48_spill] sm:$0xff] %v10338_v52  ;;  %v2309_v19 = vmul.f32 %v10321_v34, %v2308_v54  ;;  %vm15459_vm9 = vmmov 1   ;;  %v1491_v46 = vmul.f32 2.0, %v714_v29  ;;  %v4610_v5 = vmul.f32 -20.0, %v10338_v52  ;;  %v10361_v45 = vpop.permute.xlu1 %3430 }
 0x114   : > { %vm10348_vm10 = vmxor %vm3520_vm13, %vm15459_vm9  ;;  %8989 = vpow2.f32 %v4762_v33  ;;  %v3635_v31 = vadd.s32 72, %v9770_v9  ;;  %vm3966_vm11 = vcmp.ne.s32.totalorder %v10330_v26, %v9794_v32  ;;  %vm14928_vm14 = vcmp.eq.s32.totalorder %v3419_v1, %v9799_v37 }
 0x115   : > { %v8986_v38 = vpop.eup %8985  ;;  %v1619_v56 = vsub.f32 %v1363_v48, %v1491_v46  ;;  %761 = vmatmul.f32.gmra.mxu0 %v593_v30  ;;  %vm14943_vm13 = vcmp.lt.s32.totalorder %v10330_v26, 8  ;;  %v4770_v11 = vmul.f32 1.442695, %v4610_v5  ;;  %v2265_v29 = vmul.f32 %v2264_v24, %v10148_v62  ;;  %vm10367_vm15 = vmand %vm10348_vm10, %vm10255_vm7 }
 0x116   : > { %v2310_v13 = vmul.f32 0.5, %v2309_v19  ;;  %v15462_v54 = vmov 0  ;;  %vm10375_vm12 = vmand %vm14928_vm14, %vm3966_vm11  ;;  %v5594_v28 = vsel %vm10367_vm15, %v10291_v40, 0.0  ;;  %v5898_v33 = vsel %vm10030_vm3, %v8986_v38, 0.0 }
 0x117   : > { %v15463_v54 = vsel %vm10367_vm15, 4294967295, %v15462_v54  ;;  %v10371_v4 = vpop.eup %8987  ;;  %v10379_v24 = vmax.f32 %v1619_v56, 1e-12  ;;  %8991 = vrcp.f32 %v9904_v63  ;;  %v10388_v19 = vadd.s32 %v9775_v14, %v3635_v31 }
 0x118   : > { %15464 = vst [vmem:[#allocation49_spill] sm:$0xff] %v15463_v54  ;;  %v3634_v48 = vadd.s32 64, %v9770_v9  ;;  %v2356_v44 = vmul.f32 %v10371_v4, %v10323_v49  ;;  %vm15468_vm7 = vcmp.lt.s32.totalorder %v9794_v32, 8  ;;  %8993 = vpow2.f32 %v4770_v11  ;;  %v10437_v54 = vpop.permute.xlu0 %3427 }
 0x119   : > { %15467 = vst [vmem:[#allocation50_spill] sm:$0xff] %v10388_v19  ;;  %7281 = vadd.xlane.f32.xlu2 %v5594_v28  ;;  %7369 = vadd.xlane.f32.xlu0 %v5898_v33  ;;  %vm10397_vm10 = vmand %vm14943_vm13, %vm15468_vm7  ;;  %8995 = vrsqrt.f32 %v10379_v24  ;;  %vm2266_vm11 = vcmp.eq.f32.partialorder %v10148_v62, inf  ;;  %vm2268_vm14 = vcmp.eq.f32.partialorder %v10148_v62, 0.0  ;;  %v2269_v5 = vand.u32 2147483648, %v10148_v62  ;;  %v594_v33 = vld [vmem:[%s9602_s8 + $0xe8] sm:$0xff] }
 0x11a   : > { %v10401_v46 = vpop.eup %8989  ;;  %vm15472_vm3 = vcmp.eq.s32.totalorder %v3419_v1, %v9799_v37  ;;  %v2311_v31 = vsub.f32 1.5, %v2310_v13  ;;  %v2357_v56 = vmul.f32 %v10371_v4, %v2356_v44  ;;  %v717_v28 = vpop.f32.mrf.mxu0  ;;  %v2267_v26 = vsel %vm2266_vm11, %v10148_v62, %v2265_v29 }
 0x11b   : > { %15471 = vst [vmem:[#allocation51_spill] sm:$0xff] %v10401_v46  ;;  %vm10410_vm15 = vmxor %vm15472_vm3, %vm15459_vm9  ;;  %v4990_v11 = vmul.f32 %v10401_v46, %v10401_v46  ;;  %v1367_v52 = vadd.f32 %v9708_v43, %v9704_v41  ;;  %v15475_v1 = vmov 0  ;;  %v1495_v13 = vmul.f32 2.0, %v717_v28  ;;  %v10468_v38 = vpop.permute.xlu1 %3439 }
 0x11c   : > { %vm10425_vm3 = vmand %vm10375_vm12, %vm10397_vm10  ;;  %v10429_v44 = vsel %vm2268_vm14, %v2269_v5, %v2267_v26  ;;  %v10432_v12 = vadd.s32 %v9775_v14, %v3634_v48  ;;  %v2358_v10 = vmul.f32 0.5, %v2357_v56  ;;  %vm3974_vm12 = vcmp.ne.s32.totalorder %v10388_v19, %v9794_v32  ;;  %v10456_v56 = vpop.permute.xlu2 %3433 }
 0x11d   : > { %v15476_v1 = vsel %vm10425_vm3, 4294967295, %v15475_v1  ;;  %15478 = vst [vmem:[#allocation53_spill] sm:$0xff] %v10429_v44  ;;  %v5278_v62 = vsel %vm10425_vm3, %v4990_v11, 0.0  ;;  %v4614_v41 = vmul.f32 -20.0, %v10429_v44  ;;  %v8992_v29 = vpop.eup %8991  ;;  %v1623_v30 = vsub.f32 %v1367_v52, %v1495_v13  ;;  %764 = vmatmul.f32.gmra.mxu0 %v594_v33  ;;  %vm10450_vm7 = vmand %vm10410_vm15, %vm10397_vm10 }
 0x11e   : > { %15477 = vst [vmem:[#allocation52_spill] sm:$0xff] %v15476_v1  ;;  %7187 = vadd.xlane.f32.xlu1 %v5278_v62  ;;  %v10439_v3 = vpop.eup %8993  ;;  %vm14944_vm14 = vcmp.eq.s32.totalorder %v10357_v42, %v9799_v37  ;;  %v2312_v26 = vmul.f32 %v10321_v34, %v2311_v31  ;;  %v15481_v48 = vmov 0  ;;  %vm3528_vm11 = vcmp.eq.s32.totalorder %v10294_v18, %v9799_v37 }
 0x11f   : > { %15479 = vst [vmem:[#allocation54_spill] sm:$0xff] %v10432_v12  ;;  %v15482_v48 = vsel %vm10450_vm7, 4294967295, %v15481_v48  ;;  %v4778_v52 = vmul.f32 1.442695, %v4614_v41  ;;  %v10454_v5 = vpop.eup %8995  ;;  %v10460_v28 = vmax.f32 %v1623_v30, 1e-12  ;;  %vm10478_vm10 = vmand %vm14944_vm14, %vm3974_vm12  ;;  %v4994_v62 = vmul.f32 %v10439_v3, %v10439_v3 }
 0x120   : > { %15480 = vst [vmem:[#allocation55_spill] sm:$0xff] %v10439_v3  ;;  %v5894_v34 = vsel %vm9950_vm2, %v8992_v29, 0.0  ;;  %v5598_v40 = vsel %vm10450_vm7, %v4990_v11, 0.0  ;;  %v2359_v31 = vsub.f32 1.5, %v2358_v10  ;;  %v2404_v33 = vmul.f32 %v10454_v5, %v10379_v24  ;;  %vm4354_vm15 = vmxor %vm3528_vm11, %vm15459_vm9  ;;  %v595_v29 = vld [vmem:[%s9602_s8 + $0xf0] sm:$0xff] }
 0x121   : > { %15483 = vst [vmem:[#allocation56_spill] sm:$0xff] %v15482_v48  ;;  %7367 = vadd.xlane.f32.xlu2 %v5894_v34  ;;  %7283 = vadd.xlane.f32.xlu0 %v5598_v40  ;;  %8997 = vpow2.f32 %v4778_v52  ;;  %v2313_v10 = vmul.f32 %v2312_v26, %v10232_v8  ;;  %v1371_v30 = vadd.f32 %v9708_v43, %v9683_v27  ;;  %vm15487_vm13 = vcmp.lt.s32.totalorder %v9794_v32, 8 }
 0x122   : > { %8999 = vrsqrt.f32 %v10460_v28  ;;  %v2405_v13 = vmul.f32 %v10454_v5, %v2404_v33  ;;  %v720_v41 = vpop.f32.mrf.mxu0  ;;  %vm15486_vm12 = vcmp.ne.s32.totalorder %v10432_v12, %v9794_v32  ;;  %v2360_v26 = vmul.f32 %v10371_v4, %v2359_v31 }
 0x123   : > { %vm4098_vm14 = vmand %vm3528_vm11, %vm15486_vm12  ;;  %v1499_v52 = vmul.f32 2.0, %v720_v41  ;;  %vm15488_vm2 = vcmp.lt.s32.totalorder %v10432_v12, 8  ;;  %vm14968_vm0 = vcmp.lt.s32.totalorder %v10388_v19, 8  ;;  %v3636_v27 = vadd.s32 80, %v9770_v9  ;;  %v10567_v19 = vpop.permute.xlu1 %3448 }
 0x124   : > { %v2406_v34 = vmul.f32 0.5, %v2405_v13  ;;  %vm3842_vm7 = vmand %vm15488_vm2, %vm15487_vm13  ;;  %v15489_v40 = vmov 0  ;;  %9001 = vrcp.f32 %v10271_v59  ;;  %vm2314_vm11 = vcmp.eq.f32.partialorder %v10232_v8, inf }
 0x125   : > { %vm10508_vm1 = vmand %vm4354_vm15, %vm3842_vm7  ;;  %v1627_v33 = vsub.f32 %v1371_v30, %v1499_v52  ;;  %767 = vmatmul.f32.gmra.mxu0 %v595_v29  ;;  %v15493_v31 = vmov 0  ;;  %v2315_v13 = vsel %vm2314_vm11, %v10232_v8, %v2313_v10  ;;  %v2317_v41 = vand.u32 2147483648, %v10232_v8  ;;  %v10526_v29 = vpop.permute.xlu0 %3436 }
 0x126   : > { %v15490_v40 = vsel %vm10508_vm1, 4294967295, %v15489_v40  ;;  %v5602_v4 = vsel %vm10508_vm1, %v4994_v62, 0.0  ;;  %vm10518_vm2 = vmand %vm4098_vm14, %vm3842_vm7  ;;  %v2407_v30 = vsub.f32 1.5, %v2406_v34  ;;  %9003 = vrcp.f32 %v10189_v17  ;;  %v596_v17 = vld [vmem:[%s9602_s8 + $0xf8] sm:$0xff] }
 0x127   : > { %15491 = vst [vmem:[#allocation57_spill] sm:$0xff] %v15490_v40  ;;  %v10514_v18 = vpop.eup %8997  ;;  %v15494_v31 = vsel %vm10518_vm2, 4294967295, %v15493_v31  ;;  %7285 = vadd.xlane.f32.xlu1 %v5602_v4  ;;  %v10528_v52 = vmax.f32 %v1627_v33, 1e-12  ;;  %v5282_v44 = vsel %vm10518_vm2, %v4994_v62, 0.0  ;;  %vm10536_vm14 = vmand %vm14968_vm0, %vm15487_vm13  ;;  %v2361_v40 = vmul.f32 %v2360_v26, %v10323_v49  ;;  %v10555_v33 = vpop.permute.xlu2 %3442 }
 0x128   : > { %15492 = vst [vmem:[#allocation58_spill] sm:$0xff] %v10514_v18  ;;  %v10524_v12 = vpop.eup %8999  ;;  %v4998_v10 = vmul.f32 %v10514_v18, %v10514_v18  ;;  %vm10549_vm7 = vmand %vm10478_vm10, %vm10536_vm14  ;;  %v15498_v62 = vmov 0  ;;  %vm2316_vm15 = vcmp.eq.f32.partialorder %v10232_v8, 0.0  ;;  %v10558_v26 = vadd.s32 %v9775_v14, %v3636_v27 }
 0x129   : > { %15495 = vst [vmem:[#allocation59_spill] sm:$0xff] %v15494_v31  ;;  %v2452_v34 = vmul.f32 %v10524_v12, %v10460_v28  ;;  %7189 = vadd.xlane.f32.xlu2 %v5282_v44  ;;  %v15499_v62 = vsel %vm10549_vm7, 4294967295, %v15498_v62  ;;  %9005 = vrsqrt.f32 %v10528_v52  ;;  %v10563_v4 = vsel %vm2316_vm15, %v2317_v41, %v2315_v13 }
 0x12a   : > { %15500 = vst [vmem:[#allocation60_spill] sm:$0xff] %v15499_v62  ;;  %v5286_v44 = vsel %vm10549_vm7, %v4998_v10, 0.0  ;;  %v1375_v11 = vadd.f32 %v9708_v43, %v9719_v55  ;;  %v723_v8 = vpop.f32.mrf.mxu0  ;;  %v4618_v27 = vmul.f32 -20.0, %v10563_v4  ;;  %v9002_v48 = vpop.eup %9001  ;;  %vm15503_vm10 = vcmp.eq.s32.totalorder %v10357_v42, %v9799_v37 }
 0x12b   : > { %15501 = vst [vmem:[#allocation61_spill] sm:$0xff] %v10558_v26  ;;  %v2453_v59 = vmul.f32 %v10524_v12, %v2452_v34  ;;  %7191 = vadd.xlane.f32.xlu0 %v5286_v44  ;;  %vm10576_vm12 = vmxor %vm15503_vm10, %vm15459_vm9  ;;  %v3638_v55 = vadd.s32 96, %v9770_v9  ;;  %v2408_v41 = vmul.f32 %v10454_v5, %v2407_v30  ;;  %v1503_v57 = vmul.f32 2.0, %v723_v8 }
 0x12c   : > { %15502 = vst [vmem:[#allocation62_spill] sm:$0xff] %v10563_v4  ;;  %vm2362_vm11 = vcmp.eq.f32.partialorder %v10323_v49, inf  ;;  %v4786_v44 = vmul.f32 1.442695, %v4618_v27  ;;  %v2365_v63 = vand.u32 2147483648, %v10323_v49  ;;  %vm3978_vm13 = vcmp.ne.s32.totalorder %v10558_v26, %v9794_v32  ;;  %v9004_v60 = vpop.eup %9003 }
 0x12d   : > { %v2454_v34 = vmul.f32 0.5, %v2453_v59  ;;  %v2363_v4 = vsel %vm2362_vm11, %v10323_v49, %v2361_v40  ;;  %v1631_v42 = vsub.f32 %v1375_v11, %v1503_v57  ;;  %770 = vmatmul.f32.gmra.mxu0 %v596_v17  ;;  %9007 = vrcp.f32 %v10076_v61  ;;  %vm10597_vm11 = vmand %vm10576_vm12, %vm10536_vm14  ;;  %v10617_v8 = vpop.permute.xlu0 %3445 }
 0x12e   : > { %vm2364_vm15 = vcmp.eq.f32.partialorder %v10323_v49, 0.0  ;;  %vm14971_vm10 = vcmp.eq.s32.totalorder %v10437_v54, %v9799_v37  ;;  %v5914_v59 = vsel %vm10301_vm8, %v9002_v48, 0.0  ;;  %v15506_v5 = vmov 0 }
 0x12f   : > { %v15507_v5 = vsel %vm10597_vm11, 4294967295, %v15506_v5  ;;  %9009 = vpow2.f32 %v4786_v44  ;;  %v10601_v57 = vsel %vm2364_vm15, %v2365_v63, %v2363_v4  ;;  %v10603_v17 = vpop.eup %9005  ;;  %v2409_v49 = vmul.f32 %v2408_v41, %v10379_v24  ;;  %7377 = vadd.xlane.f32.xlu1 %v5914_v59  ;;  %vm10631_vm12 = vmand %vm14971_vm10, %vm3978_vm13 }
 0x130   : > { %15508 = vst [vmem:[#allocation63_spill] sm:$0xff] %v15507_v5  ;;  %v2455_v40 = vsub.f32 1.5, %v2454_v34  ;;  %v10606_v30 = vmax.f32 %v1631_v42, 1e-12  ;;  %v5606_v36 = vsel %vm10597_vm11, %v4998_v10, 0.0  ;;  %v2500_v48 = vmul.f32 %v10603_v17, %v10528_v52 }
 0x131   : > { %15509 = vst [vmem:[#allocation64_spill] sm:$0xff] %v10601_v57  ;;  %7287 = vadd.xlane.f32.xlu2 %v5606_v36  ;;  %vm14972_vm14 = vcmp.lt.s32.totalorder %v10558_v26, 8  ;;  %v4622_v63 = vmul.f32 -20.0, %v10601_v57  ;;  %v1379_v4 = vadd.f32 %v9708_v43, %v9717_v53  ;;  %v3637_v11 = vadd.s32 88, %v9770_v9 }
 0x132   : > { %9011 = vrsqrt.f32 %v10606_v30  ;;  %v5910_v10 = vsel %vm10315_vm6, %v9004_v60, 0.0  ;;  %v10623_v27 = vadd.s32 %v9775_v14, %v3638_v55  ;;  %v2501_v13 = vmul.f32 %v10603_v17, %v2500_v48  ;;  %v726_v41 = vpop.f32.mrf.mxu0  ;;  %v10637_v55 = vpop.permute.xlu2 %3451 }
 0x133   : > { %7375 = vadd.xlane.f32.xlu0 %v5910_v10  ;;  %v4794_v34 = vmul.f32 1.442695, %v4622_v63  ;;  %vm2410_vm15 = vcmp.eq.f32.partialorder %v10379_v24, inf  ;;  %v9008_v60 = vpop.eup %9007  ;;  %v2456_v44 = vmul.f32 %v10524_v12, %v2455_v40  ;;  %vm15513_vm0 = vcmp.lt.s32.totalorder %v9794_v32, 8  ;;  %v10652_v10 = vpop.permute.xlu1 %3457 }
 0x134   : > { %15510 = vst [vmem:[#allocation65_spill] sm:$0xff] %v10623_v27  ;;  %vm10644_vm13 = vmand %vm14972_vm14, %vm15513_vm0  ;;  %v1507_v59 = vmul.f32 2.0, %v726_v41  ;;  %v2411_v36 = vsel %vm2410_vm15, %v10379_v24, %v2409_v49  ;;  %v2413_v48 = vand.u32 2147483648, %v10379_v24  ;;  %v2502_v57 = vmul.f32 0.5, %v2501_v13 }
 0x135   : > { %v10650_v63 = vpop.eup %9009  ;;  %9013 = vpow2.f32 %v4794_v34  ;;  %vm2412_vm10 = vcmp.eq.f32.partialorder %v10379_v24, 0.0  ;;  %v10656_v12 = vadd.s32 %v9775_v14, %v3637_v11  ;;  %vm15518_vm0 = vcmp.eq.s32.totalorder %v10437_v54, %v9799_v37 }
 0x136   : > { %15516 = vst [vmem:[#allocation66_spill] sm:$0xff] %v10650_v63  ;;  %vm10662_vm14 = vmxor %vm15518_vm0, %vm15459_vm9  ;;  %v5002_v49 = vmul.f32 %v10650_v63, %v10650_v63  ;;  %v1635_v41 = vsub.f32 %v1379_v4, %v1507_v59  ;;  %v10668_v26 = vsel %vm2412_vm10, %v2413_v48, %v2411_v36  ;;  %vm3986_vm15 = vcmp.ne.s32.totalorder %v10623_v27, %v9794_v32 }
 0x137   : > { %15517 = vst [vmem:[#allocation67_spill] sm:$0xff] %v10656_v12  ;;  %vm10678_vm0 = vmand %vm10631_vm12, %vm10644_vm13  ;;  %v15522_v54 = vmov 0  ;;  %v4626_v24 = vmul.f32 -20.0, %v10668_v26  ;;  %v2457_v4 = vmul.f32 %v2456_v44, %v10460_v28  ;;  %v5906_v59 = vsel %vm10157_vm4, %v9008_v60, 0.0 }
 0x138   : > { %15521 = vst [vmem:[#allocation68_spill] sm:$0xff] %v10668_v26  ;;  %v15523_v54 = vsel %vm10678_vm0, 4294967295, %v15522_v54  ;;  %v10683_v11 = vpop.eup %9011  ;;  %v5290_v13 = vsel %vm10678_vm0, %v5002_v49, 0.0  ;;  %v10688_v34 = vmax.f32 %v1635_v41, 1e-12  ;;  %v2503_v53 = vsub.f32 1.5, %v2502_v57  ;;  %vm10700_vm12 = vmand %vm10662_vm14, %vm10644_vm13 }
 0x139   : > { %15524 = vst [vmem:[#allocation69_spill] sm:$0xff] %v15523_v54  ;;  %v2548_v36 = vmul.f32 %v10683_v11, %v10606_v30  ;;  %7193 = vadd.xlane.f32.xlu1 %v5290_v13  ;;  %7373 = vadd.xlane.f32.xlu2 %v5906_v59  ;;  %v15525_v44 = vmov 0  ;;  %v5610_v57 = vsel %vm10700_vm12, %v5002_v49, 0.0  ;;  %v4802_v60 = vmul.f32 1.442695, %v4626_v24  ;;  %v10734_v24 = vpop.permute.xlu0 %3454 }
 0x13a   : > { %v15526_v44 = vsel %vm10700_vm12, 4294967295, %v15525_v44  ;;  %9015 = vrsqrt.f32 %v10688_v34  ;;  %v1383_v42 = vadd.f32 %v9708_v43, %v9695_v35  ;;  %vm15529_vm14 = vcmp.eq.s32.totalorder %v10456_v56, %v9799_v37  ;;  %v729_v49 = vpop.f32.mrf.mxu0 }
 0x13b   : > { %15527 = vst [vmem:[#allocation70_spill] sm:$0xff] %v15526_v44  ;;  %v10709_v48 = vpop.eup %9013  ;;  %vm10719_vm13 = vmand %vm15529_vm14, %vm3986_vm15  ;;  %v2549_v41 = vmul.f32 %v10683_v11, %v2548_v36  ;;  %7289 = vadd.xlane.f32.xlu0 %v5610_v57  ;;  %vm2458_vm10 = vcmp.eq.f32.partialorder %v10460_v28, inf  ;;  %vm15532_vm4 = vcmp.eq.s32.totalorder %v10361_v45, %v9799_v37  ;;  %v1511_v59 = vmul.f32 2.0, %v729_v49  ;;  %v10752_v49 = vpop.permute.xlu2 %3460 }
 0x13c   : > { %15528 = vst [vmem:[#allocation71_spill] sm:$0xff] %v10709_v48  ;;  %vm10730_vm6 = vmxor %vm15532_vm4, %vm15459_vm9  ;;  %v5006_v13 = vmul.f32 %v10709_v48, %v10709_v48  ;;  %9017 = vpow2.f32 %v4802_v60  ;;  %v2459_v36 = vsel %vm2458_vm10, %v10460_v28, %v2457_v4  ;;  %vm15535_vm15 = vcmp.ne.s32.totalorder %v10656_v12, %v9794_v32 }
 0x13d   : > { %vm15536_vm14 = vmmov %vm15532_vm4  ;;  %v2504_v26 = vmul.f32 %v10603_v17, %v2503_v53  ;;  %vm14998_vm4 = vcmp.lt.s32.totalorder %v10623_v27, 8  ;;  %v2461_v51 = vand.u32 2147483648, %v10460_v28  ;;  %v2550_v60 = vmul.f32 0.5, %v2549_v41  ;;  %v10761_v17 = vpop.permute.xlu1 %3466 }
 0x13e   : > { %vm10745_vm8 = vmand %vm15536_vm14, %vm15535_vm15  ;;  %vm15539_vm10 = vcmp.lt.s32.totalorder %v9794_v32, 8  ;;  %vm15540_vm11 = vcmp.lt.s32.totalorder %v10656_v12, 8  ;;  %v1639_v4 = vsub.f32 %v1383_v42, %v1511_v59  ;;  %9019 = vrcp.f32 %v10514_v18 }
 0x13f   : > { %vm3854_vm1 = vmand %vm15540_vm11, %vm15539_vm10  ;;  %vm2460_vm15 = vcmp.eq.f32.partialorder %v10460_v28, 0.0  ;;  %v3639_v45 = vadd.s32 104, %v9770_v9  ;;  %v15541_v53 = vmov 0  ;;  %v15545_v28 = vmov 0 }
 0x140   : > { %vm10765_vm14 = vmand %vm10730_vm6, %vm3854_vm1  ;;  %v10769_v41 = vsel %vm2460_vm15, %v2461_v51, %v2459_v36  ;;  %v10771_v16 = vpop.eup %9015  ;;  %v10775_v59 = vmax.f32 %v1639_v4, 1e-12  ;;  %v2505_v12 = vmul.f32 %v2504_v26, %v10528_v52  ;;  %9021 = vrcp.f32 %v10439_v3 }
 0x141   : > { %v15542_v53 = vsel %vm10765_vm14, 4294967295, %v15541_v53  ;;  %15544 = vst [vmem:[#allocation73_spill] sm:$0xff] %v10769_v41  ;;  %v5614_v42 = vsel %vm10765_vm14, %v5006_v13, 0.0  ;;  %vm10779_vm11 = vmand %vm10745_vm8, %vm3854_vm1  ;;  %v4630_v35 = vmul.f32 -20.0, %v10769_v41  ;;  %v2596_v51 = vmul.f32 %v10771_v16, %v10688_v34 }
 0x142   : > { %15543 = vst [vmem:[#allocation72_spill] sm:$0xff] %v15542_v53  ;;  %v15546_v28 = vsel %vm10779_vm11, 4294967295, %v15545_v28  ;;  %7291 = vadd.xlane.f32.xlu1 %v5614_v42  ;;  %v5294_v36 = vsel %vm10779_vm11, %v5006_v13, 0.0  ;;  %vm15548_vm6 = vmmov %vm15539_vm10  ;;  %v10797_v4 = vpop.eup %9017  ;;  %v2551_v41 = vsub.f32 1.5, %v2550_v60  ;;  %v10801_v42 = vadd.s32 %v9775_v14, %v3639_v45  ;;  %v732_v39 = vpop.f32.mrf.mxu0 }
 0x143   : > { %15547 = vst [vmem:[#allocation74_spill] sm:$0xff] %v15546_v28  ;;  %vm10793_vm10 = vmand %vm14998_vm4, %vm15548_vm6  ;;  %7195 = vadd.xlane.f32.xlu2 %v5294_v36  ;;  %v4810_v26 = vmul.f32 1.442695, %v4630_v35  ;;  %v2597_v13 = vmul.f32 %v10771_v16, %v2596_v51  ;;  %9023 = vrsqrt.f32 %v10775_v59  ;;  %v5010_v27 = vmul.f32 %v10797_v4, %v10797_v4  ;;  %v10841_v3 = vpop.permute.xlu2 %3469 }
 0x144   : > { %15551 = vst [vmem:[#allocation75_spill] sm:$0xff] %v10797_v4  ;;  %v9020_v53 = vpop.eup %9019  ;;  %v1387_v5 = vadd.f32 %v9708_v43, %v9732_v6  ;;  %vm10813_vm1 = vmand %vm10719_vm13, %vm10793_vm10  ;;  %v15553_v60 = vmov 0  ;;  %v1515_v45 = vmul.f32 2.0, %v732_v39  ;;  %vm2506_vm8 = vcmp.eq.f32.partialorder %v10528_v52, inf  ;;  %v10830_v39 = vpop.permute.xlu0 %3463 }
 0x145   : > { %15552 = vst [vmem:[#allocation76_spill] sm:$0xff] %v10801_v42  ;;  %v15554_v60 = vsel %vm10813_vm1, 4294967295, %v15553_v60  ;;  %9025 = vpow2.f32 %v4810_v26  ;;  %vm15556_vm15 = vcmp.eq.s32.totalorder %v10456_v56, %v9799_v37  ;;  %v2598_v6 = vmul.f32 0.5, %v2597_v13 }
 0x146   : > { %15555 = vst [vmem:[#allocation77_spill] sm:$0xff] %v15554_v60  ;;  %vm10822_vm6 = vmxor %vm15556_vm15, %vm15459_vm9  ;;  %v5298_v40 = vsel %vm10813_vm1, %v5010_v27, 0.0  ;;  %v2507_v51 = vsel %vm2506_vm8, %v10528_v52, %v2505_v12  ;;  %v3640_v36 = vadd.s32 112, %v9770_v9  ;;  %v2552_v26 = vmul.f32 %v10683_v11, %v2551_v41  ;;  %v9022_v12 = vpop.eup %9021 }
 0x147   : > { %7197 = vadd.xlane.f32.xlu0 %v5298_v40  ;;  %v1643_v18 = vsub.f32 %v1387_v5, %v1515_v45  ;;  %v2509_v56 = vand.u32 2147483648, %v10528_v52  ;;  %vm3990_vm13 = vcmp.ne.s32.totalorder %v10801_v42, %v9794_v32  ;;  %v5926_v13 = vsel %vm10549_vm7, %v9020_v53, 0.0  ;;  %vm10849_vm4 = vmand %vm10822_vm6, %vm10793_vm10 }
 0x148   : > { %vm2508_vm8 = vcmp.eq.f32.partialorder %v10528_v52, 0.0  ;;  %v2599_v44 = vsub.f32 1.5, %v2598_v6  ;;  %v15559_v5 = vmov 0  ;;  %9027 = vrcp.f32 %v10401_v46  ;;  %v10858_v52 = vpop.permute.xlu1 %3475 }
 0x149   : > { %v10843_v11 = vmax.f32 %v1643_v18, 1e-12  ;;  %v15560_v5 = vsel %vm10849_vm4, 4294967295, %v15559_v5  ;;  %v10854_v41 = vsel %vm2508_vm8, %v2509_v56, %v2507_v51  ;;  %v10856_v53 = vpop.eup %9023  ;;  %v5618_v18 = vsel %vm10849_vm4, %v5010_v27, 0.0 }
 0x14a   : > { %15561 = vst [vmem:[#allocation78_spill] sm:$0xff] %v15560_v5  ;;  %7383 = vadd.xlane.f32.xlu1 %v5926_v13  ;;  %vm15006_vm15 = vcmp.lt.s32.totalorder %v10801_v42, 8  ;;  %v4634_v57 = vmul.f32 -20.0, %v10854_v41  ;;  %v2553_v35 = vmul.f32 %v2552_v26, %v10606_v30  ;;  %v1391_v6 = vadd.f32 %v9708_v43, %v9728_v2  ;;  %v735_v26 = vpop.f32.mrf.mxu0 }
 0x14b   : > { %15562 = vst [vmem:[#allocation79_spill] sm:$0xff] %v10854_v41  ;;  %v10864_v45 = vpop.eup %9025  ;;  %9029 = vrsqrt.f32 %v10843_v11  ;;  %7293 = vadd.xlane.f32.xlu2 %v5618_v18  ;;  %v3641_v40 = vadd.s32 120, %v9770_v9  ;;  %v10872_v51 = vadd.s32 %v9775_v14, %v3640_v36  ;;  %vm15564_vm10 = vcmp.eq.s32.totalorder %v10526_v29, %v9799_v37 }
 0x14c   : > { %vm10880_vm6 = vmand %vm15564_vm10, %vm3990_vm13  ;;  %v4818_v56 = vmul.f32 1.442695, %v4634_v57  ;;  %v2600_v13 = vmul.f32 %v10771_v16, %v2599_v44  ;;  %v2644_v2 = vmul.f32 %v10856_v53, %v10775_v59  ;;  %vm15567_vm8 = vcmp.lt.s32.totalorder %v9794_v32, 8 }
 0x14d   : > { %15563 = vst [vmem:[#allocation80_spill] sm:$0xff] %v10872_v51  ;;  %vm10891_vm7 = vmand %vm15006_vm15, %vm15567_vm8  ;;  %v5014_v18 = vmul.f32 %v10864_v45, %v10864_v45  ;;  %v1519_v41 = vmul.f32 2.0, %v735_v26  ;;  %v5922_v57 = vsel %vm10518_vm2, %v9022_v12, 0.0  ;;  %vm2554_vm13 = vcmp.eq.f32.partialorder %v10606_v30, inf }
 0x14e   : > { %9031 = vpow2.f32 %v4818_v56  ;;  %v2557_v16 = vand.u32 2147483648, %v10606_v30  ;;  %v9028_v44 = vpop.eup %9027  ;;  %v2555_v42 = vsel %vm2554_vm13, %v10606_v30, %v2553_v35  ;;  %vm2556_vm10 = vcmp.eq.f32.partialorder %v10606_v30, 0.0  ;;  %vm10912_vm15 = vmand %vm10880_vm6, %vm10891_vm7  ;;  %v10928_v35 = vpop.permute.xlu0 %3472 }
 0x14f   : > { %7381 = vadd.xlane.f32.xlu0 %v5922_v57  ;;  %v1647_v62 = vsub.f32 %v1391_v6, %v1519_v41  ;;  %v10904_v5 = vadd.s32 %v9775_v14, %v3641_v40  ;;  %vm15010_vm8 = vcmp.eq.s32.totalorder %v10468_v38, %v9799_v37  ;;  %v15571_v12 = vmov 0 }
 0x150   : > { %v15572_v12 = vsel %vm10912_vm15, 4294967295, %v15571_v12  ;;  %v10916_v26 = vsel %vm2556_vm10, %v2557_v16, %v2555_v42  ;;  %vm15575_vm13 = vcmp.eq.s32.totalorder %v10526_v29, %v9799_v37  ;;  %v2601_v6 = vmul.f32 %v2600_v13, %v10688_v34 }
 0x151   : > { %15570 = vst [vmem:[#allocation81_spill] sm:$0xff] %v10904_v5  ;;  %v10918_v41 = vpop.eup %9029  ;;  %vm10924_vm2 = vmxor %vm15575_vm13, %vm15459_vm9  ;;  %v2645_v40 = vmul.f32 %v10856_v53, %v2644_v2  ;;  %v5302_v42 = vsel %vm10912_vm15, %v5014_v18, 0.0  ;;  %v4638_v27 = vmul.f32 -20.0, %v10916_v26  ;;  %v5918_v29 = vsel %vm10425_vm3, %v9028_v44, 0.0  ;;  %v10950_v2 = vpop.permute.xlu2 %3478 }
 0x152   : > { %15573 = vst [vmem:[#allocation82_spill] sm:$0xff] %v15572_v12  ;;  %v2692_v56 = vmul.f32 %v10918_v41, %v10843_v11  ;;  %7199 = vadd.xlane.f32.xlu1 %v5302_v42  ;;  %vm10946_vm13 = vmxor %vm15010_vm8, %vm15459_vm9  ;;  %v10952_v57 = vmax.f32 %v1647_v62, 1e-12  ;;  %v10960_v42 = vpop.permute.xlu1 %3484  ;;  %v15580_v62 = vmov 0  ;;  %vm2602_vm3 = vcmp.eq.f32.partialorder %v10688_v34, inf }
 0x153   : > { %15574 = vst [vmem:[#allocation83_spill] sm:$0xff] %v10916_v26  ;;  %7379 = vadd.xlane.f32.xlu2 %v5918_v29  ;;  %v4826_v16 = vmul.f32 1.442695, %v4638_v27  ;;  %vm10967_vm8 = vmand %vm10924_vm2, %vm10891_vm7  ;;  %v738_v27 = vpop.f32.mrf.mxu0  ;;  %v2646_v29 = vmul.f32 0.5, %v2645_v40  ;;  %vm15583_vm6 = vcmp.lt.s32.totalorder %v9794_v32, 8  ;;  %vm15584_vm10 = vcmp.lt.s32.totalorder %v10872_v51, 8 }
 0x154   : > { %v10954_v44 = vpop.eup %9031  ;;  %v2693_v26 = vmul.f32 %v10918_v41, %v2692_v56  ;;  %v15581_v62 = vsel %vm10967_vm8, 4294967295, %v15580_v62  ;;  %vm10976_vm4 = vmand %vm15584_vm10, %vm15583_vm6  ;;  %v2603_v30 = vsel %vm2602_vm3, %v10688_v34, %v2601_v6  ;;  %vm15587_vm2 = vcmp.ne.s32.totalorder %v10872_v51, %v9794_v32 }
 0x155   : > { %15582 = vst [vmem:[#allocation84_spill] sm:$0xff] %v15581_v62  ;;  %v5018_v36 = vmul.f32 %v10954_v44, %v10954_v44  ;;  %9033 = vpow2.f32 %v4826_v16  ;;  %vm15588_vm7 = vcmp.eq.s32.totalorder %v10468_v38, %v9799_v37  ;;  %v5622_v56 = vsel %vm10967_vm8, %v5014_v18, 0.0 }
 0x156   : > { %vm10989_vm14 = vmand %vm15588_vm7, %vm15587_vm2  ;;  %vm15030_vm6 = vcmp.lt.s32.totalorder %v10904_v5, 8  ;;  %v2605_v31 = vand.u32 2147483648, %v10688_v34  ;;  %vm15591_vm3 = vcmp.ne.s32.totalorder %v10904_v5, %v9794_v32  ;;  %vm15592_vm10 = vcmp.eq.s32.totalorder %v10555_v33, %v9799_v37 }
 0x157   : > { %vm11003_vm12 = vmand %vm15592_vm10, %vm15591_vm3  ;;  %v2694_v38 = vmul.f32 0.5, %v2693_v26  ;;  %9035 = vrsqrt.f32 %v10952_v57  ;;  %7295 = vadd.xlane.f32.xlu0 %v5622_v56  ;;  %v1523_v16 = vmul.f32 2.0, %v738_v27  ;;  %vm2604_vm2 = vcmp.eq.f32.partialorder %v10688_v34, 0.0 }
 0x158   : > { %v1395_v18 = vadd.f32 %v9708_v43, %v9715_v50  ;;  %vm11015_vm7 = vmand %vm10946_vm13, %vm10976_vm4  ;;  %v15595_v51 = vmov 0  ;;  %9037 = vrcp.f32 %v10797_v4  ;;  %v11020_v26 = vsel %vm2604_vm2, %v2605_v31, %v2603_v30  ;;  %v11046_v30 = vpop.permute.xlu0 %3481 }
 0x159   : > { %v15596_v51 = vsel %vm11015_vm7, 4294967295, %v15595_v51  ;;  %15598 = vst [vmem:[#allocation86_spill] sm:$0xff] %v11020_v26  ;;  %v3642_v56 = vadd.s32 128, %v9770_v9  ;;  %v2647_v27 = vsub.f32 1.5, %v2646_v29  ;;  %v5626_v34 = vsel %vm11015_vm7, %v5018_v36, 0.0  ;;  %vm11029_vm3 = vmand %vm10989_vm14, %vm10976_vm4  ;;  %v11058_v46 = vpop.permute.xlu2 %3487 }
 0x15a   : > { %15597 = vst [vmem:[#allocation85_spill] sm:$0xff] %v15596_v51  ;;  %v15599_v50 = vmov 0  ;;  %v4642_v13 = vmul.f32 -20.0, %v11020_v26  ;;  %7297 = vadd.xlane.f32.xlu1 %v5626_v34  ;;  %v5306_v31 = vsel %vm11029_vm3, %v5018_v36, 0.0  ;;  %vm15602_vm13 = vcmp.lt.s32.totalorder %v9794_v32, 8  ;;  %v11050_v36 = vpop.xlane.xlu1 %7173 }
 0x15b   : > { %v15600_v50 = vsel %vm11029_vm3, 4294967295, %v15599_v50  ;;  %vm11040_vm10 = vmand %vm15030_vm6, %vm15602_vm13  ;;  %v11044_v1 = vpop.eup %9033  ;;  %v2695_v40 = vsub.f32 1.5, %v2694_v38  ;;  %v1651_v51 = vsub.f32 %v1395_v18, %v1523_v16  ;;  %7201 = vadd.xlane.f32.xlu2 %v5306_v31  ;;  %15606 = vst [vmem:[#allocation89_spill] sm:$0xff] %v11050_v36  ;;  %v741_v4 = vpop.f32.mrf.mxu0  ;;  %9039 = vrcp.f32 %v10709_v48 }
 0x15c   : > { %15601 = vst [vmem:[#allocation87_spill] sm:$0xff] %v15600_v50  ;;  %v4834_v26 = vmul.f32 1.442695, %v4642_v13  ;;  %v5022_v34 = vmul.f32 %v11044_v1, %v11044_v1  ;;  %v11056_v62 = vadd.s32 %v9775_v14, %v3642_v56  ;;  %v2648_v38 = vmul.f32 %v10856_v53, %v2647_v27  ;;  %vm11065_vm4 = vmand %vm11003_vm12, %vm11040_vm10 }
 0x15d   : > { %15605 = vst [vmem:[#allocation88_spill] sm:$0xff] %v11044_v1  ;;  %v11053_v5 = vpop.eup %9035  ;;  %v15608_v16 = vmov 0  ;;  %vm15611_vm14 = vcmp.eq.s32.totalorder %v10555_v33, %v9799_v37  ;;  %v1527_v13 = vmul.f32 2.0, %v741_v4  ;;  %v2696_v53 = vmul.f32 %v10918_v41, %v2695_v40 }
 0x15e   : > { %15607 = vst [vmem:[#allocation90_spill] sm:$0xff] %v11056_v62  ;;  %v15609_v16 = vsel %vm11065_vm4, 4294967295, %v15608_v16  ;;  %9041 = vpow2.f32 %v4834_v26  ;;  %v9038_v18 = vpop.eup %9037  ;;  %vm4382_vm2 = vmxor %vm15611_vm14, %vm15459_vm9  ;;  %v5310_v56 = vsel %vm11065_vm4, %v5022_v34, 0.0  ;;  %v11076_v27 = vmax.f32 %v1651_v51, 1e-12 }
 0x15f   : > { %15610 = vst [vmem:[#allocation91_spill] sm:$0xff] %v15609_v16  ;;  %7203 = vadd.xlane.f32.xlu0 %v5310_v56  ;;  %v1399_v6 = vadd.f32 %v9708_v43, %v9745_v25  ;;  %v2740_v26 = vmul.f32 %v11053_v5, %v10952_v57  ;;  %vm4002_vm12 = vcmp.ne.s32.totalorder %v11056_v62, %v9794_v32  ;;  %v5938_v4 = vsel %vm10813_vm1, %v9038_v18, 0.0  ;;  %vm11091_vm14 = vmand %vm4382_vm2, %vm11040_vm10 }
 0x160   : > { %vm15031_vm13 = vcmp.eq.s32.totalorder %v10617_v8, %v9799_v37  ;;  %v2649_v33 = vmul.f32 %v2648_v38, %v10775_v59  ;;  %v15612_v51 = vmov 0  ;;  %v5630_v31 = vsel %vm11091_vm14, %v5022_v34, 0.0 }
 0x161   : > { %v15613_v51 = vsel %vm11091_vm14, 4294967295, %v15612_v51  ;;  %v9040_v25 = vpop.eup %9039  ;;  %v1655_v41 = vsub.f32 %v1399_v6, %v1527_v13  ;;  %vm15041_vm6 = vcmp.lt.s32.totalorder %v11056_v62, 8  ;;  %v3643_v38 = vadd.s32 136, %v9770_v9  ;;  %vm11109_vm10 = vmand %vm15031_vm13, %vm4002_vm12  ;;  %v11118_v6 = vpop.permute.xlu0 %3490 }
 0x162   : > { %15614 = vst [vmem:[#allocation92_spill] sm:$0xff] %v15613_v51  ;;  %7389 = vadd.xlane.f32.xlu1 %v5938_v4  ;;  %v2697_v18 = vmul.f32 %v2696_v53, %v10843_v11  ;;  %9043 = vrsqrt.f32 %v11076_v27  ;;  %v2741_v34 = vmul.f32 %v11053_v5, %v2740_v26  ;;  %vm2650_vm2 = vcmp.eq.f32.partialorder %v10775_v59, inf  ;;  %v11120_v4 = vpop.xlane.xlu2 %7175 }
 0x163   : > { %7299 = vadd.xlane.f32.xlu2 %v5630_v31  ;;  %v744_v56 = vpop.f32.mrf.mxu0  ;;  %9045 = vrcp.f32 %v10650_v63  ;;  %v2653_v13 = vand.u32 2147483648, %v10775_v59  ;;  %v3644_v53 = vadd.s32 144, %v9770_v9  ;;  %15617 = vst [vmem:[#allocation93_spill] sm:$0xff] %v11120_v4  ;;  %vm15618_vm12 = vcmp.lt.s32.totalorder %v9794_v32, 8  ;;  %v11138_v51 = vpop.xlane.xlu1 %7273 }
 0x164   : > { %v11098_v40 = vpop.eup %9041  ;;  %vm11126_vm13 = vmand %vm15041_vm6, %vm15618_vm12  ;;  %v2651_v60 = vsel %vm2650_vm2, %v10775_v59, %v2649_v33  ;;  %vm2652_vm1 = vcmp.eq.f32.partialorder %v10775_v59, 0.0  ;;  %v11134_v36 = vmax.f32 %v1655_v41, 1e-12  ;;  %v5934_v4 = vsel %vm10779_vm11, %v9040_v25, 0.0 }
 0x165   : > { %v5026_v26 = vmul.f32 %v11098_v40, %v11098_v40  ;;  %v11140_v48 = vsel %vm2652_vm1, %v2653_v13, %v2651_v60  ;;  %vm2698_vm12 = vcmp.eq.f32.partialorder %v10843_v11, inf  ;;  %v11144_v62 = vadd.s32 %v9775_v14, %v3643_v38  ;;  %vm11153_vm2 = vmand %vm11109_vm10, %vm11126_vm13 }
 0x166   : > { %15621 = vst [vmem:[#allocation94_spill] sm:$0xff] %v11140_v48  ;;  %v4646_v63 = vmul.f32 -20.0, %v11140_v48  ;;  %v2699_v33 = vsel %vm2698_vm12, %v10843_v11, %v2697_v18  ;;  %v2701_v59 = vand.u32 2147483648, %v10843_v11  ;;  %v2742_v41 = vmul.f32 0.5, %v2741_v34 }
 0x167   : > { %15622 = vst [vmem:[#allocation95_spill] sm:$0xff] %v11144_v62  ;;  %7387 = vadd.xlane.f32.xlu0 %v5934_v4  ;;  %v15623_v60 = vmov 0  ;;  %vm2700_vm1 = vcmp.eq.f32.partialorder %v10843_v11, 0.0  ;;  %v11161_v38 = vadd.s32 %v9775_v14, %v3644_v53  ;;  %v5314_v18 = vsel %vm11153_vm2, %v5026_v26, 0.0 }
 0x168   : > { %v15624_v60 = vsel %vm11153_vm2, 4294967295, %v15623_v60  ;;  %v11158_v25 = vpop.eup %9043  ;;  %v4842_v13 = vmul.f32 1.442695, %v4646_v63  ;;  %v11165_v34 = vsel %vm2700_vm1, %v2701_v59, %v2699_v33  ;;  %vm15628_vm10 = vcmp.eq.s32.totalorder %v10617_v8, %v9799_v37 }
 0x169   : > { %15625 = vst [vmem:[#allocation96_spill] sm:$0xff] %v15624_v60  ;;  %v9046_v4 = vpop.eup %9045  ;;  %vm11171_vm12 = vmxor %vm15628_vm10, %vm15459_vm9  ;;  %9047 = vrsqrt.f32 %v11134_v36  ;;  %v4650_v11 = vmul.f32 -20.0, %v11165_v34  ;;  %v1531_v63 = vmul.f32 2.0, %v744_v56  ;;  %v2743_v33 = vsub.f32 1.5, %v2742_v41 }
 0x16a   : > { %15626 = vst [vmem:[#allocation97_spill] sm:$0xff] %v11161_v38  ;;  %7205 = vadd.xlane.f32.xlu1 %v5314_v18  ;;  %v5930_v53 = vsel %vm10678_vm0, %v9046_v4, 0.0  ;;  %v2788_v8 = vmul.f32 %v11158_v25, %v11076_v27  ;;  %9049 = vpow2.f32 %v4842_v13  ;;  %v1403_v18 = vadd.f32 %v9708_v43, %v9739_v21  ;;  %v11190_v56 = vpop.xlane.xlu0 %7177  ;;  %vm11196_vm1 = vmand %vm11171_vm12, %vm11126_vm13  ;;  %v11200_v13 = vpop.xlane.xlu2 %7269 }
 0x16b   : > { %15627 = vst [vmem:[#allocation98_spill] sm:$0xff] %v11165_v34  ;;  %7385 = vadd.xlane.f32.xlu2 %v5930_v53  ;;  %v747_v59 = vpop.f32.mrf.mxu0  ;;  %v4850_v48 = vmul.f32 1.442695, %v4650_v11  ;;  %vm4010_vm10 = vcmp.ne.s32.totalorder %v11161_v38, %v9794_v32  ;;  %v15631_v41 = vmov 0  ;;  %vm4006_vm0 = vcmp.ne.s32.totalorder %v11144_v62, %v9794_v32  ;;  %v11210_v31 = vpop.xlane.xlu1 %7365 }
 0x16c   : > { %v15632_v41 = vsel %vm11196_vm1, 4294967295, %v15631_v41  ;;  %15634 = vst [vmem:[#allocation100_spill] sm:$0xff] %v11200_v13  ;;  %vm15635_vm11 = vcmp.eq.s32.totalorder %v10567_v19, %v9799_v37  ;;  %v5634_v21 = vsel %vm11196_vm1, %v5026_v26, 0.0  ;;  %v1659_v4 = vsub.f32 %v1403_v18, %v1531_v63 }
 0x16d   : > { %15633 = vst [vmem:[#allocation99_spill] sm:$0xff] %v15632_v41  ;;  %vm4390_vm6 = vmxor %vm15635_vm11, %vm15459_vm9  ;;  %9051 = vpow2.f32 %v4850_v48  ;;  %vm15637_vm13 = vcmp.lt.s32.totalorder %v9794_v32, 8  ;;  %vm15638_vm12 = vcmp.lt.s32.totalorder %v11144_v62, 8  ;;  %vm15641_vm11 = vcmp.eq.s32.totalorder %v10637_v55, %v9799_v37 }
 0x16e   : > { %15636 = vst [vmem:[#allocation101_spill] sm:$0xff] %v11210_v31  ;;  %vm11216_vm14 = vmand %vm15638_vm12, %vm15637_vm13  ;;  %v2744_v48 = vmul.f32 %v11053_v5, %v2743_v33  ;;  %v2789_v63 = vmul.f32 %v11158_v25, %v2788_v8  ;;  %vm15069_vm1 = vcmp.lt.s32.totalorder %v11161_v38, 8  ;;  %vm15644_vm13 = vcmp.eq.s32.totalorder %v10567_v19, %v9799_v37 }
 0x16f   : > { %7301 = vadd.xlane.f32.xlu0 %v5634_v21  ;;  %v11220_v11 = vpop.eup %9047  ;;  %vm11225_vm7 = vmand %vm15641_vm11, %vm4010_vm10  ;;  %v15645_v18 = vmov 0  ;;  %v11245_v5 = vmax.f32 %v1659_v4, 1e-12  ;;  %vm15648_vm10 = vcmp.lt.s32.totalorder %v9794_v32, 8  ;;  %v1535_v54 = vmul.f32 2.0, %v747_v59 }
 0x170   : > { %vm4134_vm12 = vmand %vm15644_vm13, %vm4006_vm0  ;;  %v11235_v53 = vpop.eup %9049  ;;  %v2836_v21 = vmul.f32 %v11220_v11, %v11134_v36  ;;  %v2745_v62 = vmul.f32 %v2744_v48, %v10952_v57  ;;  %v2790_v34 = vmul.f32 0.5, %v2789_v63  ;;  %v15652_v4 = vmov 0 }
 0x171   : > { %vm11239_vm8 = vmand %vm4390_vm6, %vm11216_vm14  ;;  %v5030_v33 = vmul.f32 %v11235_v53, %v11235_v53  ;;  %9053 = vrcp.f32 %v11044_v1  ;;  %v1407_v29 = vadd.f32 %v9708_v43, %v9726_v0  ;;  %v15657_v63 = vmov 0 }
 0x172   : > { %v15646_v18 = vsel %vm11239_vm8, 4294967295, %v15645_v18  ;;  %vm11253_vm0 = vmand %vm15069_vm1, %vm15648_vm10  ;;  %v11269_v31 = vpop.xlane.xlu0 %7271  ;;  %v11275_v48 = vpop.xlane.xlu2 %7179  ;;  %9055 = vrcp.f32 %v10954_v44  ;;  %vm2746_vm11 = vcmp.eq.f32.partialorder %v10952_v57, inf }
 0x173   : > { %15647 = vst [vmem:[#allocation102_spill] sm:$0xff] %v15646_v18  ;;  %v11257_v8 = vpop.eup %9051  ;;  %vm11262_vm6 = vmand %vm4134_vm12, %vm11216_vm14  ;;  %v750_v28 = vpop.f32.mrf.mxu0  ;;  %v5638_v38 = vsel %vm11239_vm8, %v5030_v33, 0.0  ;;  %9057 = vrsqrt.f32 %v11245_v5  ;;  %v2747_v26 = vsel %vm2746_vm11, %v10952_v57, %v2745_v62  ;;  %vm2748_vm12 = vcmp.eq.f32.partialorder %v10952_v57, 0.0 }
 0x174   : > { %15651 = vst [vmem:[#allocation103_spill] sm:$0xff] %v11257_v8  ;;  %v15653_v4 = vsel %vm11262_vm6, 4294967295, %v15652_v4  ;;  %v5318_v13 = vsel %vm11262_vm6, %v5030_v33, 0.0  ;;  %v5034_v59 = vmul.f32 %v11257_v8, %v11257_v8  ;;  %7303 = vadd.xlane.f32.xlu1 %v5638_v38  ;;  %vm11283_vm14 = vmand %vm11225_vm7, %vm11253_vm0  ;;  %v2837_v33 = vmul.f32 %v11220_v11, %v2836_v21 }
 0x175   : > { %15654 = vst [vmem:[#allocation104_spill] sm:$0xff] %v15653_v4  ;;  %7207 = vadd.xlane.f32.xlu2 %v5318_v13  ;;  %v15658_v63 = vsel %vm11283_vm14, 4294967295, %v15657_v63  ;;  %v2791_v38 = vsub.f32 1.5, %v2790_v34  ;;  %v1663_v13 = vsub.f32 %v1407_v29, %v1535_v54  ;;  %vm15661_vm7 = vcmp.eq.s32.totalorder %v10637_v55, %v9799_v37 }
 0x176   : > { %15655 = vst [vmem:[#allocation105_spill] sm:$0xff] %v11269_v31  ;;  %v11287_v31 = vpop.xlane.xlu1 %7181  ;;  %v5322_v0 = vsel %vm11283_vm14, %v5034_v59, 0.0  ;;  %vm4394_vm13 = vmxor %vm15661_vm7, %vm15459_vm9  ;;  %v2749_v21 = vand.u32 2147483648, %v10952_v57  ;;  %v3645_v34 = vadd.s32 152, %v9770_v9  ;;  %v2838_v54 = vmul.f32 0.5, %v2837_v33 }
 0x177   : > { %15656 = vst [vmem:[#allocation106_spill] sm:$0xff] %v11275_v48  ;;  %7209 = vadd.xlane.f32.xlu0 %v5322_v0  ;;  %v1539_v48 = vmul.f32 2.0, %v750_v28  ;;  %v9054_v18 = vpop.eup %9053  ;;  %v2792_v0 = vmul.f32 %v11158_v25, %v2791_v38  ;;  %v11308_v1 = vmax.f32 %v1663_v13, 1e-12  ;;  %vm11312_vm10 = vmand %vm4394_vm13, %vm11253_vm0  ;;  %v15663_v55 = vmov 0 }
 0x178   : > { %15659 = vst [vmem:[#allocation107_spill] sm:$0xff] %v15658_v63  ;;  %v11305_v29 = vsel %vm2748_vm12, %v2749_v21, %v2747_v26  ;;  %v9056_v62 = vpop.eup %9055  ;;  %v15664_v55 = vsel %vm11312_vm10, 4294967295, %v15663_v55  ;;  %9059 = vrcp.f32 %v10864_v45  ;;  %v5950_v33 = vsel %vm11065_vm4, %v9054_v18, 0.0 }
 0x179   : > { %15660 = vst [vmem:[#allocation108_spill] sm:$0xff] %v11287_v31  ;;  %v1411_v31 = vadd.f32 %v9708_v43, %v9758_v20  ;;  %v4654_v28 = vmul.f32 -20.0, %v11305_v29  ;;  %v11318_v20 = vpop.eup %9057  ;;  %v5642_v19 = vsel %vm11312_vm10, %v5034_v59, 0.0  ;;  %v11331_v21 = vadd.s32 %v9775_v14, %v3645_v34 }
 0x17a   : > { %15662 = vst [vmem:[#allocation109_spill] sm:$0xff] %v11305_v29  ;;  %v2839_v29 = vsub.f32 1.5, %v2838_v54  ;;  %v5946_v16 = vsel %vm11029_vm3, %v9056_v62, 0.0  ;;  %v2793_v18 = vmul.f32 %v2792_v0, %v11076_v27  ;;  %9061 = vrsqrt.f32 %v11308_v1 }
 0x17b   : > { %15665 = vst [vmem:[#allocation110_spill] sm:$0xff] %v15664_v55  ;;  %v753_v57 = vpop.f32.mrf.mxu0  ;;  %v1667_v25 = vsub.f32 %v1411_v31, %v1539_v48  ;;  %v11326_v38 = vpop.xlane.xlu2 %7275  ;;  %v2884_v31 = vmul.f32 %v11318_v20, %v11245_v5  ;;  %v4858_v59 = vmul.f32 1.442695, %v4654_v28  ;;  %v1415_v34 = vadd.f32 %v9708_v43, %v9752_v47 }
 0x17c   : > { %v11322_v26 = vpop.xlane.xlu0 %7277  ;;  %15666 = vst [vmem:[#allocation111_spill] sm:$0xff] %v11326_v38  ;;  %7395 = vadd.xlane.f32.xlu1 %v5950_v33  ;;  %v2840_v54 = vmul.f32 %v11220_v11, %v2839_v29  ;;  %vm2794_vm0 = vcmp.eq.f32.partialorder %v11076_v27, inf  ;;  %vm4014_vm11 = vcmp.ne.s32.totalorder %v11331_v21, %v9794_v32  ;;  %vm3572_vm7 = vcmp.eq.s32.totalorder %v10734_v24, %v9799_v37 }
 0x17d   : > { %7305 = vadd.xlane.f32.xlu2 %v5642_v19  ;;  %15668 = vst [vmem:[#allocation113_spill] sm:$0xff] %v11331_v21  ;;  %v11339_v48 = vmax.f32 %v1667_v25, 1e-12  ;;  %v1543_v19 = vmul.f32 2.0, %v753_v57  ;;  %v2885_v62 = vmul.f32 %v11318_v20, %v2884_v31  ;;  %9063 = vpow2.f32 %v4858_v59 }
 0x17e   : > { %v11328_v13 = vpop.xlane.xlu1 %7279  ;;  %v9060_v33 = vpop.eup %9059  ;;  %v2797_v28 = vand.u32 2147483648, %v11076_v27  ;;  %vm15079_vm13 = vcmp.lt.s32.totalorder %v11331_v21, 8  ;;  %vm2796_vm12 = vcmp.eq.f32.partialorder %v11076_v27, 0.0  ;;  %v2841_v25 = vmul.f32 %v2840_v54, %v11134_v36 }
 0x17f   : > { %15667 = vst [vmem:[#allocation112_spill] sm:$0xff] %v11328_v13  ;;  %7393 = vadd.xlane.f32.xlu0 %v5946_v16  ;;  %v2795_v16 = vsel %vm2794_vm0, %v11076_v27, %v2793_v18  ;;  %9065 = vrsqrt.f32 %v11339_v48  ;;  %v5942_v47 = vsel %vm10912_vm15, %v9060_v33, 0.0  ;;  %v1671_v18 = vsub.f32 %v1415_v34, %v1543_v19  ;;  %vm11373_vm0 = vmand %vm3572_vm7, %vm4014_vm11 }
 0x180   : > { %v11359_v57 = vpop.eup %9061  ;;  %v11364_v31 = vsel %vm2796_vm12, %v2797_v28, %v2795_v16  ;;  %v3646_v59 = vadd.s32 160, %v9770_v9  ;;  %vm15675_vm12 = vcmp.lt.s32.totalorder %v9794_v32, 8  ;;  %vm11396_vm11 = vmxor %vm3572_vm7, %vm15459_vm9  ;;  %vm2842_vm4 = vcmp.eq.f32.partialorder %v11134_v36, inf }
 0x181   : > { %15671 = vst [vmem:[#allocation116_spill] sm:$0xff] %v11364_v31  ;;  %v2932_v27 = vmul.f32 %v11359_v57, %v11308_v1  ;;  %vm11385_vm1 = vmand %vm15079_vm13, %vm15675_vm12  ;;  %v4658_v54 = vmul.f32 -20.0, %v11364_v31  ;;  %v3647_v28 = vadd.s32 168, %v9770_v9  ;;  %v11406_v31 = vmax.f32 %v1671_v18, 1e-12 }
 0x182   : > { %v2843_v50 = vsel %vm2842_vm4, %v11134_v36, %v2841_v25  ;;  %vm11416_vm7 = vmand %vm11373_vm0, %vm11385_vm1  ;;  %v2845_v55 = vand.u32 2147483648, %v11134_v36  ;;  %vm2844_vm0 = vcmp.eq.f32.partialorder %v11134_v36, 0.0  ;;  %vm15694_vm13 = vcmp.lt.s32.totalorder %v9794_v32, 8 }
 0x183   : > { %v756_v0 = vpop.f32.mrf.mxu0  ;;  %v11390_v19 = vpop.eup %9063  ;;  %v4866_v38 = vmul.f32 1.442695, %v4658_v54  ;;  %v2933_v18 = vmul.f32 %v11359_v57, %v2932_v27  ;;  %vm11428_vm4 = vmand %vm11396_vm11, %vm11385_vm1  ;;  %vm15081_vm1 = vcmp.eq.s32.totalorder %v10652_v10, %v9799_v37  ;;  %v11449_v36 = vadd.s32 %v9775_v14, %v3647_v28 }
 0x184   : > { %v11354_v11 = vpop.xlane.xlu2 %7183  ;;  %v11356_v29 = vpop.xlane.xlu0 %7185  ;;  %v5038_v21 = vmul.f32 %v11390_v19, %v11390_v19  ;;  %v1547_v33 = vmul.f32 2.0, %v756_v0  ;;  %vm3580_vm3 = vcmp.eq.s32.totalorder %v10752_v49, %v9799_v37  ;;  %vm15697_vm10 = vcmp.eq.s32.totalorder %v10652_v10, %v9799_v37 }
 0x185   : > { %15669 = vst [vmem:[#allocation114_spill] sm:$0xff] %v11354_v11  ;;  %7391 = vadd.xlane.f32.xlu2 %v5942_v47  ;;  %v2886_v47 = vmul.f32 0.5, %v2885_v62  ;;  %v11401_v16 = vpop.eup %9065  ;;  %9067 = vpow2.f32 %v4866_v38  ;;  %v11441_v62 = vsel %vm2844_vm0, %v2845_v55, %v2843_v50  ;;  %v1419_v11 = vadd.f32 %v9708_v43, %v9741_v23  ;;  %vm11460_vm0 = vmxor %vm15081_vm1, %vm15459_vm9 }
 0x186   : > { %15670 = vst [vmem:[#allocation115_spill] sm:$0xff] %v11356_v29  ;;  %v11377_v12 = vpop.xlane.xlu1 %7371  ;;  %v15681_v29 = vmov 0  ;;  %v5326_v25 = vsel %vm11416_vm7, %v5038_v21, 0.0  ;;  %v2980_v27 = vmul.f32 %v11401_v16, %v11339_v48  ;;  %v5646_v34 = vsel %vm11428_vm4, %v5038_v21, 0.0 }
 0x187   : > { %15674 = vst [vmem:[#allocation117_spill] sm:$0xff] %v11377_v12  ;;  %v11410_v12 = vadd.s32 %v9775_v14, %v3646_v59  ;;  %v2887_v24 = vsub.f32 1.5, %v2886_v47  ;;  %v15682_v29 = vsel %vm11416_vm7, 4294967295, %v15681_v29  ;;  %v15684_v59 = vmov 0  ;;  %7211 = vadd.xlane.f32.xlu1 %v5326_v25  ;;  %7307 = vadd.xlane.f32.xlu0 %v5646_v34 }
 0x188   : > { %15683 = vst [vmem:[#allocation119_spill] sm:$0xff] %v15682_v29  ;;  %v15685_v59 = vsel %vm11428_vm4, 4294967295, %v15684_v59  ;;  %9069 = vrsqrt.f32 %v11406_v31  ;;  %v4662_v0 = vmul.f32 -20.0, %v11441_v62  ;;  %v2934_v55 = vmul.f32 0.5, %v2933_v18 }
 0x189   : > { %15680 = vst [vmem:[#allocation118_spill] sm:$0xff] %v11410_v12  ;;  %vm15098_vm12 = vcmp.lt.s32.totalorder %v11410_v12, 8  ;;  %vm4018_vm11 = vcmp.ne.s32.totalorder %v11410_v12, %v9794_v32  ;;  %v2888_v50 = vmul.f32 %v11318_v20, %v2887_v24  ;;  %v1675_v23 = vsub.f32 %v1419_v11, %v1547_v33 }
 0x18a   : > { %15686 = vst [vmem:[#allocation120_spill] sm:$0xff] %v15685_v59  ;;  %v2981_v21 = vmul.f32 %v11401_v16, %v2980_v27  ;;  %v4874_v28 = vmul.f32 1.442695, %v4662_v0  ;;  %vm11471_vm15 = vmand %vm15098_vm12, %vm15694_vm13  ;;  %v1423_v24 = vadd.f32 %v9708_v43, %v9785_v22  ;;  %vm4022_vm1 = vcmp.ne.s32.totalorder %v11449_v36, %v9794_v32 }
 0x18b   : > { %v759_v13 = vpop.f32.mrf.mxu0  ;;  %15689 = vst [vmem:[#allocation123_spill] sm:$0xff] %v11441_v62  ;;  %v11475_v11 = vpop.eup %9067  ;;  %vm11486_vm8 = vmand %vm15697_vm10, %vm4018_vm11  ;;  %v2889_v27 = vmul.f32 %v2888_v50, %v11245_v5  ;;  %v2935_v22 = vsub.f32 1.5, %v2934_v55  ;;  %v11495_v12 = vmax.f32 %v1675_v23, 1e-12  ;;  %vm15091_vm13 = vcmp.lt.s32.totalorder %v11449_v36, 8 }
 0x18c   : > { %v11433_v47 = vpop.xlane.xlu2 %7281  ;;  %v11435_v54 = vpop.xlane.xlu0 %7369  ;;  %15690 = vst [vmem:[#allocation124_spill] sm:$0xff] %v11449_v36  ;;  %v1551_v34 = vmul.f32 2.0, %v759_v13  ;;  %9071 = vpow2.f32 %v4874_v28  ;;  %v5042_v0 = vmul.f32 %v11475_v11, %v11475_v11  ;;  %v2982_v10 = vmul.f32 0.5, %v2981_v21  ;;  %vm11505_vm10 = vmand %vm11460_vm0, %vm11471_vm15 }
 0x18d   : > { %15687 = vst [vmem:[#allocation121_spill] sm:$0xff] %v11433_v47  ;;  %v15702_v28 = vmov 0  ;;  %9073 = vrcp.f32 %v11257_v8  ;;  %vm11517_vm11 = vmand %vm11486_vm8, %vm11471_vm15  ;;  %v15705_v23 = vmov 0  ;;  %vm2890_vm15 = vcmp.eq.f32.partialorder %v11245_v5, inf }
 0x18e   : > { %15688 = vst [vmem:[#allocation122_spill] sm:$0xff] %v11435_v54  ;;  %v11490_v33 = vpop.eup %9069  ;;  %v15703_v28 = vsel %vm11505_vm10, 4294967295, %v15702_v28  ;;  %v1679_v50 = vsub.f32 %v1423_v24, %v1551_v34  ;;  %v5650_v55 = vsel %vm11505_vm10, %v5042_v0, 0.0  ;;  %v15706_v23 = vsel %vm11517_vm11, 4294967295, %v15705_v23  ;;  %vm11527_vm0 = vmand %vm3580_vm3, %vm4022_vm1 }
 0x18f   : > { %15704 = vst [vmem:[#allocation128_spill] sm:$0xff] %v15703_v28  ;;  %v3028_v21 = vmul.f32 %v11490_v33, %v11406_v31  ;;  %7309 = vadd.xlane.f32.xlu1 %v5650_v55  ;;  %v5330_v34 = vsel %vm11517_vm11, %v5042_v0, 0.0  ;;  %v2936_v20 = vmul.f32 %v11359_v57, %v2935_v22  ;;  %9075 = vrsqrt.f32 %v11495_v12 }
 0x190   : > { %15707 = vst [vmem:[#allocation129_spill] sm:$0xff] %v15706_v23  ;;  %7213 = vadd.xlane.f32.xlu2 %v5330_v34  ;;  %vm15710_vm8 = vcmp.lt.s32.totalorder %v9794_v32, 8  ;;  %v2891_v13 = vsel %vm2890_vm15, %v11245_v5, %v2889_v27  ;;  %v2983_v0 = vsub.f32 1.5, %v2982_v10  ;;  %v2893_v57 = vand.u32 2147483648, %v11245_v5 }
 0x191   : > { %v11465_v25 = vpop.xlane.xlu1 %7187  ;;  %vm11542_vm1 = vmand %vm15091_vm13, %vm15710_vm8  ;;  %v1427_v34 = vadd.f32 %v9708_v43, %v9777_v15  ;;  %v3648_v27 = vadd.s32 176, %v9770_v9  ;;  %vm2892_vm15 = vcmp.eq.f32.partialorder %v11245_v5, 0.0  ;;  %v15715_v15 = vmov 0 }
 0x192   : > { %15693 = vst [vmem:[#allocation125_spill] sm:$0xff] %v11465_v25  ;;  %v11547_v55 = vpop.eup %9071  ;;  %vm11558_vm8 = vmxor %vm3580_vm3, %vm15459_vm9  ;;  %9077 = vrcp.f32 %v11235_v53  ;;  %v11576_v49 = vsel %vm2892_vm15, %v2893_v57, %v2891_v13  ;;  %v2984_v38 = vmul.f32 %v11401_v16, %v2983_v0  ;;  %v15720_v16 = vmov 0 }
 0x193   : > { %v762_v18 = vpop.f32.mrf.mxu0  ;;  %v5046_v10 = vmul.f32 %v11547_v55, %v11547_v55  ;;  %vm11571_vm13 = vmand %vm11527_vm0, %vm11542_vm1  ;;  %15718 = vst [vmem:[#allocation131_spill] sm:$0xff] %v11576_v49  ;;  %v4666_v28 = vmul.f32 -20.0, %v11576_v49  ;;  %v11591_v57 = vadd.s32 %v9775_v14, %v3648_v27  ;;  %v3650_v24 = vadd.s32 192, %v9770_v9 }
 0x194   : > { %v11497_v62 = vpop.xlane.xlu2 %7367  ;;  %v11499_v54 = vpop.xlane.xlu0 %7283  ;;  %v1555_v22 = vmul.f32 2.0, %v762_v18  ;;  %v3029_v18 = vmul.f32 %v11490_v33, %v3028_v21  ;;  %v15716_v15 = vsel %vm11571_vm13, 4294967295, %v15715_v15  ;;  %v2937_v21 = vmul.f32 %v2936_v20, %v11308_v1  ;;  %vm11599_vm3 = vmand %vm11558_vm8, %vm11542_vm1 }
 0x195   : > { %15700 = vst [vmem:[#allocation126_spill] sm:$0xff] %v11497_v62  ;;  %v11549_v62 = vmax.f32 %v1679_v50, 1e-12  ;;  %v9074_v50 = vpop.eup %9073  ;;  %v5334_v5 = vsel %vm11571_vm13, %v5046_v10, 0.0  ;;  %v15721_v16 = vsel %vm11599_vm3, 4294967295, %v15720_v16  ;;  %vm2938_vm0 = vcmp.eq.f32.partialorder %v11308_v1, inf }
 0x196   : > { %15701 = vst [vmem:[#allocation127_spill] sm:$0xff] %v11499_v54  ;;  %v1683_v25 = vsub.f32 %v1427_v34, %v1555_v22  ;;  %7215 = vadd.xlane.f32.xlu0 %v5334_v5  ;;  %v11588_v13 = vpop.eup %9075  ;;  %v5962_v22 = vsel %vm11283_vm14, %v9074_v50, 0.0  ;;  %v3030_v0 = vmul.f32 0.5, %v3029_v18  ;;  %v5654_v34 = vsel %vm11599_vm3, %v5046_v10, 0.0 }
 0x197   : > { %15717 = vst [vmem:[#allocation130_spill] sm:$0xff] %v15716_v15  ;;  %9079 = vrsqrt.f32 %v11549_v62  ;;  %7401 = vadd.xlane.f32.xlu1 %v5962_v22  ;;  %v4882_v27 = vmul.f32 1.442695, %v4666_v28  ;;  %v1431_v50 = vadd.f32 %v9708_v43, %v9762_v58  ;;  %v2985_v49 = vmul.f32 %v2984_v38, %v11339_v48 }
 0x198   : > { %15719 = vst [vmem:[#allocation132_spill] sm:$0xff] %v11591_v57  ;;  %9081 = vrcp.f32 %v11098_v40  ;;  %7311 = vadd.xlane.f32.xlu2 %v5654_v34  ;;  %v11611_v36 = vmax.f32 %v1683_v25, 1e-12  ;;  %v9078_v5 = vpop.eup %9077  ;;  %v3076_v18 = vmul.f32 %v11588_v13, %v11495_v12  ;;  %v2939_v10 = vsel %vm2938_vm0, %v11308_v1, %v2937_v21 }
 0x199   : > { %15722 = vst [vmem:[#allocation133_spill] sm:$0xff] %v15721_v16  ;;  %9083 = vpow2.f32 %v4882_v27  ;;  %v3649_v28 = vadd.s32 184, %v9770_v9  ;;  %vm4026_vm1 = vcmp.ne.s32.totalorder %v11591_v57, %v9794_v32  ;;  %vm15101_vm8 = vcmp.eq.s32.totalorder %v10830_v39, %v9799_v37  ;;  %v15776_v16 = vld [vmem:[#allocation17_spill] sm:$0xff] }
 0x19a   : > { %v11578_v54 = vpop.xlane.xlu1 %7285  ;;  %v2941_v58 = vand.u32 2147483648, %v11308_v1  ;;  %v3031_v22 = vsub.f32 1.5, %v3030_v0  ;;  %vm2940_vm12 = vcmp.eq.f32.partialorder %v11308_v1, 0.0  ;;  %v5958_v27 = vsel %vm11262_vm6, %v9078_v5, 0.0  ;;  %vm11644_vm15 = vmand %vm15101_vm8, %vm4026_vm1 }
 0x19b   : > { %v765_v8 = vpop.f32.mrf.mxu0  ;;  %9085 = vrsqrt.f32 %v11611_v36  ;;  %vm2986_vm0 = vcmp.eq.f32.partialorder %v11339_v48, inf  ;;  %vm15732_vm1 = vcmp.lt.s32.totalorder %v11591_v57, 8  ;;  %vm15756_vm6 = vcmp.eq.s32.totalorder %v10761_v17, %v9799_v37 }
 0x19c   : > { %v11582_v47 = vpop.xlane.xlu2 %7189  ;;  %v1559_v21 = vmul.f32 2.0, %v765_v8  ;;  %v11633_v63 = vsel %vm2940_vm12, %v2941_v58, %v2939_v10  ;;  %v3077_v8 = vmul.f32 %v11588_v13, %v3076_v18  ;;  %v2987_v5 = vsel %vm2986_vm0, %v11339_v48, %v2985_v49 }
 0x19d   : > { %v11624_v25 = vpop.eup %9079  ;;  %15725 = vst [vmem:[#allocation136_spill] sm:$0xff] %v11633_v63  ;;  %v4670_v0 = vmul.f32 -20.0, %v11633_v63  ;;  %v11652_v10 = vadd.s32 %v9775_v14, %v3650_v24  ;;  %v11655_v58 = vadd.s32 %v9775_v14, %v3649_v28  ;;  %vm15731_vm12 = vcmp.lt.s32.totalorder %v9794_v32, 8 }
 0x19e   : > { %v11604_v20 = vpop.xlane.xlu0 %7191  ;;  %v9082_v34 = vpop.eup %9081  ;;  %7399 = vadd.xlane.f32.xlu0 %v5958_v27  ;;  %vm11661_vm8 = vmand %vm15732_vm1, %vm15731_vm12  ;;  %v1687_v18 = vsub.f32 %v1431_v50, %v1559_v21  ;;  %v2989_v27 = vand.u32 2147483648, %v11339_v48  ;;  %v3124_v24 = vmul.f32 %v11624_v25, %v11549_v62  ;;  %vm2988_vm0 = vcmp.eq.f32.partialorder %v11339_v48, 0.0 }
 0x19f   : > { %15723 = vst [vmem:[#allocation134_spill] sm:$0xff] %v11604_v20  ;;  %v11668_v49 = vpop.eup %9083  ;;  %v5954_v28 = vsel %vm11153_vm2, %v9082_v34, 0.0  ;;  %vm15736_vm12 = vcmp.eq.s32.totalorder %v10830_v39, %v9799_v37  ;;  %v3032_v21 = vmul.f32 %v11490_v33, %v3031_v22  ;;  %v3078_v48 = vmul.f32 0.5, %v3077_v8 }
 0x1a0   : > { %15729 = vst [vmem:[#allocation138_spill] sm:$0xff] %v11652_v10  ;;  %vm11679_vm1 = vmxor %vm15736_vm12, %vm15459_vm9  ;;  %7397 = vadd.xlane.f32.xlu2 %v5954_v28  ;;  %v11686_v60 = vsel %vm2988_vm0, %v2989_v27, %v2987_v5  ;;  %v15740_v39 = vmov 0  ;;  %v1435_v34 = vadd.f32 %v9708_v43, %v9828_v7  ;;  %v11706_v8 = vmax.f32 %v1687_v18, 1e-12 }
 0x1a1   : > { %15730 = vst [vmem:[#allocation139_spill] sm:$0xff] %v11655_v58  ;;  %vm11694_vm12 = vmand %vm11644_vm15, %vm11661_vm8  ;;  %v4674_v33 = vmul.f32 -20.0, %v11686_v60  ;;  %v11699_v22 = vpop.eup %9085  ;;  %v15743_v7 = vmov 0  ;;  %vm15746_vm15 = vcmp.eq.s32.totalorder %v10761_v17, %v9799_v37  ;;  %v3033_v4 = vmul.f32 %v3032_v21, %v11406_v31 }
 0x1a2   : > { %v11628_v38 = vpop.xlane.xlu1 %7377  ;;  %15739 = vst [vmem:[#allocation141_spill] sm:$0xff] %v11686_v60  ;;  %v15741_v39 = vsel %vm11694_vm12, 4294967295, %v15740_v39  ;;  %vm11717_vm2 = vmand %vm11679_vm1, %vm11661_vm8  ;;  %v3079_v50 = vsub.f32 1.5, %v3078_v48  ;;  %vm15751_vm8 = vcmp.lt.s32.totalorder %v9794_v32, 8  ;;  %vm15752_vm1 = vcmp.lt.s32.totalorder %v11655_v58, 8 }
 0x1a3   : > { %15724 = vst [vmem:[#allocation135_spill] sm:$0xff] %v11628_v38  ;;  %v4890_v38 = vmul.f32 1.442695, %v4670_v0  ;;  %v768_v57 = vpop.f32.mrf.mxu0  ;;  %v15744_v7 = vsel %vm11717_vm2, 4294967295, %v15743_v7  ;;  %v4898_v1 = vmul.f32 1.442695, %v4674_v33  ;;  %vm11727_vm14 = vmxor %vm15746_vm15, %vm15459_vm9  ;;  %v3172_v33 = vmul.f32 %v11699_v22, %v11611_v36 }
 0x1a4   : > { %v11636_v20 = vpop.xlane.xlu2 %7287  ;;  %15742 = vst [vmem:[#allocation142_spill] sm:$0xff] %v15741_v39  ;;  %vm11744_vm15 = vmand %vm15752_vm1, %vm15751_vm8  ;;  %vm15755_vm0 = vcmp.ne.s32.totalorder %v11655_v58, %v9794_v32  ;;  %vm15759_vm8 = vcmp.ne.s32.totalorder %v11652_v10, %v9794_v32  ;;  %vm15760_vm1 = vcmp.eq.s32.totalorder %v10841_v3, %v9799_v37  ;;  %v3651_v17 = vadd.s32 200, %v9770_v9 }
 0x1a5   : > { %15726 = vst [vmem:[#allocation137_spill] sm:$0xff] %v11636_v20  ;;  %9087 = vpow2.f32 %v4890_v38  ;;  %v3125_v38 = vmul.f32 %v11624_v25, %v3124_v24  ;;  %v1563_v24 = vmul.f32 2.0, %v768_v57  ;;  %vm11754_vm3 = vmand %vm15756_vm6, %vm15755_vm0  ;;  %vm15127_vm6 = vcmp.lt.s32.totalorder %v11652_v10, 8 }
 0x1a6   : > { %v11666_v63 = vpop.xlane.xlu0 %7375  ;;  %15745 = vst [vmem:[#allocation143_spill] sm:$0xff] %v15744_v7  ;;  %9089 = vpow2.f32 %v4898_v1  ;;  %vm11767_vm10 = vmand %vm15760_vm1, %vm15759_vm8  ;;  %vm3034_vm0 = vcmp.eq.f32.partialorder %v11406_v31, inf  ;;  %v3080_v60 = vmul.f32 %v11588_v13, %v3079_v50  ;;  %v15767_v5 = vmov 0 }
 0x1a7   : > { %15735 = vst [vmem:[#allocation140_spill] sm:$0xff] %v11666_v63  ;;  %v5050_v63 = vmul.f32 %v11668_v49, %v11668_v49  ;;  %9091 = vrsqrt.f32 %v11706_v8  ;;  %v1691_v57 = vsub.f32 %v1435_v34, %v1563_v24  ;;  %v3126_v1 = vmul.f32 0.5, %v3125_v38  ;;  %vm11795_vm8 = vmand %vm11754_vm3, %vm11744_vm15 }
 0x1a8   : > { %v15764_v34 = vmov 0  ;;  %v3035_v38 = vsel %vm3034_vm0, %v11406_v31, %v3033_v4  ;;  %v15768_v5 = vsel %vm11795_vm8, 4294967295, %v15767_v5  ;;  %9093 = vrcp.f32 %v11547_v55 }
 0x1a9   : > { %v5338_v0 = vsel %vm11694_vm12, %v5050_v63, 0.0  ;;  %v5658_v18 = vsel %vm11717_vm2, %v5050_v63, 0.0  ;;  %vm11780_vm2 = vmand %vm11727_vm14, %vm11744_vm15  ;;  %v11786_v58 = vmax.f32 %v1691_v57, 1e-12  ;;  %15769 = vst [vmem:[#allocation148_spill] sm:$0xff] %v15768_v5  ;;  %vm15770_vm14 = vcmp.lt.s32.totalorder %v9794_v32, 8 }
 0x1aa   : > { %7217 = vadd.xlane.f32.xlu1 %v5338_v0  ;;  %7313 = vadd.xlane.f32.xlu0 %v5658_v18  ;;  %v15765_v34 = vsel %vm11780_vm2, 4294967295, %v15764_v34  ;;  %vm11809_vm1 = vmand %vm15127_vm6, %vm15770_vm14  ;;  %vm3036_vm3 = vcmp.eq.f32.partialorder %v11406_v31, 0.0  ;;  %v11818_v0 = vadd.s32 %v9775_v14, %v3651_v17  ;;  %v3127_v63 = vsub.f32 1.5, %v3126_v1 }
 0x1ab   : > { %v11759_v21 = vpop.eup %9087  ;;  %15766 = vst [vmem:[#allocation147_spill] sm:$0xff] %v15765_v34  ;;  %v771_v57 = vpop.f32.mrf.mxu0  ;;  %9095 = vrsqrt.f32 %v11786_v58  ;;  %v1439_v17 = vadd.f32 %v9708_v43, %v15776_v16  ;;  %vm11836_vm15 = vmand %vm11767_vm10, %vm11809_vm1  ;;  %vm15781_vm0 = vcmp.eq.s32.totalorder %v10841_v3, %v9799_v37  ;;  %v3652_v43 = vadd.s32 208, %v9770_v9 }
 0x1ac   : > { %v11734_v27 = vpop.xlane.xlu1 %7193  ;;  %v11736_v28 = vpop.xlane.xlu2 %7373  ;;  %v5054_v24 = vmul.f32 %v11759_v21, %v11759_v21  ;;  %15773 = vst [vmem:[#allocation149_spill] sm:$0xff] %v11818_v0  ;;  %9097 = vrcp.f32 %v11475_v11  ;;  %v1567_v34 = vmul.f32 2.0, %v771_v57  ;;  %vm11846_vm14 = vmxor %vm15781_vm0, %vm15459_vm9  ;;  %v3081_v16 = vmul.f32 %v3080_v60, %v11495_v12 }
 0x1ad   : > { %15749 = vst [vmem:[#allocation144_spill] sm:$0xff] %v11734_v27  ;;  %vm4038_vm10 = vcmp.ne.s32.totalorder %v11818_v0, %v9794_v32  ;;  %9099 = vrcp.f32 %v11390_v19  ;;  %vm11869_vm6 = vmand %vm11846_vm14, %vm11809_vm1  ;;  %vm3084_vm1 = vcmp.eq.f32.partialorder %v11495_v12, 0.0  ;;  %vm15790_vm14 = vcmp.eq.s32.totalorder %v10928_v35, %v9799_v37 }
 0x1ae   : > { %15750 = vst [vmem:[#allocation145_spill] sm:$0xff] %v11736_v28  ;;  %v11773_v18 = vpop.xlane.xlu0 %7289  ;;  %v3173_v28 = vmul.f32 %v11699_v22, %v3172_v33  ;;  %v5662_v4 = vsel %vm11780_vm2, %v5054_v24, 0.0  ;;  %v5342_v13 = vsel %vm11795_vm8, %v5054_v24, 0.0  ;;  %v11815_v33 = vpop.eup %9089  ;;  %v1695_v3 = vsub.f32 %v1439_v17, %v1567_v34 }
 0x1af   : > { %15763 = vst [vmem:[#allocation146_spill] sm:$0xff] %v11773_v18  ;;  %v3037_v18 = vand.u32 2147483648, %v11406_v31  ;;  %7219 = vadd.xlane.f32.xlu2 %v5342_v13  ;;  %v11822_v27 = vpop.eup %9091  ;;  %v5058_v10 = vmul.f32 %v11815_v33, %v11815_v33  ;;  %vm15795_vm0 = vcmp.lt.s32.totalorder %v9794_v32, 8  ;;  %v15810_v23 = vmov 0 }
 0x1b0   : > { %v3174_v1 = vmul.f32 0.5, %v3173_v28  ;;  %v9094_v48 = vpop.eup %9093  ;;  %v3220_v13 = vmul.f32 %v11822_v27, %v11706_v8  ;;  %vm15823_vm2 = vcmp.eq.s32.totalorder %v10950_v2, %v9799_v37 }
 0x1b1   : > { %v11820_v24 = vsel %vm3036_vm3, %v3037_v18, %v3035_v38  ;;  %v15777_v18 = vmov 0  ;;  %v5346_v28 = vsel %vm11836_vm15, %v5058_v10, 0.0  ;;  %vm3082_vm3 = vcmp.eq.f32.partialorder %v11495_v12, inf }
 0x1b2   : > { %7315 = vadd.xlane.f32.xlu1 %v5662_v4  ;;  %15774 = vst [vmem:[#allocation150_spill] sm:$0xff] %v11820_v24  ;;  %v4678_v20 = vmul.f32 -20.0, %v11820_v24  ;;  %v15778_v18 = vsel %vm11836_vm15, 4294967295, %v15777_v18  ;;  %v3128_v4 = vmul.f32 %v11624_v25, %v3127_v63  ;;  %7221 = vadd.xlane.f32.xlu0 %v5346_v28  ;;  %v3175_v60 = vsub.f32 1.5, %v3174_v1 }
 0x1b3   : > { %15779 = vst [vmem:[#allocation17_spill] sm:$0xff] %v15778_v18  ;;  %v11873_v25 = vmax.f32 %v1695_v3, 1e-12  ;;  %v5974_v17 = vsel %vm11571_vm13, %v9094_v48, 0.0  ;;  %v5666_v1 = vsel %vm11869_vm6, %v5058_v10, 0.0  ;;  %v3083_v57 = vsel %vm3082_vm3, %v11495_v12, %v3081_v16  ;;  %vm11902_vm3 = vmand %vm15790_vm14, %vm4038_vm10 }
 0x1b4   : > { %v4906_v24 = vmul.f32 1.442695, %v4678_v20  ;;  %v15784_v20 = vmov 0  ;;  %v3221_v28 = vmul.f32 %v11822_v27, %v3220_v13  ;;  %v3085_v3 = vand.u32 2147483648, %v11495_v12 }
 0x1b5   : > { %v11828_v31 = vpop.xlane.xlu1 %7291  ;;  %v15785_v20 = vsel %vm11869_vm6, 4294967295, %v15784_v20  ;;  %v3653_v48 = vadd.s32 216, %v9770_v9  ;;  %v11894_v10 = vadd.s32 %v9775_v14, %v3652_v43  ;;  %vm15796_vm13 = vcmp.lt.s32.totalorder %v11818_v0, 8  ;;  %v660_v0 = vld [vmem:[%s14864_s1 + $0x1f8] sm:$0xff] }
 0x1b6   : > { %15775 = vst [vmem:[#allocation151_spill] sm:$0xff] %v11828_v31  ;;  %v11840_v38 = vpop.xlane.xlu2 %7195  ;;  %v11857_v31 = vpop.eup %9095  ;;  %9101 = vpow2.f32 %v4906_v24  ;;  %v3129_v24 = vmul.f32 %v3128_v4, %v11549_v62  ;;  %v3176_v4 = vmul.f32 %v11699_v22, %v3175_v60  ;;  %v11909_v13 = vsel %vm3084_vm1, %v3085_v3, %v3083_v57  ;;  %vm11918_vm10 = vmand %vm15796_vm13, %vm15795_vm0  ;;  %1000 = vmatpush.msra.mxu3 %v660_v0 }
 0x1b7   : > { %15780 = vst [vmem:[#allocation152_spill] sm:$0xff] %v11840_v38  ;;  %v9098_v63 = vpop.eup %9097  ;;  %v3268_v50 = vmul.f32 %v11857_v31, %v11786_v58  ;;  %7317 = vadd.xlane.f32.xlu2 %v5666_v1  ;;  %9103 = vrsqrt.f32 %v11873_v25  ;;  %v4682_v22 = vmul.f32 -20.0, %v11909_v13  ;;  %vm3130_vm14 = vcmp.eq.f32.partialorder %v11549_v62, inf }
 0x1b8   : > { %15786 = vst [vmem:[#allocation153_spill] sm:$0xff] %v15785_v20  ;;  %v5970_v12 = vsel %vm11517_vm11, %v9098_v63, 0.0  ;;  %v9100_v43 = vpop.eup %9099  ;;  %v3133_v60 = vand.u32 2147483648, %v11549_v62  ;;  %vm15136_vm1 = vcmp.eq.s32.totalorder %v10858_v52, %v9799_v37  ;;  %v3131_v57 = vsel %vm3130_vm14, %v11549_v62, %v3129_v24  ;;  %vm11953_vm14 = vmand %vm11902_vm3, %vm11918_vm10 }
 0x1b9   : > { %15789 = vst [vmem:[#allocation156_spill] sm:$0xff] %v11894_v10  ;;  %v3269_v1 = vmul.f32 %v11857_v31, %v3268_v50  ;;  %v3222_v50 = vmul.f32 0.5, %v3221_v28  ;;  %vm3132_vm13 = vcmp.eq.f32.partialorder %v11549_v62, 0.0  ;;  %v11932_v3 = vadd.s32 %v9775_v14, %v3653_v48 }
 0x1ba   : > { %v11875_v34 = vpop.xlane.xlu0 %7197  ;;  %7407 = vadd.xlane.f32.xlu1 %v5974_v17  ;;  %15793 = vst [vmem:[#allocation157_spill] sm:$0xff] %v11909_v13  ;;  %7405 = vadd.xlane.f32.xlu0 %v5970_v12  ;;  %vm15800_vm0 = vcmp.eq.s32.totalorder %v10928_v35, %v9799_v37  ;;  %v4914_v28 = vmul.f32 1.442695, %v4682_v22  ;;  %v11944_v12 = vsel %vm3132_vm13, %v3133_v60, %v3131_v57  ;;  %v15804_v35 = vmov 0  ;;  %vm11967_vm13 = vmxor %vm15136_vm1, %vm15459_vm9 }
 0x1bb   : > { %15787 = vst [vmem:[#allocation154_spill] sm:$0xff] %v11875_v34  ;;  %vm11938_vm11 = vmxor %vm15800_vm0, %vm15459_vm9  ;;  %v3177_v62 = vmul.f32 %v3176_v4, %v11611_v36  ;;  %v15805_v35 = vsel %vm11953_vm14, 4294967295, %v15804_v35  ;;  %v5966_v48 = vsel %vm11416_vm7, %v9100_v43, 0.0  ;;  %v4686_v22 = vmul.f32 -20.0, %v11944_v12  ;;  %v640_v34 = vld [vmem:[%s14864_s1 + $0x158] sm:$0xff] }
 0x1bc   : > { %v11925_v63 = vpop.eup %9101  ;;  %15799 = vst [vmem:[#allocation159_spill] sm:$0xff] %v11932_v3  ;;  %v3270_v16 = vmul.f32 0.5, %v3269_v1  ;;  %9105 = vpow2.f32 %v4914_v28  ;;  %vm4042_vm3 = vcmp.ne.s32.totalorder %v11894_v10, %v9794_v32  ;;  %vm11981_vm1 = vmand %vm11938_vm11, %vm11918_vm10  ;;  %vm15814_vm11 = vcmp.lt.s32.totalorder %v9794_v32, 8 }
 0x1bd   : > { %v11891_v15 = vpop.xlane.xlu1 %7383  ;;  %v5062_v13 = vmul.f32 %v11925_v63, %v11925_v63  ;;  %15803 = vst [vmem:[#allocation160_spill] sm:$0xff] %v11944_v12  ;;  %v11946_v24 = vpop.eup %9103  ;;  %v3223_v12 = vsub.f32 1.5, %v3222_v50  ;;  %v15811_v23 = vsel %vm11981_vm1, 4294967295, %v15810_v23  ;;  %v4922_v1 = vmul.f32 1.442695, %v4686_v22 }
 0x1be   : > { %15788 = vst [vmem:[#allocation155_spill] sm:$0xff] %v11891_v15  ;;  %v11911_v17 = vpop.xlane.xlu2 %7293  ;;  %v3316_v43 = vmul.f32 %v11946_v24, %v11873_v25  ;;  %v659_v15 = vld [vmem:[%s14864_s1 + $0x1f0] sm:$0xff]  ;;  %vm15815_vm10 = vcmp.lt.s32.totalorder %v11894_v10, 8  ;;  %vm3178_vm0 = vcmp.eq.f32.partialorder %v11611_v36, inf  ;;  %v3181_v0 = vand.u32 2147483648, %v11611_v36 }
 0x1bf   : > { %15794 = vst [vmem:[#allocation158_spill] sm:$0xff] %v11911_v17  ;;  %v5350_v57 = vsel %vm11953_vm14, %v5062_v13, 0.0  ;;  %7403 = vadd.xlane.f32.xlu2 %v5966_v48  ;;  %v655_v48 = vld [vmem:[%s14864_s1 + $0x1d0] sm:$0xff]  ;;  %vm12005_vm7 = vmand %vm15815_vm10, %vm15814_vm11  ;;  %9107 = vpow2.f32 %v4922_v1  ;;  %887 = vmatpush.msra.mxu2 %v659_v15  ;;  %vm15819_vm11 = vcmp.eq.s32.totalorder %v10858_v52, %v9799_v37  ;;  %v3271_v1 = vsub.f32 1.5, %v3270_v16 }
 0x1c0   : > { %15806 = vst [vmem:[#allocation161_spill] sm:$0xff] %v15805_v35  ;;  %v3317_v28 = vmul.f32 %v11946_v24, %v3316_v43  ;;  %v656_v43 = vld [vmem:[%s14864_s1 + $0x1d8] sm:$0xff]  ;;  %vm12021_vm10 = vmand %vm15819_vm11, %vm4042_vm3  ;;  %v3179_v15 = vsel %vm3178_vm0, %v11611_v36, %v3177_v62  ;;  %vm15822_vm6 = vcmp.ne.s32.totalorder %v11932_v3, %v9794_v32  ;;  %v3224_v10 = vmul.f32 %v11822_v27, %v3223_v12 }
 0x1c1   : > { %15812 = vst [vmem:[#allocation163_spill] sm:$0xff] %v15811_v23  ;;  %vm12035_vm4 = vmand %vm15823_vm2, %vm15822_vm6  ;;  %vm15153_vm3 = vcmp.lt.s32.totalorder %v11932_v3, 8  ;;  %vm3180_vm11 = vcmp.eq.f32.partialorder %v11611_v36, 0.0  ;;  %888 = vmatpush.msra.mxu2 %v655_v48  ;;  %v652_v62 = vld [vmem:[%s14864_s1 + $0x1b8] sm:$0xff]  ;;  %v15826_v27 = vmov 0  ;;  %1001 = vmatpush.msra.mxu3 %v656_v43  ;;  %v3654_v12 = vadd.s32 224, %v9770_v9 }
 0x1c2   : > { %v11961_v60 = vpop.xlane.xlu0 %7381  ;;  %7223 = vadd.xlane.f32.xlu1 %v5350_v57  ;;  %v12048_v16 = vpop.eup %9105  ;;  %vm12054_vm2 = vmand %vm11967_vm13, %vm12005_vm7  ;;  %v12058_v36 = vsel %vm3180_vm11, %v3181_v0, %v3179_v15  ;;  %v3272_v43 = vmul.f32 %v11857_v31, %v3271_v1  ;;  %vm15834_vm0 = vcmp.lt.s32.totalorder %v9794_v32, 8  ;;  %9109 = vrcp.f32 %v11815_v33  ;;  %v636_v15 = vld [vmem:[%s14864_s1 + $0x138] sm:$0xff]  ;;  %v16009_v23 = vld [vmem:[#allocation20_spill] sm:$0xff] }
 0x1c3   : > { %15807 = vst [vmem:[#allocation162_spill] sm:$0xff] %v11961_v60  ;;  %v3318_v60 = vmul.f32 0.5, %v3317_v28  ;;  %v15827_v27 = vsel %vm12054_vm2, 4294967295, %v15826_v27  ;;  %v5066_v48 = vmul.f32 %v12048_v16, %v12048_v16  ;;  %vm12067_vm6 = vmand %vm12021_vm10, %vm12005_vm7  ;;  %v15830_v28 = vmov 0  ;;  %1002 = vmatpush.msra.mxu3 %v652_v62  ;;  %v647_v62 = vld [vmem:[%s14864_s1 + $0x190] sm:$0xff] }
 0x1c4   : > { %15828 = vst [vmem:[#allocation166_spill] sm:$0xff] %v15827_v27  ;;  %v15831_v28 = vsel %vm12067_vm6, 4294967295, %v15830_v28  ;;  %vm12079_vm13 = vmand %vm15153_vm3, %vm15834_vm0  ;;  %v3225_v22 = vmul.f32 %v3224_v10, %v11706_v8  ;;  %v3656_v1 = vadd.s32 240, %v9770_v9  ;;  %v658_v10 = vld [vmem:[%s14864_s1 + $0x1e8] sm:$0xff]  ;;  %9111 = vrcp.f32 %v11759_v21 }
 0x1c5   : > { %v11990_v50 = vpop.xlane.xlu1 %7199  ;;  %15829 = vst [vmem:[#allocation167_spill] sm:$0xff] %v12058_v36  ;;  %v12084_v29 = vpop.eup %9107  ;;  %v5674_v0 = vsel %vm12054_vm2, %v5066_v48, 0.0  ;;  %v5354_v31 = vsel %vm12067_vm6, %v5066_v48, 0.0  ;;  %v648_v48 = vld [vmem:[%s14864_s1 + $0x198] sm:$0xff]  ;;  %vm12112_vm7 = vmand %vm12035_vm4, %vm12079_vm13  ;;  %774 = vmatpush.msra.mxu1 %v658_v10  ;;  %v3273_v52 = vmul.f32 %v3272_v43, %v11786_v58  ;;  %vm3226_vm4 = vcmp.eq.f32.partialorder %v11706_v8, inf  ;;  %v650_v10 = vld [vmem:[%s14864_s1 + $0x1a8] sm:$0xff] }
 0x1c6   : > { %15813 = vst [vmem:[#allocation164_spill] sm:$0xff] %v11990_v50  ;;  %v12009_v57 = vpop.xlane.xlu2 %7379  ;;  %v5070_v3 = vmul.f32 %v12084_v29, %v12084_v29  ;;  %v643_v50 = vld [vmem:[%s14864_s1 + $0x170] sm:$0xff]  ;;  %1003 = vmatpush.msra.mxu3 %v648_v48  ;;  %vm15843_vm10 = vcmp.eq.s32.totalorder %v10950_v2, %v9799_v37  ;;  %v12151_v2 = vadd.s32 %v9775_v14, %v3656_v1  ;;  %vm3274_vm3 = vcmp.eq.f32.partialorder %v11786_v58, inf }
 0x1c7   : > { %15818 = vst [vmem:[#allocation165_spill] sm:$0xff] %v12009_v57  ;;  %v5670_v57 = vsel %vm11981_vm1, %v5062_v13, 0.0  ;;  %v651_v13 = vld [vmem:[%s14864_s1 + $0x1b0] sm:$0xff]  ;;  %7225 = vadd.xlane.f32.xlu2 %v5354_v31  ;;  %vm12139_vm11 = vmxor %vm15843_vm10, %vm15459_vm9  ;;  %vm3228_vm10 = vcmp.eq.f32.partialorder %v11706_v8, 0.0  ;;  %v3275_v1 = vsel %vm3274_vm3, %v11786_v58, %v3273_v52  ;;  %vm3276_vm3 = vcmp.eq.f32.partialorder %v11786_v58, 0.0 }
 0x1c8   : > { %7319 = vadd.xlane.f32.xlu0 %v5670_v57  ;;  %15832 = vst [vmem:[#allocation168_spill] sm:$0xff] %v15831_v28  ;;  %v4690_v57 = vmul.f32 -20.0, %v12058_v36  ;;  %889 = vmatpush.msra.mxu2 %v651_v13  ;;  %v3319_v13 = vsub.f32 1.5, %v3318_v60  ;;  %v12106_v60 = vadd.s32 %v9775_v14, %v3654_v12  ;;  %v654_v12 = vld [vmem:[%s14864_s1 + $0x1c8] sm:$0xff]  ;;  %v5358_v17 = vsel %vm12112_vm7, %v5070_v3, 0.0  ;;  %v639_v48 = vld [vmem:[%s14864_s1 + $0x150] sm:$0xff]  ;;  %vm12169_vm2 = vmand %vm12139_vm11, %vm12079_vm13 }
 0x1c9   : > { %775 = vmatpush.msra.mxu1 %v654_v12  ;;  %15846 = vst [vmem:[#allocation174_spill] sm:$0xff] %v12151_v2  ;;  %vm15856_vm11 = vcmp.lt.s32.totalorder %v9794_v32, 8  ;;  %v15887_v18 = vmov 0 }
 0x1ca   : > { %v12071_v4 = vpop.xlane.xlu0 %7295  ;;  %7321 = vadd.xlane.f32.xlu1 %v5674_v0  ;;  %15838 = vst [vmem:[#allocation171_spill] sm:$0xff] %v12106_v60  ;;  %v15839_v0 = vmov 0  ;;  %v4930_v31 = vmul.f32 1.442695, %v4690_v57  ;;  %890 = vmatpush.msra.mxu2 %v647_v62  ;;  %v644_v57 = vld [vmem:[%s14864_s1 + $0x178] sm:$0xff]  ;;  %v3227_v62 = vsel %vm3226_vm4, %v11706_v8, %v3225_v22  ;;  %v646_v22 = vld [vmem:[%s14864_s1 + $0x188] sm:$0xff]  ;;  %vm4050_vm0 = vcmp.ne.s32.totalorder %v12106_v60, %v9794_v32 }
 0x1cb   : > { %15833 = vst [vmem:[#allocation169_spill] sm:$0xff] %v12071_v4  ;;  %v15840_v0 = vsel %vm12112_vm7, 4294967295, %v15839_v0  ;;  %1004 = vmatpush.msra.mxu3 %v644_v57  ;;  %vm15161_vm4 = vcmp.eq.s32.totalorder %v11046_v30, %v9799_v37  ;;  %776 = vmatpush.msra.mxu1 %v650_v10  ;;  %v5678_v10 = vsel %vm12169_vm2, %v5070_v3, 0.0  ;;  %vm15159_vm13 = vcmp.lt.s32.totalorder %v12106_v60, 8  ;;  %v642_v3 = vld [vmem:[%s14864_s1 + $0x168] sm:$0xff] }
 0x1cc   : > { %15841 = vst [vmem:[#allocation172_spill] sm:$0xff] %v15840_v0  ;;  %9113 = vpow2.f32 %v4930_v31  ;;  %v3229_v31 = vand.u32 2147483648, %v11706_v8  ;;  %891 = vmatpush.msra.mxu2 %v643_v50  ;;  %v635_v8 = vld [vmem:[%s14864_s1 + $0x130] sm:$0xff]  ;;  %v9330_v0 = vld [vmem:[%s9602_s8 + $0x8] sm:$0xff] }
 0x1cd   : > { %v12094_v36 = vpop.xlane.xlu1 %7297  ;;  %9115 = vrcp.f32 %v11668_v49  ;;  %1005 = vmatpush.msra.mxu3 %v640_v34  ;;  %777 = vmatpush.msra.mxu1 %v646_v22 }
 0x1ce   : > { %15837 = vst [vmem:[#allocation170_spill] sm:$0xff] %v12094_v36  ;;  %v12117_v4 = vpop.xlane.xlu2 %7201  ;;  %v9110_v36 = vpop.eup %9109  ;;  %v12174_v50 = vsel %vm3228_vm10, %v3229_v31, %v3227_v62  ;;  %892 = vmatpush.msra.mxu2 %v639_v48  ;;  %vm12225_vm10 = vmand %vm15161_vm4, %vm4050_vm0 }
 0x1cf   : > { %15842 = vst [vmem:[#allocation173_spill] sm:$0xff] %v12117_v4  ;;  %v3655_v4 = vadd.s32 232, %v9770_v9  ;;  %v9112_v12 = vpop.eup %9111  ;;  %v5986_v57 = vsel %vm11836_vm15, %v9110_v36, 0.0  ;;  %v4694_v43 = vmul.f32 -20.0, %v12174_v50  ;;  %7323 = vadd.xlane.f32.xlu2 %v5678_v10  ;;  %1006 = vmatpush.msra.mxu3 %v636_v15  ;;  %v627_v15 = vld [vmem:[%s14864_s1 + $0xf0] sm:$0xff]  ;;  %vm12239_vm15 = vmand %vm15159_vm13, %vm15856_vm11  ;;  %v626_v10 = vld [vmem:[%s14864_s1 + $0xe8] sm:$0xff] }
 0x1d0   : > { %7227 = vadd.xlane.f32.xlu0 %v5358_v17  ;;  %v3320_v17 = vmul.f32 %v11946_v24, %v3319_v13  ;;  %v15847_v24 = vmov 0  ;;  %15850 = vst [vmem:[#allocation176_spill] sm:$0xff] %v12174_v50  ;;  %v3277_v13 = vand.u32 2147483648, %v11786_v58  ;;  %v631_v58 = vld [vmem:[%s14864_s1 + $0x110] sm:$0xff]  ;;  %893 = vmatpush.msra.mxu2 %v635_v8  ;;  %v5982_v8 = vsel %vm11795_vm8, %v9112_v12, 0.0  ;;  %vm15859_vm0 = vmmov %vm15856_vm11 }
 0x1d1   : > { %v15848_v24 = vsel %vm12169_vm2, 4294967295, %v15847_v24  ;;  %v12193_v34 = vadd.s32 %v9775_v14, %v3655_v4  ;;  %778 = vmatpush.msra.mxu1 %v642_v3  ;;  %v628_v3 = vld [vmem:[%s14864_s1 + $0xf8] sm:$0xff]  ;;  %vm15860_vm11 = vcmp.lt.s32.totalorder %v12151_v2, 8  ;;  %vm3324_vm2 = vcmp.eq.f32.partialorder %v11873_v25, 0.0 }
 0x1d2   : > { %15849 = vst [vmem:[#allocation175_spill] sm:$0xff] %v15848_v24  ;;  %v12188_v52 = vpop.xlane.xlu0 %7203  ;;  %v3321_v62 = vmul.f32 %v3320_v17, %v11873_v25  ;;  %7413 = vadd.xlane.f32.xlu1 %v5986_v57  ;;  %v12199_v48 = vsel %vm3276_vm3, %v3277_v13, %v3275_v1  ;;  %v12207_v4 = vpop.eup %9113  ;;  %v4938_v17 = vmul.f32 1.442695, %v4694_v43  ;;  %v632_v1 = vld [vmem:[%s14864_s1 + $0x118] sm:$0xff]  ;;  %v638_v13 = vld [vmem:[%s14864_s1 + $0x148] sm:$0xff]  ;;  %vm3322_vm3 = vcmp.eq.f32.partialorder %v11873_v25, inf  ;;  %894 = vmatpush.msra.mxu2 %v631_v58  ;;  %vm12255_vm13 = vmand %vm15860_vm11, %vm15859_vm0 }
 0x1d3   : > { %15851 = vst [vmem:[#allocation177_spill] sm:$0xff] %v12188_v52  ;;  %v4698_v31 = vmul.f32 -20.0, %v12199_v48  ;;  %v5074_v43 = vmul.f32 %v12207_v4, %v12207_v4  ;;  %vm15165_vm4 = vcmp.lt.s32.totalorder %v12193_v34, 8  ;;  %1007 = vmatpush.msra.mxu3 %v632_v1  ;;  %779 = vmatpush.msra.mxu1 %v638_v13  ;;  %vm4054_vm8 = vcmp.ne.s32.totalorder %v12193_v34, %v9794_v32  ;;  %v630_v13 = vld [vmem:[%s14864_s1 + $0x108] sm:$0xff] }
 0x1d4   : > { %15852 = vst [vmem:[#allocation178_spill] sm:$0xff] %v12193_v34  ;;  %9117 = vpow2.f32 %v4938_v17  ;;  %v3323_v58 = vsel %vm3322_vm3, %v11873_v25, %v3321_v62  ;;  %v623_v17 = vld [vmem:[%s14864_s1 + $0xd0] sm:$0xff]  ;;  %vm15863_vm0 = vcmp.eq.s32.totalorder %v11046_v30, %v9799_v37  ;;  %v3325_v62 = vand.u32 2147483648, %v11873_v25  ;;  %895 = vmatpush.msra.mxu2 %v627_v15  ;;  %vm12281_vm3 = vmand %vm12225_vm10, %vm12239_vm15  ;;  %v624_v30 = vld [vmem:[%s14864_s1 + $0xd8] sm:$0xff] }
 0x1d5   : > { %v12197_v36 = vpop.xlane.xlu1 %7389  ;;  %15853 = vst [vmem:[#allocation179_spill] sm:$0xff] %v12199_v48  ;;  %v4946_v12 = vmul.f32 1.442695, %v4698_v31  ;;  %v9116_v48 = vpop.eup %9115  ;;  %vm12272_vm11 = vmxor %vm15863_vm0, %vm15459_vm9  ;;  %v15866_v1 = vmov 0  ;;  %1008 = vmatpush.msra.mxu3 %v628_v3  ;;  %vm15869_vm0 = vcmp.lt.s32.totalorder %v9794_v32, 8  ;;  %v5362_v25 = vsel %vm12281_vm3, %v5074_v43, 0.0 }
 0x1d6   : > { %v12211_v22 = vpop.xlane.xlu2 %7299  ;;  %v15867_v1 = vsel %vm12281_vm3, 4294967295, %v15866_v1  ;;  %vm12296_vm10 = vmand %vm15165_vm4, %vm15869_vm0  ;;  %v5978_v15 = vsel %vm11694_vm12, %v9116_v48, 0.0  ;;  %896 = vmatpush.msra.mxu2 %v623_v17  ;;  %v619_v3 = vld [vmem:[%s14864_s1 + $0xb0] sm:$0xff]  ;;  %vm15873_vm0 = vcmp.eq.s32.totalorder %v10960_v42, %v9799_v37  ;;  %v620_v48 = vld [vmem:[%s14864_s1 + $0xb8] sm:$0xff]  ;;  %vm3616_vm12 = vcmp.eq.s32.totalorder %v11058_v46, %v9799_v37 }
 0x1d7   : > { %9119 = vpow2.f32 %v4946_v12  ;;  %15868 = vst [vmem:[#allocation180_spill] sm:$0xff] %v15867_v1  ;;  %v12304_v12 = vsel %vm3324_vm2, %v3325_v62, %v3323_v58  ;;  %vm12315_vm4 = vmand %vm15873_vm0, %vm4054_vm8  ;;  %7409 = vadd.xlane.f32.xlu2 %v5978_v15  ;;  %vm4058_vm2 = vcmp.ne.s32.totalorder %v12151_v2, %v9794_v32  ;;  %v15876_v17 = vmov 0  ;;  %1009 = vmatpush.msra.mxu3 %v624_v30  ;;  %v615_v31 = vld [vmem:[%s14864_s1 + $0x90] sm:$0xff]  ;;  %v616_v30 = vld [vmem:[%s14864_s1 + $0x98] sm:$0xff] }
 0x1d8   : > { %7411 = vadd.xlane.f32.xlu0 %v5982_v8  ;;  %v634_v8 = vld [vmem:[%s14864_s1 + $0x128] sm:$0xff]  ;;  %15872 = vst [vmem:[#allocation181_spill] sm:$0xff] %v12304_v12  ;;  %vm12332_vm8 = vmand %vm12272_vm11, %vm12239_vm15  ;;  %v4702_v50 = vmul.f32 -20.0, %v12304_v12  ;;  %897 = vmatpush.msra.mxu2 %v619_v3  ;;  %v611_v12 = vld [vmem:[%s14864_s1 + $0x70] sm:$0xff]  ;;  %v15884_v2 = vmov 0  ;;  %9121 = vrcp.f32 %v12084_v29  ;;  %v15890_v57 = vmov 0 }
 0x1d9   : > { %780 = vmatpush.msra.mxu1 %v634_v8  ;;  %v15877_v17 = vsel %vm12332_vm8, 4294967295, %v15876_v17  ;;  %vm15881_vm15 = vmmov %vm15873_vm0  ;;  %1010 = vmatpush.msra.mxu3 %v620_v48  ;;  %v622_v3 = vld [vmem:[%s14864_s1 + $0xc8] sm:$0xff]  ;;  %9123 = vrcp.f32 %v12048_v16 }
 0x1da   : > { %7229 = vadd.xlane.f32.xlu1 %v5362_v25  ;;  %v12322_v58 = vpop.eup %9117  ;;  %15878 = vst [vmem:[#allocation182_spill] sm:$0xff] %v15877_v17  ;;  %v12336_v62 = vpop.xlane.xlu0 %7387  ;;  %v5682_v25 = vsel %vm12332_vm8, %v5074_v43, 0.0  ;;  %vm4438_vm11 = vmxor %vm15881_vm15, %vm15459_vm9  ;;  %898 = vmatpush.msra.mxu2 %v615_v31  ;;  %v4954_v31 = vmul.f32 1.442695, %v4702_v50  ;;  %v618_v8 = vld [vmem:[%s14864_s1 + $0xa8] sm:$0xff] }
 0x1db   : > { %781 = vmatpush.msra.mxu1 %v630_v13  ;;  %v5078_v13 = vmul.f32 %v12322_v58, %v12322_v58  ;;  %vm12374_vm0 = vmand %vm3616_vm12, %vm4058_vm2  ;;  %1011 = vmatpush.msra.mxu3 %v616_v30  ;;  %v607_v30 = vld [vmem:[%s14864_s1 + $0x50] sm:$0xff]  ;;  %v614_v42 = vld [vmem:[%s14864_s1 + $0x88] sm:$0xff] }
 0x1dc   : > { %vm12387_vm15 = vmand %vm12315_vm4, %vm12296_vm10  ;;  %899 = vmatpush.msra.mxu2 %v611_v12  ;;  %v608_v12 = vld [vmem:[%s14864_s1 + $0x58] sm:$0xff]  ;;  %9125 = vpow2.f32 %v4954_v31 }
 0x1dd   : > { %v12340_v15 = vpop.xlane.xlu1 %7205  ;;  %v12354_v43 = vpop.eup %9119  ;;  %782 = vmatpush.msra.mxu1 %v626_v10  ;;  %v15885_v2 = vsel %vm12387_vm15, 4294967295, %v15884_v2  ;;  %vm12393_vm2 = vmand %vm4438_vm11, %vm12296_vm10  ;;  %v3657_v10 = vadd.s32 248, %v9770_v9  ;;  %v5366_v50 = vsel %vm12387_vm15, %v5078_v13, 0.0  ;;  %9127 = vrcp.f32 %v11925_v63 }
 0x1de   : > { %15879 = vst [vmem:[#allocation183_spill] sm:$0xff] %v12340_v15  ;;  %v12342_v34 = vpop.xlane.xlu2 %7385  ;;  %v5082_v48 = vmul.f32 %v12354_v43, %v12354_v43  ;;  %v15888_v18 = vsel %vm12393_vm2, 4294967295, %v15887_v18  ;;  %vm12409_vm4 = vmand %vm12374_vm0, %vm12255_vm13  ;;  %v5686_v9 = vsel %vm12393_vm2, %v5078_v13, 0.0  ;;  %900 = vmatpush.msra.mxu2 %v607_v30  ;;  %v603_v13 = vld [vmem:[%s14864_s1 + $0x30] sm:$0xff]  ;;  %v9122_v31 = vpop.eup %9121 }
 0x1df   : > { %15880 = vst [vmem:[#allocation184_spill] sm:$0xff] %v12342_v34  ;;  %783 = vmatpush.msra.mxu1 %v622_v3  ;;  %v15891_v57 = vsel %vm12409_vm4, 4294967295, %v15890_v57  ;;  %7231 = vadd.xlane.f32.xlu2 %v5366_v50  ;;  %v610_v50 = vld [vmem:[%s14864_s1 + $0x68] sm:$0xff]  ;;  %vm4442_vm10 = vmxor %vm3616_vm12, %vm15459_vm9  ;;  %v5998_v60 = vsel %vm12112_vm7, %v9122_v31, 0.0  ;;  %vm15900_vm7 = vcmp.eq.s32.totalorder %v11118_v6, %v9799_v37  ;;  %v15905_v6 = vmov 0  ;;  %v9331_v34 = vld [vmem:[%s9602_s8 + $0x10] sm:$0xff] }
 0x1e0   : > { %7325 = vadd.xlane.f32.xlu0 %v5682_v25  ;;  %v612_v25 = vld [vmem:[%s14864_s1 + $0x78] sm:$0xff]  ;;  %15886 = vst [vmem:[#allocation185_spill] sm:$0xff] %v15885_v2  ;;  %v5370_v3 = vsel %vm12409_vm4, %v5082_v48, 0.0  ;;  %901 = vmatpush.msra.mxu2 %v603_v13  ;;  %vm12457_vm12 = vmand %vm4442_vm10, %vm12255_vm13  ;;  %v9124_v13 = vpop.eup %9123  ;;  %vm15897_vm10 = vcmp.lt.s32.totalorder %v9794_v32, 8  ;;  %v15929_v2 = vld [vmem:[#allocation56_spill] sm:$0xff] }
 0x1e1   : > { %15889 = vst [vmem:[#allocation186_spill] sm:$0xff] %v15888_v18  ;;  %1012 = vmatpush.msra.mxu3 %v612_v25  ;;  %784 = vmatpush.msra.mxu1 %v618_v8  ;;  %v604_v25 = vld [vmem:[%s14864_s1 + $0x38] sm:$0xff] }
 0x1e2   : > { %15892 = vst [vmem:[#allocation187_spill] sm:$0xff] %v15891_v57  ;;  %7327 = vadd.xlane.f32.xlu1 %v5686_v9  ;;  %v12433_v9 = vadd.s32 %v9775_v14, %v3657_v10  ;;  %v12442_v8 = vpop.xlane.xlu0 %7301  ;;  %v599_v14 = vld [vmem:[%s14864_s1 + $0x10] sm:$0xff]  ;;  %v600_v10 = vld [vmem:[%s14864_s1 + $0x18] sm:$0xff]  ;;  %v15924_v57 = vld [vmem:[#allocation31_spill] sm:$0xff] }
 0x1e3   : > { %1013 = vmatpush.msra.mxu3 %v608_v12  ;;  %785 = vmatpush.msra.mxu1 %v614_v42  ;;  %v606_v42 = vld [vmem:[%s14864_s1 + $0x48] sm:$0xff] }
 0x1e4   : > { %15893 = vst [vmem:[#allocation188_spill] sm:$0xff] %v12433_v9  ;;  %vm15189_vm11 = vcmp.lt.s32.totalorder %v12433_v9, 8  ;;  %vm4062_vm0 = vcmp.ne.s32.totalorder %v12433_v9, %v9794_v32  ;;  %902 = vmatpush.msra.mxu2 %v599_v14  ;;  %v12476_v14 = vpop.eup %9125  ;;  %v15901_v9 = vmov 0 }
 0x1e5   : > { %1014 = vmatpush.msra.mxu3 %v604_v25  ;;  %786 = vmatpush.msra.mxu1 %v610_v50  ;;  %v5690_v25 = vsel %vm12457_vm12, %v5082_v48, 0.0  ;;  %v9329_v50 = vld [vmem:[%s9602_s8] sm:$0xff]  ;;  %vm12485_vm13 = vmand %vm15189_vm11, %vm15897_vm10  ;;  %v5994_v48 = vsel %vm12067_vm6, %v9124_v13, 0.0  ;;  %vm15930_vm11 = vnez %v15929_v2 }
 0x1e6   : > { %903 = vmatmul.f32.vlgmr.msra.gmra.mxu2 %v9329_v50 }
 0x1e7   : > { %v7304_v30 = vpop.xlane.xlu1 %7303  ;;  %1015 = vmatpush.msra.mxu3 %v600_v10  ;;  %7329 = vadd.xlane.f32.xlu2 %v5690_v25  ;;  %v602_v10 = vld [vmem:[%s14864_s1 + $0x28] sm:$0xff] }
 0x1e8   : > { %7233 = vadd.xlane.f32.xlu0 %v5370_v3  ;;  %v12450_v12 = vpop.xlane.xlu2 %7207  ;;  %v15894_v3 = vmov 0  ;;  %1016 = vmatmul.f32.vlgmr.msra.gmra.mxu3 %v9329_v50 }
 0x1e9   : > { %v12453_v46 = vadd.f32 %v7304_v30, %v12450_v12  ;;  %v15895_v3 = vsel %vm12457_vm12, 4294967295, %v15894_v3  ;;  %787 = vmatpush.msra.mxu1 %v606_v42  ;;  %vm4190_vm12 = vmand %vm15900_vm7, %vm4062_vm0  ;;  %v598_v30 = vld [vmem:[%s14864_s1 + $0x8] sm:$0xff]  ;;  %v9128_v42 = vpop.eup %9127 }
 0x1ea   : > { %15896 = vst [vmem:[#allocation189_spill] sm:$0xff] %v15895_v3  ;;  %7419 = vadd.xlane.f32.xlu1 %v5998_v60  ;;  %v5086_v60 = vmul.f32 %v12476_v14, %v12476_v14  ;;  %vm12504_vm10 = vmand %vm4190_vm12, %vm12485_vm13  ;;  %v5990_v32 = vsel %vm11953_vm14, %v9128_v42, 0.0 }
 0x1eb   : > { %9129 = vrcp.f32 %v12453_v46  ;;  %788 = vmatpush.msra.mxu1 %v602_v10  ;;  %v15902_v9 = vsel %vm12504_vm10, 4294967295, %v15901_v9  ;;  %vm4446_vm0 = vmxor %vm15900_vm7, %vm15459_vm9  ;;  %v8013_v28 = vand.u32 2147483647, %v12453_v46 }
 0x1ec   : > { %15903 = vst [vmem:[#allocation190_spill] sm:$0xff] %v15902_v9  ;;  %9131 = vrcp.f32 %v12207_v4  ;;  %v5374_v10 = vsel %vm12504_vm10, %v5086_v60, 0.0  ;;  %vm12524_vm9 = vmand %vm4446_vm0, %vm12485_vm13  ;;  %vm8009_vm13 = vweird.f32 %v12453_v46 }
 0x1ed   : > { %789 = vmatpush.msra.mxu1 %v598_v30  ;;  %9133 = vrcp.f32 %v12354_v43  ;;  %v15906_v6 = vsel %vm12524_vm9, 4294967295, %v15905_v6  ;;  %v5694_v30 = vsel %vm12524_vm9, %v5086_v60, 0.0  ;;  %vm8014_vm0 = vcmp.eq.f32.partialorder %v8013_v28, 8.507059e+37 }
 0x1ee   : > { %790 = vmatmul.f32.vlgmr.msra.gmra.mxu1 %v9329_v50  ;;  %906 = vmatmul.f32.gmra.mxu2 %v9330_v0  ;;  %15907 = vst [vmem:[#allocation192_spill] sm:$0xff] %v15906_v6  ;;  %v8015_v50 = vand.u32 2147483648, %v12453_v46  ;;  %9135 = vrcp.f32 %v12322_v58 }
 0x1ef   : > { %7415 = vadd.xlane.f32.xlu2 %v5990_v32  ;;  %9137 = vrcp.f32 %v12476_v14 }
 0x1f0   : > { %7417 = vadd.xlane.f32.xlu0 %v5994_v48  ;;  %v12514_v48 = vpop.xlane.xlu0 %7209  ;;  %1019 = vmatmul.f32.gmra.mxu3 %v9330_v0  ;;  %v12535_v31 = vpop.xlane.xlu2 %7305  ;;  %v8016_v39 = vor.u32 1.1754944e-38, %v8015_v50 }
 0x1f1   : > { %v9130_v25 = vpop.eup %9129  ;;  %15904 = vst [vmem:[#allocation191_spill] sm:$0xff] %v12514_v48 }
 0x1f2   : > { %v8005_v13 = vmul.f32 %v9130_v25, %v12453_v46  ;;  %7235 = vadd.xlane.f32.xlu1 %v5374_v10  ;;  %vm8010_vm12 = vweird.f32 %v9130_v25  ;;  %v12533_v10 = vpop.xlane.xlu1 %7395  ;;  %v9132_v32 = vpop.eup %9131 }
 0x1f3   : > { %15908 = vst [vmem:[#allocation193_spill] sm:$0xff] %v12533_v10  ;;  %vm8011_vm7 = vmor %vm8009_vm13, %vm8010_vm12 }
 0x1f4   : > { %v8006_v37 = vsub.f32 1.0, %v8005_v13  ;;  %v9134_v13 = vpop.eup %9133 }
 0x1f5   : > { %v9136_v60 = vpop.eup %9135  ;;  %v6010_v10 = vsel %vm12409_vm4, %v9134_v13, 0.0  ;;  %v15916_v13 = vld [vmem:[#allocation29_spill] sm:$0xff] }
 0x1f6   : > { %v8007_v42 = vmul.f32 %v9130_v25, %v8006_v37  ;;  %793 = vmatmul.f32.gmra.mxu1 %v9330_v0  ;;  %909 = vmatmul.f32.gmra.mxu2 %v9331_v34  ;;  %vm15917_vm12 = vnez %v15916_v13 }
 0x1f8   : > { %7331 = vadd.xlane.f32.xlu0 %v5694_v30  ;;  %v8008_v35 = vadd.f32 %v9130_v25, %v8007_v42  ;;  %v6002_v30 = vsel %vm12281_vm3, %v9132_v32, 0.0  ;;  %1022 = vmatmul.f32.gmra.mxu3 %v9331_v34  ;;  %v12553_v0 = vpop.xlane.xlu2 %7391  ;;  %v15915_v32 = vld [vmem:[#allocation16_spill] sm:$0xff] }
 0x1f9   : > { %7421 = vadd.xlane.f32.xlu2 %v6002_v30  ;;  %15912 = vst [vmem:[#allocation197_spill] sm:$0xff] %v12553_v0  ;;  %v15919_v30 = vld [vmem:[#allocation41_spill] sm:$0xff] }
 0x1fa   : > { %v8012_v5 = vsel %vm8011_vm7, %v9130_v25, %v8008_v35  ;;  %7425 = vadd.xlane.f32.xlu1 %v6010_v10  ;;  %v12547_v35 = vpop.xlane.xlu0 %7393  ;;  %v12551_v28 = vpop.xlane.xlu1 %7211  ;;  %v15913_v25 = vld [vmem:[#allocation23_spill] sm:$0xff]  ;;  %v9332_v10 = vld [vmem:[%s9602_s8 + $0x18] sm:$0xff]  ;;  %vm15920_vm13 = vnez %v15919_v30 }
 0x1fb   : > { %v8017_v37 = vsel %vm8014_vm0, %v8016_v39, %v8012_v5  ;;  %15910 = vst [vmem:[#allocation195_spill] sm:$0xff] %v12547_v35  ;;  %v6006_v39 = vsel %vm12387_vm15, %v9136_v60, 0.0  ;;  %v9138_v5 = vpop.eup %9137  ;;  %v6210_v60 = vsel %vm15917_vm12, %v15915_v32, 0.0  ;;  %v15932_v30 = vld [vmem:[#allocation42_spill] sm:$0xff]  ;;  %v15943_v35 = vld [vmem:[#allocation55_spill] sm:$0xff] }
 0x1fc   : > { %v12545_v46 = vmul.f32 %v8017_v37, %v12450_v12  ;;  %15911 = vst [vmem:[#allocation196_spill] sm:$0xff] %v12551_v28  ;;  %v6214_v12 = vsel %vm10123_vm5, %v15913_v25, 0.0  ;;  %v6014_v42 = vsel %vm12504_vm10, %v9138_v5, 0.0  ;;  %v15921_v25 = vld [vmem:[#allocation22_spill] sm:$0xff]  ;;  %v15922_v5 = vld [vmem:[#allocation27_spill] sm:$0xff]  ;;  %vm15933_vm10 = vnez %v15932_v30 }
 0x1fd   : > { %vm15923_vm7 = vnez %v15922_v5  ;;  %v15937_v5 = vld [vmem:[#allocation49_spill] sm:$0xff] }
 0x1fe   : > { %15909 = vst [vmem:[#allocation194_spill] sm:$0xff] %v12545_v46  ;;  %796 = vmatmul.f32.gmra.mxu1 %v9331_v34  ;;  %912 = vmatmul.f32.gmra.mxu2 %v9332_v10  ;;  %v6218_v9 = vsel %vm15923_vm7, %v15921_v25, 0.0  ;;  %v15931_v46 = vld [vmem:[#allocation39_spill] sm:$0xff]  ;;  %vm15938_vm4 = vnez %v15937_v5 }
 0x1ff   : > { %v6230_v0 = vsel %vm15933_vm10, %v15931_v46, 0.0 }
 0x200   : > { %7423 = vadd.xlane.f32.xlu0 %v6006_v39  ;;  %1025 = vmatmul.f32.gmra.mxu3 %v9332_v10  ;;  %v6226_v39 = vsel %vm15920_vm13, %v10076_v61, 0.0  ;;  %v15928_v61 = vld [vmem:[#allocation51_spill] sm:$0xff] }
 0x201   : > { %7427 = vadd.xlane.f32.xlu2 %v6014_v42  ;;  %v9333_v42 = vld [vmem:[%s9602_s8 + $0x20] sm:$0xff]  ;;  %v6238_v25 = vsel %vm15930_vm11, %v15928_v61, 0.0 }
 0x202   : > { %7463 = vadd.xlane.f32.xlu1 %v6214_v12  ;;  %v12564_v37 = vpop.xlane.xlu0 %7307  ;;  %v7310_v34 = vpop.xlane.xlu1 %7309 }
 0x203   : > { %15918 = vst [vmem:[#allocation23_spill] sm:$0xff] %v12564_v37  ;;  %v7214_v12 = vpop.xlane.xlu2 %7213 }
 0x204   : > { %v7737_v32 = vadd.f32 %v7310_v34, %v7214_v12 }
 0x206   : > { %799 = vmatmul.f32.gmra.mxu1 %v9332_v10  ;;  %915 = vmatmul.f32.gmra.mxu2 %v9333_v42  ;;  %9139 = vrcp.f32 %v7737_v32  ;;  %v8060_v30 = vand.u32 2147483648, %v7737_v32  ;;  %vm8054_vm15 = vweird.f32 %v7737_v32 }
 0x208   : > { %7461 = vadd.xlane.f32.xlu0 %v6210_v60  ;;  %1028 = vmatmul.f32.gmra.mxu3 %v9333_v42  ;;  %v15925_v60 = vld [vmem:[#allocation40_spill] sm:$0xff] }
 0x209   : > { %7465 = vadd.xlane.f32.xlu2 %v6218_v9  ;;  %vm15926_vm0 = vnez %v15925_v60  ;;  %v9334_v9 = vld [vmem:[%s9602_s8 + $0x28] sm:$0xff]  ;;  %v8058_v60 = vand.u32 2147483647, %v7737_v32 }
 0x20a   : > { %7469 = vadd.xlane.f32.xlu1 %v6226_v39  ;;  %v6222_v10 = vsel %vm15926_vm0, %v15924_v57, 0.0  ;;  %v12576_v1 = vpop.xlane.xlu0 %7215  ;;  %v12587_v57 = vpop.xlane.xlu1 %7401 }
 0x20b   : > { %15927 = vst [vmem:[#allocation16_spill] sm:$0xff] %v12576_v1  ;;  %v12584_v39 = vpop.xlane.xlu2 %7311  ;;  %vm8059_vm10 = vcmp.eq.f32.partialorder %v8058_v60, 8.507059e+37  ;;  %v15955_v60 = vld [vmem:[#allocation71_spill] sm:$0xff] }
 0x20c   : > { %15934 = vst [vmem:[#allocation22_spill] sm:$0xff] %v12584_v39  ;;  %v9140_v34 = vpop.eup %9139  ;;  %v15944_v39 = vld [vmem:[#allocation57_spill] sm:$0xff] }
 0x20d   : > { %15935 = vst [vmem:[#allocation31_spill] sm:$0xff] %v12587_v57  ;;  %vm8055_vm3 = vweird.f32 %v9140_v34  ;;  %v15941_v57 = vld [vmem:[#allocation70_spill] sm:$0xff]  ;;  %vm15945_vm14 = vnez %v15944_v39 }
 0x20e   : > { %802 = vmatmul.f32.gmra.mxu1 %v9333_v42  ;;  %918 = vmatmul.f32.gmra.mxu2 %v9334_v9  ;;  %v8050_v42 = vmul.f32 %v9140_v34, %v7737_v32  ;;  %vm15942_vm6 = vnez %v15941_v57  ;;  %v6242_v5 = vsel %vm15945_vm14, %v15943_v35, 0.0  ;;  %vm8056_vm11 = vmor %vm8054_vm15, %vm8055_vm3 }
 0x210   : > { %7467 = vadd.xlane.f32.xlu0 %v6222_v10  ;;  %1031 = vmatmul.f32.gmra.mxu3 %v9334_v9  ;;  %v15936_v10 = vld [vmem:[#allocation43_spill] sm:$0xff]  ;;  %v8051_v2 = vsub.f32 1.0, %v8050_v42  ;;  %v8061_v42 = vor.u32 1.1754944e-38, %v8060_v30  ;;  %v12614_v30 = vadd.f32 %v11138_v51, %v11190_v56 }
 0x211   : > { %7471 = vadd.xlane.f32.xlu2 %v6230_v0  ;;  %v6234_v61 = vsel %vm15938_vm4, %v15936_v10, 0.0  ;;  %v9335_v10 = vld [vmem:[%s9602_s8 + $0x30] sm:$0xff]  ;;  %v15958_v51 = vld [vmem:[#allocation75_spill] sm:$0xff] }
 0x212   : > { %7475 = vadd.xlane.f32.xlu1 %v6238_v25  ;;  %v12592_v46 = vpop.xlane.xlu0 %7399  ;;  %v8052_v50 = vmul.f32 %v9140_v34, %v8051_v2  ;;  %v15940_v25 = vld [vmem:[#allocation66_spill] sm:$0xff]  ;;  %9141 = vrcp.f32 %v12614_v30 }
 0x213   : > { %15939 = vst [vmem:[#allocation51_spill] sm:$0xff] %v12592_v46  ;;  %v6250_v0 = vsel %vm15942_vm6, %v15940_v25, 0.0  ;;  %v12601_v2 = vpop.xlane.xlu2 %7397  ;;  %v15949_v25 = vld [vmem:[#allocation63_spill] sm:$0xff] }
 0x214   : > { %v8053_v13 = vadd.f32 %v9140_v34, %v8052_v50  ;;  %15946 = vst [vmem:[#allocation39_spill] sm:$0xff] %v12601_v2  ;;  %vm15950_vm6 = vnez %v15949_v25  ;;  %v15973_v25 = vld [vmem:[#allocation89_spill] sm:$0xff] }
 0x216   : > { %805 = vmatmul.f32.gmra.mxu1 %v9334_v9  ;;  %921 = vmatmul.f32.gmra.mxu2 %v9335_v10  ;;  %v8057_v50 = vsel %vm8056_vm11, %v9140_v34, %v8053_v13  ;;  %v15953_v13 = vld [vmem:[#allocation84_spill] sm:$0xff] }
 0x217   : > { %v8062_v32 = vsel %vm8059_vm10, %v8061_v42, %v8057_v50  ;;  %vm15954_vm3 = vnez %v15953_v13  ;;  %v15956_v34 = vld [vmem:[#allocation72_spill] sm:$0xff]  ;;  %v9336_v42 = vld [vmem:[%s9602_s8 + $0x38] sm:$0xff]  ;;  %vm15962_vm10 = vnez %v15632_v41 }
 0x218   : > { %7473 = vadd.xlane.f32.xlu0 %v6234_v61  ;;  %1034 = vmatmul.f32.gmra.mxu3 %v9335_v10  ;;  %v15948_v61 = vld [vmem:[#allocation58_spill] sm:$0xff]  ;;  %v12608_v35 = vmul.f32 %v8062_v32, %v7214_v12  ;;  %vm15957_vm15 = vnez %v15956_v34  ;;  %v12636_v13 = vpop.eup %9141 }
 0x219   : > { %7477 = vadd.xlane.f32.xlu2 %v6242_v5  ;;  %v6246_v57 = vsel %vm15950_vm6, %v15948_v61, 0.0  ;;  %v6262_v5 = vsel %vm15954_vm3, %v10864_v45, 0.0  ;;  %v6274_v61 = vsel %vm15962_vm10, %v11098_v40, 0.0  ;;  %vm15977_vm10 = vnez %v15685_v59 }
 0x21a   : > { %7481 = vadd.xlane.f32.xlu1 %v6250_v0  ;;  %15951 = vst [vmem:[#allocation66_spill] sm:$0xff] %v12608_v35  ;;  %v6254_v0 = vsel %vm15957_vm15, %v15955_v60, 0.0  ;;  %vm7785_vm6 = vweird.f32 %v12636_v13 }
 0x21d   : > { %v12603_v9 = vpop.xlane.xlu1 %7217  ;;  %v12610_v39 = vpop.xlane.xlu0 %7313 }
 0x21e   : > { %15947 = vst [vmem:[#allocation43_spill] sm:$0xff] %v12603_v9  ;;  %808 = vmatmul.f32.gmra.mxu1 %v9335_v10  ;;  %924 = vmatmul.f32.gmra.mxu2 %v9336_v42 }
 0x21f   : > { %15952 = vst [vmem:[#allocation55_spill] sm:$0xff] %v12610_v39 }
 0x220   : > { %7479 = vadd.xlane.f32.xlu0 %v6246_v57  ;;  %1037 = vmatmul.f32.gmra.mxu3 %v9336_v42  ;;  %v15959_v57 = vld [vmem:[#allocation78_spill] sm:$0xff] }
 0x221   : > { %7483 = vadd.xlane.f32.xlu2 %v6254_v0  ;;  %vm15960_vm11 = vnez %v15959_v57  ;;  %v9337_v0 = vld [vmem:[%s9602_s8 + $0x40] sm:$0xff]  ;;  %v15972_v57 = vld [vmem:[#allocation112_spill] sm:$0xff] }
 0x222   : > { %7487 = vadd.xlane.f32.xlu1 %v6262_v5  ;;  %v6258_v10 = vsel %vm15960_vm11, %v15958_v51, 0.0  ;;  %v7220_v50 = vpop.xlane.xlu2 %7219  ;;  %v15963_v5 = vld [vmem:[#allocation85_spill] sm:$0xff]  ;;  %v15966_v51 = vld [vmem:[#allocation88_spill] sm:$0xff] }
 0x223   : > { %vm15964_vm3 = vnez %v15963_v5  ;;  %v15970_v5 = vld [vmem:[#allocation108_spill] sm:$0xff] }
 0x224   : > { %v6266_v60 = vsel %vm15964_vm3, %v10954_v44, 0.0  ;;  %v7780_v44 = vmul.f32 %v12636_v13, %v12614_v30  ;;  %v12649_v35 = vadd.f32 %v11322_v26, %v15970_v5  ;;  %v6286_v26 = vsel %vm15977_vm10, %v11390_v19, 0.0  ;;  %v15981_v19 = vld [vmem:[#allocation103_spill] sm:$0xff] }
 0x225   : > { %v7316_v12 = vpop.xlane.xlu1 %7315  ;;  %v12627_v32 = vpop.xlane.xlu0 %7221 }
 0x226   : > { %v7740_v45 = vadd.f32 %v7316_v12, %v7220_v50  ;;  %15961 = vst [vmem:[#allocation58_spill] sm:$0xff] %v12627_v32  ;;  %811 = vmatmul.f32.gmra.mxu1 %v9336_v42  ;;  %927 = vmatmul.f32.gmra.mxu2 %v9337_v0  ;;  %v7781_v46 = vsub.f32 1.0, %v7780_v44 }
 0x228   : > { %7485 = vadd.xlane.f32.xlu0 %v6258_v10  ;;  %9143 = vrcp.f32 %v7740_v45  ;;  %1040 = vmatmul.f32.gmra.mxu3 %v9337_v0  ;;  %v15967_v10 = vld [vmem:[#allocation92_spill] sm:$0xff]  ;;  %vm8099_vm15 = vweird.f32 %v7740_v45 }
 0x229   : > { %7489 = vadd.xlane.f32.xlu2 %v6266_v60  ;;  %vm15968_vm11 = vnez %v15967_v10  ;;  %v15971_v60 = vld [vmem:[#allocation114_spill] sm:$0xff]  ;;  %v15974_v10 = vld [vmem:[#allocation100_spill] sm:$0xff]  ;;  %9145 = vrcp.f32 %v12649_v35 }
 0x22a   : > { %7493 = vadd.xlane.f32.xlu1 %v6274_v61  ;;  %v6270_v42 = vsel %vm15968_vm11, %v15966_v51, 0.0  ;;  %v12643_v41 = vpop.xlane.xlu2 %7317  ;;  %v12653_v34 = vadd.f32 %v15972_v57, %v15971_v60  ;;  %v12657_v51 = vadd.f32 %v15974_v10, %v15973_v25  ;;  %v9338_v57 = vld [vmem:[%s9602_s8 + $0x48] sm:$0xff]  ;;  %v15982_v25 = vld [vmem:[#allocation110_spill] sm:$0xff] }
 0x22b   : > { %15969 = vst [vmem:[#allocation75_spill] sm:$0xff] %v12643_v41  ;;  %v8105_v41 = vand.u32 2147483648, %v7740_v45  ;;  %vm15983_vm10 = vnez %v15982_v25 }
 0x22c   : > { %15975 = vst [vmem:[#allocation88_spill] sm:$0xff] %v12657_v51  ;;  %9147 = vrcp.f32 %v12653_v34 }
 0x22d   : > { %v12638_v12 = vpop.xlane.xlu1 %7407  ;;  %v12659_v2 = vpop.xlane.xlu0 %7405  ;;  %9149 = vrcp.f32 %v12657_v51 }
 0x22e   : > { %15965 = vst [vmem:[#allocation71_spill] sm:$0xff] %v12638_v12  ;;  %v9144_v40 = vpop.eup %9143  ;;  %814 = vmatmul.f32.gmra.mxu1 %v9337_v0  ;;  %930 = vmatmul.f32.gmra.mxu2 %v9338_v57 }
 0x22f   : > { %v8095_v61 = vmul.f32 %v9144_v40, %v7740_v45  ;;  %15976 = vst [vmem:[#allocation108_spill] sm:$0xff] %v12659_v2  ;;  %vm8100_vm3 = vweird.f32 %v9144_v40  ;;  %v15986_v2 = vld [vmem:[#allocation105_spill] sm:$0xff]  ;;  %v12687_v25 = vpop.eup %9145 }
 0x230   : > { %7491 = vadd.xlane.f32.xlu0 %v6270_v42  ;;  %v15978_v42 = vld [vmem:[#allocation102_spill] sm:$0xff]  ;;  %1043 = vmatmul.f32.gmra.mxu3 %v9338_v57 }
 0x231   : > { %v8096_v12 = vsub.f32 1.0, %v8095_v61  ;;  %vm15979_vm11 = vnez %v15978_v42  ;;  %v8103_v61 = vand.u32 2147483647, %v7740_v45  ;;  %v7782_v42 = vmul.f32 %v12636_v13, %v7781_v46  ;;  %v15988_v46 = vld [vmem:[#allocation101_spill] sm:$0xff] }
 0x232   : > { %v6278_v32 = vsel %vm15979_vm11, %v11235_v53, 0.0  ;;  %7499 = vadd.xlane.f32.xlu1 %v6286_v26  ;;  %v6282_v53 = vsel %vm15983_vm10, %v15981_v19, 0.0  ;;  %v12675_v59 = vpop.xlane.xlu2 %7403  ;;  %vm8101_vm11 = vmor %vm8099_vm15, %vm8100_vm3  ;;  %v12685_v45 = vadd.f32 %v11578_v54, %v11582_v47  ;;  %9151 = vlog2.f32 %v15988_v46  ;;  %v15998_v46 = vld [vmem:[#allocation106_spill] sm:$0xff] }
 0x233   : > { %v8097_v10 = vmul.f32 %v9144_v40, %v8096_v12  ;;  %7495 = vadd.xlane.f32.xlu2 %v6278_v32  ;;  %15984 = vst [vmem:[#allocation112_spill] sm:$0xff] %v12675_v59  ;;  %v15985_v12 = vld [vmem:[#allocation93_spill] sm:$0xff]  ;;  %v8106_v32 = vor.u32 1.1754944e-38, %v8105_v41  ;;  %vm8104_vm10 = vcmp.eq.f32.partialorder %v8103_v61, 8.507059e+37  ;;  %v12695_v41 = vpop.eup %9147  ;;  %vm15991_vm3 = vnez %v15744_v7 }
 0x234   : > { %v12681_v26 = vadd.f32 %v15986_v2, %v15985_v12  ;;  %v6298_v54 = vsel %vm15991_vm3, %v11668_v49, 0.0 }
 0x235   : > { %v8098_v0 = vadd.f32 %v9144_v40, %v8097_v10  ;;  %v12670_v44 = vpop.xlane.xlu1 %7223 }
 0x236   : > { %15980 = vst [vmem:[#allocation114_spill] sm:$0xff] %v12670_v44  ;;  %817 = vmatmul.f32.gmra.mxu1 %v9338_v57  ;;  %9153 = vrcp.f32 %v12681_v26  ;;  %v7788_v57 = vand.u32 2147483647, %v12614_v30  ;;  %v16014_v44 = vld [vmem:[#allocation115_spill] sm:$0xff] }
 0x237   : > { %15987 = vst [vmem:[#allocation100_spill] sm:$0xff] %v12681_v26  ;;  %v8102_v10 = vsel %vm8101_vm11, %v9144_v40, %v8098_v0  ;;  %v15992_v40 = vld [vmem:[#allocation128_spill] sm:$0xff]  ;;  %v9339_v0 = vld [vmem:[%s9602_s8 + $0x50] sm:$0xff]  ;;  %9155 = vrcp.f32 %v12685_v45  ;;  %vm7784_vm11 = vweird.f32 %v12614_v30 }
 0x238   : > { %7497 = vadd.xlane.f32.xlu0 %v6282_v53  ;;  %v8107_v19 = vsel %vm8104_vm10, %v8106_v32, %v8102_v10  ;;  %v7783_v53 = vadd.f32 %v12636_v13, %v7782_v42  ;;  %vm15993_vm15 = vnez %v15992_v40  ;;  %933 = vmatmul.f32.gmra.mxu2 %v9339_v0  ;;  %v12708_v42 = vpop.eup %9149  ;;  %vm12714_vm10 = vmor %vm7784_vm11, %vm7785_vm6  ;;  %v7825_v32 = vmul.f32 %v12695_v41, %v12653_v34  ;;  %v15996_v10 = vld [vmem:[#allocation133_spill] sm:$0xff] }
 0x239   : > { %v12691_v59 = vmul.f32 %v8107_v19, %v7220_v50  ;;  %v6290_v61 = vsel %vm15993_vm15, %v11475_v11, 0.0  ;;  %1046 = vmatmul.f32.gmra.mxu3 %v9339_v0  ;;  %v7790_v50 = vand.u32 2147483648, %v12614_v30  ;;  %v7810_v11 = vmul.f32 %v12687_v25, %v12649_v35  ;;  %v9152_v40 = vpop.eup %9151 }
 0x23a   : > { %7505 = vadd.xlane.f32.xlu1 %v6298_v54  ;;  %vm15997_vm3 = vnez %v15996_v10  ;;  %v7787_v30 = vsel %vm12714_vm10, %v12636_v13, %v7783_v53  ;;  %v15999_v54 = vld [vmem:[#allocation111_spill] sm:$0xff]  ;;  %v12732_v12 = vpop.xlane.xlu2 %7225  ;;  %vm7789_vm6 = vcmp.eq.f32.partialorder %v7788_v57, 8.507059e+37  ;;  %vm16027_vm15 = vweird.f32 %v12649_v35 }
 0x23b   : > { %15989 = vst [vmem:[#allocation103_spill] sm:$0xff] %v12691_v59  ;;  %v12693_v2 = vpop.xlane.xlu0 %7319  ;;  %7501 = vadd.xlane.f32.xlu2 %v6290_v61  ;;  %v6294_v19 = vsel %vm15997_vm3, %v11547_v55, 0.0  ;;  %v12730_v61 = vadd.f32 %v15999_v54, %v15998_v46  ;;  %v7791_v59 = vor.u32 1.1754944e-38, %v7790_v50  ;;  %v7811_v54 = vsub.f32 1.0, %v7810_v11  ;;  %v16002_v57 = vld [vmem:[#allocation147_spill] sm:$0xff] }
 0x23c   : > { %15990 = vst [vmem:[#allocation105_spill] sm:$0xff] %v12693_v2  ;;  %v12736_v2 = vmul.f32 %v12708_v42, %v12657_v51  ;;  %v12741_v49 = vpop.eup %9153  ;;  %v7820_v50 = vand.u32 2147483648, %v12649_v35  ;;  %vm16003_vm11 = vnez %v16002_v57  ;;  %v7818_v57 = vand.u32 2147483647, %v12649_v35 }
 0x23d   : > { %16000 = vst [vmem:[#allocation101_spill] sm:$0xff] %v12730_v61  ;;  %v7322_v7 = vpop.xlane.xlu1 %7321  ;;  %v12743_v13 = vpop.eup %9155  ;;  %v7792_v53 = vsel %vm7789_vm6, %v7791_v59, %v7787_v30  ;;  %v6302_v10 = vsel %vm16003_vm11, %v11759_v21, 0.0  ;;  %v9340_v59 = vld [vmem:[%s9602_s8 + $0x58] sm:$0xff]  ;;  %vm16010_vm6 = vnez %v16009_v23  ;;  %v12768_v21 = vmul.f32 %v12741_v49, %v12681_v26 }
 0x23e   : > { %v12739_v55 = vadd.f32 %v7322_v7, %v12732_v12  ;;  %820 = vmatmul.f32.gmra.mxu1 %v9339_v0  ;;  %v6310_v7 = vsel %vm11981_vm1, %v11925_v63, 0.0  ;;  %v16005_v0 = vld [vmem:[#allocation15_spill] sm:$0xff]  ;;  %v16006_v30 = vld [vmem:[#allocation30_spill] sm:$0xff]  ;;  %v12778_v11 = vmul.f32 %v7792_v53, %v11190_v56  ;;  %v7812_v51 = vmul.f32 %v12687_v25, %v7811_v54 }
 0x23f   : > { %vm16007_vm10 = vnez %v16006_v30  ;;  %vm16013_vm11 = vnez %v15785_v20  ;;  %v12787_v26 = vor.u32 1.1754944e-38, %v7820_v50  ;;  %v16019_v20 = vld [vmem:[#allocation125_spill] sm:$0xff]  ;;  %v16020_v50 = vld [vmem:[#allocation127_spill] sm:$0xff]  ;;  %vm12822_vm1 = vcmp.eq.f32.partialorder %v7818_v57, 8.507059e+37 }
 0x240   : > { %7503 = vadd.xlane.f32.xlu0 %v6294_v19  ;;  %v7826_v19 = vsub.f32 1.0, %v7825_v32  ;;  %9157 = vrcp.f32 %v12739_v55  ;;  %936 = vmatmul.f32.gmra.mxu2 %v9340_v59  ;;  %v12758_v32 = vmul.f32 0.6931472, %v9152_v40  ;;  %v7870_v40 = vmul.f32 %v12743_v13, %v12685_v45  ;;  %16012 = vst [vmem:[#allocation30_spill] sm:$0xff] %v12778_v11  ;;  %v16041_v57 = vld [vmem:[#allocation137_spill] sm:$0xff]  ;;  %v16088_v11 = vld [vmem:[#allocation46_spill] sm:$0xff] }
 0x241   : > { %9159 = vrcp.f32 %v12730_v61  ;;  %1049 = vmatmul.f32.gmra.mxu3 %v9340_v59  ;;  %v12804_v9 = vadd.f32 %v16020_v50, %v16019_v20  ;;  %v16021_v50 = vld [vmem:[#allocation122_spill] sm:$0xff]  ;;  %vm16026_vm3 = vweird.f32 %v12687_v25 }
 0x242   : > { %16004 = vst [vmem:[#allocation198_spill] sm:$0xff] %v12758_v32  ;;  %7511 = vadd.xlane.f32.xlu1 %v6310_v7  ;;  %v16011_v7 = vld [vmem:[#allocation151_spill] sm:$0xff]  ;;  %v7827_v63 = vmul.f32 %v12695_v41, %v7826_v19  ;;  %v6306_v32 = vsel %vm16013_vm11, %v11815_v33, 0.0  ;;  %v12795_v53 = vpop.xlane.xlu2 %7323  ;;  %v7835_v33 = vand.u32 2147483648, %v12653_v34  ;;  %v16018_v19 = vld [vmem:[#allocation117_spill] sm:$0xff]  ;;  %vm16025_vm11 = vnez %v15827_v27  ;;  %vm12838_vm14 = vmor %vm16027_vm15, %vm16026_vm3 }
 0x243   : > { %v12746_v46 = vpop.xlane.xlu0 %7227  ;;  %7507 = vadd.xlane.f32.xlu2 %v6302_v10  ;;  %v12775_v10 = vadd.f32 %v16011_v7, %v11840_v38  ;;  %v16015_v7 = vld [vmem:[#allocation121_spill] sm:$0xff]  ;;  %16017 = vst [vmem:[#allocation151_spill] sm:$0xff] %v12795_v53  ;;  %9161 = vlog2.f32 %v16018_v19  ;;  %v9341_v53 = vld [vmem:[%s9602_s8 + $0x60] sm:$0xff]  ;;  %v16034_v27 = vld [vmem:[#allocation126_spill] sm:$0xff] }
 0x244   : > { %16001 = vst [vmem:[#allocation111_spill] sm:$0xff] %v12746_v46  ;;  %v16008_v46 = vld [vmem:[#allocation11_spill] sm:$0xff]  ;;  %v12791_v39 = vadd.f32 %v16015_v7, %v16014_v44  ;;  %v12816_v19 = vadd.f32 %v12695_v41, %v7827_v63  ;;  %v6314_v63 = vsel %vm16025_vm11, %v12048_v16, 0.0  ;;  %v8150_v16 = vand.u32 2147483648, %v12739_v55 }
 0x245   : > { %v12793_v56 = vpop.xlane.xlu1 %7413  ;;  %9163 = vrcp.f32 %v12775_v10  ;;  %vm16031_vm11 = vweird.f32 %v12653_v34 }
 0x246   : > { %16016 = vst [vmem:[#allocation20_spill] sm:$0xff] %v12793_v56  ;;  %v12797_v54 = vpop.eup %9157  ;;  %v12813_v56 = vadd.f32 %v12687_v25, %v7812_v51  ;;  %9165 = vlog2.f32 %v16021_v50  ;;  %823 = vmatmul.f32.gmra.mxu1 %v9340_v59  ;;  %v6322_v51 = vsel %vm12332_vm8, %v12207_v4, 0.0  ;;  %v7836_v4 = vor.u32 1.1754944e-38, %v7835_v33 }
 0x247   : > { %v12806_v1 = vpop.eup %9159  ;;  %v8140_v44 = vmul.f32 %v12797_v54, %v12739_v55  ;;  %9167 = vrcp.f32 %v12791_v39  ;;  %vm16030_vm8 = vweird.f32 %v12695_v41  ;;  %vm8145_vm3 = vweird.f32 %v12797_v54 }
 0x248   : > { %7509 = vadd.xlane.f32.xlu0 %v6306_v32  ;;  %v7871_v32 = vsub.f32 1.0, %v7870_v40  ;;  %939 = vmatmul.f32.gmra.mxu2 %v9341_v53  ;;  %9169 = vrcp.f32 %v12804_v9  ;;  %vm12852_vm4 = vmor %vm16031_vm11, %vm16030_vm8  ;;  %v8148_v33 = vand.u32 2147483647, %v12739_v55  ;;  %vm16035_vm8 = vnez %v15848_v24  ;;  %v16044_v24 = vld [vmem:[#allocation146_spill] sm:$0xff] }
 0x249   : > { %v8141_v7 = vsub.f32 1.0, %v8140_v44  ;;  %1052 = vmatmul.f32.gmra.mxu3 %v9341_v53  ;;  %v12844_v44 = vmul.f32 %v12806_v1, %v12730_v61  ;;  %v12860_v17 = vpop.eup %9161  ;;  %9171 = vlog2.f32 %v16034_v27  ;;  %v16036_v61 = vld [vmem:[#allocation173_spill] sm:$0xff] }
 0x24a   : > { %7517 = vadd.xlane.f32.xlu1 %v6322_v51  ;;  %v7872_v59 = vmul.f32 %v12743_v13, %v7871_v32  ;;  %v7817_v51 = vsel %vm12838_vm14, %v12687_v25, %v12813_v56  ;;  %vm8144_vm14 = vweird.f32 %v12739_v55  ;;  %v12885_v27 = vpop.xlane.xlu2 %7409  ;;  %vm8149_vm15 = vcmp.eq.f32.partialorder %v8148_v33, 8.507059e+37  ;;  %v9342_v33 = vld [vmem:[%s9602_s8 + $0x68] sm:$0xff] }
 0x24b   : > { %v12820_v20 = vpop.xlane.xlu0 %7411  ;;  %7513 = vadd.xlane.f32.xlu2 %v6314_v63  ;;  %v8142_v50 = vmul.f32 %v12797_v54, %v8141_v7  ;;  %v7832_v63 = vsel %vm12852_vm4, %v12695_v41, %v12816_v19  ;;  %v6318_v7 = vsel %vm16035_vm8, %v12084_v29, 0.0  ;;  %v12874_v32 = vpop.eup %9163  ;;  %16039 = vst [vmem:[#allocation127_spill] sm:$0xff] %v12885_v27  ;;  %vm7875_vm4 = vweird.f32 %v12743_v13  ;;  %v16040_v19 = vld [vmem:[#allocation134_spill] sm:$0xff]  ;;  %vm8146_vm11 = vmor %vm8144_vm14, %vm8145_vm3 }
 0x24c   : > { %16022 = vst [vmem:[#allocation121_spill] sm:$0xff] %v12820_v20  ;;  %v16037_v20 = vld [vmem:[#allocation170_spill] sm:$0xff]  ;;  %v12887_v41 = vpop.eup %9165  ;;  %v7878_v29 = vand.u32 2147483647, %v12685_v45  ;;  %v12893_v35 = vadd.f32 %v16041_v57, %v16040_v19  ;;  %v7880_v57 = vand.u32 2147483648, %v12685_v45  ;;  %v16047_v19 = vld [vmem:[#allocation135_spill] sm:$0xff] }
 0x24d   : > { %v12879_v38 = vadd.f32 %v16037_v20, %v16036_v61  ;;  %v8143_v25 = vadd.f32 %v12797_v54, %v8142_v50  ;;  %v12883_v56 = vpop.xlane.xlu1 %7229  ;;  %v8151_v20 = vor.u32 1.1754944e-38, %v8150_v16  ;;  %v12897_v55 = vpop.eup %9167  ;;  %v7873_v50 = vadd.f32 %v12743_v13, %v7872_v59 }
 0x24e   : > { %16038 = vst [vmem:[#allocation117_spill] sm:$0xff] %v12883_v56  ;;  %v12905_v61 = vpop.eup %9169  ;;  %9173 = vlog2.f32 %v16047_v19  ;;  %v7915_v16 = vmul.f32 %v12874_v32, %v12775_v10  ;;  %826 = vmatmul.f32.gmra.mxu1 %v9341_v53  ;;  %v6326_v59 = vsel %vm12393_vm2, %v12322_v58, 0.0  ;;  %v7822_v53 = vsel %vm12822_vm1, %v12787_v26, %v7817_v51 }
 0x24f   : > { %16042 = vst [vmem:[#allocation122_spill] sm:$0xff] %v12893_v35  ;;  %v8147_v56 = vsel %vm8146_vm11, %v12797_v54, %v8143_v25  ;;  %9175 = vrcp.f32 %v12879_v38  ;;  %v6334_v54 = vsel %vm12524_vm9, %v12476_v14, 0.0  ;;  %v9172_v25 = vpop.eup %9171  ;;  %v7766_v26 = vsub.f32 1.0, %v12768_v21 }
 0x250   : > { %7515 = vadd.xlane.f32.xlu0 %v6318_v7  ;;  %v16043_v7 = vld [vmem:[#allocation144_spill] sm:$0xff]  ;;  %16046 = vst [vmem:[#allocation170_spill] sm:$0xff] %v12905_v61  ;;  %v8152_v37 = vsel %vm8149_vm15, %v8151_v20, %v8147_v56  ;;  %942 = vmatmul.f32.gmra.mxu2 %v9342_v33  ;;  %v16049_v56 = vand.u32 2147483647, %v12653_v34  ;;  %vm16050_vm15 = vweird.f32 %v12685_v45  ;;  %9177 = vrcp.f32 %v12893_v35 }
 0x251   : > { %v12902_v27 = vadd.f32 %v16044_v24, %v16043_v7  ;;  %v12915_v24 = vmul.f32 %v8152_v37, %v12732_v12  ;;  %1055 = vmatmul.f32.gmra.mxu3 %v9342_v33  ;;  %v7840_v37 = vmul.f32 %v12897_v55, %v12791_v39  ;;  %vm12935_vm14 = vmor %vm16050_vm15, %vm7875_vm4  ;;  %v7855_v34 = vmul.f32 %v12905_v61, %v12804_v9  ;;  %v16090_v7 = vld [vmem:[#allocation21_spill] sm:$0xff] }
 0x252   : > { %vm7834_vm3 = vcmp.eq.f32.partialorder %v16049_v56, 8.507059e+37  ;;  %7523 = vadd.xlane.f32.xlu1 %v6334_v54  ;;  %v7877_v12 = vsel %vm12935_vm14, %v12743_v13, %v7873_v50  ;;  %v7796_v45 = vsub.f32 1.0, %v12844_v44  ;;  %v7881_v40 = vor.u32 1.1754944e-38, %v7880_v57  ;;  %v12955_v13 = vpop.xlane.xlu2 %7231  ;;  %v16059_v56 = vld [vmem:[#allocation158_spill] sm:$0xff] }
 0x253   : > { %16045 = vst [vmem:[#allocation126_spill] sm:$0xff] %v12902_v27  ;;  %v12911_v28 = vpop.xlane.xlu0 %7325  ;;  %7519 = vadd.xlane.f32.xlu2 %v6326_v59  ;;  %v7837_v14 = vsel %vm7834_vm3, %v7836_v4, %v7832_v63  ;;  %9179 = vrcp.f32 %v12902_v27  ;;  %vm16053_vm1 = vnez %v15895_v3  ;;  %v12952_v4 = vmul.f32 %v7822_v53, %v15970_v5  ;;  %v16055_v63 = vld [vmem:[#allocation140_spill] sm:$0xff]  ;;  %v16058_v53 = vld [vmem:[#allocation154_spill] sm:$0xff]  ;;  %v16077_v5 = vld [vmem:[#allocation145_spill] sm:$0xff] }
 0x254   : > { %16048 = vst [vmem:[#allocation137_spill] sm:$0xff] %v12915_v24  ;;  %v6330_v51 = vsel %vm16053_vm1, %v12354_v43, 0.0  ;;  %vm7879_vm4 = vcmp.eq.f32.partialorder %v7878_v29, 8.507059e+37  ;;  %9181 = vlog2.f32 %v16055_v63  ;;  %v7916_v19 = vsub.f32 1.0, %v7915_v16  ;;  %v9174_v50 = vpop.eup %9173  ;;  %v9343_v63 = vld [vmem:[%s9602_s8 + $0x70] sm:$0xff] }
 0x255   : > { %16054 = vst [vmem:[#allocation146_spill] sm:$0xff] %v12952_v4  ;;  %v7328_v20 = vpop.xlane.xlu1 %7327  ;;  %v12958_v21 = vmul.f32 %v7837_v14, %v15971_v60  ;;  %v7841_v44 = vsub.f32 1.0, %v7840_v37  ;;  %v7882_v57 = vsel %vm7879_vm4, %v7881_v40, %v7877_v12  ;;  %v12963_v43 = vpop.eup %9175  ;;  %v16057_v29 = vsub.f32 1.0, %v12736_v2 }
 0x256   : > { %v12961_v54 = vadd.f32 %v7328_v20, %v12955_v13  ;;  %v7856_v59 = vsub.f32 1.0, %v7855_v34  ;;  %v12973_v60 = vadd.f32 %v16059_v56, %v16058_v53  ;;  %v12975_v37 = vpop.eup %9177  ;;  %v12978_v58 = vmul.f32 %v12741_v49, %v7766_v26  ;;  %829 = vmatmul.f32.gmra.mxu1 %v9342_v33  ;;  %v16067_v33 = vld [vmem:[#allocation164_spill] sm:$0xff] }
 0x257   : > { %16056 = vst [vmem:[#allocation135_spill] sm:$0xff] %v12958_v21  ;;  %v12969_v16 = vmul.f32 %v12708_v42, %v16057_v29  ;;  %v12981_v14 = vmul.f32 %v12806_v1, %v7796_v45  ;;  %v12984_v12 = vmul.f32 0.6931472, %v12860_v17  ;;  %v12996_v26 = vmul.f32 %v7882_v57, %v11582_v47  ;;  %v16068_v29 = vld [vmem:[#allocation169_spill] sm:$0xff] }
 0x258   : > { %7521 = vadd.xlane.f32.xlu0 %v6330_v51  ;;  %16060 = vst [vmem:[#allocation140_spill] sm:$0xff] %v12973_v60  ;;  %9183 = vrcp.f32 %v12961_v54  ;;  %v12993_v51 = vmul.f32 0.6931472, %v12887_v41  ;;  %v7917_v45 = vmul.f32 %v12874_v32, %v7916_v19  ;;  %945 = vmatmul.f32.gmra.mxu2 %v9343_v63  ;;  %v13002_v20 = vmul.f32 %v12897_v55, %v7841_v44 }
 0x259   : > { %16061 = vst [vmem:[#allocation158_spill] sm:$0xff] %v12975_v37  ;;  %v12989_v34 = vpop.eup %9179  ;;  %1058 = vmatmul.f32.gmra.mxu3 %v9343_v63  ;;  %v13006_v56 = vadd.f32 %v16068_v29, %v16067_v33  ;;  %v7960_v41 = vmul.f32 %v12963_v43, %v12879_v38  ;;  %v16070_v47 = vsel %vm16007_vm10, %v16005_v0, 0.0  ;;  %v16071_v19 = vsel %vm16010_vm6, %v16008_v46, 0.0  ;;  %v16197_v0 = vld [vmem:[#allocation108_spill] sm:$0xff] }
 0x25a   : > { %16062 = vst [vmem:[#allocation199_spill] sm:$0xff] %v12984_v12  ;;  %7561 = vadd.xlane.f32.xlu1 %v16070_v47  ;;  %v9182_v57 = vpop.eup %9181  ;;  %v13018_v44 = vmul.f32 0.6931472, %v9172_v25  ;;  %v13021_v40 = vmul.f32 %v12905_v61, %v7856_v59  ;;  %v13025_v29 = vmul.f32 %v12975_v37, %v12893_v35  ;;  %9185 = vrcp.f32 %v12973_v60  ;;  %v16075_v25 = vld [vmem:[#allocation25_spill] sm:$0xff]  ;;  %v13044_v53 = vpop.xlane.xlu2 %7329  ;;  %v9345_v35 = vld [vmem:[%s9602_s8 + $0x80] sm:$0xff]  ;;  %v16114_v12 = vld [vmem:[#allocation152_spill] sm:$0xff] }
 0x25b   : > { %v12987_v2 = vpop.xlane.xlu0 %7233  ;;  %16064 = vst [vmem:[#allocation201_spill] sm:$0xff] %v12989_v34  ;;  %7557 = vadd.xlane.f32.xlu2 %v16071_v19  ;;  %v13028_v30 = vmul.f32 0.6931472, %v9174_v50  ;;  %v13032_v23 = vmul.f32 %v12989_v34, %v12902_v27  ;;  %v7923_v47 = vand.u32 2147483647, %v12775_v10  ;;  %v16074_v19 = vld [vmem:[#allocation14_spill] sm:$0xff]  ;;  %vm16076_vm10 = vnez %v16075_v25 }
 0x25c   : > { %16063 = vst [vmem:[#allocation200_spill] sm:$0xff] %v12987_v2  ;;  %v6534_v17 = vsel %vm16076_vm10, %v16074_v19, 0.0  ;;  %9187 = vlog2.f32 %v16077_v5  ;;  %v7918_v33 = vadd.f32 %v12874_v32, %v7917_v45  ;;  %vm7920_vm6 = vweird.f32 %v12874_v32  ;;  %v16079_v45 = vld [vmem:[#allocation155_spill] sm:$0xff]  ;;  %v16163_v19 = vld [vmem:[#allocation69_spill] sm:$0xff] }
 0x25d   : > { %16065 = vst [vmem:[#allocation202_spill] sm:$0xff] %v12993_v51  ;;  %v13042_v50 = vpop.xlane.xlu1 %7419  ;;  %v13048_v4 = vmul.f32 0.6931472, %v9182_v57  ;;  %v7925_v25 = vand.u32 2147483648, %v12775_v10  ;;  %9189 = vrcp.f32 %v13006_v56  ;;  %v7961_v59 = vsub.f32 1.0, %v7960_v41  ;;  %v16084_v41 = vld [vmem:[#allocation162_spill] sm:$0xff] }
 0x25e   : > { %16066 = vst [vmem:[#allocation203_spill] sm:$0xff] %v12996_v26  ;;  %v13046_v6 = vpop.eup %9183  ;;  %vm7919_vm11 = vweird.f32 %v12775_v10  ;;  %9191 = vlog2.f32 %v16079_v45  ;;  %vm13062_vm15 = vcmp.eq.f32.partialorder %v7923_v47, 8.507059e+37  ;;  %v13069_v10 = vadd.f32 %v12211_v22, %v12188_v52  ;;  %832 = vmatmul.f32.gmra.mxu1 %v9343_v63  ;;  %v16087_v47 = vld [vmem:[#allocation32_spill] sm:$0xff]  ;;  %v9344_v22 = vld [vmem:[%s9602_s8 + $0x78] sm:$0xff]  ;;  %v16093_v63 = vld [vmem:[#allocation165_spill] sm:$0xff] }
 0x25f   : > { %16069 = vst [vmem:[#allocation169_spill] sm:$0xff] %v13006_v56  ;;  %vm13058_vm3 = vmor %vm7919_vm11, %vm7920_vm6  ;;  %9193 = vlog2.f32 %v16084_v41  ;;  %vm16089_vm14 = vnez %v16088_v11  ;;  %v16091_v41 = vld [vmem:[#allocation35_spill] sm:$0xff]  ;;  %v7926_v52 = vor.u32 1.1754944e-38, %v7925_v25  ;;  %v8195_v57 = vand.u32 2147483648, %v12961_v54 }
 0x260   : > { %16072 = vst [vmem:[#allocation204_spill] sm:$0xff] %v13021_v40  ;;  %7559 = vadd.xlane.f32.xlu0 %v6534_v17  ;;  %v8185_v17 = vmul.f32 %v13046_v6, %v12961_v54  ;;  %v13073_v5 = vpop.eup %9185  ;;  %v7922_v26 = vsel %vm13058_vm3, %v12874_v32, %v7918_v33  ;;  %v6550_v18 = vsel %vm16089_vm14, %v16087_v47, 0.0  ;;  %vm16092_vm4 = vnez %v16091_v41  ;;  %948 = vmatmul.f32.gmra.mxu2 %v9344_v22  ;;  %v16108_v27 = vld [vmem:[#allocation59_spill] sm:$0xff] }
 0x261   : > { %16073 = vst [vmem:[#allocation205_spill] sm:$0xff] %v13028_v30  ;;  %v6542_v30 = vsel %vm16092_vm4, %v16090_v7, 0.0  ;;  %1061 = vmatmul.f32.gmra.mxu3 %v9344_v22  ;;  %9195 = vlog2.f32 %v16093_v63  ;;  %v13090_v11 = vadd.f32 %v12442_v8, %v12340_v15  ;;  %vm8190_vm10 = vweird.f32 %v13046_v6  ;;  %v16097_v8 = vld [vmem:[#allocation37_spill] sm:$0xff] }
 0x262   : > { %16078 = vst [vmem:[#allocation25_spill] sm:$0xff] %v13048_v4  ;;  %v8186_v3 = vsub.f32 1.0, %v8185_v17  ;;  %v7962_v4 = vmul.f32 %v12963_v43, %v7961_v59  ;;  %7567 = vadd.xlane.f32.xlu1 %v6550_v18  ;;  %v9188_v32 = vpop.eup %9187  ;;  %v8193_v17 = vand.u32 2147483647, %v12961_v54  ;;  %v7927_v59 = vsel %vm13062_vm15, %v7926_v52, %v7922_v26  ;;  %v13113_v21 = vpop.xlane.xlu2 %7415  ;;  %v16160_v7 = vld [vmem:[#allocation105_spill] sm:$0xff] }
 0x263   : > { %16085 = vst [vmem:[#allocation145_spill] sm:$0xff] %v13069_v10  ;;  %v13071_v45 = vpop.xlane.xlu0 %7417  ;;  %7563 = vadd.xlane.f32.xlu2 %v6542_v30  ;;  %v13095_v25 = vpop.eup %9189  ;;  %v13101_v18 = vmul.f32 %v13073_v5, %v12973_v60  ;;  %9197 = vrcp.f32 %v13069_v10  ;;  %v16096_v30 = vld [vmem:[#allocation24_spill] sm:$0xff]  ;;  %vm16098_vm6 = vnez %v16097_v8  ;;  %v7970_v63 = vand.u32 2147483648, %v12879_v38 }
 0x264   : > { %16086 = vst [vmem:[#allocation155_spill] sm:$0xff] %v13073_v5  ;;  %v8187_v33 = vmul.f32 %v13046_v6, %v8186_v3  ;;  %v6546_v41 = vsel %vm16098_vm6, %v16096_v30, 0.0  ;;  %v9192_v3 = vpop.eup %9191  ;;  %9199 = vlog2.f32 %v12197_v36  ;;  %vm8189_vm11 = vweird.f32 %v12961_v54 }
 0x265   : > { %16094 = vst [vmem:[#allocation162_spill] sm:$0xff] %v13090_v11  ;;  %v13111_v52 = vpop.xlane.xlu1 %7235  ;;  %v9194_v26 = vpop.eup %9193  ;;  %v7963_v60 = vadd.f32 %v12963_v43, %v7962_v4  ;;  %vm7965_vm3 = vweird.f32 %v12963_v43  ;;  %v13119_v8 = vadd.f32 %v12535_v31, %v12514_v48  ;;  %vm8191_vm15 = vmor %vm8189_vm11, %vm8190_vm10  ;;  %v8196_v36 = vor.u32 1.1754944e-38, %v8195_v57  ;;  %v16123_v57 = vld [vmem:[#allocation52_spill] sm:$0xff] }
 0x266   : > { %16095 = vst [vmem:[#allocation46_spill] sm:$0xff] %v13095_v25  ;;  %v8188_v15 = vadd.f32 %v13046_v6, %v8187_v33  ;;  %v7945_v54 = vmul.f32 %v13095_v25, %v13006_v56  ;;  %9201 = vrcp.f32 %v13090_v11  ;;  %vm8194_vm14 = vcmp.eq.f32.partialorder %v8193_v17, 8.507059e+37  ;;  %835 = vmatmul.f32.gmra.mxu1 %v9344_v22  ;;  %v16103_v56 = vld [vmem:[#allocation196_spill] sm:$0xff] }
 0x267   : > { %16099 = vst [vmem:[#allocation35_spill] sm:$0xff] %v13111_v52  ;;  %v9196_v4 = vpop.eup %9195  ;;  %vm7964_vm4 = vweird.f32 %v12879_v38  ;;  %9203 = vlog2.f32 %v12336_v62  ;;  %vm16109_vm6 = vnez %v16108_v27  ;;  %v13155_v61 = vmul.f32 %v7927_v59, %v16114_v12 }
 0x268   : > { %7565 = vadd.xlane.f32.xlu0 %v6546_v41  ;;  %16100 = vst [vmem:[#allocation165_spill] sm:$0xff] %v13119_v8  ;;  %v8192_v33 = vsel %vm8191_vm15, %v13046_v6, %v8188_v15  ;;  %v7968_v41 = vand.u32 2147483647, %v12879_v38  ;;  %vm13134_vm10 = vmor %vm7964_vm4, %vm7965_vm3  ;;  %v16104_v15 = vld [vmem:[#allocation23_spill] sm:$0xff]  ;;  %v16107_v38 = vld [vmem:[#allocation48_spill] sm:$0xff]  ;;  %951 = vmatmul.f32.gmra.mxu2 %v9345_v35  ;;  %9205 = vrcp.f32 %v13119_v8  ;;  %v7946_v12 = vsub.f32 1.0, %v7945_v54 }
 0x269   : > { %v8197_v31 = vsel %vm8194_vm14, %v8196_v36, %v8192_v33  ;;  %v13140_v6 = vadd.f32 %v16104_v15, %v16103_v56  ;;  %v6562_v62 = vsel %vm16109_vm6, %v16107_v38, 0.0  ;;  %v16110_v36 = vld [vmem:[#allocation36_spill] sm:$0xff]  ;;  %1064 = vmatmul.f32.gmra.mxu3 %v9345_v35  ;;  %v13152_v40 = vpop.eup %9197  ;;  %v7931_v15 = vsub.f32 1.0, %v13101_v18  ;;  %v16127_v54 = vld [vmem:[#allocation22_spill] sm:$0xff] }
 0x26a   : > { %v13143_v17 = vmul.f32 %v8197_v31, %v12955_v13  ;;  %v16111_v33 = vld [vmem:[#allocation44_spill] sm:$0xff]  ;;  %16113 = vst [vmem:[#allocation59_spill] sm:$0xff] %v13152_v40  ;;  %v7967_v13 = vsel %vm13134_vm10, %v12963_v43, %v7963_v60  ;;  %7573 = vadd.xlane.f32.xlu1 %v6562_v62  ;;  %v9200_v27 = vpop.eup %9199  ;;  %v16116_v31 = vsub.f32 1.0, %v13025_v29  ;;  %v13167_v56 = vmul.f32 0.6931472, %v9188_v32  ;;  %v16122_v60 = vld [vmem:[#allocation45_spill] sm:$0xff]  ;;  %v904_v29 = vpop.f32.mrf.mxu2 }
 0x26b   : > { %v13130_v48 = vpop.xlane.xlu0 %7331  ;;  %16105 = vst [vmem:[#allocation37_spill] sm:$0xff] %v13140_v6  ;;  %vm16112_vm11 = vnez %v16111_v33  ;;  %v7971_v59 = vor.u32 1.1754944e-38, %v7970_v63  ;;  %v16119_v18 = vsub.f32 1.0, %v13032_v23  ;;  %vm7969_vm3 = vcmp.eq.f32.partialorder %v7968_v41, 8.507059e+37  ;;  %v16121_v43 = vld [vmem:[#allocation184_spill] sm:$0xff]  ;;  %v16139_v29 = vld [vmem:[#allocation173_spill] sm:$0xff] }
 0x26c   : > { %16106 = vst [vmem:[#allocation23_spill] sm:$0xff] %v13143_v17  ;;  %v6554_v22 = vsel %vm16112_vm11, %v16110_v36, 0.0  ;;  %v13165_v33 = vmul.f32 %v12975_v37, %v16116_v31  ;;  %9207 = vlog2.f32 %v16121_v43  ;;  %vm16124_vm15 = vnez %v16123_v57  ;;  %v13178_v31 = vpop.eup %9201  ;;  %v16126_v23 = vld [vmem:[#allocation16_spill] sm:$0xff]  ;;  %v13189_v43 = vpop.xlane.xlu2 %7421 }
 0x26d   : > { %16115 = vst [vmem:[#allocation44_spill] sm:$0xff] %v13155_v61  ;;  %7569 = vadd.xlane.f32.xlu2 %v6554_v22  ;;  %v13172_v51 = vmul.f32 %v12989_v34, %v16119_v18  ;;  %v6558_v62 = vsel %vm16124_vm15, %v16122_v60, 0.0  ;;  %v1017_v22 = vpop.f32.mrf.mxu3  ;;  %v7972_v32 = vsel %vm7969_vm3, %v7971_v59, %v7967_v13  ;;  %v7975_v63 = vmul.f32 %v13152_v40, %v13069_v10  ;;  %v13187_v41 = vpop.xlane.xlu1 %7425  ;;  %v16207_v38 = vld [vmem:[#allocation112_spill] sm:$0xff] }
 0x26e   : > { %16117 = vst [vmem:[#allocation152_spill] sm:$0xff] %v13165_v33  ;;  %9209 = vrcp.f32 %v13140_v6  ;;  %v13185_v18 = vadd.f32 %v16127_v54, %v16126_v23  ;;  %v9204_v57 = vpop.eup %9203  ;;  %v13192_v22 = vmul.f32 0.6931472, %v9192_v3  ;;  %v13195_v13 = vmul.f32 %v13073_v5, %v7931_v15  ;;  %v791_v10 = vpop.f32.mrf.mxu1  ;;  %v16135_v23 = vld [vmem:[#allocation43_spill] sm:$0xff]  ;;  %838 = vmatmul.f32.gmra.mxu1 %v9345_v35 }
 0x26f   : > { %16118 = vst [vmem:[#allocation206_spill] sm:$0xff] %v13167_v56  ;;  %v13197_v59 = vmul.f32 0.6931472, %v9194_v26  ;;  %v13199_v34 = vmul.f32 0.6931472, %v9196_v4  ;;  %v13202_v54 = vmul.f32 %v13095_v25, %v7946_v12  ;;  %v13209_v3 = vpop.eup %9205  ;;  %v13212_v15 = vmul.f32 %v7972_v32, %v16139_v29  ;;  %v16142_v4 = vld [vmem:[#allocation195_spill] sm:$0xff] }
 0x270   : > { %16120 = vst [vmem:[#allocation207_spill] sm:$0xff] %v13172_v51  ;;  %7571 = vadd.xlane.f32.xlu0 %v6558_v62  ;;  %v16134_v62 = vld [vmem:[#allocation193_spill] sm:$0xff]  ;;  %v16136_v51 = vld [vmem:[#allocation55_spill] sm:$0xff]  ;;  %v13214_v26 = vmul.f32 0.6931472, %v9200_v27  ;;  %v7990_v10 = vmul.f32 %v13178_v31, %v13090_v11  ;;  %v16147_v32 = vld [vmem:[#allocation60_spill] sm:$0xff]  ;;  %vm16164_vm10 = vnez %v16163_v19 }
 0x271   : > { %16125 = vst [vmem:[#allocation184_spill] sm:$0xff] %v13178_v31  ;;  %9211 = vlog2.f32 %v16134_v62  ;;  %v13207_v37 = vadd.f32 %v16136_v51, %v16135_v23  ;;  %v7976_v62 = vsub.f32 1.0, %v7975_v63  ;;  %v16143_v51 = vld [vmem:[#allocation64_spill] sm:$0xff]  ;;  %v16144_v23 = vld [vmem:[#allocation74_spill] sm:$0xff]  ;;  %vm16148_vm4 = vnez %v16147_v32  ;;  %v16179_v19 = vld [vmem:[#allocation39_spill] sm:$0xff] }
 0x272   : > { %16128 = vst [vmem:[#allocation52_spill] sm:$0xff] %v13185_v18  ;;  %9213 = vlog2.f32 %v16142_v4  ;;  %vm16145_vm14 = vnez %v16144_v23  ;;  %v9346_v29 = vld [vmem:[%s9602_s8 + $0x88] sm:$0xff]  ;;  %v9208_v25 = vpop.eup %9207  ;;  %v16150_v4 = vld [vmem:[#allocation75_spill] sm:$0xff]  ;;  %v13244_v33 = vmul.f32 0.6931472, %v9204_v57  ;;  %v7991_v63 = vsub.f32 1.0, %v7990_v10 }
 0x273   : > { %16129 = vst [vmem:[#allocation22_spill] sm:$0xff] %v13192_v22  ;;  %v13219_v12 = vpop.xlane.xlu0 %7423  ;;  %9215 = vrcp.f32 %v13185_v18  ;;  %v6574_v61 = vsel %vm16145_vm14, %v16143_v51, 0.0  ;;  %954 = vmatmul.f32.gmra.mxu2 %v9346_v29  ;;  %1067 = vmatmul.f32.gmra.mxu3 %v9346_v29  ;;  %v16162_v22 = vld [vmem:[#allocation62_spill] sm:$0xff]  ;;  %v13262_v35 = vmul.f32 %v13152_v40, %v7976_v62  ;;  %v16170_v40 = vld [vmem:[#allocation51_spill] sm:$0xff]  ;;  %v16221_v51 = vld [vmem:[#allocation104_spill] sm:$0xff] }
 0x274   : > { %16130 = vst [vmem:[#allocation208_spill] sm:$0xff] %v13195_v13  ;;  %v16149_v13 = vld [vmem:[#allocation58_spill] sm:$0xff]  ;;  %7579 = vadd.xlane.f32.xlu1 %v6574_v61  ;;  %v8020_v61 = vmul.f32 %v13209_v3, %v13119_v8  ;;  %9217 = vrcp.f32 %v13207_v37  ;;  %v6570_v57 = vsel %vm16164_vm10, %v16162_v22, 0.0  ;;  %v16186_v8 = vld [vmem:[#allocation68_spill] sm:$0xff] }
 0x275   : > { %16131 = vst [vmem:[#allocation209_spill] sm:$0xff] %v13197_v59  ;;  %v13231_v5 = vadd.f32 %v16150_v4, %v16149_v13  ;;  %v13242_v59 = vpop.eup %9209  ;;  %v16158_v13 = vld [vmem:[#allocation197_spill] sm:$0xff]  ;;  %v1020_v23 = vpop.f32.mrf.mxu3  ;;  %v16166_v4 = vld [vmem:[#allocation31_spill] sm:$0xff] }
 0x276   : > { %16132 = vst [vmem:[#allocation210_spill] sm:$0xff] %v13199_v34  ;;  %9219 = vlog2.f32 %v16158_v13  ;;  %v13265_v10 = vpop.xlane.xlu1 %7463  ;;  %v13267_v13 = vpop.xlane.xlu2 %7427  ;;  %v8035_v62 = vmul.f32 %v13242_v59, %v13140_v6  ;;  %841 = vmatmul.f32.gmra.mxu1 %v9346_v29  ;;  %v16181_v23 = vld [vmem:[#allocation151_spill] sm:$0xff] }
 0x277   : > { %16133 = vst [vmem:[#allocation211_spill] sm:$0xff] %v13202_v54  ;;  %v16146_v54 = vld [vmem:[#allocation53_spill] sm:$0xff]  ;;  %v9212_v34 = vpop.eup %9211  ;;  %9221 = vlog2.f32 %v16166_v4  ;;  %v794_v4 = vpop.f32.mrf.mxu1 }
 0x278   : > { %16137 = vst [vmem:[#allocation193_spill] sm:$0xff] %v13207_v37  ;;  %v6566_v27 = vsel %vm16148_vm4, %v16146_v54, 0.0  ;;  %7577 = vadd.xlane.f32.xlu0 %v6570_v57  ;;  %9223 = vrcp.f32 %v13231_v5  ;;  %v8021_v57 = vsub.f32 1.0, %v8020_v61  ;;  %v13311_v60 = vmul.f32 0.6931472, %v9212_v34 }
 0x279   : > { %16138 = vst [vmem:[#allocation55_spill] sm:$0xff] %v13209_v3  ;;  %7575 = vadd.xlane.f32.xlu2 %v6566_v27  ;;  %9225 = vlog2.f32 %v16170_v40 }
 0x27a   : > { %16140 = vst [vmem:[#allocation173_spill] sm:$0xff] %v13212_v15  ;;  %v13288_v15 = vmul.f32 %v13178_v31, %v7991_v63  ;;  %v16183_v63 = vld [vmem:[#allocation79_spill] sm:$0xff]  ;;  %v16187_v31 = vld [vmem:[#allocation77_spill] sm:$0xff] }
 0x27b   : > { %16141 = vst [vmem:[#allocation212_spill] sm:$0xff] %v13214_v26  ;;  %v16159_v26 = vld [vmem:[#allocation114_spill] sm:$0xff]  ;;  %v13292_v4 = vpop.xlane.xlu0 %7461  ;;  %vm16188_vm14 = vnez %v16187_v31  ;;  %v13319_v31 = vmul.f32 %v13209_v3, %v8021_v57  ;;  %v16214_v3 = vld [vmem:[#allocation91_spill] sm:$0xff] }
 0x27c   : > { %16151 = vst [vmem:[#allocation195_spill] sm:$0xff] %v13231_v5  ;;  %v13255_v32 = vadd.f32 %v16160_v7, %v16159_v26  ;;  %v9214_v26 = vpop.eup %9213  ;;  %v6578_v29 = vsel %vm16188_vm14, %v16186_v8, 0.0  ;;  %v9347_v7 = vld [vmem:[%s9602_s8 + $0x90] sm:$0xff]  ;;  %vm16215_vm9 = vnez %v16214_v3 }
 0x27d   : > { %16155 = vst [vmem:[#allocation74_spill] sm:$0xff] %v13242_v59  ;;  %v13278_v46 = vpop.eup %9215  ;;  %957 = vmatmul.f32.gmra.mxu2 %v9347_v7  ;;  %1070 = vmatmul.f32.gmra.mxu3 %v9347_v7  ;;  %v13313_v40 = vmul.f32 0.6931472, %v9214_v26  ;;  %v1023_v57 = vpop.f32.mrf.mxu3  ;;  %v16225_v8 = vld [vmem:[#allocation121_spill] sm:$0xff] }
 0x27e   : > { %16156 = vst [vmem:[#allocation60_spill] sm:$0xff] %v13244_v33  ;;  %v907_v33 = vpop.f32.mrf.mxu2  ;;  %9227 = vrcp.f32 %v13255_v32  ;;  %v13297_v30 = vpop.eup %9217  ;;  %844 = vmatmul.f32.gmra.mxu1 %v9347_v7 }
 0x27f   : > { %16161 = vst [vmem:[#allocation75_spill] sm:$0xff] %v13255_v32  ;;  %v13272_v33 = vmul.f32 0.6931472, %v9208_v25  ;;  %v16173_v25 = vld [vmem:[#allocation42_spill] sm:$0xff]  ;;  %9229 = vlog2.f32 %v16179_v19  ;;  %v9220_v61 = vpop.eup %9219  ;;  %v8036_v19 = vsub.f32 1.0, %v8035_v62  ;;  %v8080_v62 = vmul.f32 %v13297_v30, %v13207_v37  ;;  %v13341_v27 = vpop.xlane.xlu1 %7469 }
 0x280   : > { %16165 = vst [vmem:[#allocation197_spill] sm:$0xff] %v13262_v35  ;;  %v16171_v35 = vld [vmem:[#allocation49_spill] sm:$0xff]  ;;  %vm16174_vm11 = vnez %v16173_v25  ;;  %v16180_v25 = vld [vmem:[#allocation111_spill] sm:$0xff] }
 0x281   : > { %16168 = vst [vmem:[#allocation105_spill] sm:$0xff] %v13272_v33  ;;  %vm16172_vm6 = vnez %v16171_v35  ;;  %v13302_v47 = vadd.f32 %v16181_v23, %v16180_v25  ;;  %v8065_v23 = vmul.f32 %v13278_v46, %v13185_v18  ;;  %7581 = vadd.xlane.f32.xlu2 %v6578_v29  ;;  %v16193_v35 = vld [vmem:[#allocation71_spill] sm:$0xff]  ;;  %v16194_v33 = vld [vmem:[#allocation117_spill] sm:$0xff]  ;;  %v16199_v29 = vld [vmem:[#allocation82_spill] sm:$0xff] }
 0x282   : > { %16169 = vst [vmem:[#allocation69_spill] sm:$0xff] %v13278_v46  ;;  %9231 = vlog2.f32 %v16193_v35  ;;  %v13324_v34 = vadd.f32 %v12911_v28, %v16194_v33  ;;  %vm16200_vm4 = vnez %v16199_v29  ;;  %v13337_v28 = vmul.f32 0.6931472, %v9220_v61  ;;  %v16203_v29 = vld [vmem:[#allocation63_spill] sm:$0xff]  ;;  %v797_v33 = vpop.f32.mrf.mxu1 }
 0x283   : > { %16175 = vst [vmem:[#allocation31_spill] sm:$0xff] %v13288_v15  ;;  %v16184_v15 = vld [vmem:[#allocation87_spill] sm:$0xff]  ;;  %9233 = vlog2.f32 %v16197_v0  ;;  %v13343_v0 = vpop.xlane.xlu2 %7465  ;;  %v13351_v35 = vmul.f32 %v13242_v59, %v8036_v19  ;;  %v8066_v61 = vsub.f32 1.0, %v8065_v23  ;;  %v13366_v33 = vpop.xlane.xlu0 %7467 }
 0x284   : > { %16178 = vst [vmem:[#allocation51_spill] sm:$0xff] %v13297_v30  ;;  %vm16185_vm15 = vnez %v16184_v15  ;;  %v9222_v15 = vpop.eup %9221  ;;  %9235 = vrcp.f32 %v13302_v47 }
 0x285   : > { %16182 = vst [vmem:[#allocation39_spill] sm:$0xff] %v13302_v47  ;;  %v6586_v11 = vsel %vm16185_vm15, %v16183_v63, 0.0  ;;  %v13326_v26 = vpop.eup %9223  ;;  %vm16204_vm15 = vnez %v16203_v29  ;;  %9237 = vlog2.f32 %v16207_v38  ;;  %v13364_v59 = vmul.f32 0.6931472, %v9222_v15  ;;  %v16219_v15 = vld [vmem:[#allocation20_spill] sm:$0xff]  ;;  %v9348_v29 = vld [vmem:[%s9602_s8 + $0x98] sm:$0xff] }
 0x286   : > { %16189 = vst [vmem:[#allocation151_spill] sm:$0xff] %v13311_v60  ;;  %7585 = vadd.xlane.f32.xlu1 %v6586_v11  ;;  %v16198_v11 = vld [vmem:[#allocation73_spill] sm:$0xff]  ;;  %v910_v25 = vpop.f32.mrf.mxu2  ;;  %9239 = vrcp.f32 %v13324_v34  ;;  %v8081_v38 = vsub.f32 1.0, %v8080_v62  ;;  %v16220_v62 = vld [vmem:[#allocation94_spill] sm:$0xff]  ;;  %960 = vmatmul.f32.gmra.mxu2 %v9348_v29  ;;  %v13385_v18 = vmul.f32 %v13278_v46, %v8066_v61  ;;  %v16245_v63 = vld [vmem:[#allocation100_spill] sm:$0xff] }
 0x287   : > { %16190 = vst [vmem:[#allocation87_spill] sm:$0xff] %v13313_v40  ;;  %v6582_v36 = vsel %vm16200_vm4, %v16198_v11, 0.0  ;;  %v8110_v25 = vmul.f32 %v13326_v26, %v13231_v5  ;;  %9241 = vlog2.f32 %v16219_v15  ;;  %vm16222_vm4 = vnez %v16221_v51  ;;  %1073 = vmatmul.f32.gmra.mxu3 %v9348_v29  ;;  %v16228_v40 = vld [vmem:[#allocation96_spill] sm:$0xff]  ;;  %v16243_v5 = vld [vmem:[#allocation127_spill] sm:$0xff]  ;;  %847 = vmatmul.f32.gmra.mxu1 %v9348_v29 }
 0x288   : > { %16192 = vst [vmem:[#allocation77_spill] sm:$0xff] %v13319_v31  ;;  %v9226_v31 = vpop.eup %9225  ;;  %7583 = vadd.xlane.f32.xlu0 %v6582_v36  ;;  %v6598_v19 = vsel %vm16222_vm4, %v16220_v62, 0.0  ;;  %9243 = vlog2.f32 %v16225_v8  ;;  %v16248_v11 = vld [vmem:[#allocation119_spill] sm:$0xff] }
 0x289   : > { %16195 = vst [vmem:[#allocation71_spill] sm:$0xff] %v13324_v34  ;;  %v13348_v57 = vpop.eup %9227  ;;  %v13374_v54 = vmul.f32 0.6931472, %v9226_v31  ;;  %v8111_v60 = vsub.f32 1.0, %v8110_v25  ;;  %v1026_v25 = vpop.f32.mrf.mxu3  ;;  %9245 = vlog2.f32 %v16243_v5 }
 0x28a   : > { %16196 = vst [vmem:[#allocation213_spill] sm:$0xff] %v13326_v26  ;;  %v9230_v36 = vpop.eup %9229  ;;  %v8125_v23 = vmul.f32 %v13348_v57, %v13255_v32  ;;  %v16241_v25 = vld [vmem:[#allocation88_spill] sm:$0xff]  ;;  %9247 = vlog2.f32 %v13042_v50 }
 0x28b   : > { %16205 = vst [vmem:[#allocation108_spill] sm:$0xff] %v13348_v57  ;;  %v9232_v6 = vpop.eup %9231  ;;  %v13387_v31 = vmul.f32 0.6931472, %v9230_v36  ;;  %v13400_v36 = vmul.f32 %v13297_v30, %v8081_v38  ;;  %v13415_v30 = vpop.xlane.xlu1 %7475  ;;  %v7758_v50 = vand.u32 2147483647, %v16241_v25 }
 0x28c   : > { %16206 = vst [vmem:[#allocation82_spill] sm:$0xff] %v13351_v35  ;;  %v16213_v35 = vld [vmem:[#allocation83_spill] sm:$0xff]  ;;  %v9234_v3 = vpop.eup %9233  ;;  %v8126_v38 = vsub.f32 1.0, %v8125_v23  ;;  %v13417_v8 = vpop.xlane.xlu2 %7471  ;;  %v13429_v23 = vadd.f32 %v13044_v53, %v12987_v2 }
 0x28d   : > { %16212 = vst [vmem:[#allocation112_spill] sm:$0xff] %v13364_v59  ;;  %v6590_v22 = vsel %vm16215_vm9, %v16213_v35, 0.0  ;;  %v13390_v15 = vpop.eup %9235  ;;  %vm16229_vm9 = vnez %v16228_v40  ;;  %v13411_v59 = vmul.f32 0.6931472, %v9232_v6  ;;  %v13413_v61 = vmul.f32 0.6931472, %v9234_v3  ;;  %v13447_v2 = vpop.xlane.xlu0 %7473 }
 0x28e   : > { %16218 = vst [vmem:[#allocation91_spill] sm:$0xff] %v13374_v54  ;;  %7591 = vadd.xlane.f32.xlu1 %v6598_v19  ;;  %7587 = vadd.xlane.f32.xlu2 %v6590_v22  ;;  %v16227_v54 = vld [vmem:[#allocation86_spill] sm:$0xff]  ;;  %v9238_v46 = vpop.eup %9237  ;;  %v16234_v19 = vld [vmem:[#allocation107_spill] sm:$0xff]  ;;  %v913_v51 = vpop.f32.mrf.mxu2  ;;  %v8155_v6 = vmul.f32 %v13390_v15, %v13302_v47  ;;  %9249 = vrcp.f32 %v13429_v23 }
 0x28f   : > { %16224 = vst [vmem:[#allocation20_spill] sm:$0xff] %v13385_v18  ;;  %v6594_v56 = vsel %vm16229_vm9, %v16227_v54, 0.0  ;;  %v16233_v22 = vld [vmem:[#allocation98_spill] sm:$0xff]  ;;  %vm16235_vm14 = vnez %v16234_v19  ;;  %v13409_v7 = vpop.eup %9239  ;;  %v13433_v51 = vmul.f32 %v13326_v26, %v8111_v60  ;;  %v13435_v37 = vmul.f32 0.6931472, %v9238_v46  ;;  %v16251_v60 = vld [vmem:[#allocation116_spill] sm:$0xff] }
 0x290   : > { %16226 = vst [vmem:[#allocation104_spill] sm:$0xff] %v13390_v15  ;;  %v6602_v18 = vsel %vm16235_vm14, %v16233_v22, 0.0  ;;  %7589 = vadd.xlane.f32.xlu0 %v6594_v56  ;;  %v800_v56 = vpop.f32.mrf.mxu1  ;;  %v9242_v3 = vpop.eup %9241  ;;  %vm16249_vm9 = vnez %v16248_v11  ;;  %v8170_v53 = vmul.f32 %v13409_v7, %v13324_v34  ;;  %v16252_v26 = vld [vmem:[#allocation129_spill] sm:$0xff]  ;;  %v8156_v29 = vsub.f32 1.0, %v8155_v6  ;;  %v16261_v11 = vld [vmem:[#allocation130_spill] sm:$0xff]  ;;  %v16269_v22 = vld [vmem:[#allocation148_spill] sm:$0xff] }
 0x291   : > { %16232 = vst [vmem:[#allocation121_spill] sm:$0xff] %v13400_v36  ;;  %v16247_v36 = vld [vmem:[#allocation109_spill] sm:$0xff]  ;;  %v9244_v35 = vpop.eup %9243  ;;  %v13445_v56 = vadd.f32 %v13130_v48, %v13111_v52  ;;  %vm16253_vm10 = vnez %v16252_v26  ;;  %v9349_v48 = vld [vmem:[%s9602_s8 + $0xa0] sm:$0xff]  ;;  %v13464_v19 = vmul.f32 0.6931472, %v9242_v3  ;;  %v7768_v3 = vadd.f32 %v12741_v49, %v12978_v58  ;;  %v16268_v58 = vld [vmem:[#allocation136_spill] sm:$0xff] }
 0x292   : > { %16238 = vst [vmem:[#allocation96_spill] sm:$0xff] %v13409_v7  ;;  %v6606_v5 = vsel %vm16249_vm9, %v16247_v36, 0.0  ;;  %v6610_v46 = vsel %vm16253_vm10, %v16251_v60, 0.0  ;;  %963 = vmatmul.f32.gmra.mxu2 %v9349_v48  ;;  %1076 = vmatmul.f32.gmra.mxu3 %v9349_v48  ;;  %vm16262_vm10 = vnez %v16261_v11  ;;  %v9246_v26 = vpop.eup %9245  ;;  %v8171_v6 = vsub.f32 1.0, %v8170_v53  ;;  %v16374_v60 = vld [vmem:[#allocation14_spill] sm:$0xff] }
 0x293   : > { %16244 = vst [vmem:[#allocation107_spill] sm:$0xff] %v13429_v23  ;;  %9251 = vrcp.f32 %v13445_v56  ;;  %v7753_v11 = vadd.f32 %v12708_v42, %v12969_v16  ;;  %v7773_v53 = vand.u32 2147483647, %v16245_v63  ;;  %v9248_v54 = vpop.eup %9247  ;;  %v13497_v40 = vmul.f32 0.6931472, %v9246_v26  ;;  %850 = vmatmul.f32.gmra.mxu1 %v9349_v48 }
 0x294   : > { %16246 = vst [vmem:[#allocation88_spill] sm:$0xff] %v13433_v51  ;;  %v13456_v51 = vmul.f32 %v13348_v57, %v8126_v38  ;;  %v16260_v38 = vld [vmem:[#allocation123_spill] sm:$0xff]  ;;  %v13470_v57 = vmul.f32 0.6931472, %v9244_v35  ;;  %9253 = vlog2.f32 %v13071_v45  ;;  %v13482_v35 = vpop.xlane.xlu1 %7481  ;;  %v13484_v62 = vpop.xlane.xlu2 %7477  ;;  %vm16270_vm4 = vnez %v16269_v22 }
 0x295   : > { %16250 = vst [vmem:[#allocation127_spill] sm:$0xff] %v13445_v56  ;;  %v6614_v32 = vsel %vm16262_vm10, %v16260_v38, 0.0  ;;  %vm7755_vm10 = vweird.f32 %v12708_v42  ;;  %v6622_v47 = vsel %vm16270_vm4, %v16268_v58, 0.0  ;;  %vm16274_vm14 = vweird.f32 %v16241_v25  ;;  %v13516_v45 = vpop.eup %9249  ;;  %v13518_v22 = vpop.xlane.xlu0 %7479  ;;  %v16335_v58 = vld [vmem:[#allocation206_spill] sm:$0xff] }
 0x296   : > { %16256 = vst [vmem:[#allocation100_spill] sm:$0xff] %v13456_v51  ;;  %7597 = vadd.xlane.f32.xlu1 %v6610_v46  ;;  %7593 = vadd.xlane.f32.xlu2 %v6602_v18  ;;  %v7760_v51 = vand.u32 2147483648, %v16241_v25  ;;  %v916_v46 = vpop.f32.mrf.mxu2  ;;  %v1029_v18 = vpop.f32.mrf.mxu3  ;;  %vm13509_vm1 = vmor %vm16274_vm14, %vm7755_vm10  ;;  %vm13523_vm4 = vcmp.eq.f32.partialorder %v7758_v50, 8.507059e+37  ;;  %vm16282_vm14 = vweird.f32 %v12741_v49  ;;  %9255 = vlog2.f32 %v13113_v21  ;;  %v16292_v21 = vld [vmem:[#allocation141_spill] sm:$0xff] }
 0x297   : > { %16259 = vst [vmem:[#allocation119_spill] sm:$0xff] %v13464_v19  ;;  %v16266_v46 = vld [vmem:[#allocation101_spill] sm:$0xff]  ;;  %v13493_v18 = vmul.f32 %v13390_v15, %v8156_v29  ;;  %v16271_v19 = vld [vmem:[#allocation131_spill] sm:$0xff]  ;;  %9257 = vlog2.f32 %v13187_v41  ;;  %v13557_v26 = vmul.f32 0.6931472, %v9248_v54 }
 0x298   : > { %16263 = vst [vmem:[#allocation129_spill] sm:$0xff] %v13470_v57  ;;  %7595 = vadd.xlane.f32.xlu0 %v6606_v5  ;;  %v803_v52 = vpop.f32.mrf.mxu1  ;;  %v7775_v5 = vand.u32 2147483648, %v16245_v63  ;;  %v16272_v57 = vld [vmem:[#allocation142_spill] sm:$0xff]  ;;  %v7761_v25 = vor.u32 1.1754944e-38, %v7760_v51  ;;  %9259 = vlog2.f32 %v13265_v10  ;;  %v7803_v51 = vand.u32 2147483647, %v16266_v46 }
 0x299   : > { %16267 = vst [vmem:[#allocation130_spill] sm:$0xff] %v13493_v18  ;;  %vm16273_vm9 = vnez %v16272_v57  ;;  %v7757_v57 = vsel %vm13509_vm1, %v12708_v42, %v7753_v11  ;;  %v13539_v52 = vmul.f32 %v13409_v7, %v8171_v6  ;;  %v9350_v42 = vld [vmem:[%s9602_s8 + $0xa8] sm:$0xff]  ;;  %vm13546_vm1 = vcmp.eq.f32.partialorder %v7773_v53, 8.507059e+37  ;;  %v13550_v50 = vpop.eup %9251  ;;  %v16293_v6 = vld [vmem:[#allocation17_spill] sm:$0xff] }
 0x29a   : > { %v6618_v16 = vsel %vm16273_vm9, %v16271_v19, 0.0  ;;  %16279 = vst [vmem:[#allocation101_spill] sm:$0xff] %v13516_v45  ;;  %vm16283_vm9 = vweird.f32 %v16245_v63  ;;  %966 = vmatmul.f32.gmra.mxu2 %v9350_v42  ;;  %1079 = vmatmul.f32.gmra.mxu3 %v9350_v42  ;;  %v7776_v7 = vor.u32 1.1754944e-38, %v7775_v5  ;;  %9261 = vlog2.f32 %v13189_v43  ;;  %v16306_v11 = vld [vmem:[#allocation168_spill] sm:$0xff] }
 0x29b   : > { %vm13531_vm10 = vmor %vm16283_vm9, %vm16282_vm14  ;;  %16288 = vst [vmem:[#allocation148_spill] sm:$0xff] %v13539_v52  ;;  %vm16294_vm14 = vnez %v16293_v6  ;;  %v9254_v52 = vpop.eup %9253  ;;  %v7798_v53 = vadd.f32 %v12806_v1, %v12981_v14  ;;  %vm7800_vm9 = vweird.f32 %v12806_v1  ;;  %v8215_v54 = vmul.f32 %v13550_v50, %v13445_v56  ;;  %853 = vmatmul.f32.gmra.mxu1 %v9350_v42 }
 0x29c   : > { %v7772_v63 = vsel %vm13531_vm10, %v12741_v49, %v7768_v3  ;;  %16291 = vst [vmem:[#allocation142_spill] sm:$0xff] %v13550_v50  ;;  %v6626_v48 = vsel %vm16294_vm14, %v16292_v21, 0.0  ;;  %v8200_v49 = vmul.f32 %v13516_v45, %v13429_v23  ;;  %v7762_v3 = vsel %vm13523_vm4, %v7761_v25, %v7757_v57  ;;  %v7488_v10 = vpop.xlane.xlu1 %7487  ;;  %v13573_v15 = vpop.xlane.xlu2 %7483  ;;  %v16297_v25 = vld [vmem:[#allocation89_spill] sm:$0xff] }
 0x29d   : > { %9263 = vlog2.f32 %v13219_v12  ;;  %v7805_v43 = vand.u32 2147483648, %v16266_v46  ;;  %v13579_v57 = vmul.f32 0.6931472, %v9254_v52  ;;  %v9256_v12 = vpop.eup %9255  ;;  %vm16299_vm10 = vweird.f32 %v16266_v46 }
 0x29e   : > { %7603 = vadd.xlane.f32.xlu1 %v6622_v47  ;;  %7599 = vadd.xlane.f32.xlu2 %v6614_v32  ;;  %v919_v47 = vpop.f32.mrf.mxu2  ;;  %v1032_v41 = vpop.f32.mrf.mxu3  ;;  %v7777_v32 = vsel %vm13546_vm1, %v7776_v7, %v7772_v63  ;;  %9265 = vlog2.f32 %v7488_v10  ;;  %v13582_v63 = vmul.f32 %v7762_v3, %v16297_v25  ;;  %v8201_v6 = vsub.f32 1.0, %v8200_v49  ;;  %vm13594_vm1 = vmor %vm16299_vm10, %vm7800_vm9  ;;  %v16305_v10 = vld [vmem:[#allocation157_spill] sm:$0xff] }
 0x29f   : > { %9267 = vlog2.f32 %v13267_v13  ;;  %v16298_v47 = vld [vmem:[#allocation93_spill] sm:$0xff]  ;;  %v9258_v3 = vpop.eup %9257  ;;  %v13600_v49 = vpop.xlane.xlu0 %7485  ;;  %v7802_v46 = vsel %vm13594_vm1, %v12806_v1, %v7798_v53  ;;  %vm16307_vm10 = vnez %v16306_v11  ;;  %v13614_v42 = vmul.f32 0.6931472, %v9256_v12 }
 0x2a0   : > { %7601 = vadd.xlane.f32.xlu0 %v6618_v16  ;;  %v806_v14 = vpop.f32.mrf.mxu1  ;;  %v13588_v41 = vmul.f32 %v7777_v32, %v16298_v47  ;;  %9269 = vlog2.f32 %v13292_v4  ;;  %v16303_v13 = vld [vmem:[#allocation161_spill] sm:$0xff]  ;;  %v9260_v25 = vpop.eup %9259  ;;  %v8216_v47 = vsub.f32 1.0, %v8215_v54  ;;  %v6634_v4 = vsel %vm16307_vm10, %v16305_v10, 0.0 }
 0x2a1   : > { %v16302_v14 = vld [vmem:[#allocation150_spill] sm:$0xff]  ;;  %vm16304_vm14 = vnez %v16303_v13  ;;  %9271 = vlog2.f32 %v13341_v27  ;;  %v9351_v16 = vld [vmem:[%s9602_s8 + $0xb0] sm:$0xff]  ;;  %v7806_v13 = vor.u32 1.1754944e-38, %v7805_v43  ;;  %v9262_v7 = vpop.eup %9261  ;;  %vm7804_vm1 = vcmp.eq.f32.partialorder %v7803_v51, 8.507059e+37 }
 0x2a2   : > { %v6630_v32 = vsel %vm16304_vm14, %v16302_v14, 0.0  ;;  %969 = vmatmul.f32.gmra.mxu2 %v9351_v16  ;;  %1082 = vmatmul.f32.gmra.mxu3 %v9351_v16  ;;  %9273 = vlog2.f32 %v13343_v0  ;;  %v13624_v12 = vmul.f32 %v13516_v45, %v8201_v6  ;;  %v13626_v0 = vmul.f32 0.6931472, %v9258_v3  ;;  %v16323_v3 = vld [vmem:[#allocation185_spill] sm:$0xff]  ;;  %v16363_v14 = vld [vmem:[#allocation91_spill] sm:$0xff] }
 0x2a3   : > { %v9264_v53 = vpop.eup %9263  ;;  %9275 = vlog2.f32 %v13366_v33  ;;  %v7807_v11 = vsel %vm7804_vm1, %v7806_v13, %v7802_v46  ;;  %v7848_v51 = vand.u32 2147483647, %v12791_v39  ;;  %v13630_v33 = vmul.f32 %v13550_v50, %v8216_v47  ;;  %856 = vmatmul.f32.gmra.mxu1 %v9351_v16  ;;  %v16332_v16 = vld [vmem:[#allocation180_spill] sm:$0xff] }
 0x2a4   : > { %v9266_v52 = vpop.eup %9265  ;;  %16310 = vst [vmem:[#allocation17_spill] sm:$0xff] %v13624_v12  ;;  %v7494_v13 = vpop.xlane.xlu1 %7493  ;;  %v7850_v43 = vand.u32 2147483648, %v12791_v39  ;;  %v16316_v12 = vld [vmem:[#allocation106_spill] sm:$0xff]  ;;  %v7843_v50 = vadd.f32 %v12897_v55, %v13002_v20  ;;  %v16322_v20 = vld [vmem:[#allocation176_spill] sm:$0xff]  ;;  %vm16324_vm1 = vnez %v16323_v3  ;;  %vm16326_vm14 = vweird.f32 %v12791_v39 }
 0x2a5   : > { %16311 = vst [vmem:[#allocation89_spill] sm:$0xff] %v13626_v0  ;;  %v9268_v56 = vpop.eup %9267  ;;  %v8352_v46 = vmul.f32 0.6931472, %v9266_v52  ;;  %v7490_v27 = vpop.xlane.xlu2 %7489  ;;  %9277 = vlog2.f32 %v7494_v13  ;;  %v13641_v47 = vmul.f32 %v7807_v11, %v16316_v12  ;;  %v16318_v11 = vld [vmem:[#allocation172_spill] sm:$0xff]  ;;  %vm13654_vm10 = vcmp.eq.f32.partialorder %v7848_v51, 8.507059e+37  ;;  %v16329_v51 = vld [vmem:[#allocation153_spill] sm:$0xff] }
 0x2a6   : > { %7609 = vadd.xlane.f32.xlu1 %v6634_v4  ;;  %7605 = vadd.xlane.f32.xlu2 %v6626_v48  ;;  %v8328_v48 = vmul.f32 0.6931472, %v9260_v25  ;;  %v922_v4 = vpop.f32.mrf.mxu2  ;;  %v1035_v1 = vpop.f32.mrf.mxu3  ;;  %16312 = vst [vmem:[#allocation93_spill] sm:$0xff] %v13630_v33  ;;  %v13636_v25 = vmul.f32 0.6931472, %v9262_v7  ;;  %9279 = vlog2.f32 %v7490_v27  ;;  %vm16319_vm9 = vnez %v16318_v11 }
 0x2a7   : > { %v9270_v45 = vpop.eup %9269  ;;  %v13638_v1 = vmul.f32 0.6931472, %v9264_v53  ;;  %9281 = vlog2.f32 %v13415_v30  ;;  %v7492_v13 = vpop.xlane.xlu0 %7491  ;;  %v6646_v33 = vsel %vm16324_vm1, %v16322_v20, 0.0  ;;  %v7851_v30 = vor.u32 1.1754944e-38, %v7850_v43 }
 0x2a8   : > { %7607 = vadd.xlane.f32.xlu0 %v6630_v32  ;;  %v809_v4 = vpop.f32.mrf.mxu1  ;;  %v9272_v52 = vpop.eup %9271  ;;  %v13644_v32 = vadd.f32 %v8352_v46, %v13337_v28  ;;  %v8390_v53 = vadd.f32 %v8328_v48, %v13018_v44  ;;  %v8326_v46 = vmul.f32 0.6931472, %v9270_v45  ;;  %9283 = vlog2.f32 %v7492_v13  ;;  %v9352_v44 = vld [vmem:[%s9602_s8 + $0xb8] sm:$0xff]  ;;  %v16341_v28 = vld [vmem:[#allocation87_spill] sm:$0xff] }
 0x2a9   : > { %16315 = vst [vmem:[#allocation161_spill] sm:$0xff] %v13638_v1  ;;  %v9274_v7 = vpop.eup %9273  ;;  %v16317_v4 = vld [vmem:[#allocation160_spill] sm:$0xff]  ;;  %v13662_v48 = vmul.f32 0.6931472, %v9268_v56  ;;  %v8334_v11 = vmul.f32 0.6931472, %v9272_v52  ;;  %vm16330_vm1 = vnez %v16329_v51  ;;  %vm7859_vm4 = vweird.f32 %v12804_v9 }
 0x2aa   : > { %v6638_v12 = vsel %vm16319_vm9, %v16317_v4, 0.0  ;;  %v9276_v27 = vpop.eup %9275  ;;  %972 = vmatmul.f32.gmra.mxu2 %v9352_v44  ;;  %1085 = vmatmul.f32.gmra.mxu3 %v9352_v44  ;;  %vm16325_vm9 = vweird.f32 %v12897_v55  ;;  %v8330_v56 = vmul.f32 0.6931472, %v9274_v7  ;;  %9285 = vlog2.f32 %v13417_v8  ;;  %v16334_v8 = vld [vmem:[#allocation198_spill] sm:$0xff] }
 0x2ab   : > { %vm13669_vm3 = vmor %vm16326_vm14, %vm16325_vm9  ;;  %v9278_v39 = vpop.eup %9277  ;;  %v13682_v52 = vadd.f32 6.0, %v8390_v53  ;;  %v8332_v13 = vmul.f32 0.6931472, %v9276_v27  ;;  %9287 = vlog2.f32 %v13447_v2  ;;  %vm16333_vm14 = vnez %v16332_v16  ;;  %859 = vmatmul.f32.gmra.mxu1 %v9352_v44  ;;  %v16347_v44 = vld [vmem:[#allocation151_spill] sm:$0xff] }
 0x2ac   : > { %v7847_v43 = vsel %vm13669_vm3, %v12897_v55, %v7843_v50  ;;  %v9280_v17 = vpop.eup %9279  ;;  %v8389_v34 = vadd.f32 %v8326_v46, %v16334_v8  ;;  %9289 = vlog2.f32 %v13482_v35  ;;  %v8358_v55 = vmul.f32 0.6931472, %v9278_v39  ;;  %v7500_v50 = vpop.xlane.xlu1 %7499  ;;  %v16336_v46 = vld [vmem:[#allocation202_spill] sm:$0xff] }
 0x2ad   : > { %v7496_v45 = vpop.xlane.xlu2 %7495  ;;  %v7865_v53 = vand.u32 2147483648, %v12804_v9  ;;  %v9282_v27 = vpop.eup %9281  ;;  %v8393_v2 = vadd.f32 %v8334_v11, %v16335_v58  ;;  %v8354_v6 = vmul.f32 0.6931472, %v9280_v17  ;;  %9291 = vlog2.f32 %v7500_v50  ;;  %v16340_v17 = vld [vmem:[#allocation199_spill] sm:$0xff] }
 0x2ae   : > { %7615 = vadd.xlane.f32.xlu1 %v6646_v33  ;;  %7611 = vadd.xlane.f32.xlu2 %v6638_v12  ;;  %v7863_v33 = vand.u32 2147483647, %v12804_v9  ;;  %v16331_v12 = vld [vmem:[#allocation167_spill] sm:$0xff]  ;;  %v925_v23 = vpop.f32.mrf.mxu2  ;;  %v1038_v7 = vpop.f32.mrf.mxu3  ;;  %v8391_v8 = vadd.f32 %v8330_v56, %v16336_v46  ;;  %v13696_v35 = vadd.f32 %v8358_v55, %v13387_v31  ;;  %9293 = vlog2.f32 %v7496_v45  ;;  %v16360_v9 = vld [vmem:[#allocation210_spill] sm:$0xff] }
 0x2af   : > { %v6642_v3 = vsel %vm16333_vm14, %v16331_v12, 0.0  ;;  %v7852_v23 = vsel %vm13654_vm10, %v7851_v30, %v7847_v43  ;;  %v9284_v7 = vpop.eup %9283  ;;  %v8392_v58 = vadd.f32 %v8332_v13, %v16340_v17  ;;  %9295 = vlog2.f32 %v13484_v62  ;;  %v7498_v43 = vpop.xlane.xlu0 %7497  ;;  %v16342_v31 = vld [vmem:[#allocation179_spill] sm:$0xff]  ;;  %v16346_v13 = vld [vmem:[#allocation204_spill] sm:$0xff] }
 0x2b0   : > { %7613 = vadd.xlane.f32.xlu0 %v6642_v3  ;;  %v812_v16 = vpop.f32.mrf.mxu1  ;;  %v16337_v3 = vld [vmem:[#allocation170_spill] sm:$0xff]  ;;  %vm13699_vm9 = vcmp.eq.f32.partialorder %v7863_v33, 8.507059e+37  ;;  %v13706_v30 = vadd.f32 %v8354_v6, %v16341_v28  ;;  %v8356_v11 = vmul.f32 0.6931472, %v9284_v7  ;;  %v9286_v56 = vpop.eup %9285  ;;  %9297 = vlog2.f32 %v7498_v43  ;;  %v16343_v55 = vld [vmem:[#allocation187_spill] sm:$0xff] }
 0x2b1   : > { %vm7860_vm3 = vweird.f32 %v16337_v3  ;;  %vm16344_vm10 = vnez %v16343_v55  ;;  %v9353_v33 = vld [vmem:[%s9602_s8 + $0xc0] sm:$0xff]  ;;  %v7858_v62 = vadd.f32 %v16337_v3, %v16346_v13  ;;  %v9288_v6 = vpop.eup %9287  ;;  %v8340_v46 = vmul.f32 0.6931472, %v9282_v27 }
 0x2b2   : > { %v6650_v50 = vsel %vm16344_vm10, %v16342_v31, 0.0  ;;  %975 = vmatmul.f32.gmra.mxu2 %v9353_v33  ;;  %1088 = vmatmul.f32.gmra.mxu3 %v9353_v33  ;;  %v16345_v45 = vld [vmem:[#allocation115_spill] sm:$0xff]  ;;  %9299 = vlog2.f32 %v13518_v22  ;;  %v13719_v7 = vadd.f32 %v8356_v11, %v16347_v44  ;;  %v7866_v55 = vor.u32 1.1754944e-38, %v7865_v53  ;;  %v9290_v24 = vpop.eup %9289  ;;  %v16354_v53 = vld [vmem:[#allocation181_spill] sm:$0xff]  ;;  %vm13746_vm14 = vmor %vm7859_vm4, %vm7860_vm3 }
 0x2b3   : > { %v13713_v16 = vmul.f32 %v7852_v23, %v16345_v45  ;;  %v16349_v28 = vld [vmem:[#allocation11_spill] sm:$0xff]  ;;  %v16351_v23 = vld [vmem:[#allocation122_spill] sm:$0xff]  ;;  %v13726_v45 = vadd.f32 6.0, %v8389_v34  ;;  %v13728_v13 = vadd.f32 6.0, %v8393_v2  ;;  %9301 = vlog2.f32 %v13573_v15  ;;  %v9292_v11 = vpop.eup %9291  ;;  %862 = vmatmul.f32.gmra.mxu1 %v9353_v33  ;;  %v16368_v33 = vld [vmem:[#allocation205_spill] sm:$0xff] }
 0x2b4   : > { %v16350_v43 = vsel %vm15917_vm12, %v16349_v28, 0.0  ;;  %v16352_v22 = vld [vmem:[#allocation163_spill] sm:$0xff]  ;;  %v13734_v44 = vadd.f32 6.0, %v8391_v8  ;;  %v13736_v17 = vadd.f32 6.0, %v8392_v58  ;;  %9303 = vlog2.f32 %v13600_v49  ;;  %v9294_v8 = vpop.eup %9293  ;;  %v7506_v27 = vpop.xlane.xlu1 %7505  ;;  %v16361_v15 = vld [vmem:[#allocation166_spill] sm:$0xff] }
 0x2b5   : > { %vm16353_vm10 = vnez %v16352_v22  ;;  %v8364_v58 = vmul.f32 0.6931472, %v9292_v11  ;;  %v7502_v49 = vpop.xlane.xlu2 %7501  ;;  %v8396_v22 = vadd.f32 %v8340_v46, %v16360_v9  ;;  %v8338_v19 = vmul.f32 0.6931472, %v9288_v6  ;;  %v16365_v9 = vld [vmem:[#allocation152_spill] sm:$0xff] }
 0x2b6   : > { %7653 = vadd.xlane.f32.xlu1 %v16350_v43  ;;  %7617 = vadd.xlane.f32.xlu2 %v6650_v50  ;;  %v16355_v50 = vld [vmem:[#allocation190_spill] sm:$0xff]  ;;  %v928_v28 = vpop.f32.mrf.mxu2  ;;  %v1041_v2 = vpop.f32.mrf.mxu3  ;;  %v8336_v43 = vmul.f32 0.6931472, %v9286_v56  ;;  %v8360_v54 = vmul.f32 0.6931472, %v9294_v8  ;;  %9305 = vlog2.f32 %v7506_v27  ;;  %vm16362_vm4 = vnez %v16361_v15  ;;  %v16364_v8 = vld [vmem:[#allocation25_spill] sm:$0xff] }
 0x2b7   : > { %vm16356_vm12 = vnez %v16355_v50  ;;  %v7862_v50 = vsel %vm13746_vm14, %v16337_v3, %v7858_v62  ;;  %v9296_v28 = vpop.eup %9295  ;;  %v16359_v2 = vld [vmem:[#allocation126_spill] sm:$0xff]  ;;  %v13757_v11 = vadd.f32 %v8364_v58, %v13435_v37  ;;  %9307 = vlog2.f32 %v7502_v49  ;;  %v7504_v46 = vpop.xlane.xlu0 %7503  ;;  %v9354_v49 = vld [vmem:[%s9602_s8 + $0xc8] sm:$0xff] }
 0x2b8   : > { %v6654_v34 = vsel %vm16356_vm12, %v16354_v53, 0.0  ;;  %vm7904_vm12 = vweird.f32 %v16359_v2  ;;  %v815_v21 = vpop.f32.mrf.mxu1  ;;  %v9298_v56 = vpop.eup %9297  ;;  %v13764_v51 = vadd.f32 %v8360_v54, %v16363_v14  ;;  %v7895_v37 = vand.u32 2147483648, %v16351_v23  ;;  %v16366_v3 = vld [vmem:[#allocation158_spill] sm:$0xff] }
 0x2b9   : > { %7619 = vadd.xlane.f32.xlu0 %v6654_v34  ;;  %v7893_v34 = vand.u32 2147483647, %v16351_v23  ;;  %v9300_v62 = vpop.eup %9299  ;;  %v8362_v6 = vmul.f32 0.6931472, %v9298_v56  ;;  %v7867_v21 = vsel %vm13699_vm9, %v7866_v55, %v7862_v50  ;;  %v8394_v58 = vadd.f32 %v8336_v43, %v16364_v8  ;;  %v16369_v50 = vld [vmem:[#allocation112_spill] sm:$0xff]  ;;  %v16371_v43 = vld [vmem:[#allocation21_spill] sm:$0xff] }
 0x2ba   : > { %v9302_v27 = vpop.eup %9301  ;;  %9309 = vlog2.f32 %v7504_v46  ;;  %978 = vmatmul.f32.gmra.mxu2 %v9354_v49  ;;  %1091 = vmatmul.f32.gmra.mxu3 %v9354_v49  ;;  %v7888_v10 = vadd.f32 %v16366_v3, %v16365_v9  ;;  %vm7890_vm3 = vweird.f32 %v16366_v3  ;;  %v13774_v54 = vadd.f32 6.0, %v8396_v22  ;;  %v16376_v22 = vld [vmem:[#allocation125_spill] sm:$0xff] }
 0x2bb   : > { %v9304_v14 = vpop.eup %9303  ;;  %v8395_v39 = vadd.f32 %v8338_v19, %v16368_v33  ;;  %v8346_v55 = vmul.f32 0.6931472, %v9290_v24  ;;  %v13778_v56 = vadd.f32 %v8362_v6, %v16369_v50  ;;  %v16372_v46 = vsel %vm15926_vm0, %v16371_v43, 0.0  ;;  %865 = vmatmul.f32.gmra.mxu1 %v9354_v49 }
 0x2bc   : > { %16367 = vst [vmem:[#allocation168_spill] sm:$0xff] %v13774_v54  ;;  %v16375_v9 = vsel %vm10123_vm5, %v16374_v60, 0.0  ;;  %v8342_v18 = vmul.f32 0.6931472, %v9296_v28  ;;  %v8344_v36 = vmul.f32 0.6931472, %v9300_v62  ;;  %v13789_v29 = vmul.f32 %v7867_v21, %v16376_v22  ;;  %v9306_v19 = vpop.eup %9305 }
 0x2bd   : > { %vm13791_vm9 = vcmp.eq.f32.partialorder %v7893_v34, 8.507059e+37  ;;  %vm16379_vm0 = vweird.f32 %v16351_v23  ;;  %v7896_v60 = vor.u32 1.1754944e-38, %v7895_v37  ;;  %v16382_v28 = vld [vmem:[#allocation207_spill] sm:$0xff]  ;;  %v16383_v62 = vld [vmem:[#allocation201_spill] sm:$0xff]  ;;  %v7910_v34 = vand.u32 2147483648, %v16359_v2  ;;  %v9308_v50 = vpop.eup %9307  ;;  %v16389_v22 = vld [vmem:[#allocation22_spill] sm:$0xff] }
 0x2be   : > { %7659 = vadd.xlane.f32.xlu1 %v16372_v46  ;;  %7655 = vadd.xlane.f32.xlu2 %v16375_v9  ;;  %v931_v6 = vpop.f32.mrf.mxu2  ;;  %v1044_v15 = vpop.f32.mrf.mxu3  ;;  %vm13799_vm14 = vmor %vm16379_vm0, %vm7890_vm3  ;;  %v7903_v21 = vadd.f32 %v16383_v62, %v16382_v28  ;;  %vm7905_vm5 = vweird.f32 %v16383_v62  ;;  %v8348_v43 = vmul.f32 0.6931472, %v9302_v27  ;;  %v8350_v46 = vmul.f32 0.6931472, %v9304_v14  ;;  %v16385_v23 = vld [vmem:[#allocation15_spill] sm:$0xff]  ;;  %v16387_v28 = vld [vmem:[#allocation105_spill] sm:$0xff] }
 0x2bf   : > { %v8370_v8 = vmul.f32 0.6931472, %v9306_v19  ;;  %v7512_v9 = vpop.xlane.xlu1 %7511  ;;  %v16386_v6 = vsel %vm15923_vm7, %v16385_v23, 0.0  ;;  %v7508_v15 = vpop.xlane.xlu2 %7507  ;;  %v7892_v37 = vsel %vm13799_vm14, %v16366_v3, %v7888_v10  ;;  %v8399_v38 = vadd.f32 %v8346_v55, %v16387_v28  ;;  %v16388_v19 = vld [vmem:[#allocation209_spill] sm:$0xff]  ;;  %vm13825_vm7 = vmor %vm7904_vm12, %vm7905_vm5 }
 0x2c0   : > { %v8366_v5 = vmul.f32 0.6931472, %v9308_v50  ;;  %9311 = vlog2.f32 %v7512_v9  ;;  %v818_v0 = vpop.f32.mrf.mxu1  ;;  %v7908_v27 = vand.u32 2147483647, %v16359_v2  ;;  %v9310_v14 = vpop.eup %9309  ;;  %v8397_v54 = vadd.f32 %v8342_v18, %v16388_v19  ;;  %v16392_v18 = vld [vmem:[#allocation60_spill] sm:$0xff] }
 0x2c1   : > { %7657 = vadd.xlane.f32.xlu0 %v16386_v6  ;;  %v8398_v1 = vadd.f32 %v8344_v36, %v16389_v22  ;;  %v13819_v23 = vadd.f32 %v8370_v8, %v13497_v40  ;;  %9313 = vlog2.f32 %v7508_v15  ;;  %v8368_v3 = vmul.f32 0.6931472, %v9310_v14  ;;  %v7510_v55 = vpop.xlane.xlu0 %7509  ;;  %v16393_v2 = vld [vmem:[#allocation212_spill] sm:$0xff]  ;;  %v9355_v8 = vld [vmem:[%s9602_s8 + $0xd0] sm:$0xff] }
 0x2c2   : > { %v13830_v0 = vadd.f32 %v8366_v5, %v13413_v61  ;;  %v7897_v36 = vsel %vm13791_vm9, %v7896_v60, %v7892_v37  ;;  %v7907_v40 = vsel %vm13825_vm7, %v16383_v62, %v7903_v21  ;;  %v8400_v33 = vadd.f32 %v8348_v43, %v16392_v18  ;;  %981 = vmatmul.f32.gmra.mxu2 %v9355_v8  ;;  %v16395_v60 = vld [vmem:[#allocation36_spill] sm:$0xff] }
 0x2c3   : > { %v8401_v50 = vadd.f32 %v8350_v46, %v16393_v2  ;;  %9315 = vlog2.f32 %v7510_v55  ;;  %1094 = vmatmul.f32.gmra.mxu3 %v9355_v8  ;;  %v7911_v61 = vor.u32 1.1754944e-38, %v7910_v34  ;;  %v13840_v5 = vadd.f32 6.0, %v8394_v58  ;;  %v16398_v43 = vld [vmem:[#allocation24_spill] sm:$0xff]  ;;  %v16400_v58 = vld [vmem:[#allocation134_spill] sm:$0xff]  ;;  %868 = vmatmul.f32.gmra.mxu1 %v9355_v8  ;;  %v16431_v34 = vld [vmem:[#allocation57_spill] sm:$0xff] }
 0x2c4   : > { %v13842_v9 = vadd.f32 6.0, %v8395_v39  ;;  %v13845_v49 = vadd.f32 %v8368_v3, %v13411_v59  ;;  %v16396_v62 = vsel %vm16172_vm6, %v16395_v60, 0.0  ;;  %v16399_v46 = vsel %vm15920_vm13, %v16398_v43, 0.0  ;;  %v16407_v21 = vld [vmem:[#allocation144_spill] sm:$0xff] }
 0x2c5   : > { %vm7909_vm12 = vcmp.eq.f32.partialorder %v7908_v27, 8.507059e+37  ;;  %v13857_v6 = vmul.f32 %v7897_v36, %v16400_v58  ;;  %v13862_v28 = vadd.f32 6.0, %v8399_v38  ;;  %v13864_v14 = vadd.f32 6.0, %v8397_v54  ;;  %v16402_v27 = vld [vmem:[#allocation182_spill] sm:$0xff]  ;;  %v16435_v54 = vld [vmem:[#allocation208_spill] sm:$0xff] }
 0x2c6   : > { %7665 = vadd.xlane.f32.xlu1 %v16396_v62  ;;  %7661 = vadd.xlane.f32.xlu2 %v16399_v46  ;;  %v7912_v39 = vsel %vm7909_vm12, %v7911_v61, %v7907_v40  ;;  %v9312_v37 = vpop.eup %9311  ;;  %v13866_v19 = vadd.f32 6.0, %v8398_v1  ;;  %v934_v22 = vpop.f32.mrf.mxu2  ;;  %vm16403_vm13 = vnez %v16402_v27  ;;  %v13872_v36 = vadd.f32 6.0, %v13644_v32  ;;  %v16405_v1 = vld [vmem:[#allocation32_spill] sm:$0xff] }
 0x2c7   : > { %v1047_v10 = vpop.f32.mrf.mxu3  ;;  %v9314_v55 = vpop.eup %9313  ;;  %v13874_v40 = vadd.f32 6.0, %v8400_v33  ;;  %v13876_v18 = vadd.f32 6.0, %v8401_v50  ;;  %v8376_v38 = vmul.f32 0.6931472, %v9312_v37  ;;  %v16406_v61 = vsel %vm16174_vm11, %v16405_v1, 0.0  ;;  %v16408_v32 = vld [vmem:[#allocation140_spill] sm:$0xff] }
 0x2c8   : > { %v7518_v2 = vpop.xlane.xlu1 %7517  ;;  %v7514_v24 = vpop.xlane.xlu2 %7513  ;;  %v8372_v60 = vmul.f32 0.6931472, %v9314_v55  ;;  %v13883_v43 = vmul.f32 %v7912_v39, %v16407_v21  ;;  %v7940_v46 = vand.u32 2147483648, %v16408_v32  ;;  %vm7934_vm6 = vweird.f32 %v16408_v32  ;;  %v16409_v10 = vld [vmem:[#allocation129_spill] sm:$0xff] }
 0x2c9   : > { %7663 = vadd.xlane.f32.xlu0 %v16406_v61  ;;  %9317 = vlog2.f32 %v7518_v2  ;;  %v821_v62 = vpop.f32.mrf.mxu1  ;;  %v9316_v33 = vpop.eup %9315  ;;  %v13888_v50 = vadd.f32 %v8376_v38, %v13614_v42  ;;  %v7938_v37 = vand.u32 2147483647, %v16408_v32  ;;  %v13893_v22 = vadd.f32 6.0, %v13696_v35  ;;  %v9356_v61 = vld [vmem:[%s9602_s8 + $0xd8] sm:$0xff]  ;;  %v16411_v35 = vld [vmem:[#allocation169_spill] sm:$0xff] }
 0x2ca   : > { %9319 = vlog2.f32 %v7514_v24  ;;  %v13896_v39 = vadd.f32 %v8372_v60, %v16409_v10  ;;  %v8374_v55 = vmul.f32 0.6931472, %v9316_v33  ;;  %v7516_v2 = vpop.xlane.xlu0 %7515  ;;  %v13902_v42 = vadd.f32 6.0, %v13706_v30  ;;  %984 = vmatmul.f32.gmra.mxu2 %v9356_v61  ;;  %v16412_v60 = vld [vmem:[#allocation119_spill] sm:$0xff]  ;;  %v16414_v21 = vld [vmem:[#allocation53_spill] sm:$0xff]  ;;  %v16416_v10 = vld [vmem:[#allocation56_spill] sm:$0xff] }
 0x2cb   : > { %v13905_v38 = vadd.f32 6.0, %v13719_v7  ;;  %9321 = vlog2.f32 %v7516_v2  ;;  %1097 = vmatmul.f32.gmra.mxu3 %v9356_v61  ;;  %v7955_v24 = vand.u32 2147483648, %v16411_v35  ;;  %v16415_v33 = vsel %vm16204_vm15, %v16414_v21, 0.0  ;;  %v16418_v30 = vld [vmem:[#allocation45_spill] sm:$0xff]  ;;  %v16420_v7 = vld [vmem:[#allocation30_spill] sm:$0xff]  ;;  %871 = vmatmul.f32.gmra.mxu1 %v9356_v61  ;;  %v16452_v61 = vld [vmem:[#allocation68_spill] sm:$0xff] }
 0x2cc   : > { %v13910_v62 = vadd.f32 %v8374_v55, %v16412_v60  ;;  %vm16417_vm11 = vnez %v16416_v10  ;;  %v16421_v2 = vsub.f32 1.0, %v16420_v7  ;;  %v13924_v58 = vor.u32 1.1754944e-38, %v7940_v46  ;;  %v16450_v32 = vld [vmem:[#allocation78_spill] sm:$0xff] }
 0x2cd   : > { %v16419_v1 = vsel %vm16417_vm11, %v16418_v30, 0.0  ;;  %v16422_v55 = vsub.f32 1.0, %v13582_v63  ;;  %v16423_v8 = vsub.f32 1.0, %v13588_v41  ;;  %vm13933_vm3 = vcmp.eq.f32.partialorder %v7938_v37, 8.507059e+37  ;;  %v16429_v41 = vld [vmem:[#allocation135_spill] sm:$0xff] }
 0x2ce   : > { %7671 = vadd.xlane.f32.xlu1 %v16415_v33  ;;  %7667 = vadd.xlane.f32.xlu2 %v16419_v1  ;;  %v8455_v3 = vmul.f32 %v13734_v44, %v16421_v2  ;;  %v16424_v33 = vld [vmem:[#allocation155_spill] sm:$0xff]  ;;  %v16427_v44 = vld [vmem:[#allocation189_spill] sm:$0xff]  ;;  %v13941_v30 = vadd.f32 6.0, %v13757_v11  ;;  %v13944_v63 = vadd.f32 6.0, %v13764_v51  ;;  %v937_v7 = vpop.f32.mrf.mxu2  ;;  %v7953_v2 = vand.u32 2147483647, %v16411_v35 }
 0x2cf   : > { %v8453_v60 = vmul.f32 %v13726_v45, %v16422_v55  ;;  %v8454_v21 = vmul.f32 %v13682_v52, %v16423_v8  ;;  %vm7935_vm15 = vweird.f32 %v16424_v33  ;;  %vm16428_vm9 = vnez %v16427_v44  ;;  %v9318_v46 = vpop.eup %9317  ;;  %v1050_v37 = vpop.f32.mrf.mxu3  ;;  %v16433_v11 = vld [vmem:[#allocation48_spill] sm:$0xff]  ;;  %v16436_v7 = vld [vmem:[#allocation19_spill] sm:$0xff] }
 0x2d0   : > { %v16430_v45 = vsub.f32 1.0, %v16429_v41  ;;  %v9320_v55 = vpop.eup %9319  ;;  %v13951_v8 = vadd.f32 6.0, %v13778_v56  ;;  %v8382_v10 = vmul.f32 0.6931472, %v9318_v46  ;;  %v7524_v15 = vpop.xlane.xlu1 %7523  ;;  %vm16432_vm0 = vnez %v16431_v34  ;;  %v16438_v56 = vld [vmem:[#allocation13_spill] sm:$0xff]  ;;  %v16439_v34 = vld [vmem:[#allocation12_spill] sm:$0xff] }
 0x2d1   : > { %v16434_v20 = vsel %vm16432_vm0, %v16433_v11, 0.0  ;;  %v7520_v51 = vpop.xlane.xlu2 %7519  ;;  %v7933_v41 = vadd.f32 %v16424_v33, %v16435_v54  ;;  %9323 = vlog2.f32 %v7524_v15  ;;  %vm16437_vm14 = vcmp.lt.s32.totalorder %v16436_v7, 8  ;;  %v824_v46 = vpop.f32.mrf.mxu1  ;;  %v16443_v7 = vld [vmem:[#allocation33_spill] sm:$0xff]  ;;  %v16472_v1 = vld [vmem:[#allocation192_spill] sm:$0xff] }
 0x2d2   : > { %v8458_v52 = vmul.f32 %v13840_v5, %v16430_v45  ;;  %7669 = vadd.xlane.f32.xlu0 %v16434_v20  ;;  %v13959_v5 = vor.u32 1.1754944e-38, %v7955_v24  ;;  %v8378_v45 = vmul.f32 0.6931472, %v9320_v55  ;;  %v8487_v37 = vsel %vm16437_vm14, %v8455_v3, 0.0  ;;  %v9322_v12 = vpop.eup %9321  ;;  %v16441_v24 = vld [vmem:[#allocation18_spill] sm:$0xff]  ;;  %v7522_v11 = vpop.xlane.xlu0 %7521  ;;  %vm13984_vm14 = vmor %vm7934_vm6, %vm7935_vm15 }
 0x2d3   : > { %vm15349_vm5 = vcmp.eq.s32.totalorder %v16438_v56, 0  ;;  %vm7949_vm7 = vweird.f32 %v16411_v35  ;;  %v13966_v20 = vadd.f32 %v8382_v10, %v13636_v25  ;;  %9325 = vlog2.f32 %v7520_v51  ;;  %v9357_v10 = vld [vmem:[%s9602_s8 + $0xe0] sm:$0xff]  ;;  %v16454_v51 = vld [vmem:[#allocation70_spill] sm:$0xff] }
 0x2d4   : > { %vm16440_vm12 = vcmp.lt.s32.totalorder %v16439_v34, 8  ;;  %vm16442_vm11 = vcmp.lt.s32.totalorder %v16441_v24, 8  ;;  %v13973_v55 = vadd.f32 %v8378_v45, %v13579_v57  ;;  %v8380_v3 = vmul.f32 0.6931472, %v9322_v12  ;;  %v16448_v57 = vld [vmem:[#allocation146_spill] sm:$0xff]  ;;  %987 = vmatmul.f32.gmra.mxu2 %v9357_v10  ;;  %1100 = vmatmul.f32.gmra.mxu3 %v9357_v10  ;;  %v16458_v24 = vld [vmem:[#allocation203_spill] sm:$0xff] }
 0x2d5   : > { %v8485_v54 = vsel %vm16440_vm12, %v8453_v60, 0.0  ;;  %v8486_v15 = vsel %vm16442_vm11, %v8454_v21, 0.0  ;;  %vm16444_vm0 = vcmp.lt.s32.totalorder %v16443_v7, 8  ;;  %v16445_v27 = vsub.f32 1.0, %v13641_v47  ;;  %v16456_v45 = vld [vmem:[#allocation62_spill] sm:$0xff]  ;;  %874 = vmatmul.f32.gmra.mxu1 %v9357_v10  ;;  %v16484_v10 = vld [vmem:[#allocation89_spill] sm:$0xff] }
 0x2d6   : > { %v8490_v46 = vsel %vm16444_vm0, %v8458_v52, 0.0  ;;  %9327 = vlog2.f32 %v7522_v11  ;;  %vm15350_vm12 = vcmp.eq.s32.totalorder %v16438_v56, 1  ;;  %v16449_v12 = vsub.f32 1.0, %v16448_v57 }
 0x2d7   : > { %v8456_v25 = vmul.f32 %v13736_v17, %v16445_v27  ;;  %v7937_v47 = vsel %vm13984_vm14, %v16424_v33, %v7933_v41  ;;  %v13997_v17 = vadd.f32 6.0, %v13819_v23  ;;  %v14000_v27 = vadd.f32 %v8380_v3, %v13557_v26  ;;  %v9324_v7 = vpop.eup %9323  ;;  %v1053_v57 = vpop.f32.mrf.mxu3 }
 0x2d8   : > { %v8457_v21 = vmul.f32 %v13728_v13, %v16449_v12  ;;  %vm16451_vm6 = vnez %v16450_v32  ;;  %v8520_v13 = vsel %vm15349_vm5, %v8487_v37, 0.0  ;;  %vm16455_vm15 = vnez %v16454_v51  ;;  %v16464_v12 = vld [vmem:[#allocation46_spill] sm:$0xff]  ;;  %v7562_v32 = vpop.xlane.xlu1 %7561 }
 0x2d9   : > { %v16453_v52 = vsel %vm16451_vm6, %v16452_v61, 0.0  ;;  %v16457_v34 = vsel %vm16455_vm15, %v16456_v45, 0.0  ;;  %v8518_v23 = vsel %vm15349_vm5, %v8485_v54, 0.0  ;;  %v14015_v33 = vadd.f32 6.0, %v13830_v0  ;;  %v16462_v0 = vld [vmem:[#allocation26_spill] sm:$0xff]  ;;  %v16465_v61 = vld [vmem:[#allocation72_spill] sm:$0xff]  ;;  %v827_v57 = vpop.f32.mrf.mxu1 }
 0x2da   : > { %7677 = vadd.xlane.f32.xlu1 %v16453_v52  ;;  %7673 = vadd.xlane.f32.xlu2 %v16457_v34  ;;  %v8519_v26 = vsel %vm15349_vm5, %v8486_v15, 0.0  ;;  %v14021_v41 = vsel %vm15349_vm5, %v8490_v46, 0.0  ;;  %v16459_v37 = vsub.f32 1.0, %v16458_v24  ;;  %vm14026_vm11 = vcmp.eq.f32.partialorder %v7953_v2, 8.507059e+37  ;;  %v940_v15 = vpop.f32.mrf.mxu2  ;;  %v16467_v52 = vld [vmem:[#allocation64_spill] sm:$0xff]  ;;  %v16471_v34 = vld [vmem:[#allocation211_spill] sm:$0xff] }
 0x2db   : > { %v14031_v54 = vadd.f32 6.0, %v13845_v49  ;;  %vm16463_vm0 = vcmp.lt.s32.totalorder %v16462_v0, 8  ;;  %v7942_v46 = vsel %vm13933_vm3, %v13924_v58, %v7937_v47  ;;  %vm7950_vm14 = vweird.f32 %v16464_v12  ;;  %v7558_v49 = vpop.xlane.xlu2 %7557  ;;  %v16469_v45 = vld [vmem:[#allocation28_spill] sm:$0xff]  ;;  %v16474_v47 = vld [vmem:[#allocation162_spill] sm:$0xff] }
 0x2dc   : > { %v8461_v3 = vmul.f32 %v13864_v14, %v16459_v37  ;;  %v8488_v60 = vsel %vm16463_vm0, %v8456_v25, 0.0  ;;  %v9326_v14 = vpop.eup %9325  ;;  %v8388_v2 = vmul.f32 0.6931472, %v9324_v7  ;;  %vm16466_vm6 = vnez %v16465_v61 }
 0x2dd   : > { %v16468_v51 = vsel %vm16466_vm6, %v16467_v52, 0.0  ;;  %vm16470_vm15 = vcmp.lt.s32.totalorder %v16469_v45, 8  ;;  %v7948_v24 = vadd.f32 %v16464_v12, %v16471_v34  ;;  %vm16473_vm3 = vnez %v16472_v1  ;;  %v9328_v61 = vpop.eup %9327 }
 0x2de   : > { %7675 = vadd.xlane.f32.xlu0 %v16468_v51  ;;  %v8489_v25 = vsel %vm16470_vm15, %v8457_v21, 0.0  ;;  %vm7994_vm0 = vweird.f32 %v16474_v47  ;;  %v8384_v37 = vmul.f32 0.6931472, %v9326_v14  ;;  %v8553_v7 = vsel %vm15350_vm12, %v7562_v32, 0.0  ;;  %v16476_v14 = vld [vmem:[#allocation154_spill] sm:$0xff]  ;;  %v16477_v32 = vld [vmem:[#allocation161_spill] sm:$0xff]  ;;  %vm14079_vm15 = vmor %vm7949_vm7, %vm7950_vm14 }
 0x2df   : > { %v8551_v0 = vsel %vm15350_vm12, %v7558_v49, 0.0  ;;  %v16475_v15 = vsub.f32 1.0, %v13713_v16  ;;  %v14059_v52 = vadd.f32 %v8388_v2, %v13662_v48  ;;  %v14061_v51 = vadd.f32 %v8553_v7, %v8520_v13  ;;  %v7560_v16 = vpop.xlane.xlu0 %7559  ;;  %v16495_v48 = vld [vmem:[#allocation44_spill] sm:$0xff] }
 0x2e0   : > { %v14063_v45 = vadd.f32 %v8551_v0, %v8518_v23  ;;  %v14066_v34 = vmul.f32 %v7942_v46, %v16476_v14  ;;  %v14069_v58 = vadd.f32 %v8384_v37, %v16477_v32  ;;  %v8386_v49 = vmul.f32 0.6931472, %v9328_v61  ;;  %v16483_v46 = vld [vmem:[#allocation168_spill] sm:$0xff]  ;;  %v16487_v61 = vld [vmem:[#allocation83_spill] sm:$0xff]  ;;  %v16491_v14 = vld [vmem:[#allocation73_spill] sm:$0xff] }
 0x2e1   : > { %v8459_v21 = vmul.f32 %v13842_v9, %v16475_v15  ;;  %v8521_v9 = vsel %vm15349_vm5, %v8488_v60, 0.0  ;;  %v16478_v15 = vld [vmem:[#allocation54_spill] sm:$0xff]  ;;  %v8552_v13 = vsel %vm15350_vm12, %v7560_v16, 0.0  ;;  %v8522_v23 = vsel %vm15349_vm5, %v8489_v25, 0.0  ;;  %v16485_v0 = vld [vmem:[#allocation92_spill] sm:$0xff] }
 0x2e2   : > { %vm16479_vm6 = vcmp.lt.s32.totalorder %v16478_v15, 8  ;;  %v16482_v60 = vsub.f32 1.0, %v13789_v29  ;;  %v7952_v35 = vsel %vm14079_vm15, %v16464_v12, %v7948_v24  ;;  %v14095_v37 = vadd.f32 %v8386_v49, %v16484_v10  ;;  %v16489_v29 = vld [vmem:[#allocation84_spill] sm:$0xff]  ;;  %v16493_v16 = vld [vmem:[#allocation38_spill] sm:$0xff] }
 0x2e3   : > { %v8493_v57 = vsel %vm16479_vm6, %v8461_v3, 0.0  ;;  %v9358_v3 = vld [vmem:[%s9602_s8 + $0xe8] sm:$0xff]  ;;  %v14097_v7 = vadd.f32 %v8552_v13, %v8519_v26  ;;  %vm16486_vm7 = vnez %v16485_v0  ;;  %vm16490_vm14 = vnez %v16489_v29  ;;  %v16499_v0 = vld [vmem:[#allocation145_spill] sm:$0xff]  ;;  %v7568_v29 = vpop.xlane.xlu1 %7567 }
 0x2e4   : > { %v8460_v2 = vmul.f32 %v16483_v46, %v16482_v60  ;;  %990 = vmatmul.f32.gmra.mxu2 %v9358_v3  ;;  %1103 = vmatmul.f32.gmra.mxu3 %v9358_v3  ;;  %v16488_v25 = vsel %vm16486_vm7, %v16487_v61, 0.0  ;;  %v16492_v32 = vsel %vm16490_vm14, %v16491_v14, 0.0  ;;  %vm16494_vm6 = vcmp.lt.s32.totalorder %v16493_v16, 8  ;;  %v16497_v60 = vld [vmem:[#allocation194_spill] sm:$0xff]  ;;  %v1056_v61 = vpop.f32.mrf.mxu3  ;;  %v16501_v14 = vld [vmem:[#allocation85_spill] sm:$0xff]  ;;  %v7564_v16 = vpop.xlane.xlu2 %7563 }
 0x2e5   : > { %7683 = vadd.xlane.f32.xlu1 %v16488_v25  ;;  %7679 = vadd.xlane.f32.xlu2 %v16492_v32  ;;  %v8491_v15 = vsel %vm16494_vm6, %v8459_v21, 0.0  ;;  %v16496_v12 = vsub.f32 1.0, %v16495_v48  ;;  %v14113_v26 = vadd.f32 6.0, %v13888_v50  ;;  %v14117_v49 = vsel %vm15349_vm5, %v8493_v57, 0.0  ;;  %v16500_v57 = vld [vmem:[#allocation184_spill] sm:$0xff]  ;;  %v16505_v48 = vld [vmem:[#allocation47_spill] sm:$0xff]  ;;  %v830_v61 = vpop.f32.mrf.mxu1 }
 0x2e6   : > { %v16498_v46 = vsub.f32 1.0, %v16497_v60  ;;  %vm7979_vm15 = vweird.f32 %v16499_v0  ;;  %v14127_v21 = vadd.f32 6.0, %v13896_v39  ;;  %v7957_v50 = vsel %vm14026_vm11, %v13959_v5, %v7952_v35  ;;  %v16516_v61 = vld [vmem:[#allocation37_spill] sm:$0xff]  ;;  %877 = vmatmul.f32.gmra.mxu1 %v9358_v3 }
 0x2e7   : > { %v8464_v24 = vmul.f32 %v13874_v40, %v16496_v12  ;;  %v943_v40 = vpop.f32.mrf.mxu2  ;;  %vm7995_vm7 = vweird.f32 %v16500_v57  ;;  %v7998_v25 = vand.u32 2147483647, %v16474_v47  ;;  %vm16502_vm14 = vnez %v16501_v14  ;;  %v16509_v14 = vld [vmem:[#allocation31_spill] sm:$0xff] }
 0x2e8   : > { %v14123_v10 = vmul.f32 %v13944_v63, %v16498_v46  ;;  %v16503_v63 = vld [vmem:[#allocation79_spill] sm:$0xff]  ;;  %v8524_v39 = vsel %vm15349_vm5, %v8491_v15, 0.0  ;;  %vm16506_vm6 = vcmp.lt.s32.totalorder %v16505_v48, 8  ;;  %v7983_v11 = vand.u32 2147483647, %v16499_v0  ;;  %v16512_v48 = vld [vmem:[#allocation164_spill] sm:$0xff] }
 0x2e9   : > { %v16504_v32 = vsel %vm16502_vm14, %v16503_v63, 0.0  ;;  %v8492_v12 = vsel %vm16506_vm6, %v8460_v2, 0.0  ;;  %v7985_v5 = vand.u32 2147483648, %v16499_v0  ;;  %v8556_v35 = vsel %vm15350_vm12, %v7568_v29, 0.0  ;;  %v16507_v46 = vld [vmem:[#allocation67_spill] sm:$0xff]  ;;  %v16510_v63 = vld [vmem:[#allocation165_spill] sm:$0xff]  ;;  %vm14165_vm6 = vmor %vm7994_vm0, %vm7995_vm7 }
 0x2ea   : > { %7681 = vadd.xlane.f32.xlu0 %v16504_v32  ;;  %v8554_v60 = vsel %vm15350_vm12, %v7564_v16, 0.0  ;;  %vm16508_vm11 = vcmp.lt.s32.totalorder %v16507_v46, 8  ;;  %v7993_v15 = vadd.f32 %v16500_v57, %v16509_v14  ;;  %v14154_v2 = vadd.f32 %v8556_v35, %v14021_v41  ;;  %v7566_v41 = vpop.xlane.xlu0 %7565 }
 0x2eb   : > { %v8496_v40 = vsel %vm16508_vm11, %v8464_v24, 0.0  ;;  %v14156_v32 = vadd.f32 %v8554_v60, %v8521_v9  ;;  %v14159_v29 = vmul.f32 %v7957_v50, %v16512_v48  ;;  %v16515_v16 = vand.u32 2147483648, %v16474_v47  ;;  %v16519_v48 = vld [vmem:[#allocation173_spill] sm:$0xff]  ;;  %v16530_v24 = vld [vmem:[#allocation86_spill] sm:$0xff] }
 0x2ec   : > { %16511 = vst [vmem:[#allocation106_spill] sm:$0xff] %v14154_v2  ;;  %v16517_v9 = vsub.f32 1.0, %v13857_v6  ;;  %v16518_v50 = vsub.f32 1.0, %v13883_v43  ;;  %v7997_v14 = vsel %vm14165_vm6, %v16500_v57, %v7993_v15  ;;  %vm7999_vm0 = vcmp.eq.f32.partialorder %v7998_v25, 8.507059e+37  ;;  %v9359_v6 = vld [vmem:[%s9602_s8 + $0xf0] sm:$0xff]  ;;  %v16522_v43 = vld [vmem:[#allocation59_spill] sm:$0xff] }
 0x2ed   : > { %v8001_v46 = vor.u32 1.1754944e-38, %v16515_v16  ;;  %v8555_v47 = vsel %vm15350_vm12, %v7566_v41, 0.0  ;;  %v16520_v16 = vsub.f32 1.0, %v16519_v48  ;;  %993 = vmatmul.f32.gmra.mxu2 %v9359_v6  ;;  %1106 = vmatmul.f32.gmra.mxu3 %v9359_v6  ;;  %v16526_v57 = vld [vmem:[#allocation98_spill] sm:$0xff]  ;;  %v16528_v15 = vld [vmem:[#allocation99_spill] sm:$0xff]  ;;  %vm7980_vm11 = vweird.f32 %v16522_v43 }
 0x2ee   : > { %v8462_v35 = vmul.f32 %v13866_v19, %v16517_v9  ;;  %v8463_v60 = vmul.f32 %v13862_v28, %v16518_v50  ;;  %v16521_v19 = vld [vmem:[#allocation197_spill] sm:$0xff]  ;;  %v14189_v3 = vadd.f32 %v8555_v47, %v8522_v23  ;;  %v16524_v50 = vld [vmem:[#allocation110_spill] sm:$0xff]  ;;  %vm16529_vm6 = vnez %v16528_v15  ;;  %vm14237_vm12 = vmor %vm7979_vm15, %vm7980_vm11  ;;  %880 = vmatmul.f32.gmra.mxu1 %v9359_v6 }
 0x2ef   : > { %v8467_v13 = vmul.f32 %v13902_v42, %v16520_v16  ;;  %v7978_v9 = vadd.f32 %v16522_v43, %v16521_v19  ;;  %v8002_v28 = vsel %vm7999_vm0, %v8001_v46, %v7997_v14  ;;  %vm16525_vm7 = vnez %v16524_v50  ;;  %v16532_v42 = vld [vmem:[#allocation183_spill] sm:$0xff]  ;;  %v16533_v16 = vld [vmem:[#allocation66_spill] sm:$0xff]  ;;  %v1059_v50 = vpop.f32.mrf.mxu3 }
 0x2f0   : > { %16523 = vst [vmem:[#allocation160_spill] sm:$0xff] %v14189_v3  ;;  %v16527_v25 = vsel %vm16525_vm7, %v16526_v57, 0.0  ;;  %v16531_v41 = vsel %vm16529_vm6, %v16530_v24, 0.0  ;;  %v8003_v48 = vmul.f32 %v8002_v28, %v16532_v42  ;;  %v16534_v2 = vsub.f32 1.0, %v16533_v16  ;;  %v16537_v15 = vld [vmem:[#allocation102_spill] sm:$0xff]  ;;  %v16543_v42 = vld [vmem:[#allocation61_spill] sm:$0xff] }
 0x2f1   : > { %7689 = vadd.xlane.f32.xlu1 %v16527_v25  ;;  %7685 = vadd.xlane.f32.xlu2 %v16531_v41  ;;  %v14207_v23 = vadd.f32 6.0, %v13910_v62  ;;  %v8525_v14 = vsel %vm15349_vm5, %v8492_v12, 0.0  ;;  %v14213_v47 = vsel %vm15349_vm5, %v8496_v40, 0.0  ;;  %vm14215_vm0 = vcmp.eq.f32.partialorder %v7983_v11, 8.507059e+37  ;;  %v7574_v25 = vpop.xlane.xlu1 %7573  ;;  %v16539_v12 = vld [vmem:[#allocation94_spill] sm:$0xff]  ;;  %v7570_v40 = vpop.xlane.xlu2 %7569  ;;  %v16545_v16 = vld [vmem:[#allocation80_spill] sm:$0xff] }
 0x2f2   : > { %v14204_v46 = vmul.f32 %v14015_v33, %v16534_v2  ;;  %v14220_v28 = vadd.f32 6.0, %v13966_v20  ;;  %v8242_v33 = vsub.f32 1.0, %v14159_v29  ;;  %v946_v2 = vpop.f32.mrf.mxu2  ;;  %v7986_v62 = vor.u32 1.1754944e-38, %v7985_v5  ;;  %v16541_v11 = vld [vmem:[#allocation50_spill] sm:$0xff] }
 0x2f3   : > { %v8245_v57 = vsub.f32 1.0, %v8003_v48  ;;  %vm16538_vm7 = vnez %v16537_v15  ;;  %vm16542_vm6 = vcmp.lt.s32.totalorder %v16541_v11, 8  ;;  %vm16544_vm5 = vcmp.lt.s32.totalorder %v16543_v42, 8  ;;  %v7572_v11 = vpop.xlane.xlu0 %7571  ;;  %v9360_v5 = vld [vmem:[%s9602_s8 + $0xf8] sm:$0xff]  ;;  %s331_s8 = sand.u32 1, %s9423_s22  }
 0x2f4   : > { %v16540_v24 = vsel %vm16538_vm7, %v16539_v12, 0.0  ;;  %v8494_v41 = vsel %vm16542_vm6, %v8462_v35, 0.0  ;;  %v8495_v20 = vsel %vm16544_vm5, %v8463_v60, 0.0  ;;  %vm16546_vm14 = vcmp.lt.s32.totalorder %v16545_v16, 8  ;;  %v833_v60 = vpop.f32.mrf.mxu1  ;;  %v16552_v12 = vld [vmem:[#allocation77_spill] sm:$0xff]  ;;  %s8869_s19 = sshll.u32 %s331_s8, 8 }
 0x2f5   : > { %7687 = vadd.xlane.f32.xlu0 %v16540_v24  ;;  %v8499_v29 = vsel %vm16546_vm14, %v8467_v13, 0.0  ;;  %v8028_v48 = vand.u32 2147483647, %v16510_v63  ;;  %vm16549_vm7 = vcmp.eq.s32.totalorder %v16438_v56, 1  ;;  %v7982_v13 = vsel %vm14237_vm12, %v16522_v43, %v7978_v9  ;;  %v16553_v24 = vld [vmem:[#allocation55_spill] sm:$0xff]  ;;  %v16560_v9 = vld [vmem:[#allocation74_spill] sm:$0xff]  ;;  %996 = vmatmul.f32.gmra.mxu2 %v9360_v5 }
 0x2f6   : > { %v8559_v2 = vsel %vm16549_vm7, %v7574_v25, 0.0  ;;  %vm16550_vm6 = vmmov %vm16549_vm7  ;;  %v14250_v0 = vmul.f32 %v13893_v22, %v8245_v57  ;;  %v8023_v25 = vadd.f32 %v16553_v24, %v16552_v12  ;;  %vm8025_vm5 = vweird.f32 %v16553_v24  ;;  %v16561_v16 = vld [vmem:[#allocation193_spill] sm:$0xff]  ;;  %1109 = vmatmul.f32.gmra.mxu3 %v9360_v5  ;;  %883 = vmatmul.f32.gmra.mxu1 %v9360_v5  ;;  %s14690_s27 = scalar_lea.vmem [#allocation8], %s8869_s19  ;;  %s8713_s16 = scalar_lea.sflag [#allocation9], %s331_s8 }
 0x2f7   : > { %v8557_v35 = vsel %vm16550_vm6, %v7570_v40, 0.0  ;;  %v14253_v50 = vadd.f32 %v8559_v2, %v14117_v49  ;;  %v16554_v40 = vld [vmem:[#allocation52_spill] sm:$0xff]  ;;  %vm16555_vm12 = vweird.f32 %v16510_v63  ;;  %v16558_v22 = vand.u32 2147483648, %v16510_v63  ;;  %v16564_v12 = vld [vmem:[#allocation133_spill] sm:$0xff]  ;;  %v1062_v19 = vpop.f32.mrf.mxu3  ;;  %s8725_s24 = sshll.u32 %s14690_s27, 4  ;;  %s8726_s24 = int_to_ptr.vmem [resolvable:$true] %s8725_s24 }
 0x2f8   : > { %v14255_v15 = vadd.f32 %v8557_v35, %v8524_v39  ;;  %vm14263_vm14 = vmor %vm16555_vm12, %vm8025_vm5  ;;  %v16559_v39 = vld [vmem:[#allocation82_spill] sm:$0xff]  ;;  %vm8040_vm11 = vweird.f32 %v16560_v9  ;;  %v8043_v42 = vand.u32 2147483647, %v16516_v61  ;;  %v8558_v6 = vsel %vm16550_vm6, %v7572_v11, 0.0  ;;  %v16598_v5 = vld [vmem:[#allocation121_spill] sm:$0xff] }
 0x2f9   : > { %16551 = vst [vmem:[#allocation172_spill] sm:$0xff] %v14253_v50  ;;  %v8031_v49 = vor.u32 1.1754944e-38, %v16558_v22  ;;  %v8038_v57 = vadd.f32 %v16560_v9, %v16559_v39  ;;  %v8027_v63 = vsel %vm14263_vm14, %v16553_v24, %v8023_v25  ;;  %vm8029_vm5 = vcmp.eq.f32.partialorder %v8028_v48, 8.507059e+37  ;;  %v16566_v22 = vld [vmem:[#allocation123_spill] sm:$0xff]  ;;  %v16568_v39 = vld [vmem:[#allocation120_spill] sm:$0xff]  ;;  %v16570_v50 = vld [vmem:[#allocation109_spill] sm:$0xff] }
 0x2fa   : > { %vm16562_vm12 = vweird.f32 %v16516_v61  ;;  %v16563_v2 = vand.u32 2147483648, %v16516_v61  ;;  %v14284_v60 = vadd.f32 %v8558_v6, %v8525_v14  ;;  %vm16565_vm7 = vnez %v16564_v12  ;;  %v16572_v25 = vld [vmem:[#allocation191_spill] sm:$0xff] }
 0x2fb   : > { %vm8041_vm15 = vmor %vm16562_vm12, %vm8040_vm11  ;;  %v16567_v11 = vsel %vm16565_vm7, %v16566_v22, 0.0  ;;  %vm16569_vm6 = vnez %v16568_v39  ;;  %v8032_v24 = vsel %vm8029_vm5, %v8031_v49, %v8027_v63  ;;  %vm8044_vm14 = vcmp.eq.f32.partialorder %v8043_v42, 8.507059e+37  ;;  %v16573_v6 = vld [vmem:[#allocation103_spill] sm:$0xff]  ;;  %v16578_v42 = vld [vmem:[#allocation128_spill] sm:$0xff] }
 0x2fc   : > { %v8046_v35 = vor.u32 1.1754944e-38, %v16563_v2  ;;  %7695 = vadd.xlane.f32.xlu1 %v16567_v11  ;;  %v16571_v3 = vsel %vm16569_vm6, %v16570_v50, 0.0  ;;  %v8042_v48 = vsel %vm8041_vm15, %v16560_v9, %v8038_v57  ;;  %v7987_v61 = vsel %vm14215_vm0, %v7986_v62, %v7982_v13  ;;  %v949_v9 = vpop.f32.mrf.mxu2  ;;  %v16577_v62 = vld [vmem:[#allocation196_spill] sm:$0xff]  ;;  %v7580_v57 = vpop.xlane.xlu1 %7579 }
 0x2fd   : > { %7691 = vadd.xlane.f32.xlu2 %v16571_v3  ;;  %v8033_v14 = vmul.f32 %v8032_v24, %v16572_v25  ;;  %v16574_v2 = vsub.f32 1.0, %v16573_v6  ;;  %v8447_v22 = vadd.f32 6.0, %v13973_v55  ;;  %vm16575_vm11 = vcmp.eq.s32.totalorder %v16438_v56, 0  ;;  %v16580_v63 = vld [vmem:[#allocation116_spill] sm:$0xff]  ;;  %v16586_v24 = vld [vmem:[#allocation177_spill] sm:$0xff]  ;;  %v836_v25 = vpop.f32.mrf.mxu1 }
 0x2fe   : > { %v8047_v43 = vsel %vm8044_vm14, %v8046_v35, %v8042_v48  ;;  %v8527_v3 = vsel %vm16575_vm11, %v8494_v41, 0.0  ;;  %v16576_v50 = vsub.f32 1.0, %v14066_v34  ;;  %vm16579_vm0 = vnez %v16578_v42  ;;  %vm16582_vm15 = vmmov %vm16575_vm11  ;;  %v16590_v9 = vld [vmem:[#allocation65_spill] sm:$0xff] }
 0x2ff   : > { %v14301_v12 = vmul.f32 %v14127_v21, %v16574_v2  ;;  %v8048_v13 = vmul.f32 %v8047_v43, %v16577_v62  ;;  %v16581_v35 = vsel %vm16579_vm0, %v16580_v63, 0.0  ;;  %v7576_v21 = vpop.xlane.xlu2 %7575  ;;  %v8528_v55 = vsel %vm16582_vm15, %v8495_v20, 0.0  ;;  %vm16583_vm7 = vmmov %vm16575_vm11  ;;  %v16589_v2 = vld [vmem:[#allocation195_spill] sm:$0xff]  ;;  %v16601_v63 = vld [vmem:[#allocation141_spill] sm:$0xff] }
 0x300   : > { %v8465_v49 = vmul.f32 %v13876_v18, %v16576_v50  ;;  %7693 = vadd.xlane.f32.xlu0 %v16581_v35  ;;  %v8532_v41 = vsel %vm16583_vm7, %v8499_v29, 0.0  ;;  %v8466_v34 = vmul.f32 %v13872_v36, %v8242_v33  ;;  %v8247_v18 = vsub.f32 1.0, %v8033_v14  ;;  %v16587_v36 = vld [vmem:[#allocation20_spill] sm:$0xff]  ;;  %v16588_v33 = vld [vmem:[#allocation69_spill] sm:$0xff]  ;;  %v7578_v50 = vpop.xlane.xlu0 %7577 }
 0x301   : > { %vm16584_vm5 = vcmp.eq.s32.totalorder %v16438_v56, 1  ;;  %v7988_v48 = vmul.f32 %v7987_v61, %v16586_v24  ;;  %v8248_v43 = vsub.f32 1.0, %v8048_v13  ;;  %v8068_v14 = vadd.f32 %v16588_v33, %v16587_v36  ;;  %v16613_v13 = vld [vmem:[#allocation137_spill] sm:$0xff] }
 0x302   : > { %v8562_v11 = vsel %vm16584_vm5, %v7580_v57, 0.0  ;;  %vm16585_vm12 = vmmov %vm16584_vm5  ;;  %v14330_v29 = vmul.f32 %v13951_v8, %v8247_v18  ;;  %vm8114_vm6 = vweird.f32 %v16589_v2  ;;  %vm16591_vm14 = vcmp.lt.s32.totalorder %v16590_v9, 8 }
 0x303   : > { %v8560_v39 = vsel %vm16585_vm12, %v7576_v21, 0.0  ;;  %v14325_v6 = vadd.f32 %v8562_v11, %v14213_v47  ;;  %v8497_v19 = vsel %vm16591_vm14, %v8465_v49, 0.0  ;;  %v14338_v61 = vmul.f32 %v13941_v30, %v8248_v43  ;;  %vm16592_vm0 = vmmov %vm16584_vm5  ;;  %v16599_v49 = vld [vmem:[#allocation51_spill] sm:$0xff] }
 0x304   : > { %v14327_v20 = vadd.f32 %v8560_v39, %v8527_v3  ;;  %vm8070_vm11 = vweird.f32 %v16588_v33  ;;  %v8073_v47 = vand.u32 2147483647, %v16554_v40  ;;  %v8561_v8 = vsel %vm16592_vm0, %v7578_v50, 0.0  ;;  %v16593_v3 = vld [vmem:[#allocation76_spill] sm:$0xff]  ;;  %v16603_v21 = vld [vmem:[#allocation143_spill] sm:$0xff]  ;;  %v1065_v50 = vpop.f32.mrf.mxu3 }
 0x305   : > { %vm16594_vm15 = vcmp.lt.s32.totalorder %v16593_v3, 8  ;;  %vm16595_vm7 = vweird.f32 %v16554_v40  ;;  %v8083_v30 = vadd.f32 %v16599_v49, %v16598_v5  ;;  %vm8085_vm12 = vweird.f32 %v16599_v49  ;;  %v16611_v43 = vld [vmem:[#allocation75_spill] sm:$0xff]  ;;  %v16627_v50 = vld [vmem:[#allocation81_spill] sm:$0xff] }
 0x306   : > { %v8498_v62 = vsel %vm16594_vm15, %v8466_v34, 0.0  ;;  %vm14348_vm5 = vmor %vm16595_vm7, %vm8070_vm11  ;;  %v14355_v57 = vadd.f32 %v8561_v8, %v8528_v55  ;;  %v16602_v35 = vsel %vm16330_vm1, %v16601_v63, 0.0  ;;  %vm16604_vm14 = vnez %v16603_v21  ;;  %v16605_v34 = vld [vmem:[#allocation131_spill] sm:$0xff]  ;;  %v16617_v63 = vld [vmem:[#allocation136_spill] sm:$0xff] }
 0x307   : > { %7701 = vadd.xlane.f32.xlu1 %v16602_v35  ;;  %v16606_v18 = vsel %vm16604_vm14, %v16605_v34, 0.0  ;;  %v8244_v11 = vsub.f32 1.0, %v7988_v48  ;;  %v8072_v39 = vsel %vm14348_vm5, %v16588_v33, %v8068_v14  ;;  %v16607_v24 = vand.u32 2147483648, %v16554_v40  ;;  %v952_v14 = vpop.f32.mrf.mxu2  ;;  %v16621_v21 = vld [vmem:[#allocation16_spill] sm:$0xff]  ;;  %v16626_v55 = vld [vmem:[#allocation43_spill] sm:$0xff] }
 0x308   : > { %7697 = vadd.xlane.f32.xlu2 %v16606_v18  ;;  %vm16608_vm11 = vweird.f32 %v16561_v16  ;;  %vm8129_vm1 = vweird.f32 %v16611_v43  ;;  %v8450_v36 = vadd.f32 6.0, %v14069_v58  ;;  %vm8074_vm15 = vcmp.eq.f32.partialorder %v8073_v47, 8.507059e+37  ;;  %v7586_v58 = vpop.xlane.xlu1 %7585  ;;  %v16615_v47 = vld [vmem:[#allocation147_spill] sm:$0xff] }
 0x309   : > { %v8076_v25 = vor.u32 1.1754944e-38, %v16607_v24  ;;  %vm14372_vm0 = vmor %vm16608_vm11, %vm8085_vm12  ;;  %v8088_v33 = vand.u32 2147483647, %v16561_v16  ;;  %v8468_v40 = vmul.f32 %v13905_v38, %v8244_v11  ;;  %v16612_v8 = vand.u32 2147483648, %v16561_v16  ;;  %v16624_v18 = vld [vmem:[#allocation95_spill] sm:$0xff] }
 0x30a   : > { %v8087_v48 = vsel %vm14372_vm0, %v16599_v49, %v8083_v30  ;;  %v16614_v5 = vsub.f32 1.0, %v16613_v13  ;;  %vm16616_vm7 = vnez %v16615_v47  ;;  %v7582_v49 = vpop.xlane.xlu2 %7581  ;;  %vm16619_vm5 = vcmp.eq.s32.totalorder %v16438_v56, 0  ;;  %v16630_v13 = vld [vmem:[#allocation213_spill] sm:$0xff] }
 0x30b   : > { %v8077_v9 = vsel %vm8074_vm15, %v8076_v25, %v8072_v39  ;;  %v8091_v3 = vor.u32 1.1754944e-38, %v16612_v8  ;;  %v16618_v35 = vsel %vm16616_vm7, %v16617_v63, 0.0  ;;  %v8530_v38 = vsel %vm16619_vm5, %v8497_v19, 0.0  ;;  %vm16620_vm12 = vmmov %vm16619_vm5  ;;  %v839_v39 = vpop.f32.mrf.mxu1  ;;  %v16629_v8 = vld [vmem:[#allocation88_spill] sm:$0xff] }
 0x30c   : > { %v14387_v42 = vmul.f32 %v8447_v22, %v16614_v5  ;;  %7699 = vadd.xlane.f32.xlu0 %v16618_v35  ;;  %v8531_v30 = vsel %vm16620_vm12, %v8498_v62, 0.0  ;;  %v8078_v16 = vmul.f32 %v8077_v9, %v16621_v21  ;;  %vm8089_vm14 = vcmp.eq.f32.partialorder %v8088_v33, 8.507059e+37  ;;  %v7584_v33 = vpop.xlane.xlu0 %7583  ;;  %v16642_v39 = vld [vmem:[#allocation90_spill] sm:$0xff] }
 0x30d   : > { %vm16622_vm11 = vcmp.eq.s32.totalorder %v16438_v56, 1  ;;  %vm16625_vm15 = vcmp.lt.s32.totalorder %v16624_v18, 8  ;;  %v8092_v24 = vsel %vm8089_vm14, %v8091_v3, %v8087_v48  ;;  %vm16628_vm7 = vcmp.lt.s32.totalorder %v16627_v50, 8 }
 0x30e   : > { %v8565_v22 = vsel %vm16622_vm11, %v7586_v58, 0.0  ;;  %vm16623_vm0 = vmmov %vm16622_vm11  ;;  %v8502_v11 = vsel %vm16625_vm15, %v14123_v10, 0.0  ;;  %v8250_v62 = vsub.f32 1.0, %v8078_v16  ;;  %v8093_v14 = vmul.f32 %v8092_v24, %v16626_v55  ;;  %v16631_v58 = vld [vmem:[#allocation39_spill] sm:$0xff]  ;;  %v16638_v16 = vld [vmem:[#allocation100_spill] sm:$0xff]  ;;  %v1068_v55 = vpop.f32.mrf.mxu3 }
 0x30f   : > { %v8563_v34 = vsel %vm16623_vm0, %v7582_v49, 0.0  ;;  %v14405_v25 = vadd.f32 %v8565_v22, %v8532_v41  ;;  %v8500_v9 = vsel %vm16628_vm7, %v8468_v40, 0.0  ;;  %v8113_v5 = vadd.f32 %v16630_v13, %v16629_v8  ;;  %vm16632_vm14 = vmmov %vm16623_vm0  ;;  %v16639_v22 = vld [vmem:[#allocation108_spill] sm:$0xff] }
 0x310   : > { %v14407_v19 = vadd.f32 %v8563_v34, %v8530_v38  ;;  %vm8115_vm5 = vweird.f32 %v16630_v13  ;;  %v8118_v10 = vand.u32 2147483647, %v16589_v2  ;;  %vm8159_vm12 = vweird.f32 %v16631_v58  ;;  %v16636_v38 = vld [vmem:[#allocation150_spill] sm:$0xff]  ;;  %v7592_v50 = vpop.xlane.xlu1 %7591 }
 0x311   : > { %v8564_v41 = vsel %vm16632_vm14, %v7584_v33, 0.0  ;;  %v14420_v48 = vmul.f32 %v14031_v54, %v8250_v62  ;;  %v8251_v3 = vsub.f32 1.0, %v8093_v14  ;;  %vm8116_vm11 = vmor %vm8114_vm6, %vm8115_vm5  ;;  %v16633_v40 = vand.u32 2147483648, %v16589_v2  ;;  %v955_v62 = vpop.f32.mrf.mxu2  ;;  %v16644_v14 = vld [vmem:[#allocation58_spill] sm:$0xff] }
 0x312   : > { %v14426_v63 = vadd.f32 %v8564_v41, %v8531_v30  ;;  %v16634_v35 = vsel %vm16035_vm8, %v16317_v4, 0.0  ;;  %v16637_v21 = vsel %vm16353_vm10, %v16636_v38, 0.0  ;;  %v8117_v54 = vsel %vm8116_vm11, %v16630_v13, %v8113_v5  ;;  %v16640_v4 = vld [vmem:[#allocation71_spill] sm:$0xff]  ;;  %v7588_v5 = vpop.xlane.xlu2 %7587 }
 0x313   : > { %v8121_v47 = vor.u32 1.1754944e-38, %v16633_v40  ;;  %7707 = vadd.xlane.f32.xlu1 %v16634_v35  ;;  %7703 = vadd.xlane.f32.xlu2 %v16637_v21  ;;  %vm8119_vm0 = vcmp.eq.f32.partialorder %v8118_v10, 8.507059e+37  ;;  %v8128_v34 = vadd.f32 %v16639_v22, %v16638_v16  ;;  %v14440_v2 = vadd.f32 6.0, %v14000_v27  ;;  %v16651_v10 = vld [vmem:[#allocation118_spill] sm:$0xff]  ;;  %v16653_v40 = vld [vmem:[#allocation23_spill] sm:$0xff]  ;;  %v842_v21 = vpop.f32.mrf.mxu1 }
 0x314   : > { %v14443_v30 = vmul.f32 %v13997_v17, %v8251_v3  ;;  %vm8130_vm8 = vweird.f32 %v16639_v22  ;;  %vm8174_vm6 = vweird.f32 %v16640_v4  ;;  %vm16641_vm10 = vcmp.eq.s32.totalorder %v16438_v56, 0  ;;  %v16664_v17 = vld [vmem:[#allocation114_spill] sm:$0xff] }
 0x315   : > { %v8122_v59 = vsel %vm8119_vm0, %v8121_v47, %v8117_v54  ;;  %v8535_v18 = vsel %vm16641_vm10, %v8502_v11, 0.0  ;;  %vm16643_vm15 = vcmp.lt.s32.totalorder %v16642_v39, 8  ;;  %vm14455_vm7 = vmor %vm8129_vm1, %vm8130_vm8  ;;  %v8133_v33 = vand.u32 2147483647, %v16611_v43  ;;  %v16648_v11 = vld [vmem:[#allocation157_spill] sm:$0xff] }
 0x316   : > { %v8501_v24 = vsel %vm16643_vm15, %v14250_v0, 0.0  ;;  %v8123_v27 = vmul.f32 %v8122_v59, %v16644_v14  ;;  %v16649_v13 = vsel %vm16362_vm4, %v16648_v11, 0.0  ;;  %vm16650_vm5 = vmmov %vm16641_vm10  ;;  %vm16652_vm14 = vcmp.lt.s32.totalorder %v16651_v10, 8  ;;  %v16661_v14 = vld [vmem:[#allocation130_spill] sm:$0xff] }
 0x317   : > { %7705 = vadd.xlane.f32.xlu0 %v16649_v13  ;;  %v8533_v0 = vsel %vm16650_vm5, %v8500_v9, 0.0  ;;  %v8505_v41 = vsel %vm16652_vm14, %v14204_v46, 0.0  ;;  %v8132_v3 = vsel %vm14455_vm7, %v16639_v22, %v8128_v34  ;;  %v16654_v47 = vsub.f32 1.0, %v16653_v40  ;;  %vm16658_vm11 = vmmov %vm16650_vm5  ;;  %v16659_v34 = vld [vmem:[#allocation97_spill] sm:$0xff]  ;;  %v16668_v13 = vld [vmem:[#allocation167_spill] sm:$0xff] }
 0x318   : > { %vm16655_vm1 = vcmp.eq.s32.totalorder %v16438_v56, 1  ;;  %v8253_v9 = vsub.f32 1.0, %v8123_v27  ;;  %v16657_v54 = vand.u32 2147483648, %v16611_v43  ;;  %v8534_v22 = vsel %vm16658_vm11, %v8501_v24, 0.0  ;;  %v16662_v43 = vld [vmem:[#allocation104_spill] sm:$0xff] }
 0x319   : > { %v14474_v35 = vmul.f32 %v8450_v36, %v16654_v47  ;;  %v8568_v49 = vsel %vm16655_vm1, %v7592_v50, 0.0  ;;  %vm16656_vm4 = vmmov %vm16655_vm1  ;;  %vm8134_vm0 = vcmp.eq.f32.partialorder %v8133_v33, 8.507059e+37  ;;  %v7590_v36 = vpop.xlane.xlu0 %7589  ;;  %vm16660_vm8 = vcmp.lt.s32.totalorder %v16659_v34, 8  ;;  %v16665_v33 = vld [vmem:[#allocation107_spill] sm:$0xff]  ;;  %v16672_v40 = vld [vmem:[#allocation96_spill] sm:$0xff] }
 0x31a   : > { %v8566_v38 = vsel %vm16656_vm4, %v7588_v5, 0.0  ;;  %v8136_v16 = vor.u32 1.1754944e-38, %v16657_v54  ;;  %v14482_v46 = vadd.f32 %v8568_v49, %v8535_v18  ;;  %v8503_v39 = vsel %vm16660_vm8, %v14330_v29, 0.0  ;;  %vm16663_vm10 = vmmov %vm16655_vm1  ;;  %v16673_v47 = vld [vmem:[#allocation127_spill] sm:$0xff]  ;;  %v1071_v54 = vpop.f32.mrf.mxu3  ;;  %v16678_v34 = vld [vmem:[#allocation176_spill] sm:$0xff] }
 0x31b   : > { %v14484_v59 = vadd.f32 %v8566_v38, %v8533_v0  ;;  %v14492_v62 = vmul.f32 %v14207_v23, %v8253_v9  ;;  %v8158_v27 = vadd.f32 %v16662_v43, %v16661_v14  ;;  %v8567_v18 = vsel %vm16663_vm10, %v7590_v36, 0.0  ;;  %vm16676_vm4 = vmmov %vm16650_vm5  ;;  %v958_v9 = vpop.f32.mrf.mxu2  ;;  %v16680_v14 = vld [vmem:[#allocation113_spill] sm:$0xff]  ;;  %v845_v11 = vpop.f32.mrf.mxu1 }
 0x31c   : > { %v8137_v55 = vsel %vm8134_vm0, %v8136_v16, %v8132_v3  ;;  %vm8160_vm15 = vweird.f32 %v16662_v43  ;;  %v8163_v24 = vand.u32 2147483647, %v16631_v58  ;;  %vm8204_vm7 = vweird.f32 %v16665_v33  ;;  %v16671_v3 = vld [vmem:[#allocation148_spill] sm:$0xff]  ;;  %v16693_v9 = vld [vmem:[#allocation101_spill] sm:$0xff] }
 0x31d   : > { %v8138_v50 = vmul.f32 %v8137_v55, %v16664_v17  ;;  %v14502_v8 = vadd.f32 %v8567_v18, %v8534_v22  ;;  %v16666_v23 = vsel %vm16428_vm9, %v16342_v31, 0.0  ;;  %v8538_v29 = vsel %vm16650_vm5, %v8505_v41, 0.0  ;;  %vm8161_vm14 = vmor %vm8159_vm12, %vm8160_vm15  ;;  %v16674_v31 = vld [vmem:[#allocation139_spill] sm:$0xff]  ;;  %v7598_v22 = vpop.xlane.xlu1 %7597 }
 0x31e   : > { %7713 = vadd.xlane.f32.xlu1 %v16666_v23  ;;  %v16669_v5 = vsel %vm16403_vm13, %v16668_v13, 0.0  ;;  %v16670_v0 = vand.u32 2147483648, %v16631_v58  ;;  %v8173_v44 = vadd.f32 %v16672_v40, %v16671_v3  ;;  %vm8219_vm9 = vweird.f32 %v16673_v47  ;;  %v16684_v17 = vld [vmem:[#allocation111_spill] sm:$0xff]  ;;  %vm16689_vm5 = vmmov %vm16676_vm4 }
 0x31f   : > { %7709 = vadd.xlane.f32.xlu2 %v16669_v5  ;;  %vm16675_vm1 = vcmp.lt.s32.totalorder %v16674_v31, 8  ;;  %v8254_v49 = vsub.f32 1.0, %v8138_v50  ;;  %v8162_v38 = vsel %vm8161_vm14, %v16662_v43, %v8158_v27  ;;  %vm8164_vm13 = vcmp.eq.f32.partialorder %v8163_v24, 8.507059e+37 }
 0x320   : > { %v8166_v10 = vor.u32 1.1754944e-38, %v16670_v0  ;;  %v8508_v41 = vsel %vm16675_vm1, %v14301_v12, 0.0  ;;  %v8536_v21 = vsel %vm16676_vm4, %v8503_v39, 0.0  ;;  %vm8175_vm12 = vweird.f32 %v16672_v40  ;;  %v7594_v12 = vpop.xlane.xlu2 %7593  ;;  %v16682_v39 = vld [vmem:[#allocation124_spill] sm:$0xff]  ;;  %vm16695_vm1 = vmmov %vm16676_vm4 }
 0x321   : > { %v8178_v16 = vand.u32 2147483647, %v16640_v4  ;;  %v16679_v55 = vsel %vm12393_vm2, %v16678_v34, 0.0  ;;  %vm16681_vm11 = vcmp.lt.s32.totalorder %v16680_v14, 8  ;;  %vm16683_vm0 = vcmp.lt.s32.totalorder %v16682_v39, 8  ;;  %vm8176_vm8 = vmor %vm8174_vm6, %vm8175_vm12  ;;  %v7596_v3 = vpop.xlane.xlu0 %7595  ;;  %v16697_v34 = vld [vmem:[#allocation93_spill] sm:$0xff] }
 0x322   : > { %v8167_v58 = vsel %vm8164_vm13, %v8166_v10, %v8162_v38  ;;  %7711 = vadd.xlane.f32.xlu0 %v16679_v55  ;;  %v8504_v43 = vsel %vm16681_vm11, %v14338_v61, 0.0  ;;  %v8506_v27 = vsel %vm16683_vm0, %v14420_v48, 0.0  ;;  %v14540_v18 = vmul.f32 %v14113_v26, %v8254_v49  ;;  %vm16685_vm2 = vmmov %vm16663_vm10  ;;  %v16698_v55 = vld [vmem:[#allocation142_spill] sm:$0xff] }
 0x323   : > { %v8168_v50 = vmul.f32 %v8167_v58, %v16684_v17  ;;  %v8571_v24 = vsel %vm16685_vm2, %v7598_v22, 0.0  ;;  %vm16686_vm10 = vmmov %vm16685_vm2  ;;  %v8177_v61 = vsel %vm8176_vm8, %v16672_v40, %v8173_v44  ;;  %v16687_v13 = vand.u32 2147483648, %v16640_v4  ;;  %v16691_v40 = vld [vmem:[#allocation117_spill] sm:$0xff]  ;;  %v961_v14 = vpop.f32.mrf.mxu2 }
 0x324   : > { %v8569_v23 = vsel %vm16686_vm10, %v7594_v12, 0.0  ;;  %v14552_v5 = vadd.f32 %v8571_v24, %v8538_v29  ;;  %vm8179_vm15 = vcmp.eq.f32.partialorder %v8178_v16, 8.507059e+37  ;;  %v8451_v10 = vadd.f32 6.0, %v14095_v37  ;;  %vm16688_vm6 = vmmov %vm16676_vm4 }
 0x325   : > { %v8181_v48 = vor.u32 1.1754944e-38, %v16687_v13  ;;  %v14554_v26 = vadd.f32 %v8569_v23, %v8536_v21  ;;  %v8256_v0 = vsub.f32 1.0, %v8168_v50  ;;  %v8537_v31 = vsel %vm16688_vm6, %v8504_v43, 0.0  ;;  %vm16690_vm14 = vmmov %vm16685_vm2  ;;  %v16692_v21 = vld [vmem:[#allocation17_spill] sm:$0xff]  ;;  %v1074_v43 = vpop.f32.mrf.mxu3  ;;  %v7604_v17 = vpop.xlane.xlu1 %7603 }
 0x326   : > { %v8541_v49 = vsel %vm16689_vm5, %v8508_v41, 0.0  ;;  %v8570_v4 = vsel %vm16690_vm14, %v7596_v3, 0.0  ;;  %v8203_v54 = vadd.f32 %v16693_v9, %v16692_v21  ;;  %v16694_v58 = vsel %vm16473_vm3, %v16354_v53, 0.0  ;;  %v16699_v53 = vld [vmem:[#allocation132_spill] sm:$0xff]  ;;  %vm16704_vm0 = vmmov %vm16685_vm2  ;;  %v16707_v21 = vld [vmem:[#allocation35_spill] sm:$0xff] }
 0x327   : > { %v8182_v38 = vsel %vm8179_vm15, %v8181_v48, %v8177_v61  ;;  %v14564_v29 = vmul.f32 %v14440_v2, %v8256_v0  ;;  %v14569_v37 = vadd.f32 %v8570_v4, %v8537_v31  ;;  %7715 = vadd.xlane.f32.xlu2 %v16694_v58  ;;  %v8539_v41 = vsel %vm16695_vm1, %v8506_v27, 0.0  ;;  %v848_v0 = vpop.f32.mrf.mxu1  ;;  %v16706_v3 = vld [vmem:[#allocation200_spill] sm:$0xff]  ;;  %vm16708_vm2 = vmmov %vm16695_vm1 }
 0x328   : > { %v8183_v44 = vmul.f32 %v8182_v38, %v16691_v40  ;;  %vm8205_vm13 = vweird.f32 %v16693_v9  ;;  %v8208_v2 = vand.u32 2147483647, %v16665_v33  ;;  %v16696_v22 = vand.u32 2147483648, %v16665_v33  ;;  %v7600_v50 = vpop.xlane.xlu2 %7599  ;;  %vm16709_vm10 = vmmov %vm16704_vm0 }
 0x329   : > { %vm8206_vm4 = vmor %vm8204_vm7, %vm8205_vm13  ;;  %v8218_v1 = vadd.f32 %v16698_v55, %v16697_v34  ;;  %vm8220_vm3 = vweird.f32 %v16698_v55  ;;  %vm16700_vm12 = vcmp.lt.s32.totalorder %v16699_v53, 8  ;;  %v8223_v33 = vand.u32 2147483647, %v16673_v47 }
 0x32a   : > { %v8257_v16 = vsub.f32 1.0, %v8183_v44  ;;  %v8211_v36 = vor.u32 1.1754944e-38, %v16696_v22  ;;  %v8507_v12 = vsel %vm16700_vm12, %v14443_v30, 0.0  ;;  %v8207_v39 = vsel %vm8206_vm4, %v16693_v9, %v8203_v54  ;;  %vm14592_vm7 = vmor %vm8219_vm9, %vm8220_vm3  ;;  %v7602_v44 = vpop.xlane.xlu0 %7601 }
 0x32b   : > { %vm8209_vm11 = vcmp.eq.f32.partialorder %v8208_v2, 8.507059e+37  ;;  %v8222_v30 = vsel %vm14592_vm7, %v16698_v55, %v8218_v1  ;;  %v16703_v11 = vand.u32 2147483648, %v16673_v47  ;;  %v8574_v13 = vsel %vm16704_vm0, %v7604_v17, 0.0  ;;  %vm16705_vm9 = vmmov %vm16704_vm0  ;;  %v964_v55 = vpop.f32.mrf.mxu2 }
 0x32c   : > { %v8481_v24 = vmul.f32 %v14220_v28, %v8257_v16  ;;  %v8212_v23 = vsel %vm8209_vm11, %v8211_v36, %v8207_v39  ;;  %v8572_v48 = vsel %vm16705_vm9, %v7600_v50, 0.0  ;;  %vm8224_vm8 = vcmp.eq.f32.partialorder %v8223_v33, 8.507059e+37  ;;  %vm16714_vm5 = vmmov %vm16695_vm1  ;;  %v16717_v39 = vld [vmem:[#allocation149_spill] sm:$0xff] }
 0x32d   : > { %v8226_v61 = vor.u32 1.1754944e-38, %v16703_v11  ;;  %v8213_v31 = vmul.f32 %v8212_v23, %v16706_v3  ;;  %v14608_v38 = vadd.f32 %v8574_v13, %v8541_v49  ;;  %v14610_v28 = vadd.f32 %v8572_v48, %v8539_v41  ;;  %v16710_v49 = vld [vmem:[#allocation156_spill] sm:$0xff]  ;;  %v1077_v1 = vpop.f32.mrf.mxu3  ;;  %vm16715_vm14 = vmmov %vm16704_vm0 }
 0x32e   : > { %v8452_v40 = vadd.f32 6.0, %v14059_v52  ;;  %v8540_v54 = vsel %vm16708_vm2, %v8507_v12, 0.0  ;;  %v8573_v58 = vsel %vm16709_vm10, %v7602_v44, 0.0  ;;  %vm16711_vm15 = vcmp.lt.s32.totalorder %v16710_v49, 8  ;;  %v16712_v52 = vld [vmem:[#allocation138_spill] sm:$0xff]  ;;  %v7610_v12 = vpop.xlane.xlu1 %7609  ;;  %vm16716_vm13 = vmmov %vm16704_vm0 }
 0x32f   : > { %v8227_v4 = vsel %vm8224_vm8, %v8226_v61, %v8222_v30  ;;  %v8259_v47 = vsub.f32 1.0, %v8213_v31  ;;  %v14618_v2 = vadd.f32 %v8573_v58, %v8540_v54  ;;  %v8511_v41 = vsel %vm16711_vm15, %v14387_v42, 0.0  ;;  %v851_v27 = vpop.f32.mrf.mxu1  ;;  %vm16719_vm3 = vmmov %vm16695_vm1  ;;  %v16721_v61 = vld [vmem:[#allocation178_spill] sm:$0xff] }
 0x330   : > { %v8228_v9 = vmul.f32 %v8227_v4, %v16707_v21  ;;  %vm16713_vm6 = vcmp.lt.s32.totalorder %v16712_v52, 8  ;;  %v8544_v53 = vsel %vm16714_vm5, %v8511_v41, 0.0  ;;  %v7606_v14 = vpop.xlane.xlu2 %7605  ;;  %v8577_v43 = vsel %vm16715_vm14, %v7610_v12, 0.0  ;;  %vm16720_vm12 = vmmov %vm16704_vm0  ;;  %v16728_v21 = vld [vmem:[#allocation171_spill] sm:$0xff] }
 0x331   : > { %v8483_v16 = vmul.f32 %v8451_v10, %v8259_v47  ;;  %v8509_v36 = vsel %vm16713_vm6, %v14492_v62, 0.0  ;;  %v8575_v10 = vsel %vm16716_vm13, %v7606_v14, 0.0  ;;  %vm16718_vm4 = vcmp.lt.s32.totalorder %v16717_v39, 8  ;;  %vm16725_vm0 = vmmov %vm16695_vm1 }
 0x332   : > { %v8260_v22 = vsub.f32 1.0, %v8228_v9  ;;  %v8542_v42 = vsel %vm16695_vm1, %v8509_v36, 0.0  ;;  %v8510_v62 = vsel %vm16718_vm4, %v14540_v18, 0.0  ;;  %v14637_v33 = vadd.f32 %v8577_v43, %v8544_v53  ;;  %v7608_v50 = vpop.xlane.xlu0 %7607  ;;  %v16723_v18 = vld [vmem:[#allocation159_spill] sm:$0xff]  ;;  %vm16726_vm8 = vmmov %vm16725_vm0 }
 0x333   : > { %v14639_v17 = vadd.f32 %v8575_v10, %v8542_v42  ;;  %v8543_v23 = vsel %vm16719_vm3, %v8510_v62, 0.0  ;;  %v8576_v30 = vsel %vm16720_vm12, %v7608_v50, 0.0  ;;  %vm16722_vm11 = vcmp.lt.s32.totalorder %v16721_v61, 8  ;;  %v967_v0 = vpop.f32.mrf.mxu2  ;;  %vm16727_vm2 = vmmov %vm16705_vm9  ;;  %v16736_v10 = vld [vmem:[#allocation188_spill] sm:$0xff] }
 0x334   : > { %v8484_v34 = vmul.f32 %v8452_v40, %v8260_v22  ;;  %v14645_v11 = vadd.f32 %v8576_v30, %v8543_v23  ;;  %v8514_v13 = vsel %vm16722_vm11, %v14474_v35, 0.0  ;;  %vm16724_vm7 = vcmp.lt.s32.totalorder %v16723_v18, 8  ;;  %vm16730_vm15 = vmmov %vm16725_vm0 }
 0x335   : > { %v8512_v48 = vsel %vm16724_vm7, %v14564_v29, 0.0  ;;  %v1080_v3 = vpop.f32.mrf.mxu3  ;;  %v8547_v31 = vsel %vm16725_vm0, %v8514_v13, 0.0  ;;  %vm16729_vm10 = vcmp.lt.s32.totalorder %v16728_v21, 8  ;;  %vm16731_vm6 = vmmov %vm16727_vm2  ;;  %vm8615_vm5 = vcmp.eq.s32.totalorder %v16438_v56, 2 }
 0x336   : > { %v7616_v4 = vpop.xlane.xlu1 %7615  ;;  %v8545_v47 = vsel %vm16726_vm8, %v8512_v48, 0.0  ;;  %v8513_v29 = vsel %vm16729_vm10, %v8481_v24, 0.0  ;;  %v16732_v24 = vld [vmem:[#allocation174_spill] sm:$0xff]  ;;  %vm16734_vm1 = vmmov %vm16725_vm0  ;;  %vm16737_vm4 = vcmp.lt.s32.totalorder %v16736_v10, 8 }
 0x337   : > { %v8580_v44 = vsel %vm16705_vm9, %v7616_v4, 0.0  ;;  %v854_v9 = vpop.f32.mrf.mxu1  ;;  %v8546_v41 = vsel %vm16730_vm15, %v8513_v29, 0.0  ;;  %vm16733_vm14 = vcmp.lt.s32.totalorder %v16732_v24, 8  ;;  %vm16735_vm13 = vmmov %vm16727_vm2  ;;  %v8516_v39 = vsel %vm16737_vm4, %v8484_v34, 0.0 }
 0x338   : > { %v7612_v40 = vpop.xlane.xlu2 %7611  ;;  %v14663_v54 = vadd.f32 %v8580_v44, %v8547_v31  ;;  %v8515_v36 = vsel %vm16733_vm14, %v8483_v16, 0.0  ;;  %vm16738_vm3 = vmmov %vm16725_vm0 }
 0x339   : > { %v8578_v35 = vsel %vm16727_vm2, %v7612_v40, 0.0  ;;  %v8548_v43 = vsel %vm16734_vm1, %v8515_v36, 0.0  ;;  %v8549_v23 = vsel %vm16738_vm3, %v8516_v39, 0.0  ;;  %vm16739_vm12 = vmmov %vm16727_vm2 }
 0x33a   : > { %v14665_v58 = vadd.f32 %v8578_v35, %v8545_v47  ;;  %v7614_v49 = vpop.xlane.xlu0 %7613 }
 0x33b   : > { %v8579_v22 = vsel %vm16731_vm6, %v7614_v49, 0.0  ;;  %v970_v55 = vpop.f32.mrf.mxu2 }
 0x33c   : > { %v14672_v52 = vadd.f32 %v8579_v22, %v8546_v41  ;;  %v16740_v22 = vld [vmem:[#allocation160_spill] sm:$0xff]  ;;  %v16741_v55 = vld [vmem:[#allocation106_spill] sm:$0xff] }
 0x33d   : > { %v1083_v1 = vpop.f32.mrf.mxu3 }
 0x33e   : > { %v7654_v53 = vpop.xlane.xlu1 %7653 }
 0x33f   : > { %v8616_v14 = vsel %vm8615_vm5, %v7654_v53, 0.0  ;;  %v857_v62 = vpop.f32.mrf.mxu1 }
 0x340   : > { %v7618_v12 = vpop.xlane.xlu2 %7617  ;;  %v8648_v27 = vadd.f32 %v8616_v14, %v14063_v45 }
 0x341   : > { %v8581_v42 = vsel %vm16735_vm13, %v7618_v12, 0.0 }
 0x342   : > { %v14688_v16 = vadd.f32 %v8581_v42, %v8548_v43  ;;  %v7620_v50 = vpop.xlane.xlu0 %7619  ;;  %8680 = vst [vmem:[%s14690_s27] sm:$0xff] %v8648_v27 }
 0x343   : > { %v8582_v30 = vsel %vm16739_vm12, %v7620_v50, 0.0  ;;  %v973_v61 = vpop.f32.mrf.mxu2 }
 0x344   : > { %v14697_v34 = vadd.f32 %v8582_v30, %v8549_v23  ;;  %v16742_v23 = vld [vmem:[#allocation172_spill] sm:$0xff] }
 0x345   : > { %v1086_v45 = vpop.f32.mrf.mxu3 }
 0x346   : > { %v7660_v13 = vpop.xlane.xlu1 %7659 }
 0x347   : > { %v8619_v48 = vsel %vm8615_vm5, %v7660_v13, 0.0  ;;  %v860_v3 = vpop.f32.mrf.mxu1 }
 0x348   : > { %v7656_v18 = vpop.xlane.xlu2 %7655  ;;  %v8651_v31 = vadd.f32 %v8619_v48, %v14156_v32 }
 0x349   : > { %v8617_v0 = vsel %vm8615_vm5, %v7656_v18, 0.0 }
 0x34a   : > { %v8649_v4 = vadd.f32 %v8617_v0, %v14097_v7  ;;  %v7658_v40 = vpop.xlane.xlu0 %7657  ;;  %8683 = vst [vmem:[%s14690_s27 + $0x18] sm:$0xff] %v8651_v31 }
 0x34b   : > { %v8618_v44 = vsel %vm8615_vm5, %v7658_v40, 0.0  ;;  %v976_v35 = vpop.f32.mrf.mxu2 }
 0x34c   : > { %8681 = vst [vmem:[%s14690_s27 + $0x8] sm:$0xff] %v8649_v4  ;;  %v8650_v47 = vadd.f32 %v8618_v44, %v14061_v51 }
 0x34d   : > { %v1089_v21 = vpop.f32.mrf.mxu3 }
 0x34e   : > { %8682 = vst [vmem:[%s14690_s27 + $0x10] sm:$0xff] %v8650_v47  ;;  %v7666_v29 = vpop.xlane.xlu1 %7665 }
 0x34f   : > { %v8622_v32 = vsel %vm8615_vm5, %v7666_v29, 0.0  ;;  %v863_v49 = vpop.f32.mrf.mxu1 }
 0x350   : > { %v7662_v9 = vpop.xlane.xlu2 %7661  ;;  %v8654_v41 = vadd.f32 %v8622_v32, %v14255_v15 }
 0x351   : > { %v8620_v7 = vsel %vm8615_vm5, %v7662_v9, 0.0 }
 0x352   : > { %v8652_v24 = vadd.f32 %v8620_v7, %v16740_v22  ;;  %v7664_v36 = vpop.xlane.xlu0 %7663  ;;  %8686 = vst [vmem:[%s14690_s27 + $0x30] sm:$0xff] %v8654_v41 }
 0x353   : > { %v8621_v51 = vsel %vm8615_vm5, %v7664_v36, 0.0  ;;  %v979_v53 = vpop.f32.mrf.mxu2 }
 0x354   : > { %8684 = vst [vmem:[%s14690_s27 + $0x20] sm:$0xff] %v8652_v24  ;;  %v8653_v1 = vadd.f32 %v8621_v51, %v16741_v55 }
 0x355   : > { %v1092_v12 = vpop.f32.mrf.mxu3 }
 0x356   : > { %8685 = vst [vmem:[%s14690_s27 + $0x28] sm:$0xff] %v8653_v1  ;;  %v7672_v14 = vpop.xlane.xlu1 %7671 }
 0x357   : > { %v8625_v15 = vsel %vm8615_vm5, %v7672_v14, 0.0  ;;  %v866_v10 = vpop.f32.mrf.mxu1 }
 0x358   : > { %v7668_v43 = vpop.xlane.xlu2 %7667  ;;  %v8657_v39 = vadd.f32 %v8625_v15, %v14327_v20 }
 0x359   : > { %v8623_v42 = vsel %vm8615_vm5, %v7668_v43, 0.0 }
 0x35a   : > { %v8655_v62 = vadd.f32 %v8623_v42, %v14284_v60  ;;  %v7670_v27 = vpop.xlane.xlu0 %7669  ;;  %8689 = vst [vmem:[%s14690_s27 + $0x48] sm:$0xff] %v8657_v39 }
 0x35b   : > { %v8624_v50 = vsel %vm8615_vm5, %v7670_v27, 0.0  ;;  %v982_v61 = vpop.f32.mrf.mxu2 }
 0x35c   : > { %8687 = vst [vmem:[%s14690_s27 + $0x38] sm:$0xff] %v8655_v62  ;;  %v8656_v30 = vadd.f32 %v8624_v50, %v16742_v23 }
 0x35d   : > { %v1095_v45 = vpop.f32.mrf.mxu3 }
 0x35e   : > { %8688 = vst [vmem:[%s14690_s27 + $0x40] sm:$0xff] %v8656_v30  ;;  %v7678_v13 = vpop.xlane.xlu1 %7677 }
 0x35f   : > { %v8628_v20 = vsel %vm8615_vm5, %v7678_v13, 0.0  ;;  %v869_v48 = vpop.f32.mrf.mxu1 }
 0x360   : > { %v7674_v18 = vpop.xlane.xlu2 %7673  ;;  %v8660_v0 = vadd.f32 %v8628_v20, %v14407_v19 }
 0x361   : > { %v8626_v60 = vsel %vm8615_vm5, %v7674_v18, 0.0 }
 0x362   : > { %v8658_v3 = vadd.f32 %v8626_v60, %v14355_v57  ;;  %v7676_v31 = vpop.xlane.xlu0 %7675  ;;  %8692 = vst [vmem:[%s14690_s27 + $0x60] sm:$0xff] %v8660_v0 }
 0x363   : > { %v8627_v4 = vsel %vm8615_vm5, %v7676_v31, 0.0  ;;  %v985_v44 = vpop.f32.mrf.mxu2 }
 0x364   : > { %8690 = vst [vmem:[%s14690_s27 + $0x50] sm:$0xff] %v8658_v3  ;;  %v8659_v40 = vadd.f32 %v8627_v4, %v14325_v6 }
 0x365   : > { %v1098_v47 = vpop.f32.mrf.mxu3 }
 0x366   : > { %8691 = vst [vmem:[%s14690_s27 + $0x58] sm:$0xff] %v8659_v40  ;;  %v7684_v35 = vpop.xlane.xlu1 %7683 }
 0x367   : > { %v8631_v19 = vsel %vm8615_vm5, %v7684_v35, 0.0  ;;  %v872_v29 = vpop.f32.mrf.mxu1 }
 0x368   : > { %v7680_v21 = vpop.xlane.xlu2 %7679  ;;  %v8663_v9 = vadd.f32 %v8631_v19, %v14484_v59 }
 0x369   : > { %v8629_v57 = vsel %vm8615_vm5, %v7680_v21, 0.0 }
 0x36a   : > { %v8661_v32 = vadd.f32 %v8629_v57, %v14426_v63  ;;  %v7682_v7 = vpop.xlane.xlu0 %7681  ;;  %8695 = vst [vmem:[%s14690_s27 + $0x78] sm:$0xff] %v8663_v9 }
 0x36b   : > { %v8630_v6 = vsel %vm8615_vm5, %v7682_v7, 0.0  ;;  %v988_v41 = vpop.f32.mrf.mxu2 }
 0x36c   : > { %8693 = vst [vmem:[%s14690_s27 + $0x68] sm:$0xff] %v8661_v32  ;;  %v8662_v49 = vadd.f32 %v8630_v6, %v14405_v25 }
 0x36d   : > { %v1101_v22 = vpop.f32.mrf.mxu3 }
 0x36e   : > { %8694 = vst [vmem:[%s14690_s27 + $0x70] sm:$0xff] %v8662_v49  ;;  %v7690_v24 = vpop.xlane.xlu1 %7689 }
 0x36f   : > { %v8634_v59 = vsel %vm8615_vm5, %v7690_v24, 0.0  ;;  %v875_v51 = vpop.f32.mrf.mxu1 }
 0x370   : > { %v7686_v36 = vpop.xlane.xlu2 %7685  ;;  %v8666_v55 = vadd.f32 %v8634_v59, %v14554_v26 }
 0x371   : > { %v8632_v63 = vsel %vm8615_vm5, %v7686_v36, 0.0 }
 0x372   : > { %v8664_v1 = vadd.f32 %v8632_v63, %v14502_v8  ;;  %v7688_v53 = vpop.xlane.xlu0 %7687  ;;  %8698 = vst [vmem:[%s14690_s27 + $0x90] sm:$0xff] %v8666_v55 }
 0x373   : > { %v8633_v25 = vsel %vm8615_vm5, %v7688_v53, 0.0  ;;  %v991_v14 = vpop.f32.mrf.mxu2 }
 0x374   : > { %8696 = vst [vmem:[%s14690_s27 + $0x80] sm:$0xff] %v8664_v1  ;;  %v8665_v12 = vadd.f32 %v8633_v25, %v14482_v46 }
 0x375   : > { %v1104_v43 = vpop.f32.mrf.mxu3 }
 0x376   : > { %8697 = vst [vmem:[%s14690_s27 + $0x88] sm:$0xff] %v8665_v12  ;;  %v7696_v15 = vpop.xlane.xlu1 %7695 }
 0x377   : > { %v8637_v26 = vsel %vm8615_vm5, %v7696_v15, 0.0  ;;  %v878_v10 = vpop.f32.mrf.mxu1 }
 0x378   : > { %v7692_v42 = vpop.xlane.xlu2 %7691  ;;  %v8669_v39 = vadd.f32 %v8637_v26, %v14610_v28 }
 0x379   : > { %v8635_v8 = vsel %vm8615_vm5, %v7692_v42, 0.0 }
 0x37a   : > { %v8667_v62 = vadd.f32 %v8635_v8, %v14569_v37  ;;  %v7694_v27 = vpop.xlane.xlu0 %7693  ;;  %8701 = vst [vmem:[%s14690_s27 + $0xa8] sm:$0xff] %v8669_v39 }
 0x37b   : > { %v8636_v46 = vsel %vm8615_vm5, %v7694_v27, 0.0  ;;  %v994_v23 = vpop.f32.mrf.mxu2 }
 0x37c   : > { %8699 = vst [vmem:[%s14690_s27 + $0x98] sm:$0xff] %v8667_v62  ;;  %v8668_v50 = vadd.f32 %v8636_v46, %v14552_v5 }
 0x37d   : > { %v1107_v30 = vpop.f32.mrf.mxu3 }
 0x37e   : > { %8700 = vst [vmem:[%s14690_s27 + $0xa0] sm:$0xff] %v8668_v50  ;;  %v7702_v61 = vpop.xlane.xlu1 %7701 }
 0x37f   : > { %v8640_v28 = vsel %vm8615_vm5, %v7702_v61, 0.0  ;;  %v881_v13 = vpop.f32.mrf.mxu1 }
 0x380   : > { %v7698_v45 = vpop.xlane.xlu2 %7697  ;;  %v8672_v18 = vadd.f32 %v8640_v28, %v14639_v17 }
 0x381   : > { %v8638_v37 = vsel %vm8615_vm5, %v7698_v45, 0.0 }
 0x382   : > { %v8670_v20 = vadd.f32 %v8638_v37, %v14618_v2  ;;  %v7700_v60 = vpop.xlane.xlu0 %7699  ;;  %8704 = vst [vmem:[%s14690_s27 + $0xc0] sm:$0xff] %v8672_v18 }
 0x383   : > { %v8639_v5 = vsel %vm8615_vm5, %v7700_v60, 0.0  ;;  %v997_v0 = vpop.f32.mrf.mxu2 }
 0x384   : > { %8702 = vst [vmem:[%s14690_s27 + $0xb0] sm:$0xff] %v8670_v20  ;;  %v8671_v48 = vadd.f32 %v8639_v5, %v14608_v38 }
 0x385   : > { %v1110_v3 = vpop.f32.mrf.mxu3 }
 0x386   : > { %8703 = vst [vmem:[%s14690_s27 + $0xb8] sm:$0xff] %v8671_v48  ;;  %v7708_v31 = vpop.xlane.xlu1 %7707 }
 0x387   : > { %v8643_v2 = vsel %vm8615_vm5, %v7708_v31, 0.0  ;;  %v884_v40 = vpop.f32.mrf.mxu1 }
 0x388   : > { %v7704_v4 = vpop.xlane.xlu2 %7703  ;;  %v8675_v44 = vadd.f32 %v8643_v2, %v14665_v58 }
 0x389   : > { %v8641_v17 = vsel %vm8615_vm5, %v7704_v4, 0.0 }
 0x38a   : > { %v8673_v47 = vadd.f32 %v8641_v17, %v14645_v11  ;;  %v7706_v38 = vpop.xlane.xlu0 %7705  ;;  %8707 = vst [vmem:[%s14690_s27 + $0xd8] sm:$0xff] %v8675_v44 }
 0x38b   : > { %v8642_v35 = vsel %vm8615_vm5, %v7706_v38, 0.0 }
 0x38c   : > { %8705 = vst [vmem:[%s14690_s27 + $0xc8] sm:$0xff] %v8673_v47  ;;  %v8674_v21 = vadd.f32 %v8642_v35, %v14637_v33 }
 0x38e   : > { %8706 = vst [vmem:[%s14690_s27 + $0xd0] sm:$0xff] %v8674_v21 }
 0x391   : > { %v7714_v19 = vpop.xlane.xlu1 %7713 }
 0x392   : > { %v7710_v57 = vpop.xlane.xlu2 %7709  ;;  %v8646_v58 = vsel %vm8615_vm5, %v7714_v19, 0.0 }
 0x393   : > { %v8644_v11 = vsel %vm8615_vm5, %v7710_v57, 0.0  ;;  %v8678_v29 = vadd.f32 %v8646_v58, %v14688_v16 }
 0x394   : > { %v8676_v33 = vadd.f32 %v8644_v11, %v14672_v52 }
 0x395   : > { %v7712_v9 = vpop.xlane.xlu0 %7711  ;;  %8710 = vst [vmem:[%s14690_s27 + $0xf0] sm:$0xff] %v8678_v29 }
 0x396   : > { %v8645_v32 = vsel %vm8615_vm5, %v7712_v9, 0.0  ;;  %8708 = vst [vmem:[%s14690_s27 + $0xe0] sm:$0xff] %v8676_v33 }
 0x397   : > { %v8677_v7 = vadd.f32 %v8645_v32, %v14663_v54 }
 0x399   : > { %8709 = vst [vmem:[%s14690_s27 + $0xe8] sm:$0xff] %v8677_v7 }
 0x39a   : > { %v7716_v6 = vpop.xlane.xlu2 %7715 }
 0x39b   : > { %v8647_v16 = vsel %vm8615_vm5, %v7716_v6, 0.0 }
 0x39c   : > { %v8679_v52 = vadd.f32 %v8647_v16, %v14697_v34 }
 0x39e   : > { %8711 = vst [vmem:[%s14690_s27 + $0xf8] sm:$0xff] %v8679_v52 }
 0x39f   : > { %9388 = shalt.err (!%p9385_p5)
}
 0x3a0   : > { %s9443_s8 = smov 128   ;;  %s9444_s27 = smov 8  }
 0x3a1   : > { %8883 = dma.vmem_to_hbm [thread:$0]  (%p9520_p4), %s8726_s24, 4096, %s8728_s13, %s8713_s16, %s9443_s8, %s9443_s8, %s9444_s27  }
 0x3a2 PF: > { %p8889_p6 = scmp.ge.s32.totalorder %s9439_s26, 2  ;;  %s8742_s28 = sand.u32 1, %s9419_s21  }
 0x3a3   : > { %s8743_s11 = scalar_lea.sflag [#allocation9], %s8742_s28 }
 0x3a4   : > { %p8886_p7 = pnand %p8889_p6, %p9527_p8 }
 0x3a6   : > { %p8887_p9 = pneg %p8886_p7 }
 0x3a8   : > { %9414 = dma.done.wait (%p8887_p9), %s8743_s11, 4096  }
 0x3a9   : > { %9416 = vsyncadd (%p8887_p9), %s8743_s11, 4294963200  ;;  %s19_s26 = sadd.s32 1, %s9439_s26   ;;  %s16743_s21 = smov %s9423_s22 }
 0x3aa   : > { %p16_p10 = scmp.ge.s32.totalorder %s19_s26, 4   ;;  %s16744_s22 = smov %s9427_s23 }
 0x3ab   : > { %s16745_s23 = smov %s9533_s10  ;;  %s16746_s24 = smov %s9435_s25 }
 0x3ac   : > { %s16747_s25 = smov %s16749_s29  ;;  %18 = sbr.rel (!%p16_p10) target bundleno = 4 (0x4), region = 102 }
 0x3b1   :  { %8749 = vsyncpa [#allocation9], 1 }
 0x3b2   :  { %8751 = vsyncpa [#allocation9 + $0x1], 1 }

</bundles_post_ra>
